<compile_context>
chip_gen: v7x
topology: tpu7x:2x2x1
jax: 0.10.0
libtpu: 0.0.40
codegen_flags: <defaults>
</compile_context>

<pallas_src>
import functools

import jax
import jax.numpy as jnp
from jax.experimental import pallas as pl
from jax.experimental.pallas import tpu as pltpu


# ----------------------------- Pallas kernels -----------------------------

def _conv_bias_relu_kernel(x_ref, w_ref, b_ref, o_ref):
    # (tile_m, K)bf16 @ (K, Cout)bf16 -> f32 acc, + bias, ReLU, store bf16
    y = jnp.dot(x_ref[...], w_ref[...], preferred_element_type=jnp.float32)
    y = y + b_ref[...]
    o_ref[...] = jnp.maximum(y, 0.0).astype(o_ref.dtype)


def _conv1_shortcut_kernel(x_ref, w1_ref, b1_ref, wsc_ref, bsc_ref,
                           h_ref, sc_ref, *, c_off, c_len):
    # Fused BasicBlock conv1 (3x3) + projection shortcut (1x1) on the same
    # patch tile.  The 1x1 conv input is the centre tap of the 3x3 patches,
    # i.e. columns [4*cin_pad, 5*cin_pad) of x_ref (lane-aligned slice).
    h = jnp.dot(x_ref[...], w1_ref[...], preferred_element_type=jnp.float32)
    h = h + b1_ref[...]
    h_ref[...] = jnp.maximum(h, 0.0).astype(h_ref.dtype)

    xc = x_ref[:, c_off:c_off + c_len]  # static, 128-aligned slice of the tile
    sc = jnp.dot(xc, wsc_ref[...], preferred_element_type=jnp.float32)
    sc_ref[...] = (sc + bsc_ref[...]).astype(sc_ref.dtype)


def _conv_res_relu_kernel(x_ref, w_ref, b_ref, r_ref, o_ref):
    # BasicBlock conv2: matmul + bias + residual add (bf16 residual cast
    # in-kernel) + ReLU, store bf16.
    y = jnp.dot(x_ref[...], w_ref[...], preferred_element_type=jnp.float32)
    y = y + b_ref[...] + r_ref[...].astype(jnp.float32)
    o_ref[...] = jnp.maximum(y, 0.0).astype(o_ref.dtype)


# ----------------------------- call wrappers -------------------------------

def _compiler_params():
    return pltpu.CompilerParams(
        dimension_semantics=("parallel",),
        vmem_limit_bytes=32 * 1024 * 1024,
    )


def _pick_tile_m(m):
    """Largest tile that still leaves >=2 grid steps when M allows it."""
    if m >= 512:
        return 256
    half = m // 2
    if half >= 8 and half % 8 == 0:
        return half
    return m


def _conv_bn_relu(patches, w2d, bias):
    m, k = patches.shape
    cout = w2d.shape[1]
    tm = _pick_tile_m(m)
    assert m % tm == 0, (m, tm)
    return pl.pallas_call(
        _conv_bias_relu_kernel,
        out_shape=jax.ShapeDtypeStruct((m, cout), jnp.bfloat16),
        grid=(m // tm,),
        in_specs=[
            pl.BlockSpec((tm, k), lambda i: (i, 0)),      # patches tile (bf16)
            pl.BlockSpec((k, cout), lambda i: (0, 0)),    # BN-folded weight (bf16)
            pl.BlockSpec((1, cout), lambda i: (0, 0)),    # bias (f32)
        ],
        out_specs=pl.BlockSpec((tm, cout), lambda i: (i, 0)),
        compiler_params=_compiler_params(),
    )(patches, w2d, bias)


def _conv1_shortcut(patches, w1, b1, wsc, bsc, cin_pad):
    m, k = patches.shape
    cout = w1.shape[1]
    tm = _pick_tile_m(m)
    assert m % tm == 0, (m, tm)
    kernel = functools.partial(_conv1_shortcut_kernel,
                               c_off=4 * cin_pad, c_len=cin_pad)
    h, sc = pl.pallas_call(
        kernel,
        out_shape=(jax.ShapeDtypeStruct((m, cout), jnp.bfloat16),
                   jax.ShapeDtypeStruct((m, cout), jnp.bfloat16)),
        grid=(m // tm,),
        in_specs=[
            pl.BlockSpec((tm, k), lambda i: (i, 0)),          # 3x3 patches (bf16)
            pl.BlockSpec((k, cout), lambda i: (0, 0)),        # conv1 weight (bf16)
            pl.BlockSpec((1, cout), lambda i: (0, 0)),        # conv1 bias (f32)
            pl.BlockSpec((cin_pad, cout), lambda i: (0, 0)),  # shortcut weight (bf16)
            pl.BlockSpec((1, cout), lambda i: (0, 0)),        # shortcut bias (f32)
        ],
        out_specs=(pl.BlockSpec((tm, cout), lambda i: (i, 0)),
                   pl.BlockSpec((tm, cout), lambda i: (i, 0))),
        compiler_params=_compiler_params(),
    )(patches, w1, b1, wsc, bsc)
    return h, sc


def _conv_res_relu(patches, w2d, bias, residual):
    m, k = patches.shape
    cout = w2d.shape[1]
    tm = _pick_tile_m(m)
    assert m % tm == 0, (m, tm)
    return pl.pallas_call(
        _conv_res_relu_kernel,
        out_shape=jax.ShapeDtypeStruct((m, cout), jnp.bfloat16),
        grid=(m // tm,),
        in_specs=[
            pl.BlockSpec((tm, k), lambda i: (i, 0)),      # patches tile (bf16)
            pl.BlockSpec((k, cout), lambda i: (0, 0)),    # weight (bf16)
            pl.BlockSpec((1, cout), lambda i: (0, 0)),    # bias (f32)
            pl.BlockSpec((tm, cout), lambda i: (i, 0)),   # residual tile (bf16)
        ],
        out_specs=pl.BlockSpec((tm, cout), lambda i: (i, 0)),
        compiler_params=_compiler_params(),
    )(patches, w2d, bias, residual)


# ------------------------------ conv helpers -------------------------------

def _round_up(x, m):
    return (x + m - 1) // m * m


def _im2col(x, kh, kw, stride, pad):
    """x: NHWC (bf16) -> (N*Ho*Wo, kh*kw*C) patches (order: i, j, channel)."""
    n, h, w, c = x.shape
    xp = jnp.pad(x, ((0, 0), (pad, pad), (pad, pad), (0, 0)))
    ho = (h + 2 * pad - kh) // stride + 1
    wo = (w + 2 * pad - kw) // stride + 1
    cols = []
    for i in range(kh):
        for j in range(kw):
            cols.append(
                xp[:, i:i + (ho - 1) * stride + 1:stride,
                   j:j + (wo - 1) * stride + 1:stride, :]
            )
    cols = jnp.concatenate(cols, axis=-1)  # (N, Ho, Wo, kh*kw*C)
    return cols.reshape(n * ho * wo, kh * kw * c), (n, ho, wo)


def _prep_conv(w_hwio, scale, bias, cin_pad, cout_pad):
    """Fold BN scale into the weight, zero-pad cin/cout, return (bf16 W2d, f32 bias)."""
    kh, kw, cin, cout = w_hwio.shape
    w = w_hwio * scale.reshape(1, 1, 1, cout)                      # fold BN scale
    w = jnp.pad(w, ((0, 0), (0, 0), (0, cin_pad - cin), (0, cout_pad - cout)))
    w2d = w.reshape(kh * kw * cin_pad, cout_pad).astype(jnp.bfloat16)
    b2d = jnp.pad(bias, (0, cout_pad - cout)).reshape(1, cout_pad).astype(jnp.float32)
    return w2d, b2d


# ------------------------------ parameters --------------------------------

def _bn_fold(key, c, extra_bias=None, eps=1e-5):
    """Deterministic BN params folded into per-channel (scale, bias)."""
    k1, k2, k3, k4 = jax.random.split(key, 4)
    gamma = jax.random.uniform(k1, (c,), jnp.float32, 0.5, 1.5)
    beta = jax.random.normal(k2, (c,), jnp.float32) * 0.1
    mean = jax.random.normal(k3, (c,), jnp.float32) * 0.1
    var = jax.random.uniform(k4, (c,), jnp.float32, 0.5, 1.5)
    scale = gamma / jnp.sqrt(var + eps)
    bias = beta - scale * mean
    if extra_bias is not None:  # fold a conv bias through the BN
        bias = bias + scale * extra_bias
    return scale, bias


def init_backbone_params(key, in_channel=3):
    keys = iter(jax.random.split(key, 64))

    def conv_w(shape):
        return jax.random.normal(next(keys), shape, jnp.float32) * 0.05

    params = {}
    # stem: Conv2d(in_channel, 64, k=3, s=1, p=1, bias=True) + BN + ReLU
    w = conv_w((3, 3, in_channel, 64))
    cb = jax.random.normal(next(keys), (64,), jnp.float32) * 0.1
    s, b = _bn_fold(next(keys), 64, extra_bias=cb)
    params["stem"] = dict(w=w, s=s, b=b)

    # half=True, blocks_list=[1,1,1,1], BasicBlock: (in_planes, planes, stride)
    cfg = [(64, 32, 1), (32, 64, 2), (64, 128, 2), (128, 256, 2)]
    blocks = []
    for cin, p, stride in cfg:
        w1 = conv_w((3, 3, cin, p)); s1, b1 = _bn_fold(next(keys), p)
        w2 = conv_w((3, 3, p, p));   s2, b2 = _bn_fold(next(keys), p)
        # projection shortcut (always needed here: in_planes != planes)
        wsc = conv_w((1, 1, cin, p)); ssc, bsc = _bn_fold(next(keys), p)
        blocks.append(dict(w1=w1, s1=s1, b1=b1, w2=w2, s2=s2, b2=b2,
                           wsc=wsc, ssc=ssc, bsc=bsc, stride=stride))
    params["blocks"] = blocks
    return params


# -------------------------------- forward ---------------------------------

def resnet_backbone_forward(x_nchw, params):
    # NCHW -> NHWC, bf16 activations (MXU operands), channels padded to 128.
    x = jnp.transpose(x_nchw, (0, 2, 3, 1)).astype(jnp.bfloat16)

    # stem: conv3x3(s=1) + folded BN + ReLU
    st = params["stem"]
    cin = x.shape[-1]
    cout_pad = _round_up(st["w"].shape[-1], 128)
    w2d, b2d = _prep_conv(st["w"], st["s"], st["b"], cin, cout_pad)
    patches, (n, ho, wo) = _im2col(x, 3, 3, 1, 1)
    x = _conv_bn_relu(patches, w2d, b2d).reshape(n, ho, wo, cout_pad)

    for blk in params["blocks"]:
        cin_pad = x.shape[-1]                       # current padded channel count
        planes = blk["w1"].shape[-1]
        p_pad = _round_up(planes, 128)

        w1, b1 = _prep_conv(blk["w1"], blk["s1"], blk["b1"], cin_pad, p_pad)
        wsc, bsc = _prep_conv(blk["wsc"], blk["ssc"], blk["bsc"], cin_pad, p_pad)
        w2, b2 = _prep_conv(blk["w2"], blk["s2"], blk["b2"], p_pad, p_pad)

        # fused: conv1 3x3(stride)+BN+ReLU  and  shortcut 1x1(stride)+BN
        patches, (n, ho, wo) = _im2col(x, 3, 3, blk["stride"], 1)
        h2d, sc2d = _conv1_shortcut(patches, w1, b1, wsc, bsc, cin_pad)

        # conv2 3x3(1) + BN + residual add + ReLU (fused in kernel)
        patches2, _ = _im2col(h2d.reshape(n, ho, wo, p_pad), 3, 3, 1, 1)
        x = _conv_res_relu(patches2, w2, b2, sc2d).reshape(n, ho, wo, p_pad)

    real_out = params["blocks"][-1]["w2"].shape[-1]   # 256 (== padded width here)
    x = x[..., :real_out]
    return jnp.transpose(x, (0, 3, 1, 2)).astype(jnp.float32)  # NHWC -> NCHW


if __name__ == "__main__":
    key = jax.random.PRNGKey(0)
    kx, kp = jax.random.split(key)
    x = jax.random.normal(kx, (2, 3, 16, 16), jnp.float32)  # NCHW like PyTorch
    params = init_backbone_params(kp, in_channel=3)

    fwd = jax.jit(lambda inp: resnet_backbone_forward(inp, params))
    out = fwd(x)
    out = jax.block_until_ready(out)
    assert out.shape == (2, 256, 2, 2), out.shape
    assert out.dtype == jnp.float32
    print("KERNEL_OK")
</pallas_src>

<mosaic_0001>
module attributes {stable_mosaic.version = 11 : i64} {
  func.func @_conv_bias_relu_kernel(%arg0: i32, %arg1: memref<256x27xbf16, #tpu.memory_space<vmem>>, %arg2: memref<27x128xbf16, #tpu.memory_space<vmem>>, %arg3: memref<1x128xf32, #tpu.memory_space<vmem>>, %arg4: memref<256x128xbf16, #tpu.memory_space<vmem>>) attributes {dimension_semantics = [#tpu.dimension_semantics<parallel>], iteration_bounds = array<i64: 2>, scalar_prefetch = 0 : i64, scratch_operands = 0 : i64, tpu.core_type = #tpu.core_type<tc>, window_params = [{transform_indices = @transform_0, window_bounds = array<i64: 256, 27>}, {pipeline_mode = #tpu.pipeline_mode<synchronous>, transform_indices = @transform_1, window_bounds = array<i64: 27, 128>}, {pipeline_mode = #tpu.pipeline_mode<synchronous>, transform_indices = @transform_2, window_bounds = array<i64: 1, 128>}, {transform_indices = @transform_3, window_bounds = array<i64: 256, 128>}]} {
    %c0 = arith.constant 0 : index
    %c0_0 = arith.constant 0 : index
    %0 = vector.load %arg1[%c0, %c0_0] : memref<256x27xbf16, #tpu.memory_space<vmem>>, vector<256x27xbf16>
    %c0_1 = arith.constant 0 : index
    %c0_2 = arith.constant 0 : index
    %1 = vector.load %arg2[%c0_1, %c0_2] : memref<27x128xbf16, #tpu.memory_space<vmem>>, vector<27x128xbf16>
    %cst = arith.constant dense<0.000000e+00> : vector<256x128xf32>
    %2 = tpu.matmul %0, %1, %cst {dimension_numbers = #tpu.dot_dimension_numbers<[1], [0], [0], [1], [0, 0, 1, 1], [], []>} : vector<256x27xbf16>, vector<27x128xbf16>, vector<256x128xf32> -> vector<256x128xf32>
    %c0_3 = arith.constant 0 : index
    %c0_4 = arith.constant 0 : index
    %3 = vector.load %arg3[%c0_3, %c0_4] : memref<1x128xf32, #tpu.memory_space<vmem>>, vector<1x128xf32>
    %4 = vector.broadcast %3 : vector<1x128xf32> to vector<256x128xf32>
    %5 = arith.addf %2, %4 : vector<256x128xf32>
    %cst_5 = arith.constant 0.000000e+00 : f32
    %6 = vector.broadcast %cst_5 : f32 to vector<256x128xf32>
    %7 = arith.maximumf %5, %6 : vector<256x128xf32>
    %8 = arith.truncf %7 : vector<256x128xf32> to vector<256x128xbf16>
    %c0_6 = arith.constant 0 : index
    %c0_7 = arith.constant 0 : index
    %9 = vector.load %arg4[%c0_6, %c0_7] : memref<256x128xbf16, #tpu.memory_space<vmem>>, vector<256x128xbf16>
    tpu.vector_store %arg4[%c0_6, %c0_7], %8 {strides = array<i32>} : memref<256x128xbf16, #tpu.memory_space<vmem>>, vector<256x128xbf16>,
    return
  }
  func.func @transform_0(%arg0: i32) -> (i32, i32) {
    %c0_i32 = arith.constant 0 : i32
    %c0_i32_0 = arith.constant 0 : i32
    return %arg0, %c0_i32 : i32, i32
  }
  func.func @transform_1(%arg0: i32) -> (i32, i32) {
    %c0_i32 = arith.constant 0 : i32
    %c0_i32_0 = arith.constant 0 : i32
    %c0_i32_1 = arith.constant 0 : i32
    return %c0_i32, %c0_i32_0 : i32, i32
  }
  func.func @transform_2(%arg0: i32) -> (i32, i32) {
    %c0_i32 = arith.constant 0 : i32
    %c0_i32_0 = arith.constant 0 : i32
    %c0_i32_1 = arith.constant 0 : i32
    return %c0_i32, %c0_i32_0 : i32, i32
  }
  func.func @transform_3(%arg0: i32) -> (i32, i32) {
    %c0_i32 = arith.constant 0 : i32
    %c0_i32_0 = arith.constant 0 : i32
    return %arg0, %c0_i32 : i32, i32
  }
}

module attributes {stable_mosaic.version = 11 : i64} {
  func.func @_conv_res_relu_kernel(%arg0: i32, %arg1: memref<256x1152xbf16, #tpu.memory_space<vmem>>, %arg2: memref<1152x128xbf16, #tpu.memory_space<vmem>>, %arg3: memref<1x128xf32, #tpu.memory_space<vmem>>, %arg4: memref<256x128xbf16, #tpu.memory_space<vmem>>, %arg5: memref<256x128xbf16, #tpu.memory_space<vmem>>) attributes {dimension_semantics = [#tpu.dimension_semantics<parallel>], iteration_bounds = array<i64: 2>, scalar_prefetch = 0 : i64, scratch_operands = 0 : i64, tpu.core_type = #tpu.core_type<tc>, window_params = [{transform_indices = @transform_0, window_bounds = array<i64: 256, 1152>}, {pipeline_mode = #tpu.pipeline_mode<synchronous>, transform_indices = @transform_1, window_bounds = array<i64: 1152, 128>}, {pipeline_mode = #tpu.pipeline_mode<synchronous>, transform_indices = @transform_2, window_bounds = array<i64: 1, 128>}, {transform_indices = @transform_3, window_bounds = array<i64: 256, 128>}, {transform_indices = @transform_4, window_bounds = array<i64: 256, 128>}]} {
    %c0 = arith.constant 0 : index
    %c0_0 = arith.constant 0 : index
    %0 = vector.load %arg1[%c0, %c0_0] : memref<256x1152xbf16, #tpu.memory_space<vmem>>, vector<256x1152xbf16>
    %c0_1 = arith.constant 0 : index
    %c0_2 = arith.constant 0 : index
    %1 = vector.load %arg2[%c0_1, %c0_2] : memref<1152x128xbf16, #tpu.memory_space<vmem>>, vector<1152x128xbf16>
    %cst = arith.constant dense<0.000000e+00> : vector<256x128xf32>
    %2 = tpu.matmul %0, %1, %cst {dimension_numbers = #tpu.dot_dimension_numbers<[1], [0], [0], [1], [0, 0, 1, 1], [], []>} : vector<256x1152xbf16>, vector<1152x128xbf16>, vector<256x128xf32> -> vector<256x128xf32>
    %c0_3 = arith.constant 0 : index
    %c0_4 = arith.constant 0 : index
    %3 = vector.load %arg3[%c0_3, %c0_4] : memref<1x128xf32, #tpu.memory_space<vmem>>, vector<1x128xf32>
    %4 = vector.broadcast %3 : vector<1x128xf32> to vector<256x128xf32>
    %5 = arith.addf %2, %4 : vector<256x128xf32>
    %c0_5 = arith.constant 0 : index
    %c0_6 = arith.constant 0 : index
    %6 = vector.load %arg4[%c0_5, %c0_6] : memref<256x128xbf16, #tpu.memory_space<vmem>>, vector<256x128xbf16>
    %7 = arith.extf %6 : vector<256x128xbf16> to vector<256x128xf32>
    %8 = arith.addf %5, %7 : vector<256x128xf32>
    %cst_7 = arith.constant 0.000000e+00 : f32
    %9 = vector.broadcast %cst_7 : f32 to vector<256x128xf32>
    %10 = arith.maximumf %8, %9 : vector<256x128xf32>
    %11 = arith.truncf %10 : vector<256x128xf32> to vector<256x128xbf16>
    %c0_8 = arith.constant 0 : index
    %c0_9 = arith.constant 0 : index
    %12 = vector.load %arg5[%c0_8, %c0_9] : memref<256x128xbf16, #tpu.memory_space<vmem>>, vector<256x128xbf16>
    tpu.vector_store %arg5[%c0_8, %c0_9], %11 {strides = array<i32>} : memref<256x128xbf16, #tpu.memory_space<vmem>>, vector<256x128xbf16>,
    return
  }
  func.func @transform_0(%arg0: i32) -> (i32, i32) {
    %c0_i32 = arith.constant 0 : i32
    %c0_i32_0 = arith.constant 0 : i32
    return %arg0, %c0_i32 : i32, i32
  }
  func.func @transform_1(%arg0: i32) -> (i32, i32) {
    %c0_i32 = arith.constant 0 : i32
    %c0_i32_0 = arith.constant 0 : i32
    %c0_i32_1 = arith.constant 0 : i32
    return %c0_i32, %c0_i32_0 : i32, i32
  }
  func.func @transform_2(%arg0: i32) -> (i32, i32) {
    %c0_i32 = arith.constant 0 : i32
    %c0_i32_0 = arith.constant 0 : i32
    %c0_i32_1 = arith.constant 0 : i32
    return %c0_i32, %c0_i32_0 : i32, i32
  }
  func.func @transform_3(%arg0: i32) -> (i32, i32) {
    %c0_i32 = arith.constant 0 : i32
    %c0_i32_0 = arith.constant 0 : i32
    return %arg0, %c0_i32 : i32, i32
  }
  func.func @transform_4(%arg0: i32) -> (i32, i32) {
    %c0_i32 = arith.constant 0 : i32
    %c0_i32_0 = arith.constant 0 : i32
    return %arg0, %c0_i32 : i32, i32
  }
}

module attributes {stable_mosaic.version = 11 : i64} {
  func.func @_conv1_shortcut_kernel(%arg0: i32, %arg1: memref<256x1152xbf16, #tpu.memory_space<vmem>>, %arg2: memref<1152x128xbf16, #tpu.memory_space<vmem>>, %arg3: memref<1x128xf32, #tpu.memory_space<vmem>>, %arg4: memref<128x128xbf16, #tpu.memory_space<vmem>>, %arg5: memref<1x128xf32, #tpu.memory_space<vmem>>, %arg6: memref<256x128xbf16, #tpu.memory_space<vmem>>, %arg7: memref<256x128xbf16, #tpu.memory_space<vmem>>) attributes {dimension_semantics = [#tpu.dimension_semantics<parallel>], iteration_bounds = array<i64: 2>, scalar_prefetch = 0 : i64, scratch_operands = 0 : i64, tpu.core_type = #tpu.core_type<tc>, window_params = [{transform_indices = @transform_0, window_bounds = array<i64: 256, 1152>}, {pipeline_mode = #tpu.pipeline_mode<synchronous>, transform_indices = @transform_1, window_bounds = array<i64: 1152, 128>}, {pipeline_mode = #tpu.pipeline_mode<synchronous>, transform_indices = @transform_2, window_bounds = array<i64: 1, 128>}, {pipeline_mode = #tpu.pipeline_mode<synchronous>, transform_indices = @transform_3, window_bounds = array<i64: 128, 128>}, {pipeline_mode = #tpu.pipeline_mode<synchronous>, transform_indices = @transform_4, window_bounds = array<i64: 1, 128>}, {transform_indices = @transform_5, window_bounds = array<i64: 256, 128>}, {transform_indices = @transform_6, window_bounds = array<i64: 256, 128>}]} {
    %c0 = arith.constant 0 : index
    %c0_0 = arith.constant 0 : index
    %0 = vector.load %arg1[%c0, %c0_0] : memref<256x1152xbf16, #tpu.memory_space<vmem>>, vector<256x1152xbf16>
    %c0_1 = arith.constant 0 : index
    %c0_2 = arith.constant 0 : index
    %1 = vector.load %arg2[%c0_1, %c0_2] : memref<1152x128xbf16, #tpu.memory_space<vmem>>, vector<1152x128xbf16>
    %cst = arith.constant dense<0.000000e+00> : vector<256x128xf32>
    %2 = tpu.matmul %0, %1, %cst {dimension_numbers = #tpu.dot_dimension_numbers<[1], [0], [0], [1], [0, 0, 1, 1], [], []>} : vector<256x1152xbf16>, vector<1152x128xbf16>, vector<256x128xf32> -> vector<256x128xf32>
    %c0_3 = arith.constant 0 : index
    %c0_4 = arith.constant 0 : index
    %3 = vector.load %arg3[%c0_3, %c0_4] : memref<1x128xf32, #tpu.memory_space<vmem>>, vector<1x128xf32>
    %4 = vector.broadcast %3 : vector<1x128xf32> to vector<256x128xf32>
    %5 = arith.addf %2, %4 : vector<256x128xf32>
    %cst_5 = arith.constant 0.000000e+00 : f32
    %6 = vector.broadcast %cst_5 : f32 to vector<256x128xf32>
    %7 = arith.maximumf %5, %6 : vector<256x128xf32>
    %8 = arith.truncf %7 : vector<256x128xf32> to vector<256x128xbf16>
    %c0_6 = arith.constant 0 : index
    %c0_7 = arith.constant 0 : index
    %9 = vector.load %arg6[%c0_6, %c0_7] : memref<256x128xbf16, #tpu.memory_space<vmem>>, vector<256x128xbf16>
    tpu.vector_store %arg6[%c0_6, %c0_7], %8 {strides = array<i32>} : memref<256x128xbf16, #tpu.memory_space<vmem>>, vector<256x128xbf16>,
    %c0_8 = arith.constant 0 : index
    %c512 = arith.constant 512 : index
    %10 = vector.load %arg1[%c0_8, %c512] : memref<256x1152xbf16, #tpu.memory_space<vmem>>, vector<256x128xbf16>
    %c0_9 = arith.constant 0 : index
    %c0_10 = arith.constant 0 : index
    %11 = vector.load %arg4[%c0_9, %c0_10] : memref<128x128xbf16, #tpu.memory_space<vmem>>, vector<128x128xbf16>
    %cst_11 = arith.constant dense<0.000000e+00> : vector<256x128xf32>
    %12 = tpu.matmul %10, %11, %cst_11 {dimension_numbers = #tpu.dot_dimension_numbers<[1], [0], [0], [1], [0, 0, 1, 1], [], []>} : vector<256x128xbf16>, vector<128x128xbf16>, vector<256x128xf32> -> vector<256x128xf32>
    %c0_12 = arith.constant 0 : index
    %c0_13 = arith.constant 0 : index
    %13 = vector.load %arg5[%c0_12, %c0_13] : memref<1x128xf32, #tpu.memory_space<vmem>>, vector<1x128xf32>
    %14 = vector.broadcast %13 : vector<1x128xf32> to vector<256x128xf32>
    %15 = arith.addf %12, %14 : vector<256x128xf32>
    %16 = arith.truncf %15 : vector<256x128xf32> to vector<256x128xbf16>
    %c0_14 = arith.constant 0 : index
    %c0_15 = arith.constant 0 : index
    %17 = vector.load %arg7[%c0_14, %c0_15] : memref<256x128xbf16, #tpu.memory_space<vmem>>, vector<256x128xbf16>
    tpu.vector_store %arg7[%c0_14, %c0_15], %16 {strides = array<i32>} : memref<256x128xbf16, #tpu.memory_space<vmem>>, vector<256x128xbf16>,
    return
  }
  func.func @transform_0(%arg0: i32) -> (i32, i32) {
    %c0_i32 = arith.constant 0 : i32
    %c0_i32_0 = arith.constant 0 : i32
    return %arg0, %c0_i32 : i32, i32
  }
  func.func @transform_1(%arg0: i32) -> (i32, i32) {
    %c0_i32 = arith.constant 0 : i32
    %c0_i32_0 = arith.constant 0 : i32
    %c0_i32_1 = arith.constant 0 : i32
    return %c0_i32, %c0_i32_0 : i32, i32
  }
  func.func @transform_2(%arg0: i32) -> (i32, i32) {
    %c0_i32 = arith.constant 0 : i32
    %c0_i32_0 = arith.constant 0 : i32
    %c0_i32_1 = arith.constant 0 : i32
    return %c0_i32, %c0_i32_0 : i32, i32
  }
  func.func @transform_3(%arg0: i32) -> (i32, i32) {
    %c0_i32 = arith.constant 0 : i32
    %c0_i32_0 = arith.constant 0 : i32
    %c0_i32_1 = arith.constant 0 : i32
    return %c0_i32, %c0_i32_0 : i32, i32
  }
  func.func @transform_4(%arg0: i32) -> (i32, i32) {
    %c0_i32 = arith.constant 0 : i32
    %c0_i32_0 = arith.constant 0 : i32
    %c0_i32_1 = arith.constant 0 : i32
    return %c0_i32, %c0_i32_0 : i32, i32
  }
  func.func @transform_5(%arg0: i32) -> (i32, i32) {
    %c0_i32 = arith.constant 0 : i32
    %c0_i32_0 = arith.constant 0 : i32
    return %arg0, %c0_i32 : i32, i32
  }
  func.func @transform_6(%arg0: i32) -> (i32, i32) {
    %c0_i32 = arith.constant 0 : i32
    %c0_i32_0 = arith.constant 0 : i32
    return %arg0, %c0_i32 : i32, i32
  }
}

module attributes {stable_mosaic.version = 11 : i64} {
  func.func @_conv1_shortcut_kernel(%arg0: i32, %arg1: memref<64x1152xbf16, #tpu.memory_space<vmem>>, %arg2: memref<1152x128xbf16, #tpu.memory_space<vmem>>, %arg3: memref<1x128xf32, #tpu.memory_space<vmem>>, %arg4: memref<128x128xbf16, #tpu.memory_space<vmem>>, %arg5: memref<1x128xf32, #tpu.memory_space<vmem>>, %arg6: memref<64x128xbf16, #tpu.memory_space<vmem>>, %arg7: memref<64x128xbf16, #tpu.memory_space<vmem>>) attributes {dimension_semantics = [#tpu.dimension_semantics<parallel>], iteration_bounds = array<i64: 2>, scalar_prefetch = 0 : i64, scratch_operands = 0 : i64, tpu.core_type = #tpu.core_type<tc>, window_params = [{transform_indices = @transform_0, window_bounds = array<i64: 64, 1152>}, {pipeline_mode = #tpu.pipeline_mode<synchronous>, transform_indices = @transform_1, window_bounds = array<i64: 1152, 128>}, {pipeline_mode = #tpu.pipeline_mode<synchronous>, transform_indices = @transform_2, window_bounds = array<i64: 1, 128>}, {pipeline_mode = #tpu.pipeline_mode<synchronous>, transform_indices = @transform_3, window_bounds = array<i64: 128, 128>}, {pipeline_mode = #tpu.pipeline_mode<synchronous>, transform_indices = @transform_4, window_bounds = array<i64: 1, 128>}, {transform_indices = @transform_5, window_bounds = array<i64: 64, 128>}, {transform_indices = @transform_6, window_bounds = array<i64: 64, 128>}]} {
    %c0 = arith.constant 0 : index
    %c0_0 = arith.constant 0 : index
    %0 = vector.load %arg1[%c0, %c0_0] : memref<64x1152xbf16, #tpu.memory_space<vmem>>, vector<64x1152xbf16>
    %c0_1 = arith.constant 0 : index
    %c0_2 = arith.constant 0 : index
    %1 = vector.load %arg2[%c0_1, %c0_2] : memref<1152x128xbf16, #tpu.memory_space<vmem>>, vector<1152x128xbf16>
    %cst = arith.constant dense<0.000000e+00> : vector<64x128xf32>
    %2 = tpu.matmul %0, %1, %cst {dimension_numbers = #tpu.dot_dimension_numbers<[1], [0], [0], [1], [0, 0, 1, 1], [], []>} : vector<64x1152xbf16>, vector<1152x128xbf16>, vector<64x128xf32> -> vector<64x128xf32>
    %c0_3 = arith.constant 0 : index
    %c0_4 = arith.constant 0 : index
    %3 = vector.load %arg3[%c0_3, %c0_4] : memref<1x128xf32, #tpu.memory_space<vmem>>, vector<1x128xf32>
    %4 = vector.broadcast %3 : vector<1x128xf32> to vector<64x128xf32>
    %5 = arith.addf %2, %4 : vector<64x128xf32>
    %cst_5 = arith.constant 0.000000e+00 : f32
    %6 = vector.broadcast %cst_5 : f32 to vector<64x128xf32>
    %7 = arith.maximumf %5, %6 : vector<64x128xf32>
    %8 = arith.truncf %7 : vector<64x128xf32> to vector<64x128xbf16>
    %c0_6 = arith.constant 0 : index
    %c0_7 = arith.constant 0 : index
    %9 = vector.load %arg6[%c0_6, %c0_7] : memref<64x128xbf16, #tpu.memory_space<vmem>>, vector<64x128xbf16>
    tpu.vector_store %arg6[%c0_6, %c0_7], %8 {strides = array<i32>} : memref<64x128xbf16, #tpu.memory_space<vmem>>, vector<64x128xbf16>,
    %c0_8 = arith.constant 0 : index
    %c512 = arith.constant 512 : index
    %10 = vector.load %arg1[%c0_8, %c512] : memref<64x1152xbf16, #tpu.memory_space<vmem>>, vector<64x128xbf16>
    %c0_9 = arith.constant 0 : index
    %c0_10 = arith.constant 0 : index
    %11 = vector.load %arg4[%c0_9, %c0_10] : memref<128x128xbf16, #tpu.memory_space<vmem>>, vector<128x128xbf16>
    %cst_11 = arith.constant dense<0.000000e+00> : vector<64x128xf32>
    %12 = tpu.matmul %10, %11, %cst_11 {dimension_numbers = #tpu.dot_dimension_numbers<[1], [0], [0], [1], [0, 0, 1, 1], [], []>} : vector<64x128xbf16>, vector<128x128xbf16>, vector<64x128xf32> -> vector<64x128xf32>
    %c0_12 = arith.constant 0 : index
    %c0_13 = arith.constant 0 : index
    %13 = vector.load %arg5[%c0_12, %c0_13] : memref<1x128xf32, #tpu.memory_space<vmem>>, vector<1x128xf32>
    %14 = vector.broadcast %13 : vector<1x128xf32> to vector<64x128xf32>
    %15 = arith.addf %12, %14 : vector<64x128xf32>
    %16 = arith.truncf %15 : vector<64x128xf32> to vector<64x128xbf16>
    %c0_14 = arith.constant 0 : index
    %c0_15 = arith.constant 0 : index
    %17 = vector.load %arg7[%c0_14, %c0_15] : memref<64x128xbf16, #tpu.memory_space<vmem>>, vector<64x128xbf16>
    tpu.vector_store %arg7[%c0_14, %c0_15], %16 {strides = array<i32>} : memref<64x128xbf16, #tpu.memory_space<vmem>>, vector<64x128xbf16>,
    return
  }
  func.func @transform_0(%arg0: i32) -> (i32, i32) {
    %c0_i32 = arith.constant 0 : i32
    %c0_i32_0 = arith.constant 0 : i32
    return %arg0, %c0_i32 : i32, i32
  }
  func.func @transform_1(%arg0: i32) -> (i32, i32) {
    %c0_i32 = arith.constant 0 : i32
    %c0_i32_0 = arith.constant 0 : i32
    %c0_i32_1 = arith.constant 0 : i32
    return %c0_i32, %c0_i32_0 : i32, i32
  }
  func.func @transform_2(%arg0: i32) -> (i32, i32) {
    %c0_i32 = arith.constant 0 : i32
    %c0_i32_0 = arith.constant 0 : i32
    %c0_i32_1 = arith.constant 0 : i32
    return %c0_i32, %c0_i32_0 : i32, i32
  }
  func.func @transform_3(%arg0: i32) -> (i32, i32) {
    %c0_i32 = arith.constant 0 : i32
    %c0_i32_0 = arith.constant 0 : i32
    %c0_i32_1 = arith.constant 0 : i32
    return %c0_i32, %c0_i32_0 : i32, i32
  }
  func.func @transform_4(%arg0: i32) -> (i32, i32) {
    %c0_i32 = arith.constant 0 : i32
    %c0_i32_0 = arith.constant 0 : i32
    %c0_i32_1 = arith.constant 0 : i32
    return %c0_i32, %c0_i32_0 : i32, i32
  }
  func.func @transform_5(%arg0: i32) -> (i32, i32) {
    %c0_i32 = arith.constant 0 : i32
    %c0_i32_0 = arith.constant 0 : i32
    return %arg0, %c0_i32 : i32, i32
  }
  func.func @transform_6(%arg0: i32) -> (i32, i32) {
    %c0_i32 = arith.constant 0 : i32
    %c0_i32_0 = arith.constant 0 : i32
    return %arg0, %c0_i32 : i32, i32
  }
}

module attributes {stable_mosaic.version = 11 : i64} {
  func.func @_conv_res_relu_kernel(%arg0: i32, %arg1: memref<64x1152xbf16, #tpu.memory_space<vmem>>, %arg2: memref<1152x128xbf16, #tpu.memory_space<vmem>>, %arg3: memref<1x128xf32, #tpu.memory_space<vmem>>, %arg4: memref<64x128xbf16, #tpu.memory_space<vmem>>, %arg5: memref<64x128xbf16, #tpu.memory_space<vmem>>) attributes {dimension_semantics = [#tpu.dimension_semantics<parallel>], iteration_bounds = array<i64: 2>, scalar_prefetch = 0 : i64, scratch_operands = 0 : i64, tpu.core_type = #tpu.core_type<tc>, window_params = [{transform_indices = @transform_0, window_bounds = array<i64: 64, 1152>}, {pipeline_mode = #tpu.pipeline_mode<synchronous>, transform_indices = @transform_1, window_bounds = array<i64: 1152, 128>}, {pipeline_mode = #tpu.pipeline_mode<synchronous>, transform_indices = @transform_2, window_bounds = array<i64: 1, 128>}, {transform_indices = @transform_3, window_bounds = array<i64: 64, 128>}, {transform_indices = @transform_4, window_bounds = array<i64: 64, 128>}]} {
    %c0 = arith.constant 0 : index
    %c0_0 = arith.constant 0 : index
    %0 = vector.load %arg1[%c0, %c0_0] : memref<64x1152xbf16, #tpu.memory_space<vmem>>, vector<64x1152xbf16>
    %c0_1 = arith.constant 0 : index
    %c0_2 = arith.constant 0 : index
    %1 = vector.load %arg2[%c0_1, %c0_2] : memref<1152x128xbf16, #tpu.memory_space<vmem>>, vector<1152x128xbf16>
    %cst = arith.constant dense<0.000000e+00> : vector<64x128xf32>
    %2 = tpu.matmul %0, %1, %cst {dimension_numbers = #tpu.dot_dimension_numbers<[1], [0], [0], [1], [0, 0, 1, 1], [], []>} : vector<64x1152xbf16>, vector<1152x128xbf16>, vector<64x128xf32> -> vector<64x128xf32>
    %c0_3 = arith.constant 0 : index
    %c0_4 = arith.constant 0 : index
    %3 = vector.load %arg3[%c0_3, %c0_4] : memref<1x128xf32, #tpu.memory_space<vmem>>, vector<1x128xf32>
    %4 = vector.broadcast %3 : vector<1x128xf32> to vector<64x128xf32>
    %5 = arith.addf %2, %4 : vector<64x128xf32>
    %c0_5 = arith.constant 0 : index
    %c0_6 = arith.constant 0 : index
    %6 = vector.load %arg4[%c0_5, %c0_6] : memref<64x128xbf16, #tpu.memory_space<vmem>>, vector<64x128xbf16>
    %7 = arith.extf %6 : vector<64x128xbf16> to vector<64x128xf32>
    %8 = arith.addf %5, %7 : vector<64x128xf32>
    %cst_7 = arith.constant 0.000000e+00 : f32
    %9 = vector.broadcast %cst_7 : f32 to vector<64x128xf32>
    %10 = arith.maximumf %8, %9 : vector<64x128xf32>
    %11 = arith.truncf %10 : vector<64x128xf32> to vector<64x128xbf16>
    %c0_8 = arith.constant 0 : index
    %c0_9 = arith.constant 0 : index
    %12 = vector.load %arg5[%c0_8, %c0_9] : memref<64x128xbf16, #tpu.memory_space<vmem>>, vector<64x128xbf16>
    tpu.vector_store %arg5[%c0_8, %c0_9], %11 {strides = array<i32>} : memref<64x128xbf16, #tpu.memory_space<vmem>>, vector<64x128xbf16>,
    return
  }
  func.func @transform_0(%arg0: i32) -> (i32, i32) {
    %c0_i32 = arith.constant 0 : i32
    %c0_i32_0 = arith.constant 0 : i32
    return %arg0, %c0_i32 : i32, i32
  }
  func.func @transform_1(%arg0: i32) -> (i32, i32) {
    %c0_i32 = arith.constant 0 : i32
    %c0_i32_0 = arith.constant 0 : i32
    %c0_i32_1 = arith.constant 0 : i32
    return %c0_i32, %c0_i32_0 : i32, i32
  }
  func.func @transform_2(%arg0: i32) -> (i32, i32) {
    %c0_i32 = arith.constant 0 : i32
    %c0_i32_0 = arith.constant 0 : i32
    %c0_i32_1 = arith.constant 0 : i32
    return %c0_i32, %c0_i32_0 : i32, i32
  }
  func.func @transform_3(%arg0: i32) -> (i32, i32) {
    %c0_i32 = arith.constant 0 : i32
    %c0_i32_0 = arith.constant 0 : i32
    return %arg0, %c0_i32 : i32, i32
  }
  func.func @transform_4(%arg0: i32) -> (i32, i32) {
    %c0_i32 = arith.constant 0 : i32
    %c0_i32_0 = arith.constant 0 : i32
    return %arg0, %c0_i32 : i32, i32
  }
}

module attributes {stable_mosaic.version = 11 : i64} {
  func.func @_conv1_shortcut_kernel(%arg0: i32, %arg1: memref<16x1152xbf16, #tpu.memory_space<vmem>>, %arg2: memref<1152x128xbf16, #tpu.memory_space<vmem>>, %arg3: memref<1x128xf32, #tpu.memory_space<vmem>>, %arg4: memref<128x128xbf16, #tpu.memory_space<vmem>>, %arg5: memref<1x128xf32, #tpu.memory_space<vmem>>, %arg6: memref<16x128xbf16, #tpu.memory_space<vmem>>, %arg7: memref<16x128xbf16, #tpu.memory_space<vmem>>) attributes {dimension_semantics = [#tpu.dimension_semantics<parallel>], iteration_bounds = array<i64: 2>, scalar_prefetch = 0 : i64, scratch_operands = 0 : i64, tpu.core_type = #tpu.core_type<tc>, window_params = [{transform_indices = @transform_0, window_bounds = array<i64: 16, 1152>}, {pipeline_mode = #tpu.pipeline_mode<synchronous>, transform_indices = @transform_1, window_bounds = array<i64: 1152, 128>}, {pipeline_mode = #tpu.pipeline_mode<synchronous>, transform_indices = @transform_2, window_bounds = array<i64: 1, 128>}, {pipeline_mode = #tpu.pipeline_mode<synchronous>, transform_indices = @transform_3, window_bounds = array<i64: 128, 128>}, {pipeline_mode = #tpu.pipeline_mode<synchronous>, transform_indices = @transform_4, window_bounds = array<i64: 1, 128>}, {transform_indices = @transform_5, window_bounds = array<i64: 16, 128>}, {transform_indices = @transform_6, window_bounds = array<i64: 16, 128>}]} {
    %c0 = arith.constant 0 : index
    %c0_0 = arith.constant 0 : index
    %0 = vector.load %arg1[%c0, %c0_0] : memref<16x1152xbf16, #tpu.memory_space<vmem>>, vector<16x1152xbf16>
    %c0_1 = arith.constant 0 : index
    %c0_2 = arith.constant 0 : index
    %1 = vector.load %arg2[%c0_1, %c0_2] : memref<1152x128xbf16, #tpu.memory_space<vmem>>, vector<1152x128xbf16>
    %cst = arith.constant dense<0.000000e+00> : vector<16x128xf32>
    %2 = tpu.matmul %0, %1, %cst {dimension_numbers = #tpu.dot_dimension_numbers<[1], [0], [0], [1], [0, 0, 1, 1], [], []>} : vector<16x1152xbf16>, vector<1152x128xbf16>, vector<16x128xf32> -> vector<16x128xf32>
    %c0_3 = arith.constant 0 : index
    %c0_4 = arith.constant 0 : index
    %3 = vector.load %arg3[%c0_3, %c0_4] : memref<1x128xf32, #tpu.memory_space<vmem>>, vector<1x128xf32>
    %4 = vector.broadcast %3 : vector<1x128xf32> to vector<16x128xf32>
    %5 = arith.addf %2, %4 : vector<16x128xf32>
    %cst_5 = arith.constant 0.000000e+00 : f32
    %6 = vector.broadcast %cst_5 : f32 to vector<16x128xf32>
    %7 = arith.maximumf %5, %6 : vector<16x128xf32>
    %8 = arith.truncf %7 : vector<16x128xf32> to vector<16x128xbf16>
    %c0_6 = arith.constant 0 : index
    %c0_7 = arith.constant 0 : index
    %9 = vector.load %arg6[%c0_6, %c0_7] : memref<16x128xbf16, #tpu.memory_space<vmem>>, vector<16x128xbf16>
    tpu.vector_store %arg6[%c0_6, %c0_7], %8 {strides = array<i32>} : memref<16x128xbf16, #tpu.memory_space<vmem>>, vector<16x128xbf16>,
    %c0_8 = arith.constant 0 : index
    %c512 = arith.constant 512 : index
    %10 = vector.load %arg1[%c0_8, %c512] : memref<16x1152xbf16, #tpu.memory_space<vmem>>, vector<16x128xbf16>
    %c0_9 = arith.constant 0 : index
    %c0_10 = arith.constant 0 : index
    %11 = vector.load %arg4[%c0_9, %c0_10] : memref<128x128xbf16, #tpu.memory_space<vmem>>, vector<128x128xbf16>
    %cst_11 = arith.constant dense<0.000000e+00> : vector<16x128xf32>
    %12 = tpu.matmul %10, %11, %cst_11 {dimension_numbers = #tpu.dot_dimension_numbers<[1], [0], [0], [1], [0, 0, 1, 1], [], []>} : vector<16x128xbf16>, vector<128x128xbf16>, vector<16x128xf32> -> vector<16x128xf32>
    %c0_12 = arith.constant 0 : index
    %c0_13 = arith.constant 0 : index
    %13 = vector.load %arg5[%c0_12, %c0_13] : memref<1x128xf32, #tpu.memory_space<vmem>>, vector<1x128xf32>
    %14 = vector.broadcast %13 : vector<1x128xf32> to vector<16x128xf32>
    %15 = arith.addf %12, %14 : vector<16x128xf32>
    %16 = arith.truncf %15 : vector<16x128xf32> to vector<16x128xbf16>
    %c0_14 = arith.constant 0 : index
    %c0_15 = arith.constant 0 : index
    %17 = vector.load %arg7[%c0_14, %c0_15] : memref<16x128xbf16, #tpu.memory_space<vmem>>, vector<16x128xbf16>
    tpu.vector_store %arg7[%c0_14, %c0_15], %16 {strides = array<i32>} : memref<16x128xbf16, #tpu.memory_space<vmem>>, vector<16x128xbf16>,
    return
  }
  func.func @transform_0(%arg0: i32) -> (i32, i32) {
    %c0_i32 = arith.constant 0 : i32
    %c0_i32_0 = arith.constant 0 : i32
    return %arg0, %c0_i32 : i32, i32
  }
  func.func @transform_1(%arg0: i32) -> (i32, i32) {
    %c0_i32 = arith.constant 0 : i32
    %c0_i32_0 = arith.constant 0 : i32
    %c0_i32_1 = arith.constant 0 : i32
    return %c0_i32, %c0_i32_0 : i32, i32
  }
  func.func @transform_2(%arg0: i32) -> (i32, i32) {
    %c0_i32 = arith.constant 0 : i32
    %c0_i32_0 = arith.constant 0 : i32
    %c0_i32_1 = arith.constant 0 : i32
    return %c0_i32, %c0_i32_0 : i32, i32
  }
  func.func @transform_3(%arg0: i32) -> (i32, i32) {
    %c0_i32 = arith.constant 0 : i32
    %c0_i32_0 = arith.constant 0 : i32
    %c0_i32_1 = arith.constant 0 : i32
    return %c0_i32, %c0_i32_0 : i32, i32
  }
  func.func @transform_4(%arg0: i32) -> (i32, i32) {
    %c0_i32 = arith.constant 0 : i32
    %c0_i32_0 = arith.constant 0 : i32
    %c0_i32_1 = arith.constant 0 : i32
    return %c0_i32, %c0_i32_0 : i32, i32
  }
  func.func @transform_5(%arg0: i32) -> (i32, i32) {
    %c0_i32 = arith.constant 0 : i32
    %c0_i32_0 = arith.constant 0 : i32
    return %arg0, %c0_i32 : i32, i32
  }
  func.func @transform_6(%arg0: i32) -> (i32, i32) {
    %c0_i32 = arith.constant 0 : i32
    %c0_i32_0 = arith.constant 0 : i32
    return %arg0, %c0_i32 : i32, i32
  }
}

module attributes {stable_mosaic.version = 11 : i64} {
  func.func @_conv_res_relu_kernel(%arg0: i32, %arg1: memref<16x1152xbf16, #tpu.memory_space<vmem>>, %arg2: memref<1152x128xbf16, #tpu.memory_space<vmem>>, %arg3: memref<1x128xf32, #tpu.memory_space<vmem>>, %arg4: memref<16x128xbf16, #tpu.memory_space<vmem>>, %arg5: memref<16x128xbf16, #tpu.memory_space<vmem>>) attributes {dimension_semantics = [#tpu.dimension_semantics<parallel>], iteration_bounds = array<i64: 2>, scalar_prefetch = 0 : i64, scratch_operands = 0 : i64, tpu.core_type = #tpu.core_type<tc>, window_params = [{transform_indices = @transform_0, window_bounds = array<i64: 16, 1152>}, {pipeline_mode = #tpu.pipeline_mode<synchronous>, transform_indices = @transform_1, window_bounds = array<i64: 1152, 128>}, {pipeline_mode = #tpu.pipeline_mode<synchronous>, transform_indices = @transform_2, window_bounds = array<i64: 1, 128>}, {transform_indices = @transform_3, window_bounds = array<i64: 16, 128>}, {transform_indices = @transform_4, window_bounds = array<i64: 16, 128>}]} {
    %c0 = arith.constant 0 : index
    %c0_0 = arith.constant 0 : index
    %0 = vector.load %arg1[%c0, %c0_0] : memref<16x1152xbf16, #tpu.memory_space<vmem>>, vector<16x1152xbf16>
    %c0_1 = arith.constant 0 : index
    %c0_2 = arith.constant 0 : index
    %1 = vector.load %arg2[%c0_1, %c0_2] : memref<1152x128xbf16, #tpu.memory_space<vmem>>, vector<1152x128xbf16>
    %cst = arith.constant dense<0.000000e+00> : vector<16x128xf32>
    %2 = tpu.matmul %0, %1, %cst {dimension_numbers = #tpu.dot_dimension_numbers<[1], [0], [0], [1], [0, 0, 1, 1], [], []>} : vector<16x1152xbf16>, vector<1152x128xbf16>, vector<16x128xf32> -> vector<16x128xf32>
    %c0_3 = arith.constant 0 : index
    %c0_4 = arith.constant 0 : index
    %3 = vector.load %arg3[%c0_3, %c0_4] : memref<1x128xf32, #tpu.memory_space<vmem>>, vector<1x128xf32>
    %4 = vector.broadcast %3 : vector<1x128xf32> to vector<16x128xf32>
    %5 = arith.addf %2, %4 : vector<16x128xf32>
    %c0_5 = arith.constant 0 : index
    %c0_6 = arith.constant 0 : index
    %6 = vector.load %arg4[%c0_5, %c0_6] : memref<16x128xbf16, #tpu.memory_space<vmem>>, vector<16x128xbf16>
    %7 = arith.extf %6 : vector<16x128xbf16> to vector<16x128xf32>
    %8 = arith.addf %5, %7 : vector<16x128xf32>
    %cst_7 = arith.constant 0.000000e+00 : f32
    %9 = vector.broadcast %cst_7 : f32 to vector<16x128xf32>
    %10 = arith.maximumf %8, %9 : vector<16x128xf32>
    %11 = arith.truncf %10 : vector<16x128xf32> to vector<16x128xbf16>
    %c0_8 = arith.constant 0 : index
    %c0_9 = arith.constant 0 : index
    %12 = vector.load %arg5[%c0_8, %c0_9] : memref<16x128xbf16, #tpu.memory_space<vmem>>, vector<16x128xbf16>
    tpu.vector_store %arg5[%c0_8, %c0_9], %11 {strides = array<i32>} : memref<16x128xbf16, #tpu.memory_space<vmem>>, vector<16x128xbf16>,
    return
  }
  func.func @transform_0(%arg0: i32) -> (i32, i32) {
    %c0_i32 = arith.constant 0 : i32
    %c0_i32_0 = arith.constant 0 : i32
    return %arg0, %c0_i32 : i32, i32
  }
  func.func @transform_1(%arg0: i32) -> (i32, i32) {
    %c0_i32 = arith.constant 0 : i32
    %c0_i32_0 = arith.constant 0 : i32
    %c0_i32_1 = arith.constant 0 : i32
    return %c0_i32, %c0_i32_0 : i32, i32
  }
  func.func @transform_2(%arg0: i32) -> (i32, i32) {
    %c0_i32 = arith.constant 0 : i32
    %c0_i32_0 = arith.constant 0 : i32
    %c0_i32_1 = arith.constant 0 : i32
    return %c0_i32, %c0_i32_0 : i32, i32
  }
  func.func @transform_3(%arg0: i32) -> (i32, i32) {
    %c0_i32 = arith.constant 0 : i32
    %c0_i32_0 = arith.constant 0 : i32
    return %arg0, %c0_i32 : i32, i32
  }
  func.func @transform_4(%arg0: i32) -> (i32, i32) {
    %c0_i32 = arith.constant 0 : i32
    %c0_i32_0 = arith.constant 0 : i32
    return %arg0, %c0_i32 : i32, i32
  }
}

module attributes {stable_mosaic.version = 11 : i64} {
  func.func @_conv1_shortcut_kernel(%arg0: i32, %arg1: memref<8x1152xbf16, #tpu.memory_space<vmem>>, %arg2: memref<1152x256xbf16, #tpu.memory_space<vmem>>, %arg3: memref<1x256xf32, #tpu.memory_space<vmem>>, %arg4: memref<128x256xbf16, #tpu.memory_space<vmem>>, %arg5: memref<1x256xf32, #tpu.memory_space<vmem>>, %arg6: memref<8x256xbf16, #tpu.memory_space<vmem>>, %arg7: memref<8x256xbf16, #tpu.memory_space<vmem>>) attributes {dimension_semantics = [#tpu.dimension_semantics<parallel>], iteration_bounds = array<i64: 1>, scalar_prefetch = 0 : i64, scratch_operands = 0 : i64, tpu.core_type = #tpu.core_type<tc>, window_params = [{transform_indices = @transform_0, window_bounds = array<i64: 8, 1152>}, {pipeline_mode = #tpu.pipeline_mode<synchronous>, transform_indices = @transform_1, window_bounds = array<i64: 1152, 256>}, {pipeline_mode = #tpu.pipeline_mode<synchronous>, transform_indices = @transform_2, window_bounds = array<i64: 1, 256>}, {pipeline_mode = #tpu.pipeline_mode<synchronous>, transform_indices = @transform_3, window_bounds = array<i64: 128, 256>}, {pipeline_mode = #tpu.pipeline_mode<synchronous>, transform_indices = @transform_4, window_bounds = array<i64: 1, 256>}, {transform_indices = @transform_5, window_bounds = array<i64: 8, 256>}, {transform_indices = @transform_6, window_bounds = array<i64: 8, 256>}]} {
    %c0 = arith.constant 0 : index
    %c0_0 = arith.constant 0 : index
    %0 = vector.load %arg1[%c0, %c0_0] : memref<8x1152xbf16, #tpu.memory_space<vmem>>, vector<8x1152xbf16>
    %c0_1 = arith.constant 0 : index
    %c0_2 = arith.constant 0 : index
    %1 = vector.load %arg2[%c0_1, %c0_2] : memref<1152x256xbf16, #tpu.memory_space<vmem>>, vector<1152x256xbf16>
    %cst = arith.constant dense<0.000000e+00> : vector<8x256xf32>
    %2 = tpu.matmul %0, %1, %cst {dimension_numbers = #tpu.dot_dimension_numbers<[1], [0], [0], [1], [0, 0, 1, 1], [], []>} : vector<8x1152xbf16>, vector<1152x256xbf16>, vector<8x256xf32> -> vector<8x256xf32>
    %c0_3 = arith.constant 0 : index
    %c0_4 = arith.constant 0 : index
    %3 = vector.load %arg3[%c0_3, %c0_4] : memref<1x256xf32, #tpu.memory_space<vmem>>, vector<1x256xf32>
    %4 = vector.broadcast %3 : vector<1x256xf32> to vector<8x256xf32>
    %5 = arith.addf %2, %4 : vector<8x256xf32>
    %cst_5 = arith.constant 0.000000e+00 : f32
    %6 = vector.broadcast %cst_5 : f32 to vector<8x256xf32>
    %7 = arith.maximumf %5, %6 : vector<8x256xf32>
    %8 = arith.truncf %7 : vector<8x256xf32> to vector<8x256xbf16>
    %c0_6 = arith.constant 0 : index
    %c0_7 = arith.constant 0 : index
    %9 = vector.load %arg6[%c0_6, %c0_7] : memref<8x256xbf16, #tpu.memory_space<vmem>>, vector<8x256xbf16>
    tpu.vector_store %arg6[%c0_6, %c0_7], %8 {strides = array<i32>} : memref<8x256xbf16, #tpu.memory_space<vmem>>, vector<8x256xbf16>,
    %c0_8 = arith.constant 0 : index
    %c512 = arith.constant 512 : index
    %10 = vector.load %arg1[%c0_8, %c512] : memref<8x1152xbf16, #tpu.memory_space<vmem>>, vector<8x128xbf16>
    %c0_9 = arith.constant 0 : index
    %c0_10 = arith.constant 0 : index
    %11 = vector.load %arg4[%c0_9, %c0_10] : memref<128x256xbf16, #tpu.memory_space<vmem>>, vector<128x256xbf16>
    %cst_11 = arith.constant dense<0.000000e+00> : vector<8x256xf32>
    %12 = tpu.matmul %10, %11, %cst_11 {dimension_numbers = #tpu.dot_dimension_numbers<[1], [0], [0], [1], [0, 0, 1, 1], [], []>} : vector<8x128xbf16>, vector<128x256xbf16>, vector<8x256xf32> -> vector<8x256xf32>
    %c0_12 = arith.constant 0 : index
    %c0_13 = arith.constant 0 : index
    %13 = vector.load %arg5[%c0_12, %c0_13] : memref<1x256xf32, #tpu.memory_space<vmem>>, vector<1x256xf32>
    %14 = vector.broadcast %13 : vector<1x256xf32> to vector<8x256xf32>
    %15 = arith.addf %12, %14 : vector<8x256xf32>
    %16 = arith.truncf %15 : vector<8x256xf32> to vector<8x256xbf16>
    %c0_14 = arith.constant 0 : index
    %c0_15 = arith.constant 0 : index
    %17 = vector.load %arg7[%c0_14, %c0_15] : memref<8x256xbf16, #tpu.memory_space<vmem>>, vector<8x256xbf16>
    tpu.vector_store %arg7[%c0_14, %c0_15], %16 {strides = array<i32>} : memref<8x256xbf16, #tpu.memory_space<vmem>>, vector<8x256xbf16>,
    return
  }
  func.func @transform_0(%arg0: i32) -> (i32, i32) {
    %c0_i32 = arith.constant 0 : i32
    %c0_i32_0 = arith.constant 0 : i32
    return %arg0, %c0_i32 : i32, i32
  }
  func.func @transform_1(%arg0: i32) -> (i32, i32) {
    %c0_i32 = arith.constant 0 : i32
    %c0_i32_0 = arith.constant 0 : i32
    %c0_i32_1 = arith.constant 0 : i32
    return %c0_i32, %c0_i32_0 : i32, i32
  }
  func.func @transform_2(%arg0: i32) -> (i32, i32) {
    %c0_i32 = arith.constant 0 : i32
    %c0_i32_0 = arith.constant 0 : i32
    %c0_i32_1 = arith.constant 0 : i32
    return %c0_i32, %c0_i32_0 : i32, i32
  }
  func.func @transform_3(%arg0: i32) -> (i32, i32) {
    %c0_i32 = arith.constant 0 : i32
    %c0_i32_0 = arith.constant 0 : i32
    %c0_i32_1 = arith.constant 0 : i32
    return %c0_i32, %c0_i32_0 : i32, i32
  }
  func.func @transform_4(%arg0: i32) -> (i32, i32) {
    %c0_i32 = arith.constant 0 : i32
    %c0_i32_0 = arith.constant 0 : i32
    %c0_i32_1 = arith.constant 0 : i32
    return %c0_i32, %c0_i32_0 : i32, i32
  }
  func.func @transform_5(%arg0: i32) -> (i32, i32) {
    %c0_i32 = arith.constant 0 : i32
    %c0_i32_0 = arith.constant 0 : i32
    return %arg0, %c0_i32 : i32, i32
  }
  func.func @transform_6(%arg0: i32) -> (i32, i32) {
    %c0_i32 = arith.constant 0 : i32
    %c0_i32_0 = arith.constant 0 : i32
    return %arg0, %c0_i32 : i32, i32
  }
}

module attributes {stable_mosaic.version = 11 : i64} {
  func.func @_conv_res_relu_kernel(%arg0: i32, %arg1: memref<8x2304xbf16, #tpu.memory_space<vmem>>, %arg2: memref<2304x256xbf16, #tpu.memory_space<vmem>>, %arg3: memref<1x256xf32, #tpu.memory_space<vmem>>, %arg4: memref<8x256xbf16, #tpu.memory_space<vmem>>, %arg5: memref<8x256xbf16, #tpu.memory_space<vmem>>) attributes {dimension_semantics = [#tpu.dimension_semantics<parallel>], iteration_bounds = array<i64: 1>, scalar_prefetch = 0 : i64, scratch_operands = 0 : i64, tpu.core_type = #tpu.core_type<tc>, window_params = [{transform_indices = @transform_0, window_bounds = array<i64: 8, 2304>}, {pipeline_mode = #tpu.pipeline_mode<synchronous>, transform_indices = @transform_1, window_bounds = array<i64: 2304, 256>}, {pipeline_mode = #tpu.pipeline_mode<synchronous>, transform_indices = @transform_2, window_bounds = array<i64: 1, 256>}, {transform_indices = @transform_3, window_bounds = array<i64: 8, 256>}, {transform_indices = @transform_4, window_bounds = array<i64: 8, 256>}]} {
    %c0 = arith.constant 0 : index
    %c0_0 = arith.constant 0 : index
    %0 = vector.load %arg1[%c0, %c0_0] : memref<8x2304xbf16, #tpu.memory_space<vmem>>, vector<8x2304xbf16>
    %c0_1 = arith.constant 0 : index
    %c0_2 = arith.constant 0 : index
    %1 = vector.load %arg2[%c0_1, %c0_2] : memref<2304x256xbf16, #tpu.memory_space<vmem>>, vector<2304x256xbf16>
    %cst = arith.constant dense<0.000000e+00> : vector<8x256xf32>
    %2 = tpu.matmul %0, %1, %cst {dimension_numbers = #tpu.dot_dimension_numbers<[1], [0], [0], [1], [0, 0, 1, 1], [], []>} : vector<8x2304xbf16>, vector<2304x256xbf16>, vector<8x256xf32> -> vector<8x256xf32>
    %c0_3 = arith.constant 0 : index
    %c0_4 = arith.constant 0 : index
    %3 = vector.load %arg3[%c0_3, %c0_4] : memref<1x256xf32, #tpu.memory_space<vmem>>, vector<1x256xf32>
    %4 = vector.broadcast %3 : vector<1x256xf32> to vector<8x256xf32>
    %5 = arith.addf %2, %4 : vector<8x256xf32>
    %c0_5 = arith.constant 0 : index
    %c0_6 = arith.constant 0 : index
    %6 = vector.load %arg4[%c0_5, %c0_6] : memref<8x256xbf16, #tpu.memory_space<vmem>>, vector<8x256xbf16>
    %7 = arith.extf %6 : vector<8x256xbf16> to vector<8x256xf32>
    %8 = arith.addf %5, %7 : vector<8x256xf32>
    %cst_7 = arith.constant 0.000000e+00 : f32
    %9 = vector.broadcast %cst_7 : f32 to vector<8x256xf32>
    %10 = arith.maximumf %8, %9 : vector<8x256xf32>
    %11 = arith.truncf %10 : vector<8x256xf32> to vector<8x256xbf16>
    %c0_8 = arith.constant 0 : index
    %c0_9 = arith.constant 0 : index
    %12 = vector.load %arg5[%c0_8, %c0_9] : memref<8x256xbf16, #tpu.memory_space<vmem>>, vector<8x256xbf16>
    tpu.vector_store %arg5[%c0_8, %c0_9], %11 {strides = array<i32>} : memref<8x256xbf16, #tpu.memory_space<vmem>>, vector<8x256xbf16>,
    return
  }
  func.func @transform_0(%arg0: i32) -> (i32, i32) {
    %c0_i32 = arith.constant 0 : i32
    %c0_i32_0 = arith.constant 0 : i32
    return %arg0, %c0_i32 : i32, i32
  }
  func.func @transform_1(%arg0: i32) -> (i32, i32) {
    %c0_i32 = arith.constant 0 : i32
    %c0_i32_0 = arith.constant 0 : i32
    %c0_i32_1 = arith.constant 0 : i32
    return %c0_i32, %c0_i32_0 : i32, i32
  }
  func.func @transform_2(%arg0: i32) -> (i32, i32) {
    %c0_i32 = arith.constant 0 : i32
    %c0_i32_0 = arith.constant 0 : i32
    %c0_i32_1 = arith.constant 0 : i32
    return %c0_i32, %c0_i32_0 : i32, i32
  }
  func.func @transform_3(%arg0: i32) -> (i32, i32) {
    %c0_i32 = arith.constant 0 : i32
    %c0_i32_0 = arith.constant 0 : i32
    return %arg0, %c0_i32 : i32, i32
  }
  func.func @transform_4(%arg0: i32) -> (i32, i32) {
    %c0_i32 = arith.constant 0 : i32
    %c0_i32_0 = arith.constant 0 : i32
    return %arg0, %c0_i32 : i32, i32
  }
}

</mosaic_0001>

<bundles_post_ra>
// kernel: _lambda_.9
= control target key start
LH: loop header
LB: loop body
LE: loop exit
PB: predicated region body
PF: predicated region fallthrough
CT: control target
= control target key end

     0   :  { %8 = vsyncpa [#allocation3], 0  ;;  %s1428_s0 = inlined_call_operand.vmem [shape: bf16[512,27], index: 0, kind: input, shape index: {}]   ;;  %s1429_s1 = inlined_call_operand.hbm [shape: bf16[27,128], index: 1, kind: input, shape index: {}]   ;;  %s1430_s2 = inlined_call_operand.hbm [shape: f32[1,128], index: 2, kind: input, shape index: {}]   ;;  %s1431_s3 = inlined_call_operand.vmem [shape: bf16[512,128], index: 3, kind: output, shape index: {}]  }
   0x1   :  { %9 = vsyncpa [#allocation5], 0  ;;  %s1238_s12 = smov 0  }
   0x2 LB: > { %s824_s13 = sadd.s32 4294967295, %s1211_s12   ;;  %p826_p0 = scmp.ge.s32.totalorder %s1211_s12, 1  ;;  %s1211_s12 = sphi %s1238_s12, %s15_s12  }
   0x3   : > { %p114_p1 = scmp.lt.s32.totalorder %s1211_s12, 3  ;;  %s1213_s14 = smov [#allocation2]  }
   0x4   : > { %s126_s15 = sshll.u32 %s1213_s14, 4  ;;  %p1252_p3 = scmp.eq.s32.totalorder %s824_s13, 0  ;;  %s127_s15 = int_to_ptr.vmem [resolvable:$true] %s126_s15 }
   0x5   : > { %p1246_p2 = pnand %p826_p0, %p114_p1  ;;  %s1214_s18 = smov [#allocation4]  }
   0x6   : > { %s1436_s17 = scalar_select %p1252_p3, 1, 0 }
   0x7   : > { %s1435_s16 = scalar_select %p1246_p2, 1, 0 }
   0x8   : > { %p1099_p4 = pneg %p1246_p2  ;;  %s140_s19 = sshll.u32 %s1214_s18, 4  ;;  %s1264_s19 = int_to_ptr.vmem [resolvable:$true] %s140_s19 }
   0x9   : > { %s1141_s23 = scalar_lea.hbm %s1429_s1, 256 }
   0xa   : > { %p1260_p5 = pnand %p1252_p3, %p1099_p4  ;;  %p1142_p6 = scmp.ne.s32.totalorder %s1429_s1, %s1141_s23 }
   0xb   : > { %p1148_p10 = scmp.lt.u32.totalorder %s1141_s23, %s1429_s1 }
   0xc   : > { %p1143_p7 = pneg %p1260_p5 }
   0xe   : > { %p1144_p8 = pnand %p1143_p7, %p1142_p6 }
  0x10   : > { %p1145_p9 = pneg %p1144_p8 }
  0x12   : > { %p1150_p11 = pnand %p1148_p10, %p1145_p9 }
  0x14   : > { %1153 = shalt.err (!%p1150_p11)
}
  0x15   : > { %s1154_s28 = scalar_lea.vmem %s127_s15, 256  ;;  %p1162_p1 = scmp.lt.s32.totalorder %s127_s15, %s127_s15 }
  0x16   : > { %p1155_p12 = scmp.ne.s32.totalorder %s127_s15, %s1154_s28  ;;  %p1163_p4 = scmp.lt.s32.totalorder %s1154_s28, %s1154_s28 }
  0x18   : > { %p1157_p13 = pnand %p1155_p12, %p1143_p7  ;;  %p1164_p3 = por %p1163_p4, %p1162_p1 }
  0x1a   : > { %p1158_p0 = pneg %p1157_p13 }
  0x1c   : > { %p1165_p2 = pnand %p1164_p3, %p1158_p0 }
  0x1e   : > { %1168 = shalt.err (!%p1165_p2)
}
  0x1f   : > { %s1215_s29 = smov 64   ;;  %s1216_s30 = smov 4  }
  0x20   : > { %1102 = dma.hbm_to_vmem [thread:$0]  (!%p1260_p5), %s1429_s1, 256, %s127_s15, [#allocation3], %s1215_s29, %s1215_s29, %s1216_s30  }
  0x21   : > { %s1169_s8 = scalar_lea.hbm %s1430_s2, 16 }
  0x22   : > { %p1170_p6 = scmp.ne.s32.totalorder %s1430_s2, %s1169_s8  ;;  %p1176_p8 = scmp.lt.u32.totalorder %s1169_s8, %s1430_s2 }
  0x24   : > { %p1172_p2 = pnand %p1170_p6, %p1143_p7 }
  0x26   : > { %p1173_p3 = pneg %p1172_p2 }
  0x28   : > { %p1178_p9 = pnand %p1176_p8, %p1173_p3 }
  0x2a   : > { %1181 = shalt.err (!%p1178_p9)
}
  0x2b   : > { %s1182_s15 = scalar_lea.vmem %s1264_s19, 16  ;;  %s1189_s18 = scalar_lea.vmem %s1264_s19, 32 }
  0x2c   : > { %p1183_p10 = scmp.ne.s32.totalorder %s1264_s19, %s1182_s15  ;;  %p1190_p13 = scmp.lt.s32.totalorder %s1264_s19, %s1264_s19 }
  0x2d   : > { %p1191_p0 = scmp.lt.s32.totalorder %s1189_s18, %s1182_s15 }
  0x2e   : > { %p1185_p11 = pnand %p1183_p10, %p1143_p7 }
  0x2f   : > { %p1192_p1 = por %p1191_p0, %p1190_p13 }
  0x30   : > { %p1186_p12 = pneg %p1185_p11 }
  0x32   : > { %p1193_p4 = pnand %p1192_p1, %p1186_p12 }
  0x34   : > { %1196 = shalt.err (!%p1193_p4)
}
  0x35   : > { %1105 = dma.hbm_to_vmem [thread:$0]  (!%p1260_p5), %s1430_s2, 16, %s1264_s19, [#allocation5]  }
  0x36   : > { %p1438_p6 = scmp.ne.s32.totalorder %s1435_s16, 0 }
  0x37   : > { %p1439_p7 = scmp.ne.s32.totalorder (!%p1438_p6), %s1436_s17, 0 }
  0x38   : > { %162 = sbr.rel (%p1438_p6) target bundleno = 323 (0x143), region = 32 }
  0x3f   : > { %1202 = dma.done.wait (%p1439_p7), [#allocation3], 256  }
  0x40   : > { %1204 = vsyncadd (%p1439_p7), [#allocation3], 4294967040 }
  0x41   : > { %1206 = dma.done.wait (%p1439_p7), [#allocation5], 16  }
  0x42   : > { %1208 = vsyncadd (%p1439_p7), [#allocation5], 4294967280  ;;  %s833_s20 = sshll.u32 %s824_s13, 5  ;;  %vm386_vm0 = vcmask 1044480   ;;  %vm387_vm1 = vcmask 1045504   ;;  %v1217_v0 = vmov 65535  }
  0x43   : > { %p191_p5 = scmp.lt.s32.totalorder %s833_s20, 63  ;;  %v388_v1 = vsel %vm386_vm0, 4294967295, %v1217_v0  ;;  %vm337_vm2 = vcmask 220160   ;;  %v1123_v2 = vld [vmem:[#allocation2] sm:$0xff]   ;;  %v1124_v4 = vld [vmem:[#allocation2 + $0x8] sm:$0x3f]  }
  0x44   : > { %v389_v3 = vsel %vm387_vm1, %v388_v1, 0  ;;  %1051 = vmatprep.subr.bf16.mxu0 %v1123_v2  ;;  %1087 = vmatprep.subr.bf16.mxu1 %v1123_v2  ;;  %v1368_v22 = vld [vmem:[#allocation4] ss:$0 sm:$0xff] }
  0x45   : > { %s1441_s20 = smov (!%p191_p5, %s833_s20), 63  ;;  %1052 = vmatpush3.bf16.msra.mxu0 %v1123_v2  ;;  %1089 = vmatpush3.bf16.msra.mxu1 %v1123_v2  ;;  %v391_v6 = vand.u32 %v1124_v4, %v389_v3 }
  0x46   : > { %s834_s16 = sshll.u32 %s1441_s20, 2 }
  0x47   : > { %s1334_s24 = scalar_lea.vmem %s1428_s0, %s834_s16  ;;  %1053 = vmatprep.subr.bf16.mxu0 %v391_v6  ;;  %1088 = vmatprep.subr.bf16.mxu1 %v391_v6  ;;  %s1383_s25 = scalar_lea.vmem %s1431_s3, %s834_s16 }
  0x48   : > { %v1125_v5 = vld [vmem:[%s1334_s24] sm:$0xff]   ;;  %v1127_v8 = vld [vmem:[%s1334_s24 + $0x8] sm:$0xff]   ;;  %v1129_v10 = vld [vmem:[%s1334_s24 + $0x10] sm:$0xff]  }
  0x49   : > { %v1126_v7 = vld [vmem:[%s1334_s24 + $0x40] sm:$0xff]   ;;  %1055 = vmatprep.mubr.msk.bf16.mxu0 %vm337_vm2, %v1125_v5  ;;  %v1128_v9 = vld [vmem:[%s1334_s24 + $0x48] sm:$0xff]   ;;  %1054 = vmatpush3.bf16.msra.mxu0 %v391_v6  ;;  %v1130_v11 = vld [vmem:[%s1334_s24 + $0x50] sm:$0xff]  }
  0x4a   : > { %1071 = vmatprep.mubr.msk.bf16.mxu1 %vm337_vm2, %v1126_v7  ;;  %1090 = vmatpush3.bf16.msra.mxu1 %v391_v6  ;;  %v1131_v12 = vld [vmem:[%s1334_s24 + $0x18] sm:$0xff]   ;;  %v1133_v14 = vld [vmem:[%s1334_s24 + $0x20] sm:$0xff]   ;;  %v1135_v16 = vld [vmem:[%s1334_s24 + $0x28] sm:$0xff]  }
  0x4b   : > { %v1132_v13 = vld [vmem:[%s1334_s24 + $0x58] sm:$0xff]   ;;  %v1134_v15 = vld [vmem:[%s1334_s24 + $0x60] sm:$0xff]   ;;  %v1136_v17 = vld [vmem:[%s1334_s24 + $0x68] sm:$0xff]  }
  0x4c   : > { %1056 = vmatmul.mubr.msk.bf16.vlgmr.msra.gmra.mrb[0].mxu0 %vm337_vm2, %v1127_v8  ;;  %v1137_v18 = vld [vmem:[%s1334_s24 + $0x30] sm:$0xff]   ;;  %v1139_v20 = vld [vmem:[%s1334_s24 + $0x38] sm:$0xff]  }
  0x4d   : > { %1072 = vmatmul.mubr.msk.bf16.vlgmr.msra.gmra.mrb[0].mxu1 %vm337_vm2, %v1128_v9  ;;  %1059 = vmatprep.mubr.msk.bf16.mxu0 %vm337_vm2, %v1129_v10  ;;  %v1138_v19 = vld [vmem:[%s1334_s24 + $0x70] sm:$0xff]   ;;  %v1140_v21 = vld [vmem:[%s1334_s24 + $0x78] sm:$0xff]  }
  0x4e   : > { %1075 = vmatprep.mubr.msk.bf16.mxu1 %vm337_vm2, %v1130_v11 }
  0x54   : > { %1060 = vmatmul.mubr.msk.bf16.gmra.mrb[4].mxu0 %vm337_vm2, %v1131_v12 }
  0x55   : > { %1076 = vmatmul.mubr.msk.bf16.gmra.mrb[4].mxu1 %vm337_vm2, %v1132_v13  ;;  %1063 = vmatprep.mubr.msk.bf16.mxu0 %vm337_vm2, %v1133_v14 }
  0x56   : > { %1079 = vmatprep.mubr.msk.bf16.mxu1 %vm337_vm2, %v1134_v15 }
  0x5c   : > { %1064 = vmatmul.mubr.msk.bf16.gmra.mrb[8].mxu0 %vm337_vm2, %v1135_v16 }
  0x5d   : > { %1080 = vmatmul.mubr.msk.bf16.gmra.mrb[8].mxu1 %vm337_vm2, %v1136_v17  ;;  %1067 = vmatprep.mubr.msk.bf16.mxu0 %vm337_vm2, %v1137_v18 }
  0x5e   : > { %1083 = vmatprep.mubr.msk.bf16.mxu1 %vm337_vm2, %v1138_v19 }
  0x64   : > { %1068 = vmatmul.mubr.msk.bf16.gmra.mrb[12].mxu0 %vm337_vm2, %v1139_v20 }
  0x65   : > { %1084 = vmatmul.mubr.msk.bf16.gmra.mrb[12].mxu1 %vm337_vm2, %v1140_v21 }
 0x11f   : > { %v1057_v23 = vpop.f32.mrb[0].mxu0 }
 0x120   : > { %v1073_v24 = vpop.f32.mrb[0].mxu1  ;;  %v436_v25 = vadd.f32 %v1057_v23, %v1368_v22  ;;  %v427_v27 = vpop.f32.mrb[1].mxu0 }
 0x121   : > { %v500_v26 = vadd.f32 %v1073_v24, %v1368_v22  ;;  %v491_v28 = vpop.f32.mrb[1].mxu1  ;;  %v428_v29 = vadd.f32 %v1368_v22, %v427_v27  ;;  %v1058_v31 = vpop.f32.mrb[2].mxu0 }
 0x122   : > { %v492_v30 = vadd.f32 %v1368_v22, %v491_v28  ;;  %v1074_v32 = vpop.f32.mrb[2].mxu1  ;;  %v439_v33 = vadd.f32 %v1058_v31, %v1368_v22  ;;  %v430_v35 = vpop.f32.mrb[3].mxu0  ;;  %v556_v39 = vmax.f32 %v436_v25, 0.0 }
 0x123   : > { %v503_v34 = vadd.f32 %v1074_v32, %v1368_v22  ;;  %v494_v36 = vpop.f32.mrb[3].mxu1  ;;  %v431_v37 = vadd.f32 %v1368_v22, %v430_v35  ;;  %v572_v40 = vmax.f32 %v500_v26, 0.0  ;;  %v554_v43 = vmax.f32 %v428_v29, 0.0 }
 0x124   : > { %v495_v38 = vadd.f32 %v1368_v22, %v494_v36  ;;  %v557_v41 = vmax.f32 %v439_v33, 0.0  ;;  %v570_v44 = vmax.f32 %v492_v30, 0.0 }
 0x125   : > { %v573_v42 = vmax.f32 %v503_v34, 0.0  ;;  %v555_v45 = vmax.f32 %v431_v37, 0.0 }
 0x126   : > { %v571_v46 = vmax.f32 %v495_v38, 0.0  ;;  %v946_v47 = vpack.c.bf16 %v557_v41, %v556_v39 }
 0x127   : > { %v986_v48 = vpack.c.bf16 %v573_v42, %v572_v40  ;;  %v941_v49 = vpack.c.bf16 %v555_v45, %v554_v43  ;;  %v1061_v51 = vpop.f32.mrb[4].mxu0 }
 0x128   : > { %v981_v50 = vpack.c.bf16 %v571_v46, %v570_v44  ;;  %v1077_v52 = vpop.f32.mrb[4].mxu1  ;;  %1018 = vst [vmem:[%s1383_s25 + $0x8] sm:$0xff] %v946_v47   ;;  %v452_v53 = vadd.f32 %v1061_v51, %v1368_v22  ;;  %v443_v55 = vpop.f32.mrb[5].mxu0 }
 0x129   : > { %1026 = vst [vmem:[%s1383_s25 + $0x48] sm:$0xff] %v986_v48   ;;  %v516_v54 = vadd.f32 %v1077_v52, %v1368_v22  ;;  %v507_v56 = vpop.f32.mrb[5].mxu1  ;;  %942 = vst [vmem:[%s1383_s25] sm:$0xff] %v941_v49   ;;  %v444_v57 = vadd.f32 %v1368_v22, %v443_v55  ;;  %v1062_v59 = vpop.f32.mrb[6].mxu0 }
 0x12a   : > { %1025 = vst [vmem:[%s1383_s25 + $0x40] sm:$0xff] %v981_v50   ;;  %v508_v58 = vadd.f32 %v1368_v22, %v507_v56  ;;  %v1078_v60 = vpop.f32.mrb[6].mxu1  ;;  %v455_v61 = vadd.f32 %v1062_v59, %v1368_v22  ;;  %v446_v63 = vpop.f32.mrb[7].mxu0  ;;  %v560_v3 = vmax.f32 %v452_v53, 0.0 }
 0x12b   : > { %v519_v62 = vadd.f32 %v1078_v60, %v1368_v22  ;;  %v510_v0 = vpop.f32.mrb[7].mxu1  ;;  %v447_v1 = vadd.f32 %v1368_v22, %v446_v63  ;;  %v576_v4 = vmax.f32 %v516_v54, 0.0  ;;  %v558_v7 = vmax.f32 %v444_v57, 0.0 }
 0x12c   : > { %v511_v2 = vadd.f32 %v1368_v22, %v510_v0  ;;  %v561_v5 = vmax.f32 %v455_v61, 0.0  ;;  %v574_v8 = vmax.f32 %v508_v58, 0.0 }
 0x12d   : > { %v577_v6 = vmax.f32 %v519_v62, 0.0  ;;  %v559_v9 = vmax.f32 %v447_v1, 0.0 }
 0x12e   : > { %v575_v10 = vmax.f32 %v511_v2, 0.0  ;;  %v956_v11 = vpack.c.bf16 %v561_v5, %v560_v3 }
 0x12f   : > { %v996_v12 = vpack.c.bf16 %v577_v6, %v576_v4  ;;  %v951_v13 = vpack.c.bf16 %v559_v9, %v558_v7  ;;  %v1065_v15 = vpop.f32.mrb[8].mxu0 }
 0x130   : > { %v991_v14 = vpack.c.bf16 %v575_v10, %v574_v8  ;;  %v1081_v16 = vpop.f32.mrb[8].mxu1  ;;  %1020 = vst [vmem:[%s1383_s25 + $0x18] sm:$0xff] %v956_v11   ;;  %v468_v17 = vadd.f32 %v1065_v15, %v1368_v22  ;;  %v459_v19 = vpop.f32.mrb[9].mxu0 }
 0x131   : > { %1028 = vst [vmem:[%s1383_s25 + $0x58] sm:$0xff] %v996_v12   ;;  %v532_v18 = vadd.f32 %v1081_v16, %v1368_v22  ;;  %v523_v20 = vpop.f32.mrb[9].mxu1  ;;  %1019 = vst [vmem:[%s1383_s25 + $0x10] sm:$0xff] %v951_v13   ;;  %v460_v21 = vadd.f32 %v1368_v22, %v459_v19  ;;  %v1066_v24 = vpop.f32.mrb[10].mxu0 }
 0x132   : > { %1027 = vst [vmem:[%s1383_s25 + $0x50] sm:$0xff] %v991_v14   ;;  %v524_v23 = vadd.f32 %v1368_v22, %v523_v20  ;;  %v1082_v25 = vpop.f32.mrb[10].mxu1  ;;  %v471_v26 = vadd.f32 %v1066_v24, %v1368_v22  ;;  %v462_v28 = vpop.f32.mrb[11].mxu0  ;;  %v564_v32 = vmax.f32 %v468_v17, 0.0 }
 0x133   : > { %v535_v27 = vadd.f32 %v1082_v25, %v1368_v22  ;;  %v526_v29 = vpop.f32.mrb[11].mxu1  ;;  %v463_v30 = vadd.f32 %v1368_v22, %v462_v28  ;;  %v580_v33 = vmax.f32 %v532_v18, 0.0  ;;  %v562_v36 = vmax.f32 %v460_v21, 0.0 }
 0x134   : > { %v527_v31 = vadd.f32 %v1368_v22, %v526_v29  ;;  %v565_v34 = vmax.f32 %v471_v26, 0.0  ;;  %v578_v37 = vmax.f32 %v524_v23, 0.0 }
 0x135   : > { %v581_v35 = vmax.f32 %v535_v27, 0.0  ;;  %v563_v38 = vmax.f32 %v463_v30, 0.0 }
 0x136   : > { %v579_v39 = vmax.f32 %v527_v31, 0.0  ;;  %v966_v40 = vpack.c.bf16 %v565_v34, %v564_v32 }
 0x137   : > { %v1006_v41 = vpack.c.bf16 %v581_v35, %v580_v33  ;;  %v961_v42 = vpack.c.bf16 %v563_v38, %v562_v36  ;;  %v1069_v44 = vpop.f32.mrb[12].mxu0 }
 0x138   : > { %v1001_v43 = vpack.c.bf16 %v579_v39, %v578_v37  ;;  %v1085_v45 = vpop.f32.mrb[12].mxu1  ;;  %1022 = vst [vmem:[%s1383_s25 + $0x28] sm:$0xff] %v966_v40   ;;  %v484_v46 = vadd.f32 %v1069_v44, %v1368_v22  ;;  %v475_v48 = vpop.f32.mrb[13].mxu0 }
 0x139   : > { %1030 = vst [vmem:[%s1383_s25 + $0x68] sm:$0xff] %v1006_v41   ;;  %v548_v47 = vadd.f32 %v1085_v45, %v1368_v22  ;;  %v539_v49 = vpop.f32.mrb[13].mxu1  ;;  %1021 = vst [vmem:[%s1383_s25 + $0x20] sm:$0xff] %v961_v42   ;;  %v476_v50 = vadd.f32 %v1368_v22, %v475_v48  ;;  %v1070_v52 = vpop.f32.mrb[14].mxu0 }
 0x13a   : > { %1029 = vst [vmem:[%s1383_s25 + $0x60] sm:$0xff] %v1001_v43   ;;  %v540_v51 = vadd.f32 %v1368_v22, %v539_v49  ;;  %v1086_v53 = vpop.f32.mrb[14].mxu1  ;;  %v487_v54 = vadd.f32 %v1070_v52, %v1368_v22  ;;  %v478_v56 = vpop.f32.mrb[15].mxu0  ;;  %v568_v60 = vmax.f32 %v484_v46, 0.0 }
 0x13b   : > { %v551_v55 = vadd.f32 %v1086_v53, %v1368_v22  ;;  %v542_v57 = vpop.f32.mrb[15].mxu1  ;;  %v479_v58 = vadd.f32 %v1368_v22, %v478_v56  ;;  %v584_v61 = vmax.f32 %v548_v47, 0.0  ;;  %v566_v0 = vmax.f32 %v476_v50, 0.0 }
 0x13c   : > { %v543_v59 = vadd.f32 %v1368_v22, %v542_v57  ;;  %v569_v62 = vmax.f32 %v487_v54, 0.0  ;;  %v582_v1 = vmax.f32 %v540_v51, 0.0 }
 0x13d   : > { %v585_v63 = vmax.f32 %v551_v55, 0.0  ;;  %v567_v2 = vmax.f32 %v479_v58, 0.0 }
 0x13e   : > { %v583_v3 = vmax.f32 %v543_v59, 0.0  ;;  %v976_v4 = vpack.c.bf16 %v569_v62, %v568_v60 }
 0x13f   : > { %v1016_v5 = vpack.c.bf16 %v585_v63, %v584_v61  ;;  %v971_v6 = vpack.c.bf16 %v567_v2, %v566_v0 }
 0x140   : > { %v1011_v7 = vpack.c.bf16 %v583_v3, %v582_v1  ;;  %1024 = vst [vmem:[%s1383_s25 + $0x38] sm:$0xff] %v976_v4  }
 0x141   : > { %1032 = vst [vmem:[%s1383_s25 + $0x78] sm:$0xff] %v1016_v5   ;;  %1023 = vst [vmem:[%s1383_s25 + $0x30] sm:$0xff] %v971_v6  }
 0x142   : > { %1031 = vst [vmem:[%s1383_s25 + $0x70] sm:$0xff] %v1011_v7  }
 0x143 PF: > { %s15_s12 = sadd.s32 1, %s1211_s12  }
 0x144   : > { %p12_p2 = scmp.ge.s32.totalorder %s15_s12, 4  }
 0x146   :  { %14 = sbr.rel (!%p12_p2) target bundleno = 2 (0x2), region = 71 }
 0x14d   :  { %768 = vsyncpa [#allocation3], 1 }
 0x14e   :  { %770 = vsyncpa [#allocation3 + $0x1], 1 }
 0x14f   :  { %771 = vsyncpa [#allocation5], 1 }

// kernel: _lambda_.11
= control target key start
LH: loop header
LB: loop body
LE: loop exit
PB: predicated region body
PF: predicated region fallthrough
CT: control target
= control target key end

     0   :  { %s4193_s15 = smov 0   ;;  %s5004_s0 = inlined_call_operand.vmem [shape: bf16[512,1152], index: 0, kind: input, shape index: {}]   ;;  %s5005_s1 = inlined_call_operand.vmem [shape: bf16[1152,128], index: 1, kind: input, shape index: {}]   ;;  %s5006_s2 = inlined_call_operand.vmem [shape: f32[1,128], index: 2, kind: input, shape index: {}]   ;;  %s5007_s3 = inlined_call_operand.vmem [shape: bf16[512,128], index: 3, kind: input, shape index: {}]   ;;  %s5008_s4 = inlined_call_operand.vmem [shape: bf16[512,128], index: 4, kind: output, shape index: {}]  }
   0x1 LB: > { %s2867_s16 = sadd.s32 4294967295, %s4166_s15   ;;  %p2871_p0 = scmp.ge.s32.totalorder %s4166_s15, 1  ;;  %s4166_s15 = sphi %s4193_s15, %s14_s15  }
   0x2   : > { %p175_p1 = scmp.lt.s32.totalorder %s4166_s15, 3 }
   0x4   : > { %p176_p2 = pnand %p2871_p0, %p175_p1 }
   0x5   : > { %v3880_v0 = vld [vmem:[%s5005_s1 + $0x40] sm:$0xff] (!%p176_p2)   ;;  %s2872_s19 = sshll.u32 (!%p176_p2), %s2867_s16, 5  ;;  %v3882_v2 = vld [vmem:[%s5005_s1 + $0x48] sm:$0xff] (!%p176_p2)   ;;  %v3884_v4 = vld [vmem:[%s5005_s1 + $0x50] sm:$0xff] (!%p176_p2)  }
   0x6   : > { %179 = sbr.rel (%p176_p2) target bundleno = 546 (0x222), region = 36  ;;  %v3881_v1 = vld [vmem:[%s5005_s1] sm:$0xff] (!%p176_p2)   ;;  %3335 = vmatprep.subr.bf16.mxu0 (!%p176_p2), %v3880_v0  ;;  %3855 = vmatprep.subr.bf16.mxu1 (!%p176_p2), %v3880_v0  ;;  %p208_p3 = scmp.lt.s32.totalorder (!%p176_p2), %s2872_s19, 63  ;;  %v3883_v3 = vld [vmem:[%s5005_s1 + $0x8] sm:$0xff] (!%p176_p2)   ;;  %v3885_v5 = vld [vmem:[%s5005_s1 + $0x10] sm:$0xff] (!%p176_p2)  }
   0x7   : > { %3336 = vmatpush3.bf16.msra.mxu0 (!%p176_p2), %v3881_v1  ;;  %3863 = vmatpush3.bf16.msra.mxu1 (!%p176_p2), %v3881_v1  ;;  %v3886_v6 = vld [vmem:[%s5005_s1 + $0x58] sm:$0xff] (!%p176_p2)   ;;  %v3888_v8 = vld [vmem:[%s5005_s1 + $0x60] sm:$0xff] (!%p176_p2)   ;;  %v3890_v10 = vld [vmem:[%s5005_s1 + $0x68] sm:$0xff] (!%p176_p2)  }
   0x8   : > { %3337 = vmatprep.subr.bf16.mxu0 (!%p176_p2), %v3882_v2  ;;  %3856 = vmatprep.subr.bf16.mxu1 (!%p176_p2), %v3882_v2  ;;  %v3887_v7 = vld [vmem:[%s5005_s1 + $0x18] sm:$0xff] (!%p176_p2)   ;;  %v3889_v9 = vld [vmem:[%s5005_s1 + $0x20] sm:$0xff] (!%p176_p2)   ;;  %v3891_v13 = vld [vmem:[%s5005_s1 + $0x28] sm:$0xff] (!%p176_p2)  }
   0x9   : > { %v3892_v14 = vld [vmem:[%s5005_s1 + $0x70] sm:$0xff] (!%p176_p2)   ;;  %v3894_v16 = vld [vmem:[%s5005_s1 + $0x78] sm:$0xff] (!%p176_p2)   ;;  %v3902_v18 = vld [vmem:[%s5005_s1 + $0xc0] sm:$0xff] (!%p176_p2)  }
   0xa   : > { %v3893_v15 = vld [vmem:[%s5005_s1 + $0x30] sm:$0xff] (!%p176_p2)   ;;  %v3895_v17 = vld [vmem:[%s5005_s1 + $0x38] sm:$0xff] (!%p176_p2)   ;;  %v3905_v21 = vld [vmem:[%s5005_s1 + $0x140] sm:$0xff] (!%p176_p2)  }
   0xb   : > { %3338 = vmatpush3.bf16.msra.mxu0 (!%p176_p2), %v3883_v3  ;;  %3864 = vmatpush3.bf16.msra.mxu1 (!%p176_p2), %v3883_v3  ;;  %v3903_v22 = vld [vmem:[%s5005_s1 + $0x80] sm:$0xff] (!%p176_p2)   ;;  %v3904_v23 = vld [vmem:[%s5005_s1 + $0xc8] sm:$0xff] (!%p176_p2)   ;;  %v3914_v31 = vld [vmem:[%s5005_s1 + $0xd0] sm:$0xff] (!%p176_p2)  }
   0xc   : > { %3339 = vmatprep.subr.bf16.mxu0 (!%p176_p2), %v3884_v4  ;;  %3857 = vmatprep.subr.bf16.mxu1 (!%p176_p2), %v3884_v4  ;;  %v3907_v24 = vld [vmem:[%s5005_s1 + $0x100] sm:$0xff] (!%p176_p2)   ;;  %v3906_v27 = vld [vmem:[%s5005_s1 + $0x88] sm:$0xff] (!%p176_p2)   ;;  %v3915_v32 = vld [vmem:[%s5005_s1 + $0x90] sm:$0xff] (!%p176_p2)  }
   0xd   : > { %s5010_s19 = smov (!%p208_p3, %s2872_s19), 63  ;;  %v3925_v28 = vld [vmem:[%s5005_s1 + $0x148] sm:$0xff]   ;;  %v3916_v34 = vld [vmem:[%s5005_s1 + $0xd8] sm:$0xff]   ;;  %v3924_v40 = vld [vmem:[%s5005_s1 + $0xe0] sm:$0xff]  }
   0xe   : > { %s3871_s6 = smul.u32 36, %s5010_s19  ;;  %v3927_v33 = vld [vmem:[%s5005_s1 + $0x108] sm:$0xff]   ;;  %v3917_v37 = vld [vmem:[%s5005_s1 + $0x98] sm:$0xff]   ;;  %v3926_v41 = vld [vmem:[%s5005_s1 + $0xa0] sm:$0xff]  }
   0xf   : > { %3340 = vmatpush3.bf16.msra.mxu0 %v3885_v5  ;;  %3865 = vmatpush3.bf16.msra.mxu1 %v3885_v5  ;;  %v3928_v42 = vld [vmem:[%s5005_s1 + $0xe8] sm:$0xff]   ;;  %v3939_v43 = vld [vmem:[%s5005_s1 + $0x150] sm:$0xff]   ;;  %v3938_v52 = vld [vmem:[%s5005_s1 + $0xf8] sm:$0xff]  }
  0x10   : > { %3341 = vmatprep.subr.bf16.mxu0 %v3886_v6  ;;  %3858 = vmatprep.subr.bf16.mxu1 %v3886_v6  ;;  %s4234_s13 = scalar_lea.vmem %s5004_s0, %s3871_s6  ;;  %v3941_v46 = vld [vmem:[%s5005_s1 + $0x110] sm:$0xff]   ;;  %v3929_v47 = vld [vmem:[%s5005_s1 + $0xa8] sm:$0xff]   ;;  %v3956_v55 = vld [vmem:[%s5005_s1 + $0x158] sm:$0xff]  }
  0x11   : > { %v3898_v11 = vld [vmem:[%s4234_s13 + $0x4] ss:$36 sps:$4 sm:$0xff]   ;;  %v3908_v25 = vld [vmem:[%s4234_s13 + $0x4c] ss:$36 sps:$4 sm:$0xff]   ;;  %v3918_v35 = vld [vmem:[%s4234_s13 + $0x94] ss:$36 sps:$4 sm:$0xff]  }
  0x12   : > { %v3901_v12 = vld [vmem:[%s4234_s13 + $0x364] ss:$36 sps:$4 sm:$0xff]   ;;  %1738 = vmatprep.mubr.bf16.mxu0 %v3898_v11  ;;  %v3910_v26 = vld [vmem:[%s4234_s13 + $0x3ac] ss:$36 sps:$4 sm:$0xff]   ;;  %v3920_v36 = vld [vmem:[%s4234_s13 + $0x3f4] ss:$36 sps:$4 sm:$0xff]  }
  0x13   : > { %3342 = vmatpush3.bf16.msra.mxu0 %v3887_v7  ;;  %3866 = vmatpush3.bf16.msra.mxu1 %v3887_v7  ;;  %v3896_v19 = vld [vmem:[%s4234_s13] ss:$36 sps:$4 sm:$0xff]   ;;  %v3912_v29 = vld [vmem:[%s4234_s13 + $0x48] ss:$36 sps:$4 sm:$0xff]   ;;  %v3922_v38 = vld [vmem:[%s4234_s13 + $0x90] ss:$36 sps:$4 sm:$0xff]  }
  0x14   : > { %3343 = vmatprep.subr.bf16.mxu0 %v3888_v8  ;;  %3859 = vmatprep.subr.bf16.mxu1 %v3888_v8  ;;  %v3899_v20 = vld [vmem:[%s4234_s13 + $0x360] ss:$36 sps:$4 sm:$0xff]   ;;  %v3913_v30 = vld [vmem:[%s4234_s13 + $0x3a8] ss:$36 sps:$4 sm:$0xff]   ;;  %v3923_v39 = vld [vmem:[%s4234_s13 + $0x3f0] ss:$36 sps:$4 sm:$0xff]  }
  0x15   : > { %1834 = vmatprep.mubr.bf16.mxu1 %v3901_v12  ;;  %v3930_v44 = vld [vmem:[%s4234_s13 + $0xdc] ss:$36 sps:$4 sm:$0xff]   ;;  %v3936_v48 = vld [vmem:[%s5005_s1 + $0xf0] sm:$0xff]   ;;  %v3942_v53 = vld [vmem:[%s4234_s13 + $0x124] ss:$36 sps:$4 sm:$0xff]  }
  0x16   : > { %v3932_v45 = vld [vmem:[%s4234_s13 + $0x43c] ss:$36 sps:$4 sm:$0xff]   ;;  %v3937_v51 = vld [vmem:[%s5005_s1 + $0xb0] sm:$0xff]   ;;  %v3944_v58 = vld [vmem:[%s4234_s13 + $0x8] ss:$36 sps:$4 sm:$0xff]  }
  0x17   : > { %3344 = vmatpush3.bf16.msra.mxu0 %v3889_v9  ;;  %3867 = vmatpush3.bf16.msra.mxu1 %v3889_v9  ;;  %v3934_v49 = vld [vmem:[%s4234_s13 + $0xd8] ss:$36 sps:$4 sm:$0xff]   ;;  %v3946_v54 = vld [vmem:[%s4234_s13 + $0xc] ss:$36 sps:$4 sm:$0xff]   ;;  %v3947_v59 = vld [vmem:[%s4234_s13 + $0x120] ss:$36 sps:$4 sm:$0xff]  }
  0x18   : > { %3345 = vmatprep.subr.bf16.mxu0 %v3890_v10  ;;  %3860 = vmatprep.subr.bf16.mxu1 %v3890_v10  ;;  %v3935_v50 = vld [vmem:[%s4234_s13 + $0x438] ss:$36 sps:$4 sm:$0xff]   ;;  %v3948_v60 = vld [vmem:[%s5005_s1 + $0x1c0] sm:$0xff]   ;;  %v3950_v62 = vld [vmem:[%s4234_s13 + $0x16c] ss:$36 sps:$4 sm:$0xff]  }
  0x19   : > { %v3957_v56 = vld [vmem:[%s5005_s1 + $0x118] sm:$0xff]   ;;  %v3949_v61 = vld [vmem:[%s5005_s1 + $0x180] sm:$0xff]   ;;  %v3964_v1 = vld [vmem:[%s5005_s1 + $0x1c8] sm:$0xff]  }
  0x1a   : > { %v3940_v57 = vld [vmem:[%s5005_s1 + $0xb8] sm:$0xff]   ;;  %v3966_v0 = vld [vmem:[%s5005_s1 + $0x160] sm:$0xff]   ;;  %v3965_v3 = vld [vmem:[%s5005_s1 + $0x188] sm:$0xff]  }
  0x1b   : > { %3346 = vmatpush3.bf16.msra.mxu0 %v3891_v13  ;;  %3868 = vmatpush3.bf16.msra.mxu1 %v3891_v13  ;;  %v3952_v63 = vld [vmem:[%s4234_s13 + $0x54] ss:$36 sps:$4 sm:$0xff]   ;;  %v3967_v2 = vld [vmem:[%s5005_s1 + $0x120] sm:$0xff]   ;;  %v3954_v4 = vld [vmem:[%s4234_s13 + $0x168] ss:$36 sps:$4 sm:$0xff]  }
  0x1c   : > { %3347 = vmatprep.subr.bf16.mxu0 %v3892_v14  ;;  %3861 = vmatprep.subr.bf16.mxu1 %v3892_v14  ;;  %v3955_v5 = vld [vmem:[%s4234_s13 + $0x50] ss:$36 sps:$4 sm:$0xff]   ;;  %v3960_v7 = vld [vmem:[%s4234_s13 + $0x9c] ss:$36 sps:$4 sm:$0xff]   ;;  %v3980_v8 = vld [vmem:[%s5005_s1 + $0x168] sm:$0xff]  }
  0x1d   : > { %v3958_v6 = vld [vmem:[%s4234_s13 + $0x1b4] ss:$36 sps:$4 sm:$0xff]   ;;  %v3982_v10 = vld [vmem:[%s5005_s1 + $0x128] sm:$0xff]   ;;  %v3968_v14 = vld [vmem:[%s4234_s13 + $0x1fc] ss:$36 sps:$4 sm:$0xff]  }
  0x1e   : > { %v3981_v9 = vld [vmem:[%s5005_s1 + $0x1d0] sm:$0xff]   ;;  %v3963_v13 = vld [vmem:[%s4234_s13 + $0x98] ss:$36 sps:$4 sm:$0xff]  }
  0x1f   : > { %3348 = vmatpush3.bf16.msra.mxu0 %v3893_v15  ;;  %3869 = vmatpush3.bf16.msra.mxu1 %v3893_v15  ;;  %v3983_v11 = vld [vmem:[%s5005_s1 + $0x190] sm:$0xff]  }
  0x20   : > { %3349 = vmatprep.subr.bf16.mxu0 %v3894_v16  ;;  %3862 = vmatprep.subr.bf16.mxu1 %v3894_v16  ;;  %v3962_v12 = vld [vmem:[%s4234_s13 + $0x1b0] ss:$36 sps:$4 sm:$0xff]  }
  0x21   : > { %v3990_v15 = vld [vmem:[%s5005_s1 + $0x170] sm:$0xff]  }
  0x22   : > { %v3991_v16 = vld [vmem:[%s5005_s1 + $0x130] sm:$0xff]  }
  0x23   : > { %3350 = vmatpush3.bf16.msra.mxu0 %v3895_v17  ;;  %3870 = vmatpush3.bf16.msra.mxu1 %v3895_v17  ;;  %v3970_v17 = vld [vmem:[%s4234_s13 + $0xe4] ss:$36 sps:$4 sm:$0xff]  }
  0x24   : > { %3447 = vmatprep.subr.bf16.mxu1 %v3902_v18  ;;  %3559 = vmatprep.subr.bf16.mxu0 %v3905_v21  ;;  %v3998_v18 = vld [vmem:[%s5005_s1 + $0x1d8] sm:$0xff]   ;;  %v3973_v21 = vld [vmem:[%s4234_s13 + $0xe0] ss:$36 sps:$4 sm:$0xff]  }
  0x26   : > { %1739 = vmatmul.mubr.bf16.vlgmr.msra.gmra.mrb[0].mxu0 %v3896_v19  ;;  %1835 = vmatmul.mubr.bf16.vlgmr.msra.gmra.mrb[0].mxu1 %v3899_v20  ;;  %v3999_v19 = vld [vmem:[%s5005_s1 + $0x198] sm:$0xff]  }
  0x27   : > { %3448 = vmatpush3.bf16.msra.mxu1 %v3903_v22  ;;  %3560 = vmatpush3.bf16.msra.mxu0 %v3907_v24  ;;  %v3972_v20 = vld [vmem:[%s4234_s13 + $0x1f8] ss:$36 sps:$4 sm:$0xff]   ;;  %v3974_v22 = vld [vmem:[%s4234_s13 + $0x244] ss:$36 sps:$4 sm:$0xff]  }
  0x28   : > { %3449 = vmatprep.subr.bf16.mxu1 %v3904_v23  ;;  %1746 = vmatprep.mubr.bf16.mxu0 %v3908_v25  ;;  %v3976_v23 = vld [vmem:[%s4234_s13 + $0x12c] ss:$36 sps:$4 sm:$0xff]   ;;  %v4006_v24 = vld [vmem:[%s5005_s1 + $0x178] sm:$0xff]  }
  0x29   : > { %1842 = vmatprep.mubr.bf16.mxu1 %v3910_v26  ;;  %3561 = vmatprep.subr.bf16.mxu0 %v3925_v28  ;;  %v4007_v25 = vld [vmem:[%s5005_s1 + $0x138] sm:$0xff]   ;;  %v4014_v26 = vld [vmem:[%s5005_s1 + $0x1e0] sm:$0xff]  }
  0x2a   : > { %v4015_v28 = vld [vmem:[%s5005_s1 + $0x1a0] sm:$0xff]  }
  0x2b   : > { %3450 = vmatpush3.bf16.msra.mxu1 %v3906_v27  ;;  %3562 = vmatpush3.bf16.msra.mxu0 %v3927_v33  ;;  %v3978_v27 = vld [vmem:[%s4234_s13 + $0x240] ss:$36 sps:$4 sm:$0xff]   ;;  %v4029_v33 = vld [vmem:[%s5005_s1 + $0x1e8] sm:$0xff]  }
  0x2c   : > { %3451 = vmatprep.subr.bf16.mxu1 %v3914_v31  ;;  %3563 = vmatprep.subr.bf16.mxu0 %v3939_v43  ;;  %v3984_v31 = vld [vmem:[%s4234_s13 + $0x28c] ss:$36 sps:$4 sm:$0xff]   ;;  %v4000_v43 = vld [vmem:[%s4234_s13 + $0x31c] ss:$36 sps:$4 sm:$0xff]  }
  0x2e   : > { %1747 = vmatmul.mubr.bf16.gmra.mrb[4].mxu0 %v3912_v29  ;;  %1843 = vmatmul.mubr.bf16.gmra.mrb[4].mxu1 %v3913_v30  ;;  %v4016_v29 = vld [vmem:[%s5005_s1 + $0x200] sm:$0xff]   ;;  %v3979_v30 = vld [vmem:[%s4234_s13 + $0x128] ss:$36 sps:$4 sm:$0xff]  }
  0x2f   : > { %3452 = vmatpush3.bf16.msra.mxu1 %v3915_v32  ;;  %1754 = vmatprep.mubr.bf16.mxu0 %v3918_v35  ;;  %v3986_v32 = vld [vmem:[%s4234_s13 + $0x174] ss:$36 sps:$4 sm:$0xff]   ;;  %v4030_v35 = vld [vmem:[%s5005_s1 + $0x1a8] sm:$0xff]  }
  0x30   : > { %3453 = vmatprep.subr.bf16.mxu1 %v3916_v34  ;;  %1850 = vmatprep.mubr.bf16.mxu1 %v3920_v36  ;;  %v3988_v34 = vld [vmem:[%s4234_s13 + $0x288] ss:$36 sps:$4 sm:$0xff]   ;;  %v3989_v36 = vld [vmem:[%s4234_s13 + $0x170] ss:$36 sps:$4 sm:$0xff]  }
  0x31   : > { %3564 = vmatpush3.bf16.msra.mxu0 %v3941_v46  ;;  %v4005_v46 = vld [vmem:[%s4234_s13 + $0x200] ss:$36 sps:$4 sm:$0xff]  }
  0x32   : > { %3565 = vmatprep.subr.bf16.mxu0 %v3956_v55  ;;  %v4031_v55 = vld [vmem:[%s5005_s1 + $0x208] sm:$0xff]  }
  0x33   : > { %3454 = vmatpush3.bf16.msra.mxu1 %v3917_v37  ;;  %v3992_v37 = vld [vmem:[%s4234_s13 + $0x2d4] ss:$36 sps:$4 sm:$0xff]  }
  0x34   : > { %3455 = vmatprep.subr.bf16.mxu1 %v3924_v40  ;;  %v3997_v40 = vld [vmem:[%s4234_s13 + $0x1b8] ss:$36 sps:$4 sm:$0xff]  }
  0x35   : > { %3566 = vmatpush3.bf16.msra.mxu0 %v3957_v56  ;;  %v4046_v56 = vld [vmem:[%s5005_s1 + $0x210] sm:$0xff]  }
  0x36   : > { %1755 = vmatmul.mubr.bf16.gmra.mrb[8].mxu0 %v3922_v38  ;;  %1851 = vmatmul.mubr.bf16.gmra.mrb[8].mxu1 %v3923_v39  ;;  %v3994_v38 = vld [vmem:[%s4234_s13 + $0x1bc] ss:$36 sps:$4 sm:$0xff]   ;;  %v3996_v39 = vld [vmem:[%s4234_s13 + $0x2d0] ss:$36 sps:$4 sm:$0xff]  }
  0x37   : > { %3456 = vmatpush3.bf16.msra.mxu1 %v3926_v41  ;;  %1762 = vmatprep.mubr.bf16.mxu0 %v3930_v44  ;;  %v4044_v41 = vld [vmem:[%s5005_s1 + $0x1f0] sm:$0xff]   ;;  %v4002_v44 = vld [vmem:[%s4234_s13 + $0x204] ss:$36 sps:$4 sm:$0xff]  }
  0x38   : > { %3457 = vmatprep.subr.bf16.mxu1 %v3928_v42  ;;  %1858 = vmatprep.mubr.bf16.mxu1 %v3932_v45  ;;  %v4045_v42 = vld [vmem:[%s5005_s1 + $0x1b0] sm:$0xff]   ;;  %v4004_v45 = vld [vmem:[%s4234_s13 + $0x318] ss:$36 sps:$4 sm:$0xff]  }
  0x39   : > { %3567 = vmatprep.subr.bf16.mxu0 %v3966_v0  ;;  %v4028_v0 = vld [vmem:[%s4234_s13 + $0xa0] ss:$36 sps:$4 sm:$0xff]  }
  0x3a   : > { %3568 = vmatpush3.bf16.msra.mxu0 %v3967_v2  ;;  %v4034_v2 = vld [vmem:[%s4234_s13 + $0xec] ss:$36 sps:$4 sm:$0xff]  }
  0x3b   : > { %3458 = vmatpush3.bf16.msra.mxu1 %v3929_v47  ;;  %3569 = vmatprep.subr.bf16.mxu0 %v3980_v8  ;;  %v4059_v47 = vld [vmem:[%s5005_s1 + $0x1f8] sm:$0xff]  }
  0x3c   : > { %3459 = vmatprep.subr.bf16.mxu1 %v3936_v48  ;;  %v4060_v48 = vld [vmem:[%s5005_s1 + $0x1b8] sm:$0xff]  }
  0x3d   : > { %v4040_v8 = vld [vmem:[%s4234_s13 + $0x134] ss:$36 sps:$4 sm:$0xff]  }
  0x3e   : > { %1763 = vmatmul.mubr.bf16.gmra.mrb[12].mxu0 %v3934_v49  ;;  %1859 = vmatmul.mubr.bf16.gmra.mrb[12].mxu1 %v3935_v50  ;;  %v4008_v49 = vld [vmem:[%s4234_s13 + $0x24c] ss:$36 sps:$4 sm:$0xff]   ;;  %v4012_v50 = vld [vmem:[%s4234_s13 + $0x14] ss:$36 sps:$4 sm:$0xff]  }
  0x3f   : > { %3460 = vmatpush3.bf16.msra.mxu1 %v3937_v51  ;;  %1770 = vmatprep.mubr.bf16.mxu0 %v3942_v53  ;;  %v4010_v51 = vld [vmem:[%s4234_s13 + $0x10] ss:$36 sps:$4 sm:$0xff]  }
  0x40   : > { %3461 = vmatprep.subr.bf16.mxu1 %v3938_v52  ;;  %1899 = vmatprep.mubr.bf16.mxu1 %v3946_v54  ;;  %v4013_v52 = vld [vmem:[%s4234_s13 + $0x248] ss:$36 sps:$4 sm:$0xff]   ;;  %v4017_v53 = vld [vmem:[%s4234_s13 + $0x294] ss:$36 sps:$4 sm:$0xff]   ;;  %v4019_v54 = vld [vmem:[%s4234_s13 + $0x5c] ss:$36 sps:$4 sm:$0xff]  }
  0x41   : > { %3570 = vmatpush3.bf16.msra.mxu0 %v3982_v10  ;;  %v4042_v10 = vld [vmem:[%s4234_s13 + $0x368] ss:$36 sps:$4 sm:$0xff]  }
  0x42   : > { %3571 = vmatprep.subr.bf16.mxu0 %v3990_v15  ;;  %v4052_v15 = vld [vmem:[%s4234_s13 + $0x178] ss:$36 sps:$4 sm:$0xff]  }
  0x43   : > { %3462 = vmatpush3.bf16.msra.mxu1 %v3940_v57  ;;  %v4021_v57 = vld [vmem:[%s4234_s13 + $0x290] ss:$36 sps:$4 sm:$0xff]  }
  0x44   : > { %3671 = vmatprep.subr.bf16.mxu1 %v3948_v60  ;;  %v4025_v60 = vld [vmem:[%s4234_s13 + $0xa4] ss:$36 sps:$4 sm:$0xff]  }
  0x45   : > { %3572 = vmatpush3.bf16.msra.mxu0 %v3991_v16  ;;  %v4053_v16 = vld [vmem:[%s4234_s13 + $0x3fc] ss:$36 sps:$4 sm:$0xff]  }
  0x46   : > { %1771 = vmatmul.mubr.bf16.gmra.mrb[16].mxu0 %v3947_v59  ;;  %1900 = vmatmul.mubr.bf16.vlgmr.msra.gmra.mrb[16].mxu1 %v3944_v58  ;;  %v4022_v58 = vld [vmem:[%s4234_s13 + $0x58] ss:$36 sps:$4 sm:$0xff]  }
  0x47   : > { %3672 = vmatpush3.bf16.msra.mxu1 %v3949_v61  ;;  %1778 = vmatprep.mubr.bf16.mxu0 %v3950_v62  ;;  %v4023_v59 = vld [vmem:[%s4234_s13 + $0x2dc] ss:$36 sps:$4 sm:$0xff]  }
  0x48   : > { %1907 = vmatprep.mubr.bf16.mxu1 %v3952_v63  ;;  %3673 = vmatprep.subr.bf16.mxu1 %v3964_v1  ;;  %v4061_v61 = vld [vmem:[%s5005_s1 + $0x218] sm:$0xff]   ;;  %v4074_v62 = vld [vmem:[%s5005_s1 + $0x220] sm:$0xff]  }
  0x49   : > { %3573 = vmatprep.subr.bf16.mxu0 %v4006_v24  ;;  %v4027_v63 = vld [vmem:[%s4234_s13 + $0x2d8] ss:$36 sps:$4 sm:$0xff]   ;;  %v4032_v1 = vld [vmem:[%s4234_s13 + $0x324] ss:$36 sps:$4 sm:$0xff]  }
  0x4a   : > { %3574 = vmatpush3.bf16.msra.mxu0 %v4007_v25  ;;  %v4068_v24 = vld [vmem:[%s4234_s13 + $0x254] ss:$36 sps:$4 sm:$0xff]   ;;  %v4072_v25 = vld [vmem:[%s4234_s13 + $0x1c] ss:$36 sps:$4 sm:$0xff]  }
  0x4b   : > { %3674 = vmatpush3.bf16.msra.mxu1 %v3965_v3  ;;  %3807 = vmatprep.subr.bf16.mxu0 %v4016_v29  ;;  %v4087_v3 = vld [vmem:[%s5005_s1 + $0x228] sm:$0xff]  }
  0x4c   : > { %3675 = vmatprep.subr.bf16.mxu1 %v3981_v9  ;;  %v4113_v9 = vld [vmem:[%s5005_s1 + $0x238] sm:$0xff]  }
  0x4e   : > { %1779 = vmatmul.mubr.bf16.gmra.mrb[20].mxu0 %v3954_v4  ;;  %1908 = vmatmul.mubr.bf16.gmra.mrb[20].mxu1 %v3955_v5  ;;  %v4036_v4 = vld [vmem:[%s4234_s13 + $0x320] ss:$36 sps:$4 sm:$0xff]   ;;  %v4037_v5 = vld [vmem:[%s4234_s13 + $0xe8] ss:$36 sps:$4 sm:$0xff]  }
  0x4f   : > { %1786 = vmatprep.mubr.bf16.mxu0 %v3958_v6  ;;  %1915 = vmatprep.mubr.bf16.mxu1 %v3960_v7  ;;  %v4100_v6 = vld [vmem:[%s5005_s1 + $0x230] sm:$0xff]  }
  0x50   : > { %3676 = vmatpush3.bf16.msra.mxu1 %v3983_v11  ;;  %v4038_v7 = vld [vmem:[%s4234_s13 + $0x36c] ss:$36 sps:$4 sm:$0xff]  }
  0x51   : > { %3677 = vmatprep.subr.bf16.mxu1 %v3998_v18  ;;  %v4043_v11 = vld [vmem:[%s4234_s13 + $0x130] ss:$36 sps:$4 sm:$0xff]   ;;  %v4057_v18 = vld [vmem:[%s4234_s13 + $0x3f8] ss:$36 sps:$4 sm:$0xff]  }
  0x54   : > { %3678 = vmatpush3.bf16.msra.mxu1 %v3999_v19  ;;  %v4058_v19 = vld [vmem:[%s4234_s13 + $0x1c0] ss:$36 sps:$4 sm:$0xff]  }
  0x55   : > { %3679 = vmatprep.subr.bf16.mxu1 %v4014_v26  ;;  %v4070_v26 = vld [vmem:[%s4234_s13 + $0x18] ss:$36 sps:$4 sm:$0xff]  }
  0x56   : > { %1787 = vmatmul.mubr.bf16.gmra.mrb[24].mxu0 %v3962_v12  ;;  %1916 = vmatmul.mubr.bf16.gmra.mrb[24].mxu1 %v3963_v13  ;;  %v4047_v12 = vld [vmem:[%s4234_s13 + $0x3b4] ss:$36 sps:$4 sm:$0xff]   ;;  %v4049_v13 = vld [vmem:[%s4234_s13 + $0x17c] ss:$36 sps:$4 sm:$0xff]  }
  0x57   : > { %1794 = vmatprep.mubr.bf16.mxu0 %v3968_v14  ;;  %1923 = vmatprep.mubr.bf16.mxu1 %v3970_v17  ;;  %v4051_v14 = vld [vmem:[%s4234_s13 + $0x3b0] ss:$36 sps:$4 sm:$0xff]   ;;  %v4055_v17 = vld [vmem:[%s4234_s13 + $0x1c4] ss:$36 sps:$4 sm:$0xff]  }
  0x58   : > { %3680 = vmatpush3.bf16.msra.mxu1 %v4015_v28  ;;  %v4075_v28 = vld [vmem:[%s4234_s13 + $0x29c] ss:$36 sps:$4 sm:$0xff]  }
  0x59   : > { %3681 = vmatprep.subr.bf16.mxu1 %v4029_v33  ;;  %v4083_v33 = vld [vmem:[%s4234_s13 + $0xac] ss:$36 sps:$4 sm:$0xff]  }
  0x5c   : > { %3682 = vmatpush3.bf16.msra.mxu1 %v4030_v35  ;;  %v4086_v35 = vld [vmem:[%s4234_s13 + $0xa8] ss:$36 sps:$4 sm:$0xff]  }
  0x5d   : > { %3683 = vmatprep.subr.bf16.mxu1 %v4044_v41  ;;  %v4096_v41 = vld [vmem:[%s4234_s13 + $0x13c] ss:$36 sps:$4 sm:$0xff]  }
  0x5e   : > { %1795 = vmatmul.mubr.bf16.gmra.mrb[28].mxu0 %v3972_v20  ;;  %1924 = vmatmul.mubr.bf16.gmra.mrb[28].mxu1 %v3973_v21  ;;  %v4062_v20 = vld [vmem:[%s4234_s13 + $0x444] ss:$36 sps:$4 sm:$0xff]   ;;  %v4064_v21 = vld [vmem:[%s4234_s13 + $0x20c] ss:$36 sps:$4 sm:$0xff]  }
  0x5f   : > { %1802 = vmatprep.mubr.bf16.mxu0 %v3974_v22  ;;  %1931 = vmatprep.mubr.bf16.mxu1 %v3976_v23  ;;  %v4066_v22 = vld [vmem:[%s4234_s13 + $0x440] ss:$36 sps:$4 sm:$0xff]   ;;  %v4067_v23 = vld [vmem:[%s4234_s13 + $0x208] ss:$36 sps:$4 sm:$0xff]  }
  0x60   : > { %3684 = vmatpush3.bf16.msra.mxu1 %v4045_v42  ;;  %v4098_v42 = vld [vmem:[%s4234_s13 + $0x370] ss:$36 sps:$4 sm:$0xff]  }
  0x61   : > { %3685 = vmatprep.subr.bf16.mxu1 %v4059_v47  ;;  %v4106_v47 = vld [vmem:[%s4234_s13 + $0x180] ss:$36 sps:$4 sm:$0xff]  }
  0x64   : > { %3686 = vmatpush3.bf16.msra.mxu1 %v4060_v48  ;;  %v4107_v48 = vld [vmem:[%s4234_s13 + $0x404] ss:$36 sps:$4 sm:$0xff]  }
  0x66   : > { %1803 = vmatmul.mubr.bf16.gmra.mrb[32].mxu0 %v3978_v27  ;;  %1932 = vmatmul.mubr.bf16.gmra.mrb[32].mxu1 %v3979_v30  ;;  %v4073_v27 = vld [vmem:[%s4234_s13 + $0x250] ss:$36 sps:$4 sm:$0xff]   ;;  %v4079_v30 = vld [vmem:[%s4234_s13 + $0x298] ss:$36 sps:$4 sm:$0xff]  }
  0x67   : > { %1810 = vmatprep.mubr.bf16.mxu0 %v3984_v31  ;;  %1939 = vmatprep.mubr.bf16.mxu1 %v3986_v32  ;;  %v4080_v31 = vld [vmem:[%s4234_s13 + $0x60] ss:$36 sps:$4 sm:$0xff]  }
  0x68   : > { %v4081_v32 = vld [vmem:[%s4234_s13 + $0x2e4] ss:$36 sps:$4 sm:$0xff]  }
  0x6e   : > { %1811 = vmatmul.mubr.bf16.gmra.mrb[36].mxu0 %v3988_v34  ;;  %1940 = vmatmul.mubr.bf16.gmra.mrb[36].mxu1 %v3989_v36  ;;  %v4085_v34 = vld [vmem:[%s4234_s13 + $0x2e0] ss:$36 sps:$4 sm:$0xff]   ;;  %v4088_v36 = vld [vmem:[%s4234_s13 + $0x32c] ss:$36 sps:$4 sm:$0xff]  }
  0x6f   : > { %1818 = vmatprep.mubr.bf16.mxu0 %v3992_v37  ;;  %1947 = vmatprep.mubr.bf16.mxu1 %v3994_v38  ;;  %v4090_v37 = vld [vmem:[%s4234_s13 + $0xf4] ss:$36 sps:$4 sm:$0xff]   ;;  %v4092_v38 = vld [vmem:[%s4234_s13 + $0x328] ss:$36 sps:$4 sm:$0xff]  }
  0x76   : > { %1819 = vmatmul.mubr.bf16.gmra.mrb[40].mxu0 %v3996_v39  ;;  %1948 = vmatmul.mubr.bf16.gmra.mrb[40].mxu1 %v3997_v40  ;;  %v4093_v39 = vld [vmem:[%s4234_s13 + $0xf0] ss:$36 sps:$4 sm:$0xff]  }
  0x77   : > { %1826 = vmatprep.mubr.bf16.mxu0 %v4000_v43  ;;  %1955 = vmatprep.mubr.bf16.mxu1 %v4002_v44  ;;  %v4094_v40 = vld [vmem:[%s4234_s13 + $0x374] ss:$36 sps:$4 sm:$0xff]   ;;  %v4101_v44 = vld [vmem:[%s4234_s13 + $0x3bc] ss:$36 sps:$4 sm:$0xff]  }
  0x78   : > { %v4099_v43 = vld [vmem:[%s4234_s13 + $0x138] ss:$36 sps:$4 sm:$0xff]  }
  0x7e   : > { %1827 = vmatmul.mubr.bf16.gmra.mrb[44].mxu0 %v4004_v45  ;;  %1956 = vmatmul.mubr.bf16.gmra.mrb[44].mxu1 %v4005_v46  ;;  %v4103_v45 = vld [vmem:[%s4234_s13 + $0x184] ss:$36 sps:$4 sm:$0xff]   ;;  %v4105_v46 = vld [vmem:[%s4234_s13 + $0x3b8] ss:$36 sps:$4 sm:$0xff]  }
  0x7f   : > { %1963 = vmatprep.mubr.bf16.mxu1 %v4008_v49  ;;  %2060 = vmatprep.mubr.bf16.mxu0 %v4012_v50  ;;  %v4109_v49 = vld [vmem:[%s4234_s13 + $0x1cc] ss:$36 sps:$4 sm:$0xff]   ;;  %v4111_v50 = vld [vmem:[%s4234_s13 + $0x400] ss:$36 sps:$4 sm:$0xff]  }
  0x86   : > { %1964 = vmatmul.mubr.bf16.gmra.mrb[48].mxu1 %v4013_v52  ;;  %2061 = vmatmul.mubr.bf16.vlgmr.msra.gmra.mrb[48].mxu0 %v4010_v51  ;;  %v4112_v51 = vld [vmem:[%s4234_s13 + $0x1c8] ss:$36 sps:$4 sm:$0xff]  }
  0x87   : > { %3808 = vmatpush3.bf16.msra.mxu0 %v4016_v29  ;;  %1971 = vmatprep.mubr.bf16.mxu1 %v4017_v53  ;;  %v4077_v29 = vld [vmem:[%s4234_s13 + $0x64] ss:$36 sps:$4 sm:$0xff]   ;;  %v4114_v52 = vld [vmem:[%s4234_s13 + $0x44c] ss:$36 sps:$4 sm:$0xff]   ;;  %v4116_v53 = vld [vmem:[%s4234_s13 + $0x214] ss:$36 sps:$4 sm:$0xff]  }
  0x88   : > { %2068 = vmatprep.mubr.bf16.mxu0 %v4019_v54  ;;  %3809 = vmatprep.subr.bf16.mxu0 %v4031_v55 }
  0x8b   : > { %3810 = vmatpush3.bf16.msra.mxu0 %v4031_v55 }
  0x8c   : > { %3811 = vmatprep.subr.bf16.mxu0 %v4046_v56 }
  0x8e   : > { %1972 = vmatmul.mubr.bf16.gmra.mrb[52].mxu1 %v4021_v57  ;;  %2069 = vmatmul.mubr.bf16.gmra.mrb[52].mxu0 %v4022_v58  ;;  %v4118_v58 = vld [vmem:[%s4234_s13 + $0x448] ss:$36 sps:$4 sm:$0xff]  }
  0x8f   : > { %1979 = vmatprep.mubr.bf16.mxu1 %v4023_v59  ;;  %2076 = vmatprep.mubr.bf16.mxu0 %v4025_v60  ;;  %v4119_v59 = vld [vmem:[%s4234_s13 + $0x210] ss:$36 sps:$4 sm:$0xff]  }
  0x90   : > { %3812 = vmatpush3.bf16.msra.mxu0 %v4046_v56 }
  0x91   : > { %3813 = vmatprep.subr.bf16.mxu0 %v4061_v61 }
  0x94   : > { %3814 = vmatpush3.bf16.msra.mxu0 %v4061_v61 }
  0x95   : > { %3815 = vmatprep.subr.bf16.mxu0 %v4074_v62 }
  0x96   : > { %1980 = vmatmul.mubr.bf16.gmra.mrb[56].mxu1 %v4027_v63  ;;  %2077 = vmatmul.mubr.bf16.gmra.mrb[56].mxu0 %v4028_v0  ;;  %v4120_v0 = vld [vmem:[%s4234_s13 + $0x25c] ss:$36 sps:$4 sm:$0xff]  }
  0x97   : > { %1987 = vmatprep.mubr.bf16.mxu1 %v4032_v1  ;;  %2084 = vmatprep.mubr.bf16.mxu0 %v4034_v2  ;;  %v4122_v1 = vld [vmem:[%s4234_s13 + $0x20] ss:$36 sps:$4 sm:$0xff]  }
  0x98   : > { %3816 = vmatpush3.bf16.msra.mxu0 %v4074_v62 }
  0x99   : > { %3817 = vmatprep.subr.bf16.mxu0 %v4087_v3 }
  0x9c   : > { %3818 = vmatpush3.bf16.msra.mxu0 %v4087_v3 }
  0x9d   : > { %3819 = vmatprep.subr.bf16.mxu0 %v4100_v6 }
  0x9e   : > { %1988 = vmatmul.mubr.bf16.gmra.mrb[60].mxu1 %v4036_v4  ;;  %2085 = vmatmul.mubr.bf16.gmra.mrb[60].mxu0 %v4037_v5 }
  0x9f   : > { %1995 = vmatprep.mubr.bf16.mxu1 %v4038_v7  ;;  %2092 = vmatprep.mubr.bf16.mxu0 %v4040_v8 }
  0xa0   : > { %3820 = vmatpush3.bf16.msra.mxu0 %v4100_v6 }
  0xa1   : > { %3821 = vmatprep.subr.bf16.mxu0 %v4113_v9 }
  0xa4   : > { %3822 = vmatpush3.bf16.msra.mxu0 %v4113_v9 }
  0xa6   : > { %1996 = vmatmul.mubr.bf16.gmra.mrb[64].mxu1 %v4042_v10  ;;  %2093 = vmatmul.mubr.bf16.gmra.mrb[64].mxu0 %v4043_v11  ;;  %v4123_v10 = vld [vmem:[%s4234_s13 + $0x258] ss:$36 sps:$4 sm:$0xff]   ;;  %v4124_v11 = vld [vmem:[%s4234_s13 + $0x68] ss:$36 sps:$4 sm:$0xff]  }
  0xa7   : > { %2003 = vmatprep.mubr.bf16.mxu1 %v4047_v12  ;;  %2100 = vmatprep.mubr.bf16.mxu0 %v4049_v13 }
  0xae   : > { %2004 = vmatmul.mubr.bf16.gmra.mrb[68].mxu1 %v4051_v14  ;;  %2101 = vmatmul.mubr.bf16.gmra.mrb[68].mxu0 %v4052_v15 }
  0xaf   : > { %2011 = vmatprep.mubr.bf16.mxu1 %v4053_v16  ;;  %2108 = vmatprep.mubr.bf16.mxu0 %v4055_v17  ;;  %v4125_v16 = vld [vmem:[%s4234_s13 + $0x2a4] ss:$36 sps:$4 sm:$0xff]   ;;  %v4127_v17 = vld [vmem:[%s4234_s13 + $0xb0] ss:$36 sps:$4 sm:$0xff]  }
  0xb6   : > { %2012 = vmatmul.mubr.bf16.gmra.mrb[72].mxu1 %v4057_v18  ;;  %2109 = vmatmul.mubr.bf16.gmra.mrb[72].mxu0 %v4058_v19 }
  0xb7   : > { %2019 = vmatprep.mubr.bf16.mxu1 %v4062_v20  ;;  %2116 = vmatprep.mubr.bf16.mxu0 %v4064_v21 }
  0xbe   : > { %2020 = vmatmul.mubr.bf16.gmra.mrb[76].mxu1 %v4066_v22  ;;  %2117 = vmatmul.mubr.bf16.gmra.mrb[76].mxu0 %v4067_v23 }
  0xbf   : > { %2124 = vmatprep.mubr.bf16.mxu0 %v4068_v24  ;;  %2221 = vmatprep.mubr.bf16.mxu1 %v4072_v25 }
  0xc6   : > { %2125 = vmatmul.mubr.bf16.gmra.mrb[80].mxu0 %v4073_v27  ;;  %2222 = vmatmul.mubr.bf16.vlgmr.msra.gmra.mrb[80].mxu1 %v4070_v26  ;;  %v4128_v26 = vld [vmem:[%s4234_s13 + $0x2a0] ss:$36 sps:$4 sm:$0xff]   ;;  %v4129_v27 = vld [vmem:[%s4234_s13 + $0xf8] ss:$36 sps:$4 sm:$0xff]  }
  0xc7   : > { %2132 = vmatprep.mubr.bf16.mxu0 %v4075_v28  ;;  %2229 = vmatprep.mubr.bf16.mxu1 %v4077_v29 }
  0xce   : > { %2133 = vmatmul.mubr.bf16.gmra.mrb[84].mxu0 %v4079_v30  ;;  %2230 = vmatmul.mubr.bf16.gmra.mrb[84].mxu1 %v4080_v31 }
  0xcf   : > { %2140 = vmatprep.mubr.bf16.mxu0 %v4081_v32  ;;  %2237 = vmatprep.mubr.bf16.mxu1 %v4083_v33  ;;  %v4130_v32 = vld [vmem:[%s4234_s13 + $0x2ec] ss:$36 sps:$4 sm:$0xff]   ;;  %v4132_v33 = vld [vmem:[%s4234_s13 + $0x140] ss:$36 sps:$4 sm:$0xff]  }
  0xd6   : > { %2141 = vmatmul.mubr.bf16.gmra.mrb[88].mxu0 %v4085_v34  ;;  %2238 = vmatmul.mubr.bf16.gmra.mrb[88].mxu1 %v4086_v35 }
  0xd7   : > { %2148 = vmatprep.mubr.bf16.mxu0 %v4088_v36  ;;  %2245 = vmatprep.mubr.bf16.mxu1 %v4090_v37 }
  0xde   : > { %2149 = vmatmul.mubr.bf16.gmra.mrb[92].mxu0 %v4092_v38  ;;  %2246 = vmatmul.mubr.bf16.gmra.mrb[92].mxu1 %v4093_v39 }
  0xdf   : > { %2156 = vmatprep.mubr.bf16.mxu0 %v4094_v40  ;;  %2253 = vmatprep.mubr.bf16.mxu1 %v4096_v41 }
  0xe6   : > { %2157 = vmatmul.mubr.bf16.gmra.mrb[96].mxu0 %v4098_v42  ;;  %2254 = vmatmul.mubr.bf16.gmra.mrb[96].mxu1 %v4099_v43  ;;  %v4133_v42 = vld [vmem:[%s4234_s13 + $0x2e8] ss:$36 sps:$4 sm:$0xff]  }
  0xe7   : > { %2164 = vmatprep.mubr.bf16.mxu0 %v4101_v44  ;;  %2261 = vmatprep.mubr.bf16.mxu1 %v4103_v45  ;;  %v4134_v43 = vld [vmem:[%s4234_s13 + $0x188] ss:$36 sps:$4 sm:$0xff]  }
  0xee   : > { %2165 = vmatmul.mubr.bf16.gmra.mrb[100].mxu0 %v4105_v46  ;;  %2262 = vmatmul.mubr.bf16.gmra.mrb[100].mxu1 %v4106_v47 }
  0xef   : > { %2172 = vmatprep.mubr.bf16.mxu0 %v4107_v48  ;;  %2269 = vmatprep.mubr.bf16.mxu1 %v4109_v49  ;;  %v4135_v48 = vld [vmem:[%s4234_s13 + $0x334] ss:$36 sps:$4 sm:$0xff]  }
  0xf0   : > { %v4137_v49 = vld [vmem:[%s4234_s13 + $0x1d0] ss:$36 sps:$4 sm:$0xff]  }
  0xf6   : > { %2173 = vmatmul.mubr.bf16.gmra.mrb[104].mxu0 %v4111_v50  ;;  %2270 = vmatmul.mubr.bf16.gmra.mrb[104].mxu1 %v4112_v51 }
  0xf7   : > { %2180 = vmatprep.mubr.bf16.mxu0 %v4114_v52  ;;  %2277 = vmatprep.mubr.bf16.mxu1 %v4116_v53 }
  0xf9   : > { %v3423_v54 = vpop.f32.mrb[0].mxu1  ;;  %v3351_v55 = vpop.f32.mrb[0].mxu0 }
  0xfa   : > { %v3424_v56 = vpop.f32.mrb[1].mxu1  ;;  %v3352_v57 = vpop.f32.mrb[1].mxu0 }
  0xfb   : > { %v4537_v60 = vadd.f32 %v3424_v56, %v3423_v54  ;;  %v3426_v61 = vpop.f32.mrb[2].mxu1  ;;  %v4539_v62 = vadd.f32 %v3352_v57, %v3351_v55  ;;  %v3354_v63 = vpop.f32.mrb[2].mxu0  ;;  %v4586_v54 = vld [vmem:[%s5006_s2] ss:$0 sm:$0xff] }
  0xfc   : > { %v3427_v2 = vpop.f32.mrb[3].mxu1  ;;  %v3355_v3 = vpop.f32.mrb[3].mxu0 }
  0xfd   : > { %v4543_v4 = vadd.f32 %v3427_v2, %v3426_v61  ;;  %v4545_v5 = vadd.f32 %v3355_v3, %v3354_v63  ;;  %v4139_v61 = vld [vmem:[%s4234_s13 + $0x218] ss:$36 sps:$4 sm:$0xff]   ;;  %v1741_v63 = vadd.f32 %v4539_v62, %v4586_v54 }
  0xfe   : > { %2181 = vmatmul.mubr.bf16.gmra.mrb[108].mxu0 %v4118_v58  ;;  %2278 = vmatmul.mubr.bf16.gmra.mrb[108].mxu1 %v4119_v59  ;;  %v4138_v59 = vld [vmem:[%s4234_s13 + $0x330] ss:$36 sps:$4 sm:$0xff]  }
  0xff   : > { %2285 = vmatprep.mubr.bf16.mxu1 %v4120_v0  ;;  %3823 = vmatprep.mubr.bf16.mxu0 %v4122_v1 }
 0x101   : > { %v3429_v6 = vpop.f32.mrb[4].mxu1  ;;  %v3357_v7 = vpop.f32.mrb[4].mxu0 }
 0x102   : > { %v3430_v8 = vpop.f32.mrb[5].mxu1  ;;  %v3358_v9 = vpop.f32.mrb[5].mxu0 }
 0x103   : > { %v4549_v12 = vadd.f32 %v3430_v8, %v3429_v6  ;;  %v3432_v13 = vpop.f32.mrb[6].mxu1  ;;  %v4551_v14 = vadd.f32 %v3358_v9, %v3357_v7  ;;  %v3360_v15 = vpop.f32.mrb[6].mxu0  ;;  %v4140_v6 = vld [vmem:[%s4234_s13 + $0x37c] ss:$36 sps:$4 sm:$0xff]  }
 0x104   : > { %v3433_v18 = vpop.f32.mrb[7].mxu1  ;;  %v3361_v19 = vpop.f32.mrb[7].mxu0  ;;  %v4142_v7 = vld [vmem:[%s4234_s13 + $0x260] ss:$36 sps:$4 sm:$0xff]  }
 0x105   : > { %v4555_v20 = vadd.f32 %v3433_v18, %v3432_v13  ;;  %v4557_v21 = vadd.f32 %v3361_v19, %v3360_v15 }
 0x106   : > { %2286 = vmatmul.mubr.bf16.gmra.mrb[112].mxu1 %v4123_v10  ;;  %3824 = vmatmul.mubr.bf16.vlgmr.msra.gmra.mrb[112].mxu0 %v4124_v11  ;;  %v1744_v10 = vadd.f32 %v4545_v5, %v4586_v54  ;;  %v1749_v5 = vadd.f32 %v4551_v14, %v4586_v54 }
 0x107   : > { %2293 = vmatprep.mubr.bf16.mxu1 %v4125_v16  ;;  %3827 = vmatprep.mubr.bf16.mxu0 %v4127_v17 }
 0x109   : > { %v3435_v22 = vpop.f32.mrb[8].mxu1  ;;  %v3363_v23 = vpop.f32.mrb[8].mxu0 }
 0x10a   : > { %v3436_v24 = vpop.f32.mrb[9].mxu1  ;;  %v3364_v25 = vpop.f32.mrb[9].mxu0 }
 0x10b   : > { %v4561_v28 = vadd.f32 %v3436_v24, %v3435_v22  ;;  %v3438_v29 = vpop.f32.mrb[10].mxu1  ;;  %v4563_v30 = vadd.f32 %v3364_v25, %v3363_v23  ;;  %v3366_v31 = vpop.f32.mrb[10].mxu0  ;;  %v4143_v22 = vld [vmem:[%s4234_s13 + $0x378] ss:$36 sps:$4 sm:$0xff]   ;;  %v4144_v23 = vld [vmem:[%s4234_s13 + $0x2a8] ss:$36 sps:$4 sm:$0xff]  }
 0x10c   : > { %v3439_v34 = vpop.f32.mrb[11].mxu1  ;;  %v3367_v35 = vpop.f32.mrb[11].mxu0 }
 0x10d   : > { %v4567_v36 = vadd.f32 %v3439_v34, %v3438_v29  ;;  %v4569_v37 = vadd.f32 %v3367_v35, %v3366_v31  ;;  %v4145_v29 = vld [vmem:[%s4234_s13 + $0x3c4] ss:$36 sps:$4 sm:$0xff]   ;;  %v4147_v31 = vld [vmem:[%s4234_s13 + $0x2f0] ss:$36 sps:$4 sm:$0xff]   ;;  %v1752_v34 = vadd.f32 %v4557_v21, %v4586_v54  ;;  %v1757_v21 = vadd.f32 %v4563_v30, %v4586_v54 }
 0x10e   : > { %2294 = vmatmul.mubr.bf16.gmra.mrb[116].mxu1 %v4128_v26  ;;  %3828 = vmatmul.mubr.bf16.gmra.mrb[116].mxu0 %v4129_v27 }
 0x10f   : > { %2301 = vmatprep.mubr.bf16.mxu1 %v4130_v32  ;;  %3831 = vmatprep.mubr.bf16.mxu0 %v4132_v33 }
 0x111   : > { %v3441_v38 = vpop.f32.mrb[12].mxu1  ;;  %v3369_v39 = vpop.f32.mrb[12].mxu0 }
 0x112   : > { %v3442_v40 = vpop.f32.mrb[13].mxu1  ;;  %v3370_v41 = vpop.f32.mrb[13].mxu0 }
 0x113   : > { %v4573_v44 = vadd.f32 %v3442_v40, %v3441_v38  ;;  %v3444_v45 = vpop.f32.mrb[14].mxu1  ;;  %v4575_v46 = vadd.f32 %v3370_v41, %v3369_v39  ;;  %v3372_v47 = vpop.f32.mrb[14].mxu0 }
 0x114   : > { %v3445_v50 = vpop.f32.mrb[15].mxu1  ;;  %v3373_v51 = vpop.f32.mrb[15].mxu0 }
 0x115   : > { %v4579_v52 = vadd.f32 %v3445_v50, %v3444_v45  ;;  %v4581_v53 = vadd.f32 %v3373_v51, %v3372_v47  ;;  %v4148_v45 = vld [vmem:[%s4234_s13 + $0x3c0] ss:$36 sps:$4 sm:$0xff]   ;;  %v4149_v47 = vld [vmem:[%s4234_s13 + $0x338] ss:$36 sps:$4 sm:$0xff]  }
 0x116   : > { %2302 = vmatmul.mubr.bf16.gmra.mrb[120].mxu1 %v4133_v42  ;;  %3832 = vmatmul.mubr.bf16.gmra.mrb[120].mxu0 %v4134_v43 }
 0x117   : > { %2309 = vmatprep.mubr.bf16.mxu1 %v4135_v48  ;;  %3835 = vmatprep.mubr.bf16.mxu0 %v4137_v49 }
 0x119   : > { %v3463_v55 = vpop.f32.mrb[16].mxu1  ;;  %v3375_v56 = vpop.f32.mrb[16].mxu0 }
 0x11a   : > { %v3464_v57 = vpop.f32.mrb[17].mxu1  ;;  %v3376_v58 = vpop.f32.mrb[17].mxu0 }
 0x11b   : > { %v3465_v0 = vadd.f32 %v3464_v57, %v3463_v55  ;;  %v3466_v1 = vpop.f32.mrb[18].mxu1  ;;  %v4592_v2 = vadd.f32 %v3376_v58, %v3375_v56  ;;  %v3378_v3 = vpop.f32.mrb[18].mxu0  ;;  %v4150_v55 = vld [vmem:[%s4234_s13 + $0x40c] ss:$36 sps:$4 sm:$0xff]   ;;  %v4152_v56 = vld [vmem:[%s4234_s13 + $0x380] ss:$36 sps:$4 sm:$0xff]  }
 0x11c   : > { %v3467_v8 = vpop.f32.mrb[19].mxu1  ;;  %v3379_v9 = vpop.f32.mrb[19].mxu0 }
 0x11d   : > { %v4598_v11 = vadd.f32 %v3465_v0, %v1741_v63  ;;  %v3468_v13 = vadd.f32 %v3467_v8, %v3466_v1  ;;  %v4600_v15 = vadd.f32 %v3379_v9, %v3378_v3  ;;  %v4153_v8 = vld [vmem:[%s4234_s13 + $0x408] ss:$36 sps:$4 sm:$0xff]  }
 0x11e   : > { %2310 = vmatmul.mubr.bf16.gmra.mrb[124].mxu1 %v4138_v59  ;;  %3836 = vmatmul.mubr.bf16.gmra.mrb[124].mxu0 %v4139_v61  ;;  %v1760_v59 = vadd.f32 %v4569_v37, %v4586_v54  ;;  %v4154_v9 = vld [vmem:[%s4234_s13 + $0x3c8] ss:$36 sps:$4 sm:$0xff]   ;;  %v1765_v37 = vadd.f32 %v4575_v46, %v4586_v54 }
 0x11f   : > { %v4602_v62 = vadd.f32 %v3468_v13, %v1744_v10  ;;  %2317 = vmatprep.mubr.bf16.mxu1 %v4140_v6  ;;  %3839 = vmatprep.mubr.bf16.mxu0 %v4142_v7 }
 0x121   : > { %v3469_v16 = vpop.f32.mrb[20].mxu1  ;;  %v3381_v17 = vpop.f32.mrb[20].mxu0 }
 0x122   : > { %v3470_v18 = vpop.f32.mrb[21].mxu1  ;;  %v3382_v19 = vpop.f32.mrb[21].mxu0 }
 0x123   : > { %v3471_v24 = vadd.f32 %v3470_v18, %v3469_v16  ;;  %v3472_v25 = vpop.f32.mrb[22].mxu1  ;;  %v4608_v26 = vadd.f32 %v3382_v19, %v3381_v17  ;;  %v3384_v27 = vpop.f32.mrb[22].mxu0  ;;  %v4155_v18 = vld [vmem:[%s4234_s13 + $0x454] ss:$36 sps:$4 sm:$0xff]  }
 0x124   : > { %v3473_v32 = vpop.f32.mrb[23].mxu1  ;;  %v3385_v33 = vpop.f32.mrb[23].mxu0  ;;  %v4157_v19 = vld [vmem:[%s4234_s13 + $0x410] ss:$36 sps:$4 sm:$0xff]  }
 0x125   : > { %v4614_v35 = vadd.f32 %v3471_v24, %v1749_v5  ;;  %v3474_v38 = vadd.f32 %v3473_v32, %v3472_v25  ;;  %v4616_v39 = vadd.f32 %v3385_v33, %v3384_v27  ;;  %v1768_v5 = vadd.f32 %v4581_v53, %v4586_v54 }
 0x126   : > { %2318 = vmatmul.mubr.bf16.gmra.mrb[128].mxu1 %v4143_v22  ;;  %3840 = vmatmul.mubr.bf16.gmra.mrb[128].mxu0 %v4144_v23  ;;  %v1773_v53 = vadd.f32 %v4592_v2, %v4586_v54 }
 0x127   : > { %v4618_v14 = vadd.f32 %v3474_v38, %v1752_v34  ;;  %2325 = vmatprep.mubr.bf16.mxu1 %v4145_v29  ;;  %3843 = vmatprep.mubr.bf16.mxu0 %v4147_v31  ;;  %v4158_v34 = vld [vmem:[%s4234_s13 + $0x450] ss:$36 sps:$4 sm:$0xff]   ;;  %v4159_v38 = vld [vmem:[%s4234_s13 + $0x458] ss:$36 sps:$4 sm:$0xff]   ;;  %s2875_s13 = sshll.u32 %s5010_s19, 2 }
 0x128   : > { %s4898_s5 = scalar_lea.vmem %s5007_s3, %s2875_s13  ;;  %s4931_s8 = scalar_lea.vmem %s5008_s4, %s2875_s13 }
 0x129   : > { %v3475_v40 = vpop.f32.mrb[24].mxu1  ;;  %v3387_v41 = vpop.f32.mrb[24].mxu0 }
 0x12a   : > { %v3476_v42 = vpop.f32.mrb[25].mxu1  ;;  %v3388_v43 = vpop.f32.mrb[25].mxu0 }
 0x12b   : > { %v3477_v48 = vadd.f32 %v3476_v42, %v3475_v40  ;;  %v3478_v49 = vpop.f32.mrb[26].mxu1  ;;  %v4624_v50 = vadd.f32 %v3388_v43, %v3387_v41  ;;  %v3390_v51 = vpop.f32.mrb[26].mxu0 }
 0x12c   : > { %v3479_v57 = vpop.f32.mrb[27].mxu1  ;;  %v3391_v58 = vpop.f32.mrb[27].mxu0 }
 0x12d   : > { %v4630_v61 = vadd.f32 %v3477_v48, %v1757_v21  ;;  %v3480_v63 = vadd.f32 %v3479_v57, %v3478_v49  ;;  %v4632_v0 = vadd.f32 %v3391_v58, %v3390_v51  ;;  %v1776_v21 = vadd.f32 %v4600_v15, %v4586_v54 }
 0x12e   : > { %2326 = vmatmul.mubr.bf16.gmra.mrb[132].mxu1 %v4148_v45  ;;  %3844 = vmatmul.mubr.bf16.gmra.mrb[132].mxu0 %v4149_v47 }
 0x12f   : > { %v4634_v30 = vadd.f32 %v3480_v63, %v1760_v59  ;;  %2333 = vmatprep.mubr.bf16.mxu1 %v4150_v55  ;;  %3847 = vmatprep.mubr.bf16.mxu0 %v4152_v56  ;;  %v1781_v59 = vadd.f32 %v4608_v26, %v4586_v54 }
 0x131   : > { %v3481_v1 = vpop.f32.mrb[28].mxu1  ;;  %v3393_v3 = vpop.f32.mrb[28].mxu0 }
 0x132   : > { %v3482_v6 = vpop.f32.mrb[29].mxu1  ;;  %v3394_v7 = vpop.f32.mrb[29].mxu0 }
 0x133   : > { %v3483_v10 = vadd.f32 %v3482_v6, %v3481_v1  ;;  %v3484_v13 = vpop.f32.mrb[30].mxu1  ;;  %v4640_v16 = vadd.f32 %v3394_v7, %v3393_v3  ;;  %v3396_v17 = vpop.f32.mrb[30].mxu0 }
 0x134   : > { %v3485_v22 = vpop.f32.mrb[31].mxu1  ;;  %v3397_v23 = vpop.f32.mrb[31].mxu0 }
 0x135   : > { %v4646_v24 = vadd.f32 %v3483_v10, %v1765_v37  ;;  %v3486_v25 = vadd.f32 %v3485_v22, %v3484_v13  ;;  %v4648_v27 = vadd.f32 %v3397_v23, %v3396_v17  ;;  %v1789_v22 = vadd.f32 %v4624_v50, %v4586_v54 }
 0x136   : > { %2334 = vmatmul.mubr.bf16.gmra.mrb[136].mxu1 %v4153_v8  ;;  %3848 = vmatmul.mubr.bf16.gmra.mrb[136].mxu0 %v4154_v9  ;;  %v1784_v8 = vadd.f32 %v4616_v39, %v4586_v54 }
 0x137   : > { %v4650_v46 = vadd.f32 %v3486_v25, %v1768_v5  ;;  %2341 = vmatprep.mubr.bf16.mxu1 %v4155_v18  ;;  %3851 = vmatprep.mubr.bf16.mxu0 %v4157_v19 }
 0x139   : > { %v3487_v29 = vpop.f32.mrb[32].mxu1  ;;  %v3399_v31 = vpop.f32.mrb[32].mxu0 }
 0x13a   : > { %v3488_v32 = vpop.f32.mrb[33].mxu1  ;;  %v3400_v33 = vpop.f32.mrb[33].mxu0 }
 0x13b   : > { %v3489_v40 = vadd.f32 %v3488_v32, %v3487_v29  ;;  %v3490_v41 = vpop.f32.mrb[34].mxu1  ;;  %v4656_v42 = vadd.f32 %v3400_v33, %v3399_v31  ;;  %v3402_v43 = vpop.f32.mrb[34].mxu0  ;;  %v1792_v32 = vadd.f32 %v4632_v0, %v4586_v54 }
 0x13c   : > { %v3491_v45 = vpop.f32.mrb[35].mxu1  ;;  %v3403_v47 = vpop.f32.mrb[35].mxu0 }
 0x13d   : > { %v4660_v48 = vadd.f32 %v3489_v40, %v1773_v53  ;;  %v3492_v49 = vadd.f32 %v3491_v45, %v3490_v41  ;;  %v3404_v51 = vadd.f32 %v3403_v47, %v3402_v43  ;;  %v1797_v45 = vadd.f32 %v4640_v16, %v4586_v54 }
 0x13e   : > { %2342 = vmatmul.mubr.bf16.gmra.mrb[140].mxu1 %v4158_v34  ;;  %3852 = vmatmul.mubr.bf16.gmra.mrb[140].mxu0 %v4159_v38 }
 0x13f   : > { %v4662_v55 = vadd.f32 %v3492_v49, %v1776_v21 }
 0x141   : > { %v3493_v56 = vpop.f32.mrb[36].mxu1  ;;  %v3405_v2 = vpop.f32.mrb[36].mxu0 }
 0x142   : > { %v3494_v57 = vpop.f32.mrb[37].mxu1  ;;  %v3406_v58 = vpop.f32.mrb[37].mxu0 }
 0x143   : > { %v3495_v63 = vadd.f32 %v3494_v57, %v3493_v56  ;;  %v3496_v1 = vpop.f32.mrb[38].mxu1  ;;  %v4666_v3 = vadd.f32 %v3406_v58, %v3405_v2  ;;  %v3408_v15 = vpop.f32.mrb[38].mxu0  ;;  %v1800_v57 = vadd.f32 %v4648_v27, %v4586_v54  ;;  %v1808_v27 = vadd.f32 %v3404_v51, %v4586_v54 }
 0x144   : > { %v3497_v6 = vpop.f32.mrb[39].mxu1  ;;  %v3409_v7 = vpop.f32.mrb[39].mxu0 }
 0x145   : > { %v4670_v9 = vadd.f32 %v3495_v63, %v1781_v59  ;;  %v3498_v37 = vadd.f32 %v3497_v6, %v3496_v1  ;;  %v3410_v10 = vadd.f32 %v3409_v7, %v3408_v15  ;;  %v1813_v51 = vadd.f32 %v4666_v3, %v4586_v54 }
 0x147   : > { %v4672_v13 = vadd.f32 %v3498_v37, %v1784_v8  ;;  %v1805_v8 = vadd.f32 %v4656_v42, %v4586_v54 }
 0x149   : > { %v3499_v17 = vpop.f32.mrb[40].mxu1  ;;  %v3411_v18 = vpop.f32.mrb[40].mxu0 }
 0x14a   : > { %v3500_v19 = vpop.f32.mrb[41].mxu1  ;;  %v3412_v26 = vpop.f32.mrb[41].mxu0 }
 0x14b   : > { %v3501_v23 = vadd.f32 %v3500_v19, %v3499_v17  ;;  %v3502_v5 = vpop.f32.mrb[42].mxu1  ;;  %v4676_v25 = vadd.f32 %v3412_v26, %v3411_v18  ;;  %v3414_v29 = vpop.f32.mrb[42].mxu0 }
 0x14c   : > { %v3503_v31 = vpop.f32.mrb[43].mxu1  ;;  %v3415_v39 = vpop.f32.mrb[43].mxu0 }
 0x14d   : > { %v4680_v33 = vadd.f32 %v3501_v23, %v1789_v22  ;;  %v3504_v34 = vadd.f32 %v3503_v31, %v3502_v5  ;;  %v4682_v38 = vadd.f32 %v3415_v39, %v3414_v29 }
 0x14f   : > { %v4684_v53 = vadd.f32 %v3504_v34, %v1792_v32 }
 0x151   : > { %v3505_v40 = vpop.f32.mrb[44].mxu1  ;;  %v3417_v41 = vpop.f32.mrb[44].mxu0 }
 0x152   : > { %v3506_v50 = vpop.f32.mrb[45].mxu1  ;;  %v3418_v43 = vpop.f32.mrb[45].mxu0 }
 0x153   : > { %v3507_v47 = vadd.f32 %v3506_v50, %v3505_v40  ;;  %v3508_v21 = vpop.f32.mrb[46].mxu1  ;;  %v4688_v49 = vadd.f32 %v3418_v43, %v3417_v41  ;;  %v3420_v56 = vpop.f32.mrb[46].mxu0 }
 0x154   : > { %v3509_v0 = vpop.f32.mrb[47].mxu1  ;;  %v3421_v2 = vpop.f32.mrb[47].mxu0 }
 0x155   : > { %v4692_v58 = vadd.f32 %v3507_v47, %v1797_v45  ;;  %v3510_v59 = vadd.f32 %v3509_v0, %v3508_v21  ;;  %v4694_v63 = vadd.f32 %v3421_v2, %v3420_v56 }
 0x157   : > { %v4696_v1 = vadd.f32 %v3510_v59, %v1800_v57 }
 0x159   : > { %v3511_v15 = vpop.f32.mrb[48].mxu1  ;;  %v3575_v6 = vpop.f32.mrb[48].mxu0 }
 0x15a   : > { %v3512_v16 = vpop.f32.mrb[49].mxu1  ;;  %v3576_v7 = vpop.f32.mrb[49].mxu0 }
 0x15b   : > { %v3513_v37 = vadd.f32 %v3512_v16, %v3511_v15  ;;  %v3577_v17 = vadd.f32 %v3576_v7, %v3575_v6  ;;  %v3514_v18 = vpop.f32.mrb[50].mxu1  ;;  %v3578_v19 = vpop.f32.mrb[50].mxu0 }
 0x15c   : > { %v3515_v26 = vpop.f32.mrb[51].mxu1  ;;  %v3579_v22 = vpop.f32.mrb[51].mxu0 }
 0x15d   : > { %v4701_v23 = vadd.f32 %v3513_v37, %v1805_v8  ;;  %v4704_v5 = vadd.f32 %v3577_v17, %v4598_v11  ;;  %v3516_v29 = vadd.f32 %v3515_v26, %v3514_v18  ;;  %v3580_v31 = vadd.f32 %v3579_v22, %v3578_v19 }
 0x15e   : > { %v1816_v11 = vadd.f32 %v3410_v10, %v4586_v54  ;;  %v1821_v10 = vadd.f32 %v4676_v25, %v4586_v54 }
 0x15f   : > { %v4706_v39 = vadd.f32 %v3516_v29, %v1808_v27  ;;  %v4709_v32 = vadd.f32 %v3580_v31, %v4602_v62 }
 0x161   : > { %v3517_v42 = vpop.f32.mrb[52].mxu1  ;;  %v3581_v34 = vpop.f32.mrb[52].mxu0 }
 0x162   : > { %v3518_v40 = vpop.f32.mrb[53].mxu1  ;;  %v3582_v41 = vpop.f32.mrb[53].mxu0 }
 0x163   : > { %v3519_v50 = vadd.f32 %v3518_v40, %v3517_v42  ;;  %v3583_v43 = vadd.f32 %v3582_v41, %v3581_v34  ;;  %v3520_v45 = vpop.f32.mrb[54].mxu1  ;;  %v3584_v47 = vpop.f32.mrb[54].mxu0 }
 0x164   : > { %v3521_v21 = vpop.f32.mrb[55].mxu1  ;;  %v3585_v56 = vpop.f32.mrb[55].mxu0 }
 0x165   : > { %v4714_v0 = vadd.f32 %v3519_v50, %v1813_v51  ;;  %v4717_v62 = vadd.f32 %v3583_v43, %v4614_v35  ;;  %v3522_v2 = vadd.f32 %v3521_v21, %v3520_v45  ;;  %v3586_v57 = vadd.f32 %v3585_v56, %v3584_v47 }
 0x166   : > { %v1824_v35 = vadd.f32 %v4682_v38, %v4586_v54  ;;  %v1829_v38 = vadd.f32 %v4688_v49, %v4586_v54 }
 0x167   : > { %v4719_v59 = vadd.f32 %v3522_v2, %v1816_v11  ;;  %v4722_v15 = vadd.f32 %v3586_v57, %v4618_v14 }
 0x169   : > { %v3523_v3 = vpop.f32.mrb[56].mxu1  ;;  %v3587_v6 = vpop.f32.mrb[56].mxu0 }
 0x16a   : > { %v3524_v16 = vpop.f32.mrb[57].mxu1  ;;  %v3588_v7 = vpop.f32.mrb[57].mxu0 }
 0x16b   : > { %v3525_v8 = vadd.f32 %v3524_v16, %v3523_v3  ;;  %v3589_v37 = vadd.f32 %v3588_v7, %v3587_v6  ;;  %v3526_v17 = vpop.f32.mrb[58].mxu1  ;;  %v3590_v18 = vpop.f32.mrb[58].mxu0 }
 0x16c   : > { %v3527_v19 = vpop.f32.mrb[59].mxu1  ;;  %v3591_v27 = vpop.f32.mrb[59].mxu0 }
 0x16d   : > { %v4728_v26 = vadd.f32 %v3525_v8, %v1821_v10  ;;  %v4731_v14 = vadd.f32 %v3589_v37, %v4630_v61  ;;  %v3528_v22 = vadd.f32 %v3527_v19, %v3526_v17  ;;  %v3592_v29 = vadd.f32 %v3591_v27, %v3590_v18 }
 0x16e   : > { %v1832_v61 = vadd.f32 %v4694_v63, %v4586_v54  ;;  %v1837_v63 = vadd.f32 %v4537_v60, %v4586_v54 }
 0x16f   : > { %v4733_v31 = vadd.f32 %v3528_v22, %v1824_v35  ;;  %v4736_v25 = vadd.f32 %v3592_v29, %v4634_v30 }
 0x171   : > { %v3529_v42 = vpop.f32.mrb[60].mxu1  ;;  %v3593_v34 = vpop.f32.mrb[60].mxu0 }
 0x172   : > { %v3530_v40 = vpop.f32.mrb[61].mxu1  ;;  %v3594_v41 = vpop.f32.mrb[61].mxu0 }
 0x173   : > { %v3531_v51 = vadd.f32 %v3530_v40, %v3529_v42  ;;  %v3595_v50 = vadd.f32 %v3594_v41, %v3593_v34  ;;  %v3532_v43 = vpop.f32.mrb[62].mxu1  ;;  %v3596_v45 = vpop.f32.mrb[62].mxu0 }
 0x174   : > { %v3533_v47 = vpop.f32.mrb[63].mxu1  ;;  %v3597_v11 = vpop.f32.mrb[63].mxu0 }
 0x175   : > { %v4742_v21 = vadd.f32 %v3531_v51, %v1829_v38  ;;  %v4745_v30 = vadd.f32 %v3595_v50, %v4646_v24  ;;  %v3534_v56 = vadd.f32 %v3533_v47, %v3532_v43  ;;  %v3598_v2 = vadd.f32 %v3597_v11, %v3596_v45 }
 0x176   : > { %v1840_v24 = vadd.f32 %v4543_v4, %v4586_v54  ;;  %v1845_v4 = vadd.f32 %v4549_v12, %v4586_v54 }
 0x177   : > { %v4747_v57 = vadd.f32 %v3534_v56, %v1832_v61  ;;  %v4750_v49 = vadd.f32 %v3598_v2, %v4650_v46 }
 0x179   : > { %v3535_v3 = vpop.f32.mrb[64].mxu1  ;;  %v3599_v6 = vpop.f32.mrb[64].mxu0 }
 0x17a   : > { %v3536_v16 = vpop.f32.mrb[65].mxu1  ;;  %v3600_v7 = vpop.f32.mrb[65].mxu0 }
 0x17b   : > { %v3537_v10 = vadd.f32 %v3536_v16, %v3535_v3  ;;  %v3601_v8 = vadd.f32 %v3600_v7, %v3599_v6  ;;  %v3538_v37 = vpop.f32.mrb[66].mxu1  ;;  %v3602_v17 = vpop.f32.mrb[66].mxu0 }
 0x17c   : > { %v3539_v18 = vpop.f32.mrb[67].mxu1  ;;  %v3603_v35 = vpop.f32.mrb[67].mxu0 }
 0x17d   : > { %v4756_v19 = vadd.f32 %v3537_v10, %v1837_v63  ;;  %v4759_v46 = vadd.f32 %v3601_v8, %v4660_v48  ;;  %v3540_v27 = vadd.f32 %v3539_v18, %v3538_v37  ;;  %v3604_v22 = vadd.f32 %v3603_v35, %v3602_v17 }
 0x17e   : > { %v1848_v48 = vadd.f32 %v4555_v20, %v4586_v54  ;;  %v1853_v20 = vadd.f32 %v4561_v28, %v4586_v54 }
 0x17f   : > { %v4761_v29 = vadd.f32 %v3540_v27, %v1840_v24  ;;  %v4764_v60 = vadd.f32 %v3604_v22, %v4662_v55 }
 0x181   : > { %v3541_v42 = vpop.f32.mrb[68].mxu1  ;;  %v3605_v34 = vpop.f32.mrb[68].mxu0 }
 0x182   : > { %v3542_v40 = vpop.f32.mrb[69].mxu1  ;;  %v3606_v41 = vpop.f32.mrb[69].mxu0 }
 0x183   : > { %v3543_v38 = vadd.f32 %v3542_v40, %v3541_v42  ;;  %v3607_v51 = vadd.f32 %v3606_v41, %v3605_v34  ;;  %v3544_v50 = vpop.f32.mrb[70].mxu1  ;;  %v3608_v43 = vpop.f32.mrb[70].mxu0 }
 0x184   : > { %v3545_v45 = vpop.f32.mrb[71].mxu1  ;;  %v3609_v61 = vpop.f32.mrb[71].mxu0 }
 0x185   : > { %v4770_v47 = vadd.f32 %v3543_v38, %v1845_v4  ;;  %v4773_v55 = vadd.f32 %v3607_v51, %v4670_v9  ;;  %v3546_v11 = vadd.f32 %v3545_v45, %v3544_v50  ;;  %v3610_v56 = vadd.f32 %v3609_v61, %v3608_v43 }
 0x186   : > { %v1856_v9 = vadd.f32 %v4567_v36, %v4586_v54  ;;  %v1861_v36 = vadd.f32 %v4573_v44, %v4586_v54 }
 0x187   : > { %v4775_v2 = vadd.f32 %v3546_v11, %v1848_v48  ;;  %v4778_v12 = vadd.f32 %v3610_v56, %v4672_v13 }
 0x189   : > { %v3547_v3 = vpop.f32.mrb[72].mxu1  ;;  %v3611_v6 = vpop.f32.mrb[72].mxu0 }
 0x18a   : > { %v3548_v16 = vpop.f32.mrb[73].mxu1  ;;  %v3612_v7 = vpop.f32.mrb[73].mxu0 }
 0x18b   : > { %v3549_v63 = vadd.f32 %v3548_v16, %v3547_v3  ;;  %v3613_v10 = vadd.f32 %v3612_v7, %v3611_v6  ;;  %v3550_v8 = vpop.f32.mrb[74].mxu1  ;;  %v3614_v37 = vpop.f32.mrb[74].mxu0 }
 0x18c   : > { %v3551_v17 = vpop.f32.mrb[75].mxu1  ;;  %v3615_v24 = vpop.f32.mrb[75].mxu0 }
 0x18d   : > { %v4784_v18 = vadd.f32 %v3549_v63, %v1853_v20  ;;  %v4787_v13 = vadd.f32 %v3613_v10, %v4680_v33  ;;  %v3552_v35 = vadd.f32 %v3551_v17, %v3550_v8  ;;  %v3616_v27 = vadd.f32 %v3615_v24, %v3614_v37 }
 0x18e   : > { %v1864_v33 = vadd.f32 %v4579_v52, %v4586_v54 }
 0x18f   : > { %v4789_v22 = vadd.f32 %v3552_v35, %v1856_v9  ;;  %v4792_v28 = vadd.f32 %v3616_v27, %v4684_v53 }
 0x191   : > { %v3553_v42 = vpop.f32.mrb[76].mxu1  ;;  %v3617_v34 = vpop.f32.mrb[76].mxu0 }
 0x192   : > { %v3554_v40 = vpop.f32.mrb[77].mxu1  ;;  %v3618_v41 = vpop.f32.mrb[77].mxu0 }
 0x193   : > { %v3555_v4 = vadd.f32 %v3554_v40, %v3553_v42  ;;  %v3619_v38 = vadd.f32 %v3618_v41, %v3617_v34  ;;  %v3556_v51 = vpop.f32.mrb[78].mxu1  ;;  %v3620_v50 = vpop.f32.mrb[78].mxu0 }
 0x194   : > { %v3557_v43 = vpop.f32.mrb[79].mxu1  ;;  %v3621_v48 = vpop.f32.mrb[79].mxu0 }
 0x195   : > { %v4798_v45 = vadd.f32 %v3555_v4, %v1861_v36  ;;  %v4801_v53 = vadd.f32 %v3619_v38, %v4692_v58  ;;  %v3558_v61 = vadd.f32 %v3557_v43, %v3556_v51  ;;  %v3622_v11 = vadd.f32 %v3621_v48, %v3620_v50 }
 0x197   : > { %v4803_v56 = vadd.f32 %v3558_v61, %v1864_v33  ;;  %v4806_v44 = vadd.f32 %v3622_v11, %v4696_v1 }
 0x199   : > { %v3623_v3 = vpop.f32.mrb[80].mxu0  ;;  %v3687_v6 = vpop.f32.mrb[80].mxu1 }
 0x19a   : > { %v3624_v16 = vpop.f32.mrb[81].mxu0  ;;  %v3688_v7 = vpop.f32.mrb[81].mxu1 }
 0x19b   : > { %v3625_v20 = vadd.f32 %v3624_v16, %v3623_v3  ;;  %v3689_v52 = vadd.f32 %v3688_v7, %v3687_v6  ;;  %v3626_v54 = vpop.f32.mrb[82].mxu0  ;;  %v3690_v63 = vpop.f32.mrb[82].mxu1 }
 0x19c   : > { %v3627_v10 = vpop.f32.mrb[83].mxu0  ;;  %v3691_v8 = vpop.f32.mrb[83].mxu1 }
 0x19d   : > { %v4809_v58 = vadd.f32 %v3625_v20, %v4701_v23  ;;  %v3628_v37 = vadd.f32 %v3627_v10, %v3626_v54  ;;  %v3692_v9 = vadd.f32 %v3691_v8, %v3690_v63  ;;  %v4812_v17 = vadd.f32 %v3689_v52, %v4704_v5 }
 0x19f   : > { %v4815_v1 = vadd.f32 %v3628_v37, %v4706_v39  ;;  %v4818_v24 = vadd.f32 %v3692_v9, %v4709_v32 }
 0x1a1   : > { %v3629_v35 = vpop.f32.mrb[84].mxu0  ;;  %v3693_v27 = vpop.f32.mrb[84].mxu1 }
 0x1a2   : > { %v3630_v42 = vpop.f32.mrb[85].mxu0  ;;  %v3694_v34 = vpop.f32.mrb[85].mxu1 }
 0x1a3   : > { %v3631_v40 = vadd.f32 %v3630_v42, %v3629_v35  ;;  %v3695_v41 = vadd.f32 %v3694_v34, %v3693_v27  ;;  %v3632_v36 = vpop.f32.mrb[86].mxu0  ;;  %v3696_v23 = vpop.f32.mrb[86].mxu1 }
 0x1a4   : > { %v3633_v4 = vpop.f32.mrb[87].mxu0  ;;  %v3697_v38 = vpop.f32.mrb[87].mxu1 }
 0x1a5   : > { %v4821_v51 = vadd.f32 %v3631_v40, %v4714_v0  ;;  %v3634_v5 = vadd.f32 %v3633_v4, %v3632_v36  ;;  %v3698_v50 = vadd.f32 %v3697_v38, %v3696_v23  ;;  %v4824_v39 = vadd.f32 %v3695_v41, %v4717_v62 }
 0x1a7   : > { %v4827_v32 = vadd.f32 %v3634_v5, %v4719_v59  ;;  %v4830_v33 = vadd.f32 %v3698_v50, %v4722_v15 }
 0x1a9   : > { %v3635_v43 = vpop.f32.mrb[88].mxu0  ;;  %v3699_v48 = vpop.f32.mrb[88].mxu1 }
 0x1aa   : > { %v3636_v61 = vpop.f32.mrb[89].mxu0  ;;  %v3700_v11 = vpop.f32.mrb[89].mxu1 }
 0x1ab   : > { %v3637_v3 = vadd.f32 %v3636_v61, %v3635_v43  ;;  %v3701_v6 = vadd.f32 %v3700_v11, %v3699_v48  ;;  %v3638_v16 = vpop.f32.mrb[90].mxu0  ;;  %v3702_v0 = vpop.f32.mrb[90].mxu1 }
 0x1ac   : > { %v3639_v7 = vpop.f32.mrb[91].mxu0  ;;  %v3703_v20 = vpop.f32.mrb[91].mxu1 }
 0x1ad   : > { %v4833_v52 = vadd.f32 %v3637_v3, %v4728_v26  ;;  %v3640_v62 = vadd.f32 %v3639_v7, %v3638_v16  ;;  %v3704_v54 = vadd.f32 %v3703_v20, %v3702_v0  ;;  %v4836_v59 = vadd.f32 %v3701_v6, %v4731_v14 }
 0x1af   : > { %v4839_v15 = vadd.f32 %v3640_v62, %v4733_v31  ;;  %v4842_v63 = vadd.f32 %v3704_v54, %v4736_v25 }
 0x1b1   : > { %v3641_v10 = vpop.f32.mrb[92].mxu0  ;;  %v3705_v8 = vpop.f32.mrb[92].mxu1 }
 0x1b2   : > { %v3642_v37 = vpop.f32.mrb[93].mxu0  ;;  %v3706_v9 = vpop.f32.mrb[93].mxu1 }
 0x1b3   : > { %v3643_v35 = vadd.f32 %v3642_v37, %v3641_v10  ;;  %v3707_v27 = vadd.f32 %v3706_v9, %v3705_v8  ;;  %v3644_v42 = vpop.f32.mrb[94].mxu0  ;;  %v3708_v26 = vpop.f32.mrb[94].mxu1 }
 0x1b4   : > { %v3645_v34 = vpop.f32.mrb[95].mxu0  ;;  %v3709_v40 = vpop.f32.mrb[95].mxu1 }
 0x1b5   : > { %v4845_v41 = vadd.f32 %v3643_v35, %v4742_v21  ;;  %v3646_v14 = vadd.f32 %v3645_v34, %v3644_v42  ;;  %v3710_v36 = vadd.f32 %v3709_v40, %v3708_v26  ;;  %v4848_v31 = vadd.f32 %v3707_v27, %v4745_v30 }
 0x1b7   : > { %v4851_v25 = vadd.f32 %v3646_v14, %v4747_v57  ;;  %v4854_v23 = vadd.f32 %v3710_v36, %v4750_v49 }
 0x1b9   : > { %v3647_v4 = vpop.f32.mrb[96].mxu0  ;;  %v3711_v38 = vpop.f32.mrb[96].mxu1 }
 0x1ba   : > { %v3648_v5 = vpop.f32.mrb[97].mxu0  ;;  %v3712_v50 = vpop.f32.mrb[97].mxu1 }
 0x1bb   : > { %v3649_v43 = vadd.f32 %v3648_v5, %v3647_v4  ;;  %v3713_v48 = vadd.f32 %v3712_v50, %v3711_v38  ;;  %v3650_v61 = vpop.f32.mrb[98].mxu0  ;;  %v3714_v21 = vpop.f32.mrb[98].mxu1 }
 0x1bc   : > { %v3651_v11 = vpop.f32.mrb[99].mxu0  ;;  %v3715_v3 = vpop.f32.mrb[99].mxu1 }
 0x1bd   : > { %v4857_v6 = vadd.f32 %v3649_v43, %v4756_v19  ;;  %v3652_v30 = vadd.f32 %v3651_v11, %v3650_v61  ;;  %v3716_v16 = vadd.f32 %v3715_v3, %v3714_v21  ;;  %v4860_v57 = vadd.f32 %v3713_v48, %v4759_v46 }
 0x1bf   : > { %v4863_v49 = vadd.f32 %v3652_v30, %v4761_v29  ;;  %v4866_v0 = vadd.f32 %v3716_v16, %v4764_v60 }
 0x1c1   : > { %v3653_v7 = vpop.f32.mrb[100].mxu0  ;;  %v3717_v20 = vpop.f32.mrb[100].mxu1 }
 0x1c2   : > { %v3654_v62 = vpop.f32.mrb[101].mxu0  ;;  %v3718_v54 = vpop.f32.mrb[101].mxu1 }
 0x1c3   : > { %v3655_v10 = vadd.f32 %v3654_v62, %v3653_v7  ;;  %v3719_v8 = vadd.f32 %v3718_v54, %v3717_v20  ;;  %v3656_v37 = vpop.f32.mrb[102].mxu0  ;;  %v3720_v19 = vpop.f32.mrb[102].mxu1 }
 0x1c4   : > { %v3657_v9 = vpop.f32.mrb[103].mxu0  ;;  %v3721_v35 = vpop.f32.mrb[103].mxu1 }
 0x1c5   : > { %v4869_v27 = vadd.f32 %v3655_v10, %v4770_v47  ;;  %v3658_v46 = vadd.f32 %v3657_v9, %v3656_v37  ;;  %v3722_v42 = vadd.f32 %v3721_v35, %v3720_v19  ;;  %v4872_v29 = vadd.f32 %v3719_v8, %v4773_v55  ;;  %v3305_v8 = vld [vmem:[%s4898_s5 + $0x8] sm:$0xff]   ;;  %v3162_v19 = vld [vmem:[%s4898_s5] sm:$0xff]  }
 0x1c7   : > { %v4875_v60 = vadd.f32 %v3658_v46, %v4775_v2  ;;  %v4878_v26 = vadd.f32 %v3722_v42, %v4778_v12  ;;  %v3167_v46 = vunpack.c.l.bf16 %v3305_v8 }
 0x1c9   : > { %v3659_v34 = vpop.f32.mrb[104].mxu0  ;;  %v3723_v40 = vpop.f32.mrb[104].mxu1 }
 0x1ca   : > { %v3660_v14 = vpop.f32.mrb[105].mxu0  ;;  %v3724_v36 = vpop.f32.mrb[105].mxu1 }
 0x1cb   : > { %v3661_v4 = vadd.f32 %v3660_v14, %v3659_v34  ;;  %v3725_v38 = vadd.f32 %v3724_v36, %v3723_v40  ;;  %v3662_v47 = vpop.f32.mrb[106].mxu0  ;;  %v3726_v5 = vpop.f32.mrb[106].mxu1  ;;  %v3163_v40 = vunpack.c.l.bf16 %v3162_v19 }
 0x1cc   : > { %v3663_v50 = vpop.f32.mrb[107].mxu0  ;;  %v3727_v43 = vpop.f32.mrb[107].mxu1 }
 0x1cd   : > { %v4881_v55 = vadd.f32 %v3661_v4, %v4784_v18  ;;  %v3664_v2 = vadd.f32 %v3663_v50, %v3662_v47  ;;  %v3728_v48 = vadd.f32 %v3727_v43, %v3726_v5  ;;  %v4884_v12 = vadd.f32 %v3725_v38, %v4787_v13 }
 0x1ce   : > { %v3168_v4 = vunpack.c.h.bf16 %v3305_v8  ;;  %v3164_v5 = vunpack.c.h.bf16 %v3162_v19 }
 0x1cf   : > { %v4887_v61 = vadd.f32 %v3664_v2, %v4789_v22  ;;  %v4891_v21 = vadd.f32 %v3728_v48, %v4792_v28 }
 0x1d1   : > { %v3665_v11 = vpop.f32.mrb[108].mxu0  ;;  %v3729_v3 = vpop.f32.mrb[108].mxu1 }
 0x1d2   : > { %v3666_v30 = vpop.f32.mrb[109].mxu0  ;;  %v3730_v16 = vpop.f32.mrb[109].mxu1 }
 0x1d3   : > { %v3667_v18 = vadd.f32 %v3666_v30, %v3665_v11  ;;  %v3731_v13 = vadd.f32 %v3730_v16, %v3729_v3  ;;  %v3668_v22 = vpop.f32.mrb[110].mxu0  ;;  %v3732_v7 = vpop.f32.mrb[110].mxu1  ;;  %v3307_v3 = vld [vmem:[%s4898_s5 + $0x18] sm:$0xff]  }
 0x1d4   : > { %v3669_v20 = vpop.f32.mrb[111].mxu0  ;;  %v3733_v62 = vpop.f32.mrb[111].mxu1 }
 0x1d5   : > { %v4901_v28 = vadd.f32 %v3667_v18, %v4798_v45  ;;  %v3670_v54 = vadd.f32 %v3669_v20, %v3668_v22  ;;  %v3734_v10 = vadd.f32 %v3733_v62, %v3732_v7  ;;  %v4905_v37 = vadd.f32 %v3731_v13, %v4801_v53  ;;  %v3306_v18 = vld [vmem:[%s4898_s5 + $0x10] sm:$0xff]  }
 0x1d7   : > { %v4909_v9 = vadd.f32 %v3670_v54, %v4803_v56  ;;  %v4912_v35 = vadd.f32 %v3734_v10, %v4806_v44  ;;  %v3171_v54 = vunpack.c.l.bf16 %v3306_v18 }
 0x1d9   : > { %v3735_v42 = vpop.f32.mrb[112].mxu1  ;;  %v3825_v34 = vpop.f32.mrb[112].mxu0 }
 0x1da   : > { %v2393_v45 = vadd.f32 %v3825_v34, %v4824_v39  ;;  %v3736_v14 = vpop.f32.mrb[113].mxu1  ;;  %v2384_v36 = vpop.f32.mrb[113].mxu0 }
 0x1db   : > { %v3737_v53 = vadd.f32 %v3736_v14, %v3735_v42  ;;  %v2385_v38 = vadd.f32 %v2384_v36, %v4812_v17  ;;  %v3738_v47 = vpop.f32.mrb[114].mxu1  ;;  %v3826_v56 = vpop.f32.mrb[114].mxu0  ;;  %v3172_v36 = vunpack.c.h.bf16 %v3306_v18 }
 0x1dc   : > { %v2577_v50 = vadd.f32 %v3167_v46, %v2393_v45  ;;  %v2396_v44 = vadd.f32 %v3826_v56, %v4830_v33  ;;  %v3739_v43 = vpop.f32.mrb[115].mxu1  ;;  %v2387_v2 = vpop.f32.mrb[115].mxu0  ;;  %v3175_v33 = vunpack.c.l.bf16 %v3307_v3  ;;  %v3176_v46 = vunpack.c.h.bf16 %v3307_v3 }
 0x1dd   : > { %v2575_v48 = vadd.f32 %v3163_v40, %v2385_v38  ;;  %v3740_v11 = vadd.f32 %v3739_v43, %v3738_v47  ;;  %v2388_v39 = vadd.f32 %v2387_v2, %v4818_v24  ;;  %v4920_v30 = vadd.f32 %v3737_v53, %v4809_v58  ;;  %v3308_v43 = vld [vmem:[%s4898_s5 + $0x20] sm:$0xff]  }
 0x1de   : > { %v2578_v16 = vadd.f32 %v3168_v4, %v2396_v44  ;;  %v2609_v22 = vmax.f32 %v2577_v50, 0.0  ;;  %v3309_v50 = vld [vmem:[%s4898_s5 + $0x28] sm:$0xff]  }
 0x1df   : > { %v2576_v17 = vadd.f32 %v3164_v5, %v2388_v39  ;;  %v4924_v13 = vadd.f32 %v3740_v11, %v4815_v1  ;;  %v2607_v20 = vmax.f32 %v2575_v48, 0.0 }
 0x1e0   : > { %v2610_v7 = vmax.f32 %v2578_v16, 0.0 }
 0x1e1   : > { %v2608_v24 = vmax.f32 %v2576_v17, 0.0  ;;  %v3741_v58 = vpop.f32.mrb[116].mxu1  ;;  %v3829_v62 = vpop.f32.mrb[116].mxu0 }
 0x1e2   : > { %v3233_v10 = vpack.c.bf16 %v2610_v7, %v2609_v22  ;;  %v2409_v1 = vadd.f32 %v3829_v62, %v4848_v31  ;;  %v3742_v8 = vpop.f32.mrb[117].mxu1  ;;  %v2400_v19 = vpop.f32.mrb[117].mxu0  ;;  %v3179_v22 = vunpack.c.l.bf16 %v3308_v43 }
 0x1e3   : > { %v3228_v42 = vpack.c.bf16 %v2608_v24, %v2607_v20  ;;  %v3743_v34 = vadd.f32 %v3742_v8, %v3741_v58  ;;  %v2401_v40 = vadd.f32 %v2400_v19, %v4836_v59  ;;  %v3744_v45 = vpop.f32.mrb[118].mxu1  ;;  %v3830_v14 = vpop.f32.mrb[118].mxu0  ;;  %v3184_v20 = vunpack.c.h.bf16 %v3309_v50 }
 0x1e4   : > { %3320 = vst [vmem:[%s4931_s8 + $0x8] sm:$0xff] %v3233_v10   ;;  %v2581_v4 = vadd.f32 %v3175_v33, %v2409_v1  ;;  %v2412_v53 = vadd.f32 %v3830_v14, %v4854_v23  ;;  %v3745_v38 = vpop.f32.mrb[119].mxu1  ;;  %v2403_v47 = vpop.f32.mrb[119].mxu0  ;;  %v3183_v23 = vunpack.c.l.bf16 %v3309_v50  ;;  %v3180_v10 = vunpack.c.h.bf16 %v3308_v43  ;;  %v3310_v14 = vld [vmem:[%s4898_s5 + $0x30] sm:$0xff]  }
 0x1e5   : > { %3229 = vst [vmem:[%s4931_s8] sm:$0xff] %v3228_v42   ;;  %v2579_v31 = vadd.f32 %v3171_v54, %v2401_v40  ;;  %v3746_v56 = vadd.f32 %v3745_v38, %v3744_v45  ;;  %v2404_v5 = vadd.f32 %v2403_v47, %v4842_v63  ;;  %v4941_v44 = vadd.f32 %v3743_v34, %v4821_v51  ;;  %v3311_v40 = vld [vmem:[%s4898_s5 + $0x38] sm:$0xff]  }
 0x1e6   : > { %v2582_v59 = vadd.f32 %v3176_v46, %v2412_v53  ;;  %v2613_v11 = vmax.f32 %v2581_v4, 0.0  ;;  %v3187_v50 = vunpack.c.l.bf16 %v3310_v14 }
 0x1e7   : > { %v2580_v2 = vadd.f32 %v3172_v36, %v2404_v5  ;;  %v4945_v48 = vadd.f32 %v3746_v56, %v4827_v32  ;;  %v2611_v3 = vmax.f32 %v2579_v31, 0.0 }
 0x1e8   : > { %v2614_v39 = vmax.f32 %v2582_v59, 0.0 }
 0x1e9   : > { %v2612_v16 = vmax.f32 %v2580_v2, 0.0  ;;  %v3747_v18 = vpop.f32.mrb[120].mxu1  ;;  %v3833_v17 = vpop.f32.mrb[120].mxu0  ;;  %v3192_v2 = vunpack.c.h.bf16 %v3311_v40 }
 0x1ea   : > { %v3243_v63 = vpack.c.bf16 %v2614_v39, %v2613_v11  ;;  %v2425_v51 = vadd.f32 %v3833_v17, %v4872_v29  ;;  %v3748_v7 = vpop.f32.mrb[121].mxu1  ;;  %v2416_v33 = vpop.f32.mrb[121].mxu0 }
 0x1eb   : > { %v3238_v24 = vpack.c.bf16 %v2612_v16, %v2611_v3  ;;  %v3749_v32 = vadd.f32 %v3748_v7, %v3747_v18  ;;  %v2417_v58 = vadd.f32 %v2416_v33, %v4860_v57  ;;  %v3750_v62 = vpop.f32.mrb[122].mxu1  ;;  %v3834_v54 = vpop.f32.mrb[122].mxu0  ;;  %v3188_v16 = vunpack.c.h.bf16 %v3310_v14  ;;  %v3313_v33 = vld [vmem:[%s4898_s5 + $0x48] sm:$0xff]  }
 0x1ec   : > { %3322 = vst [vmem:[%s4931_s8 + $0x18] sm:$0xff] %v3243_v63   ;;  %v2585_v1 = vadd.f32 %v3183_v23, %v2425_v51  ;;  %v2428_v8 = vadd.f32 %v3834_v54, %v4878_v26  ;;  %v3751_v19 = vpop.f32.mrb[123].mxu1  ;;  %v2419_v46 = vpop.f32.mrb[123].mxu0  ;;  %v3191_v26 = vunpack.c.l.bf16 %v3311_v40 }
 0x1ed   : > { %3321 = vst [vmem:[%s4931_s8 + $0x10] sm:$0xff] %v3238_v24   ;;  %v2583_v29 = vadd.f32 %v3179_v22, %v2417_v58  ;;  %v3752_v42 = vadd.f32 %v3751_v19, %v3750_v62  ;;  %v2420_v34 = vadd.f32 %v2419_v46, %v4866_v0  ;;  %v4955_v45 = vadd.f32 %v3749_v32, %v4833_v52 }
 0x1ee   : > { %v2586_v57 = vadd.f32 %v3184_v20, %v2428_v8  ;;  %v2617_v53 = vmax.f32 %v2585_v1, 0.0 }
 0x1ef   : > { %v2584_v36 = vadd.f32 %v3180_v10, %v2420_v34  ;;  %v4959_v4 = vadd.f32 %v3752_v42, %v4839_v15  ;;  %v2615_v47 = vmax.f32 %v2583_v29, 0.0  ;;  %v3199_v10 = vunpack.c.l.bf16 %v3313_v33 }
 0x1f0   : > { %v2618_v38 = vmax.f32 %v2586_v57, 0.0  ;;  %v3200_v34 = vunpack.c.h.bf16 %v3313_v33 }
 0x1f1   : > { %v2616_v31 = vmax.f32 %v2584_v36, 0.0  ;;  %v3753_v56 = vpop.f32.mrb[124].mxu1  ;;  %v3837_v5 = vpop.f32.mrb[124].mxu0 }
 0x1f2   : > { %v3253_v0 = vpack.c.bf16 %v2618_v38, %v2617_v53  ;;  %v2441_v52 = vadd.f32 %v3837_v5, %v4905_v37  ;;  %v3754_v59 = vpop.f32.mrb[125].mxu1  ;;  %v2432_v43 = vpop.f32.mrb[125].mxu0 }
 0x1f3   : > { %v3248_v11 = vpack.c.bf16 %v2616_v31, %v2615_v47  ;;  %v3755_v15 = vadd.f32 %v3754_v59, %v3753_v56  ;;  %v2433_v39 = vadd.f32 %v2432_v43, %v4884_v12  ;;  %v3756_v23 = vpop.f32.mrb[126].mxu1  ;;  %v3838_v3 = vpop.f32.mrb[126].mxu0  ;;  %v3312_v12 = vld [vmem:[%s4898_s5 + $0x40] sm:$0xff]  }
 0x1f4   : > { %3324 = vst [vmem:[%s4931_s8 + $0x28] sm:$0xff] %v3253_v0   ;;  %v2589_v18 = vadd.f32 %v3191_v26, %v2441_v52  ;;  %v2444_v17 = vadd.f32 %v3838_v3, %v4912_v35  ;;  %v3757_v22 = vpop.f32.mrb[127].mxu1  ;;  %v2435_v63 = vpop.f32.mrb[127].mxu0  ;;  %v3195_v46 = vunpack.c.l.bf16 %v3312_v12  ;;  %v3196_v53 = vunpack.c.h.bf16 %v3312_v12 }
 0x1f5   : > { %3323 = vst [vmem:[%s4931_s8 + $0x20] sm:$0xff] %v3248_v11   ;;  %v2587_v37 = vadd.f32 %v3187_v50, %v2433_v39  ;;  %v3758_v51 = vadd.f32 %v3757_v22, %v3756_v23  ;;  %v2436_v7 = vadd.f32 %v2435_v63, %v4891_v21  ;;  %v2312_v20 = vadd.f32 %v3755_v15, %v4845_v41  ;;  %v3315_v50 = vld [vmem:[%s4898_s5 + $0x58] sm:$0xff]  }
 0x1f6   : > { %v2590_v24 = vadd.f32 %v3192_v2, %v2444_v17  ;;  %v2621_v62 = vmax.f32 %v2589_v18, 0.0  ;;  %v3207_v15 = vunpack.c.l.bf16 %v3315_v50 }
 0x1f7   : > { %v2588_v32 = vadd.f32 %v3188_v16, %v2436_v7  ;;  %v2315_v58 = vadd.f32 %v3758_v51, %v4851_v25  ;;  %v2619_v1 = vmax.f32 %v2587_v37, 0.0 }
 0x1f8   : > { %v2622_v54 = vmax.f32 %v2590_v24, 0.0 }
 0x1f9   : > { %v2620_v35 = vmax.f32 %v2588_v32, 0.0  ;;  %v3759_v8 = vpop.f32.mrb[128].mxu1  ;;  %v3841_v19 = vpop.f32.mrb[128].mxu0 }
 0x1fa   : > { %v3263_v29 = vpack.c.bf16 %v2622_v54, %v2621_v62  ;;  %v2457_v21 = vadd.f32 %v3841_v19, %v4941_v44  ;;  %v3760_v42 = vpop.f32.mrb[129].mxu1  ;;  %v2448_v41 = vpop.f32.mrb[129].mxu0  ;;  %v3316_v19 = vld [vmem:[%s4898_s5 + $0x60] sm:$0xff]  }
 0x1fb   : > { %v3258_v40 = vpack.c.bf16 %v2620_v35, %v2619_v1  ;;  %v3761_v57 = vadd.f32 %v3760_v42, %v3759_v8  ;;  %v2449_v25 = vadd.f32 %v2448_v41, %v4920_v30  ;;  %v3762_v14 = vpop.f32.mrb[130].mxu1  ;;  %v3842_v36 = vpop.f32.mrb[130].mxu0  ;;  %v3314_v30 = vld [vmem:[%s4898_s5 + $0x50] sm:$0xff]   ;;  %v3317_v35 = vld [vmem:[%s4898_s5 + $0x68] sm:$0xff]  }
 0x1fc   : > { %3326 = vst [vmem:[%s4931_s8 + $0x38] sm:$0xff] %v3263_v29   ;;  %v2593_v38 = vadd.f32 %v3199_v10, %v2457_v21  ;;  %v2460_v26 = vadd.f32 %v3842_v36, %v4945_v48  ;;  %v3763_v47 = vpop.f32.mrb[131].mxu1  ;;  %v2451_v31 = vpop.f32.mrb[131].mxu0  ;;  %v3203_v16 = vunpack.c.l.bf16 %v3314_v30  ;;  %v3204_v33 = vunpack.c.h.bf16 %v3314_v30 }
 0x1fd   : > { %3325 = vst [vmem:[%s4931_s8 + $0x30] sm:$0xff] %v3258_v40   ;;  %v2591_v44 = vadd.f32 %v3195_v46, %v2449_v25  ;;  %v3764_v56 = vadd.f32 %v3763_v47, %v3762_v14  ;;  %v2452_v5 = vadd.f32 %v2451_v31, %v4924_v13  ;;  %v2320_v0 = vadd.f32 %v3761_v57, %v4857_v6 }
 0x1fe   : > { %v2594_v52 = vadd.f32 %v3200_v34, %v2460_v26  ;;  %v2625_v2 = vmax.f32 %v2593_v38, 0.0  ;;  %v3208_v6 = vunpack.c.h.bf16 %v3315_v50  ;;  %v3215_v42 = vunpack.c.l.bf16 %v3317_v35 }
 0x1ff   : > { %v2592_v59 = vadd.f32 %v3196_v53, %v2452_v5  ;;  %v2323_v43 = vadd.f32 %v3764_v56, %v4863_v49  ;;  %v2623_v39 = vmax.f32 %v2591_v44, 0.0  ;;  %v3211_v57 = vunpack.c.l.bf16 %v3316_v19 }
 0x200   : > { %v2626_v11 = vmax.f32 %v2594_v52, 0.0  ;;  %v3216_v36 = vunpack.c.h.bf16 %v3317_v35  ;;  %v3212_v31 = vunpack.c.h.bf16 %v3316_v19 }
 0x201   : > { %v2624_v48 = vmax.f32 %v2592_v59, 0.0  ;;  %v3765_v23 = vpop.f32.mrb[132].mxu1  ;;  %v3845_v3 = vpop.f32.mrb[132].mxu0 }
 0x202   : > { %v3273_v18 = vpack.c.bf16 %v2626_v11, %v2625_v2  ;;  %v2473_v13 = vadd.f32 %v3845_v3, %v2312_v20  ;;  %v3766_v17 = vpop.f32.mrb[133].mxu1  ;;  %v2464_v22 = vpop.f32.mrb[133].mxu0 }
 0x203   : > { %v3268_v63 = vpack.c.bf16 %v2624_v48, %v2623_v39  ;;  %v3767_v37 = vadd.f32 %v3766_v17, %v3765_v23  ;;  %v2465_v49 = vadd.f32 %v2464_v22, %v4955_v45  ;;  %v3768_v51 = vpop.f32.mrb[134].mxu1  ;;  %v3846_v7 = vpop.f32.mrb[134].mxu0  ;;  %v3319_v17 = vld [vmem:[%s4898_s5 + $0x78] sm:$0xff]  }
 0x204   : > { %3328 = vst [vmem:[%s4931_s8 + $0x48] sm:$0xff] %v3273_v18   ;;  %v2597_v24 = vadd.f32 %v3207_v15, %v2473_v13  ;;  %v2476_v12 = vadd.f32 %v3846_v7, %v2315_v58  ;;  %v3769_v32 = vpop.f32.mrb[135].mxu1  ;;  %v2467_v62 = vpop.f32.mrb[135].mxu0  ;;  %v3318_v15 = vld [vmem:[%s4898_s5 + $0x70] sm:$0xff]   ;;  %v3224_v35 = vunpack.c.h.bf16 %v3319_v17 }
 0x205   : > { %3327 = vst [vmem:[%s4931_s8 + $0x40] sm:$0xff] %v3268_v63   ;;  %v2595_v54 = vadd.f32 %v3203_v16, %v2465_v49  ;;  %v3770_v20 = vadd.f32 %v3769_v32, %v3768_v51  ;;  %v2468_v10 = vadd.f32 %v2467_v62, %v4959_v4  ;;  %v2328_v1 = vadd.f32 %v3767_v37, %v4869_v27 }
 0x206   : > { %v2598_v8 = vadd.f32 %v3208_v6, %v2476_v12  ;;  %v2629_v29 = vmax.f32 %v2597_v24, 0.0  ;;  %v3219_v22 = vunpack.c.l.bf16 %v3318_v15 }
 0x207   : > { %v2596_v45 = vadd.f32 %v3204_v33, %v2468_v10  ;;  %v2331_v46 = vadd.f32 %v3770_v20, %v4875_v60  ;;  %v2627_v41 = vmax.f32 %v2595_v54, 0.0  ;;  %v3220_v33 = vunpack.c.h.bf16 %v3318_v15 }
 0x208   : > { %v2630_v21 = vmax.f32 %v2598_v8, 0.0 }
 0x209   : > { %v2628_v58 = vmax.f32 %v2596_v45, 0.0  ;;  %v3771_v34 = vpop.f32.mrb[136].mxu1  ;;  %v3849_v40 = vpop.f32.mrb[136].mxu0 }
 0x20a   : > { %v3283_v25 = vpack.c.bf16 %v2630_v21, %v2629_v29  ;;  %v2489_v4 = vadd.f32 %v3849_v40, %v2328_v1  ;;  %v3772_v14 = vpop.f32.mrb[137].mxu1  ;;  %v2480_v27 = vpop.f32.mrb[137].mxu0 }
 0x20b   : > { %v3278_v53 = vpack.c.bf16 %v2628_v58, %v2627_v41  ;;  %v3773_v38 = vadd.f32 %v3772_v14, %v3771_v34  ;;  %v2481_v26 = vadd.f32 %v2480_v27, %v2320_v0  ;;  %v3774_v60 = vpop.f32.mrb[138].mxu1  ;;  %v3850_v47 = vpop.f32.mrb[138].mxu0 }
 0x20c   : > { %3330 = vst [vmem:[%s4931_s8 + $0x58] sm:$0xff] %v3283_v25   ;;  %v2601_v44 = vadd.f32 %v3215_v42, %v2489_v4  ;;  %v2492_v56 = vadd.f32 %v3850_v47, %v2331_v46  ;;  %v3775_v5 = vpop.f32.mrb[139].mxu1  ;;  %v2483_v50 = vpop.f32.mrb[139].mxu0 }
 0x20d   : > { %3329 = vst [vmem:[%s4931_s8 + $0x50] sm:$0xff] %v3278_v53   ;;  %v2599_v52 = vadd.f32 %v3211_v57, %v2481_v26  ;;  %v3776_v30 = vadd.f32 %v3775_v5, %v3774_v60  ;;  %v2484_v59 = vadd.f32 %v2483_v50, %v2323_v43  ;;  %v2336_v2 = vadd.f32 %v3773_v38, %v4881_v55 }
 0x20e   : > { %v2602_v11 = vadd.f32 %v3216_v36, %v2492_v56  ;;  %v2633_v48 = vmax.f32 %v2601_v44, 0.0 }
 0x20f   : > { %v2600_v39 = vadd.f32 %v3212_v31, %v2484_v59  ;;  %v2339_v0 = vadd.f32 %v3776_v30, %v4887_v61  ;;  %v2631_v3 = vmax.f32 %v2599_v52, 0.0  ;;  %v3223_v61 = vunpack.c.l.bf16 %v3319_v17 }
 0x210   : > { %v2634_v23 = vmax.f32 %v2602_v11, 0.0 }
 0x211   : > { %v2632_v16 = vmax.f32 %v2600_v39, 0.0  ;;  %v3777_v18 = vpop.f32.mrb[140].mxu1  ;;  %v3853_v13 = vpop.f32.mrb[140].mxu0 }
 0x212   : > { %v3293_v6 = vpack.c.bf16 %v2634_v23, %v2633_v48  ;;  %v3778_v63 = vpop.f32.mrb[141].mxu1  ;;  %v2496_v43 = vpop.f32.mrb[141].mxu0 }
 0x213   : > { %v3288_v37 = vpack.c.bf16 %v2632_v16, %v2631_v3  ;;  %v3779_v55 = vadd.f32 %v3778_v63, %v3777_v18  ;;  %v2497_v49 = vadd.f32 %v2496_v43, %v2336_v2  ;;  %v3780_v51 = vpop.f32.mrb[142].mxu1  ;;  %v3854_v7 = vpop.f32.mrb[142].mxu0 }
 0x214   : > { %3332 = vst [vmem:[%s4931_s8 + $0x68] sm:$0xff] %v3293_v6   ;;  %v3781_v24 = vpop.f32.mrb[143].mxu1  ;;  %v2499_v12 = vpop.f32.mrb[143].mxu0 }
 0x215   : > { %3331 = vst [vmem:[%s4931_s8 + $0x60] sm:$0xff] %v3288_v37   ;;  %v2344_v32 = vadd.f32 %v3779_v55, %v4901_v28  ;;  %v2603_v62 = vadd.f32 %v3219_v22, %v2497_v49  ;;  %v3782_v54 = vadd.f32 %v3781_v24, %v3780_v51  ;;  %v2500_v20 = vadd.f32 %v2499_v12, %v2339_v0 }
 0x217   : > { %v2505_v10 = vadd.f32 %v3853_v13, %v2344_v32  ;;  %v2347_v1 = vadd.f32 %v3782_v54, %v4909_v9  ;;  %v2604_v8 = vadd.f32 %v3220_v33, %v2500_v20  ;;  %v2635_v45 = vmax.f32 %v2603_v62, 0.0 }
 0x219   : > { %v2605_v19 = vadd.f32 %v3223_v61, %v2505_v10  ;;  %v2508_v46 = vadd.f32 %v3854_v7, %v2347_v1  ;;  %v2636_v29 = vmax.f32 %v2604_v8, 0.0 }
 0x21b   : > { %v2606_v21 = vadd.f32 %v3224_v35, %v2508_v46  ;;  %v3298_v42 = vpack.c.bf16 %v2636_v29, %v2635_v45  ;;  %v2637_v41 = vmax.f32 %v2605_v19, 0.0 }
 0x21d   : > { %v2638_v58 = vmax.f32 %v2606_v21, 0.0  ;;  %3333 = vst [vmem:[%s4931_s8 + $0x70] sm:$0xff] %v3298_v42  }
 0x21f   : > { %v3303_v28 = vpack.c.bf16 %v2638_v58, %v2637_v41 }
 0x221   : > { %3334 = vst [vmem:[%s4931_s8 + $0x78] sm:$0xff] %v3303_v28  }
 0x222 PF: > { %s14_s15 = sadd.s32 1, %s4166_s15  }
 0x223   : > { %p11_p4 = scmp.ge.s32.totalorder %s14_s15, 4  }
 0x225   :  { %13 = sbr.rel (!%p11_p4) target bundleno = 1 (0x1), region = 69 }

// kernel: _lambda_.10
= control target key start
LH: loop header
LB: loop body
LE: loop exit
PB: predicated region body
PF: predicated region fallthrough
CT: control target
= control target key end

     0   :  { %s4880_s21 = smov 0   ;;  %s5610_s0 = inlined_call_operand.vmem [shape: bf16[512,1152], index: 0, kind: input, shape index: {}]   ;;  %s5611_s1 = inlined_call_operand.vmem [shape: bf16[1152,128], index: 1, kind: input, shape index: {}]   ;;  %s5612_s2 = inlined_call_operand.vmem [shape: f32[1,128], index: 2, kind: input, shape index: {}]   ;;  %s5613_s3 = inlined_call_operand.vmem [shape: bf16[128,128], index: 3, kind: input, shape index: {}]   ;;  %s5614_s4 = inlined_call_operand.vmem [shape: f32[1,128], index: 4, kind: input, shape index: {}]   ;;  %s5615_s5 = inlined_call_operand.vmem [shape: bf16[512,128], index: 5, kind: output, shape index: {0}]   ;;  %s5616_s6 = inlined_call_operand.vmem [shape: bf16[512,128], index: 6, kind: output, shape index: {1}]  }
   0x1 LB: > { %s3359_s22 = sadd.s32 4294967295, %s4843_s21   ;;  %p3363_p0 = scmp.ge.s32.totalorder %s4843_s21, 1  ;;  %s4843_s21 = sphi %s4880_s21, %s17_s21  }
   0x2   : > { %p217_p1 = scmp.lt.s32.totalorder %s4843_s21, 3 }
   0x4   : > { %p218_p2 = pnand %p3363_p0, %p217_p1 }
   0x5   : > { %v4533_v0 = vld [vmem:[%s5611_s1 + $0x40] sm:$0xff] (!%p218_p2)   ;;  %v4537_v4 = vld [vmem:[%s5611_s1 + $0x48] sm:$0xff] (!%p218_p2)   ;;  %v4541_v8 = vld [vmem:[%s5611_s1 + $0x50] sm:$0xff] (!%p218_p2)   ;;  %s3364_s7 = sshll.u32 (!%p218_p2), %s3359_s22, 5 }
   0x6   : > { %221 = sbr.rel (%p218_p2) target bundleno = 573 (0x23d), region = 40  ;;  %v4534_v1 = vld [vmem:[%s5611_s1 + $0xc0] sm:$0xff] (!%p218_p2)   ;;  %3932 = vmatprep.subr.bf16.mxu0 (!%p218_p2), %v4533_v0  ;;  %v4538_v5 = vld [vmem:[%s5611_s1 + $0xc8] sm:$0xff] (!%p218_p2)   ;;  %v4542_v9 = vld [vmem:[%s5611_s1 + $0xd0] sm:$0xff] (!%p218_p2)   ;;  %p254_p3 = scmp.lt.s32.totalorder (!%p218_p2), %s3364_s7, 63 }
   0x7   : > { %v4535_v2 = vld [vmem:[%s5611_s1] sm:$0xff] (!%p218_p2)   ;;  %4044 = vmatprep.subr.bf16.mxu1 (!%p218_p2), %v4534_v1  ;;  %v4539_v6 = vld [vmem:[%s5611_s1 + $0x8] sm:$0xff] (!%p218_p2)   ;;  %v4543_v10 = vld [vmem:[%s5611_s1 + $0x10] sm:$0xff] (!%p218_p2)  }
   0x8   : > { %v4536_v3 = vld [vmem:[%s5611_s1 + $0x80] sm:$0xff] (!%p218_p2)   ;;  %3933 = vmatpush3.bf16.msra.mxu0 (!%p218_p2), %v4535_v2  ;;  %v4540_v7 = vld [vmem:[%s5611_s1 + $0x88] sm:$0xff] (!%p218_p2)   ;;  %v4544_v11 = vld [vmem:[%s5611_s1 + $0x90] sm:$0xff] (!%p218_p2)  }
   0x9   : > { %4045 = vmatpush3.bf16.msra.mxu1 (!%p218_p2), %v4536_v3  ;;  %3934 = vmatprep.subr.bf16.mxu0 (!%p218_p2), %v4537_v4  ;;  %v4545_v12 = vld [vmem:[%s5611_s1 + $0x58] sm:$0xff] (!%p218_p2)   ;;  %v4549_v16 = vld [vmem:[%s5611_s1 + $0x60] sm:$0xff] (!%p218_p2)   ;;  %v4553_v20 = vld [vmem:[%s5611_s1 + $0x68] sm:$0xff] (!%p218_p2)  }
   0xa   : > { %4046 = vmatprep.subr.bf16.mxu1 (!%p218_p2), %v4538_v5  ;;  %v4546_v13 = vld [vmem:[%s5611_s1 + $0xd8] sm:$0xff] (!%p218_p2)   ;;  %v4550_v17 = vld [vmem:[%s5611_s1 + $0xe0] sm:$0xff] (!%p218_p2)   ;;  %v4554_v21 = vld [vmem:[%s5611_s1 + $0xe8] sm:$0xff] (!%p218_p2)  }
   0xb   : > { %v4547_v14 = vld [vmem:[%s5611_s1 + $0x18] sm:$0xff] (!%p218_p2)   ;;  %v4551_v18 = vld [vmem:[%s5611_s1 + $0x20] sm:$0xff] (!%p218_p2)   ;;  %v4555_v22 = vld [vmem:[%s5611_s1 + $0x28] sm:$0xff] (!%p218_p2)  }
   0xc   : > { %3935 = vmatpush3.bf16.msra.mxu0 (!%p218_p2), %v4539_v6  ;;  %v4548_v15 = vld [vmem:[%s5611_s1 + $0x98] sm:$0xff] (!%p218_p2)   ;;  %v4552_v19 = vld [vmem:[%s5611_s1 + $0xa0] sm:$0xff] (!%p218_p2)   ;;  %v4556_v23 = vld [vmem:[%s5611_s1 + $0xa8] sm:$0xff] (!%p218_p2)  }
   0xd   : > { %4047 = vmatpush3.bf16.msra.mxu1 %v4540_v7  ;;  %3936 = vmatprep.subr.bf16.mxu0 %v4541_v8  ;;  %s5618_s7 = smov (!%p254_p3, %s3364_s7), 63  ;;  %v4557_v24 = vld [vmem:[%s5611_s1 + $0x70] sm:$0xff]   ;;  %v4561_v28 = vld [vmem:[%s5611_s1 + $0x78] sm:$0xff]   ;;  %v4571_v36 = vld [vmem:[%s5611_s1 + $0x140] sm:$0xff]  }
   0xe   : > { %4048 = vmatprep.subr.bf16.mxu1 %v4542_v9  ;;  %v4558_v25 = vld [vmem:[%s5611_s1 + $0xf0] sm:$0xff]   ;;  %s4524_s8 = smul.u32 36, %s5618_s7  ;;  %v4562_v29 = vld [vmem:[%s5611_s1 + $0xf8] sm:$0xff]   ;;  %v4572_v37 = vld [vmem:[%s5611_s1 + $0x100] sm:$0xff]   ;;  %s3367_s16 = sshll.u32 %s5618_s7, 2 }
   0xf   : > { %v4559_v26 = vld [vmem:[%s5611_s1 + $0x30] sm:$0xff]   ;;  %v4563_v30 = vld [vmem:[%s5611_s1 + $0x38] sm:$0xff]   ;;  %v4573_v38 = vld [vmem:[%s5611_s1 + $0x1c0] sm:$0xff]   ;;  %s5511_s20 = scalar_lea.vmem %s5616_s6, %s3367_s16  ;;  %s5517_s24 = scalar_lea.vmem %s5615_s5, %s3367_s16 }
  0x10   : > { %3937 = vmatpush3.bf16.msra.mxu0 %v4543_v10  ;;  %v4560_v27 = vld [vmem:[%s5611_s1 + $0xb0] sm:$0xff]   ;;  %s4986_s18 = scalar_lea.vmem %s5610_s0, %s4524_s8  ;;  %v4564_v31 = vld [vmem:[%s5611_s1 + $0xb8] sm:$0xff]   ;;  %v4574_v39 = vld [vmem:[%s5611_s1 + $0x180] sm:$0xff]  }
  0x11   : > { %4049 = vmatpush3.bf16.msra.mxu1 %v4544_v11  ;;  %3938 = vmatprep.subr.bf16.mxu0 %v4545_v12  ;;  %v4565_v32 = vld [vmem:[%s4986_s18] ss:$36 sps:$4 sm:$0xff]   ;;  %v4568_v34 = vld [vmem:[%s4986_s18 + $0x8] ss:$36 sps:$4 sm:$0xff]   ;;  %v4577_v41 = vld [vmem:[%s4986_s18 + $0x54] ss:$36 sps:$4 sm:$0xff]  }
  0x12   : > { %4050 = vmatprep.subr.bf16.mxu1 %v4546_v13  ;;  %v4567_v33 = vld [vmem:[%s4986_s18 + $0x4] ss:$36 sps:$4 sm:$0xff]   ;;  %v4570_v35 = vld [vmem:[%s4986_s18 + $0xc] ss:$36 sps:$4 sm:$0xff]   ;;  %v4581_v44 = vld [vmem:[%s4986_s18 + $0x94] ss:$36 sps:$4 sm:$0xff]  }
  0x13   : > { %1784 = vmatprep.mubr.bf16.mxu0 %v4567_v33  ;;  %1945 = vmatprep.mubr.bf16.mxu1 %v4570_v35  ;;  %v4575_v40 = vld [vmem:[%s4986_s18 + $0x4c] ss:$36 sps:$4 sm:$0xff]   ;;  %v4583_v45 = vld [vmem:[%s4986_s18 + $0x9c] ss:$36 sps:$4 sm:$0xff]   ;;  %v4593_v53 = vld [vmem:[%s4986_s18 + $0xe4] ss:$36 sps:$4 sm:$0xff]  }
  0x14   : > { %3939 = vmatpush3.bf16.msra.mxu0 %v4547_v14  ;;  %v4579_v42 = vld [vmem:[%s4986_s18 + $0x48] ss:$36 sps:$4 sm:$0xff]   ;;  %v4580_v43 = vld [vmem:[%s4986_s18 + $0x50] ss:$36 sps:$4 sm:$0xff]   ;;  %v4586_v51 = vld [vmem:[%s4986_s18 + $0x98] ss:$36 sps:$4 sm:$0xff]  }
  0x15   : > { %4051 = vmatpush3.bf16.msra.mxu1 %v4548_v15  ;;  %3940 = vmatprep.subr.bf16.mxu0 %v4549_v16  ;;  %v4587_v46 = vld [vmem:[%s5611_s1 + $0x148] sm:$0xff]   ;;  %v4585_v48 = vld [vmem:[%s4986_s18 + $0x90] ss:$36 sps:$4 sm:$0xff]   ;;  %v4591_v52 = vld [vmem:[%s4986_s18 + $0xdc] ss:$36 sps:$4 sm:$0xff]  }
  0x16   : > { %4052 = vmatprep.subr.bf16.mxu1 %v4550_v17  ;;  %v4588_v47 = vld [vmem:[%s5611_s1 + $0x108] sm:$0xff]   ;;  %v4595_v54 = vld [vmem:[%s4986_s18 + $0xd8] ss:$36 sps:$4 sm:$0xff]   ;;  %v4603_v55 = vld [vmem:[%s5611_s1 + $0x150] sm:$0xff]  }
  0x17   : > { %v4589_v49 = vld [vmem:[%s5611_s1 + $0x1c8] sm:$0xff]   ;;  %v4596_v56 = vld [vmem:[%s4986_s18 + $0xe0] ss:$36 sps:$4 sm:$0xff]   ;;  %v4604_v58 = vld [vmem:[%s5611_s1 + $0x110] sm:$0xff]  }
  0x18   : > { %3941 = vmatpush3.bf16.msra.mxu0 %v4551_v18  ;;  %v4590_v50 = vld [vmem:[%s5611_s1 + $0x188] sm:$0xff]   ;;  %v4605_v59 = vld [vmem:[%s5611_s1 + $0x1d0] sm:$0xff]   ;;  %v4601_v62 = vld [vmem:[%s4986_s18 + $0x120] ss:$36 sps:$4 sm:$0xff]  }
  0x19   : > { %4053 = vmatpush3.bf16.msra.mxu1 %v4552_v19  ;;  %3942 = vmatprep.subr.bf16.mxu0 %v4553_v20  ;;  %v4597_v57 = vld [vmem:[%s4986_s18 + $0x124] ss:$36 sps:$4 sm:$0xff]   ;;  %v4606_v60 = vld [vmem:[%s5611_s1 + $0x190] sm:$0xff]   ;;  %v4619_v1 = vld [vmem:[%s5611_s1 + $0x158] sm:$0xff]  }
  0x1a   : > { %4054 = vmatprep.subr.bf16.mxu1 %v4554_v21  ;;  %v4599_v61 = vld [vmem:[%s4986_s18 + $0x12c] ss:$36 sps:$4 sm:$0xff]   ;;  %v4609_v2 = vld [vmem:[%s4986_s18 + $0x174] ss:$36 sps:$4 sm:$0xff]   ;;  %v4615_v9 = vld [vmem:[%s4986_s18 + $0x1bc] ss:$36 sps:$4 sm:$0xff]  }
  0x1b   : > { %v4602_v63 = vld [vmem:[%s4986_s18 + $0x128] ss:$36 sps:$4 sm:$0xff]   ;;  %v4620_v3 = vld [vmem:[%s5611_s1 + $0x118] sm:$0xff]   ;;  %v4612_v7 = vld [vmem:[%s4986_s18 + $0x170] ss:$36 sps:$4 sm:$0xff]  }
  0x1c   : > { %3943 = vmatpush3.bf16.msra.mxu0 %v4555_v22  ;;  %v4607_v0 = vld [vmem:[%s4986_s18 + $0x16c] ss:$36 sps:$4 sm:$0xff]   ;;  %v4621_v4 = vld [vmem:[%s5611_s1 + $0x1d8] sm:$0xff]   ;;  %v4635_v10 = vld [vmem:[%s5611_s1 + $0x160] sm:$0xff]  }
  0x1d   : > { %4055 = vmatpush3.bf16.msra.mxu1 %v4556_v23  ;;  %3944 = vmatprep.subr.bf16.mxu0 %v4557_v24  ;;  %v4622_v5 = vld [vmem:[%s5611_s1 + $0x198] sm:$0xff]   ;;  %v4611_v6 = vld [vmem:[%s4986_s18 + $0x168] ss:$36 sps:$4 sm:$0xff]   ;;  %v4636_v11 = vld [vmem:[%s5611_s1 + $0x120] sm:$0xff]  }
  0x1e   : > { %4056 = vmatprep.subr.bf16.mxu1 %v4558_v25  ;;  %v4613_v8 = vld [vmem:[%s4986_s18 + $0x1b4] ss:$36 sps:$4 sm:$0xff]   ;;  %v4637_v12 = vld [vmem:[%s5611_s1 + $0x1e0] sm:$0xff]   ;;  %v4651_v18 = vld [vmem:[%s5611_s1 + $0x168] sm:$0xff]  }
  0x1f   : > { %v4638_v13 = vld [vmem:[%s5611_s1 + $0x1a0] sm:$0xff]   ;;  %v4617_v14 = vld [vmem:[%s4986_s18 + $0x1b0] ss:$36 sps:$4 sm:$0xff]   ;;  %v4618_v15 = vld [vmem:[%s4986_s18 + $0x1b8] ss:$36 sps:$4 sm:$0xff]  }
  0x20   : > { %3945 = vmatpush3.bf16.msra.mxu0 %v4559_v26  ;;  %v4623_v16 = vld [vmem:[%s4986_s18 + $0x1fc] ss:$36 sps:$4 sm:$0xff]   ;;  %v4625_v17 = vld [vmem:[%s4986_s18 + $0x204] ss:$36 sps:$4 sm:$0xff]   ;;  %v4631_v25 = vld [vmem:[%s4986_s18 + $0x24c] ss:$36 sps:$4 sm:$0xff]  }
  0x21   : > { %4057 = vmatpush3.bf16.msra.mxu1 %v4560_v27  ;;  %3946 = vmatprep.subr.bf16.mxu0 %v4561_v28  ;;  %v4652_v19 = vld [vmem:[%s5611_s1 + $0x128] sm:$0xff]   ;;  %v4627_v22 = vld [vmem:[%s4986_s18 + $0x1f8] ss:$36 sps:$4 sm:$0xff]   ;;  %v4628_v23 = vld [vmem:[%s4986_s18 + $0x200] ss:$36 sps:$4 sm:$0xff]  }
  0x22   : > { %4058 = vmatprep.subr.bf16.mxu1 %v4562_v29  ;;  %v4653_v20 = vld [vmem:[%s5611_s1 + $0x1e8] sm:$0xff]   ;;  %v4667_v26 = vld [vmem:[%s5611_s1 + $0x170] sm:$0xff]   ;;  %v4684_v35 = vld [vmem:[%s5611_s1 + $0x138] sm:$0xff]  }
  0x23   : > { %v4654_v21 = vld [vmem:[%s5611_s1 + $0x1a8] sm:$0xff]   ;;  %v4668_v27 = vld [vmem:[%s5611_s1 + $0x130] sm:$0xff]  }
  0x24   : > { %3947 = vmatpush3.bf16.msra.mxu0 %v4563_v30  ;;  %v4629_v24 = vld [vmem:[%s4986_s18 + $0x244] ss:$36 sps:$4 sm:$0xff]   ;;  %v4669_v28 = vld [vmem:[%s5611_s1 + $0x1f0] sm:$0xff]  }
  0x25   : > { %4059 = vmatpush3.bf16.msra.mxu1 %v4564_v31  ;;  %4156 = vmatprep.subr.bf16.mxu0 %v4571_v36  ;;  %v4670_v29 = vld [vmem:[%s5611_s1 + $0x1b0] sm:$0xff]   ;;  %v4633_v30 = vld [vmem:[%s4986_s18 + $0x240] ss:$36 sps:$4 sm:$0xff]   ;;  %v4634_v31 = vld [vmem:[%s4986_s18 + $0x248] ss:$36 sps:$4 sm:$0xff]  }
  0x26   : > { %4268 = vmatprep.subr.bf16.mxu1 %v4573_v38  ;;  %v4641_v33 = vld [vmem:[%s4986_s18 + $0x294] ss:$36 sps:$4 sm:$0xff]   ;;  %v4643_v36 = vld [vmem:[%s4986_s18 + $0x288] ss:$36 sps:$4 sm:$0xff]  }
  0x27   : > { %1785 = vmatmul.mubr.bf16.vlgmr.msra.gmra.mrb[0].mxu0 %v4565_v32  ;;  %v4639_v32 = vld [vmem:[%s4986_s18 + $0x28c] ss:$36 sps:$4 sm:$0xff]   ;;  %v4686_v38 = vld [vmem:[%s5611_s1 + $0x1b8] sm:$0xff]  }
  0x28   : > { %1946 = vmatmul.mubr.bf16.vlgmr.msra.gmra.mrb[0].mxu1 %v4568_v34  ;;  %4157 = vmatpush3.bf16.msra.mxu0 %v4572_v37  ;;  %v4683_v34 = vld [vmem:[%s5611_s1 + $0x178] sm:$0xff]  }
  0x29   : > { %4269 = vmatpush3.bf16.msra.mxu1 %v4574_v39  ;;  %1792 = vmatprep.mubr.bf16.mxu0 %v4575_v40  ;;  %v4685_v37 = vld [vmem:[%s5611_s1 + $0x1f8] sm:$0xff]   ;;  %v4644_v39 = vld [vmem:[%s4986_s18 + $0x290] ss:$36 sps:$4 sm:$0xff]  }
  0x2a   : > { %1953 = vmatprep.mubr.bf16.mxu1 %v4577_v41  ;;  %4158 = vmatprep.subr.bf16.mxu0 %v4587_v46  ;;  %v4645_v40 = vld [vmem:[%s4986_s18 + $0x2d4] ss:$36 sps:$4 sm:$0xff]   ;;  %v4647_v41 = vld [vmem:[%s4986_s18 + $0x2dc] ss:$36 sps:$4 sm:$0xff]  }
  0x2b   : > { %4270 = vmatprep.subr.bf16.mxu1 %v4589_v49  ;;  %v4655_v46 = vld [vmem:[%s4986_s18 + $0x31c] ss:$36 sps:$4 sm:$0xff]  }
  0x2c   : > { %4159 = vmatpush3.bf16.msra.mxu0 %v4588_v47  ;;  %v4657_v47 = vld [vmem:[%s4986_s18 + $0x324] ss:$36 sps:$4 sm:$0xff]  }
  0x2d   : > { %4271 = vmatpush3.bf16.msra.mxu1 %v4590_v50  ;;  %4160 = vmatprep.subr.bf16.mxu0 %v4603_v55  ;;  %v4660_v49 = vld [vmem:[%s4986_s18 + $0x320] ss:$36 sps:$4 sm:$0xff]   ;;  %v4673_v55 = vld [vmem:[%s4986_s18 + $0x3b4] ss:$36 sps:$4 sm:$0xff]  }
  0x2e   : > { %4272 = vmatprep.subr.bf16.mxu1 %v4605_v59  ;;  %v4661_v50 = vld [vmem:[%s4986_s18 + $0x364] ss:$36 sps:$4 sm:$0xff]   ;;  %v4679_v59 = vld [vmem:[%s4986_s18 + $0x3fc] ss:$36 sps:$4 sm:$0xff]  }
  0x2f   : > { %1793 = vmatmul.mubr.bf16.gmra.mrb[4].mxu0 %v4579_v42  ;;  %v4699_v42 = vld [vmem:[%s5611_s1 + $0x200] sm:$0xff]  }
  0x30   : > { %1954 = vmatmul.mubr.bf16.gmra.mrb[4].mxu1 %v4580_v43  ;;  %1800 = vmatprep.mubr.bf16.mxu0 %v4581_v44  ;;  %v4700_v43 = vld [vmem:[%s5613_s3] sm:$0xff]   ;;  %v4649_v44 = vld [vmem:[%s4986_s18 + $0x2d0] ss:$36 sps:$4 sm:$0xff]  }
  0x31   : > { %1961 = vmatprep.mubr.bf16.mxu1 %v4583_v45  ;;  %4161 = vmatpush3.bf16.msra.mxu0 %v4604_v58  ;;  %v4650_v45 = vld [vmem:[%s4986_s18 + $0x2d8] ss:$36 sps:$4 sm:$0xff]  }
  0x32   : > { %4273 = vmatpush3.bf16.msra.mxu1 %v4606_v60  ;;  %4162 = vmatprep.subr.bf16.mxu0 %v4619_v1  ;;  %v4677_v58 = vld [vmem:[%s4986_s18 + $0x3f4] ss:$36 sps:$4 sm:$0xff]   ;;  %v4692_v1 = vld [vmem:[%s4986_s18 + $0x440] ss:$36 sps:$4 sm:$0xff]  }
  0x33   : > { %4274 = vmatprep.subr.bf16.mxu1 %v4621_v4  ;;  %v4681_v60 = vld [vmem:[%s4986_s18 + $0x3f0] ss:$36 sps:$4 sm:$0xff]  }
  0x34   : > { %v4693_v4 = vld [vmem:[%s4986_s18 + $0x10] ss:$36 sps:$4 sm:$0xff]  }
  0x35   : > { %4163 = vmatpush3.bf16.msra.mxu0 %v4620_v3  ;;  %v4698_v3 = vld [vmem:[%s4986_s18 + $0x1c] ss:$36 sps:$4 sm:$0xff]  }
  0x36   : > { %4275 = vmatpush3.bf16.msra.mxu1 %v4622_v5  ;;  %4164 = vmatprep.subr.bf16.mxu0 %v4635_v10  ;;  %v4696_v5 = vld [vmem:[%s4986_s18 + $0x18] ss:$36 sps:$4 sm:$0xff]  }
  0x37   : > { %1801 = vmatmul.mubr.bf16.gmra.mrb[8].mxu0 %v4585_v48  ;;  %4276 = vmatprep.subr.bf16.mxu1 %v4637_v12  ;;  %v4659_v48 = vld [vmem:[%s4986_s18 + $0x318] ss:$36 sps:$4 sm:$0xff]   ;;  %v4728_v12 = vld [vmem:[%s5613_s3 + $0x10] sm:$0xff]  }
  0x38   : > { %1962 = vmatmul.mubr.bf16.gmra.mrb[8].mxu1 %v4586_v51  ;;  %1808 = vmatprep.mubr.bf16.mxu0 %v4591_v52  ;;  %v4663_v51 = vld [vmem:[%s4986_s18 + $0x36c] ss:$36 sps:$4 sm:$0xff]   ;;  %v4665_v52 = vld [vmem:[%s4986_s18 + $0x360] ss:$36 sps:$4 sm:$0xff]   ;;  %v4705_v10 = vld [vmem:[%s4986_s18 + $0x58] ss:$36 sps:$4 sm:$0xff]  }
  0x39   : > { %1969 = vmatprep.mubr.bf16.mxu1 %v4593_v53  ;;  %4165 = vmatpush3.bf16.msra.mxu0 %v4636_v11  ;;  %v4666_v53 = vld [vmem:[%s4986_s18 + $0x368] ss:$36 sps:$4 sm:$0xff]   ;;  %v4727_v11 = vld [vmem:[%s5611_s1 + $0x210] sm:$0xff]  }
  0x3a   : > { %4277 = vmatpush3.bf16.msra.mxu1 %v4638_v13  ;;  %4166 = vmatprep.subr.bf16.mxu0 %v4651_v18  ;;  %v4706_v13 = vld [vmem:[%s4986_s18 + $0x60] ss:$36 sps:$4 sm:$0xff]  }
  0x3b   : > { %4278 = vmatprep.subr.bf16.mxu1 %v4653_v20  ;;  %v4755_v18 = vld [vmem:[%s5611_s1 + $0x220] sm:$0xff]  }
  0x3c   : > { %v4756_v20 = vld [vmem:[%s5613_s3 + $0x20] sm:$0xff]  }
  0x3d   : > { %4167 = vmatpush3.bf16.msra.mxu0 %v4652_v19  ;;  %v4711_v19 = vld [vmem:[%s4986_s18 + $0xa0] ss:$36 sps:$4 sm:$0xff]  }
  0x3e   : > { %4279 = vmatpush3.bf16.msra.mxu1 %v4654_v21  ;;  %4168 = vmatprep.subr.bf16.mxu0 %v4667_v26  ;;  %v4712_v21 = vld [vmem:[%s4986_s18 + $0xa8] ss:$36 sps:$4 sm:$0xff]   ;;  %v4783_v26 = vld [vmem:[%s5611_s1 + $0x230] sm:$0xff]  }
  0x3f   : > { %1809 = vmatmul.mubr.bf16.gmra.mrb[12].mxu0 %v4595_v54  ;;  %4280 = vmatprep.subr.bf16.mxu1 %v4669_v28  ;;  %v4671_v54 = vld [vmem:[%s4986_s18 + $0x3ac] ss:$36 sps:$4 sm:$0xff]  }
  0x40   : > { %1970 = vmatmul.mubr.bf16.gmra.mrb[12].mxu1 %v4596_v56  ;;  %1816 = vmatprep.mubr.bf16.mxu0 %v4597_v57  ;;  %v4675_v56 = vld [vmem:[%s4986_s18 + $0x3a8] ss:$36 sps:$4 sm:$0xff]   ;;  %v4676_v57 = vld [vmem:[%s4986_s18 + $0x3b0] ss:$36 sps:$4 sm:$0xff]  }
  0x41   : > { %1977 = vmatprep.mubr.bf16.mxu1 %v4599_v61  ;;  %4169 = vmatpush3.bf16.msra.mxu0 %v4668_v27  ;;  %v4682_v61 = vld [vmem:[%s4986_s18 + $0x3f8] ss:$36 sps:$4 sm:$0xff]   ;;  %v4719_v27 = vld [vmem:[%s4986_s18 + $0xe8] ss:$36 sps:$4 sm:$0xff]   ;;  %v4784_v28 = vld [vmem:[%s5613_s3 + $0x30] sm:$0xff]  }
  0x42   : > { %4281 = vmatpush3.bf16.msra.mxu1 %v4670_v29  ;;  %4170 = vmatprep.subr.bf16.mxu0 %v4683_v34  ;;  %v4720_v29 = vld [vmem:[%s4986_s18 + $0xf0] ss:$36 sps:$4 sm:$0xff]  }
  0x43   : > { %4282 = vmatprep.subr.bf16.mxu1 %v4685_v37  ;;  %v4725_v34 = vld [vmem:[%s4986_s18 + $0x130] ss:$36 sps:$4 sm:$0xff]   ;;  %v4731_v37 = vld [vmem:[%s4986_s18 + $0x184] ss:$36 sps:$4 sm:$0xff]  }
  0x45   : > { %4171 = vmatpush3.bf16.msra.mxu0 %v4684_v35  ;;  %v4726_v35 = vld [vmem:[%s4986_s18 + $0x138] ss:$36 sps:$4 sm:$0xff]  }
  0x46   : > { %4283 = vmatpush3.bf16.msra.mxu1 %v4686_v38  ;;  %4428 = vmatprep.subr.bf16.mxu0 %v4699_v42  ;;  %v4733_v38 = vld [vmem:[%s4986_s18 + $0x178] ss:$36 sps:$4 sm:$0xff]  }
  0x47   : > { %1817 = vmatmul.mubr.bf16.gmra.mrb[16].mxu0 %v4601_v62  ;;  %4476 = vmatprep.subr.bf16.mxu1 %v4700_v43  ;;  %v4687_v62 = vld [vmem:[%s4986_s18 + $0x43c] ss:$36 sps:$4 sm:$0xff]  }
  0x48   : > { %1978 = vmatmul.mubr.bf16.gmra.mrb[16].mxu1 %v4602_v63  ;;  %1824 = vmatprep.mubr.bf16.mxu0 %v4607_v0  ;;  %v4689_v63 = vld [vmem:[%s4986_s18 + $0x444] ss:$36 sps:$4 sm:$0xff]   ;;  %v4691_v0 = vld [vmem:[%s4986_s18 + $0x438] ss:$36 sps:$4 sm:$0xff]  }
  0x49   : > { %1985 = vmatprep.mubr.bf16.mxu1 %v4609_v2  ;;  %v4695_v2 = vld [vmem:[%s4986_s18 + $0x14] ss:$36 sps:$4 sm:$0xff]  }
  0x4f   : > { %1825 = vmatmul.mubr.bf16.gmra.mrb[20].mxu0 %v4611_v6  ;;  %v4701_v6 = vld [vmem:[%s4986_s18 + $0x5c] ss:$36 sps:$4 sm:$0xff]  }
  0x50   : > { %1986 = vmatmul.mubr.bf16.gmra.mrb[20].mxu1 %v4612_v7  ;;  %1832 = vmatprep.mubr.bf16.mxu0 %v4613_v8  ;;  %v4703_v7 = vld [vmem:[%s4986_s18 + $0x64] ss:$36 sps:$4 sm:$0xff]  }
  0x51   : > { %1993 = vmatprep.mubr.bf16.mxu1 %v4615_v9  ;;  %v4713_v8 = vld [vmem:[%s5611_s1 + $0x208] sm:$0xff]  }
  0x52   : > { %v4714_v9 = vld [vmem:[%s5613_s3 + $0x8] sm:$0xff]  }
  0x57   : > { %1833 = vmatmul.mubr.bf16.gmra.mrb[24].mxu0 %v4617_v14  ;;  %v4707_v14 = vld [vmem:[%s4986_s18 + $0xa4] ss:$36 sps:$4 sm:$0xff]  }
  0x58   : > { %1994 = vmatmul.mubr.bf16.gmra.mrb[24].mxu1 %v4618_v15  ;;  %1840 = vmatprep.mubr.bf16.mxu0 %v4623_v16  ;;  %v4709_v15 = vld [vmem:[%s4986_s18 + $0xac] ss:$36 sps:$4 sm:$0xff]   ;;  %v4741_v16 = vld [vmem:[%s5611_s1 + $0x218] sm:$0xff]  }
  0x59   : > { %2001 = vmatprep.mubr.bf16.mxu1 %v4625_v17  ;;  %v4742_v17 = vld [vmem:[%s5613_s3 + $0x18] sm:$0xff]  }
  0x5f   : > { %1841 = vmatmul.mubr.bf16.gmra.mrb[28].mxu0 %v4627_v22  ;;  %v4715_v22 = vld [vmem:[%s4986_s18 + $0xec] ss:$36 sps:$4 sm:$0xff]  }
  0x60   : > { %2002 = vmatmul.mubr.bf16.gmra.mrb[28].mxu1 %v4628_v23  ;;  %1848 = vmatprep.mubr.bf16.mxu0 %v4629_v24  ;;  %v4717_v23 = vld [vmem:[%s4986_s18 + $0xf4] ss:$36 sps:$4 sm:$0xff]   ;;  %v4769_v24 = vld [vmem:[%s5611_s1 + $0x228] sm:$0xff]  }
  0x61   : > { %2009 = vmatprep.mubr.bf16.mxu1 %v4631_v25  ;;  %v4770_v25 = vld [vmem:[%s5613_s3 + $0x28] sm:$0xff]  }
  0x67   : > { %1849 = vmatmul.mubr.bf16.gmra.mrb[32].mxu0 %v4633_v30  ;;  %v4721_v30 = vld [vmem:[%s4986_s18 + $0x134] ss:$36 sps:$4 sm:$0xff]  }
  0x68   : > { %2010 = vmatmul.mubr.bf16.gmra.mrb[32].mxu1 %v4634_v31  ;;  %1856 = vmatprep.mubr.bf16.mxu0 %v4639_v32  ;;  %v4723_v31 = vld [vmem:[%s4986_s18 + $0x13c] ss:$36 sps:$4 sm:$0xff]  }
  0x69   : > { %2017 = vmatprep.mubr.bf16.mxu1 %v4641_v33  ;;  %v4797_v32 = vld [vmem:[%s5611_s1 + $0x238] sm:$0xff]  }
  0x6a   : > { %v4798_v33 = vld [vmem:[%s5613_s3 + $0x38] sm:$0xff]  }
  0x6f   : > { %1857 = vmatmul.mubr.bf16.gmra.mrb[36].mxu0 %v4643_v36  ;;  %v4729_v36 = vld [vmem:[%s4986_s18 + $0x17c] ss:$36 sps:$4 sm:$0xff]  }
  0x70   : > { %2018 = vmatmul.mubr.bf16.gmra.mrb[36].mxu1 %v4644_v39  ;;  %1864 = vmatprep.mubr.bf16.mxu0 %v4645_v40  ;;  %v4734_v39 = vld [vmem:[%s4986_s18 + $0x180] ss:$36 sps:$4 sm:$0xff]  }
  0x71   : > { %2025 = vmatprep.mubr.bf16.mxu1 %v4647_v41  ;;  %v4735_v40 = vld [vmem:[%s4986_s18 + $0x1c4] ss:$36 sps:$4 sm:$0xff]   ;;  %v4737_v41 = vld [vmem:[%s4986_s18 + $0x1cc] ss:$36 sps:$4 sm:$0xff]  }
  0x77   : > { %1865 = vmatmul.mubr.bf16.gmra.mrb[40].mxu0 %v4649_v44  ;;  %v4743_v44 = vld [vmem:[%s4986_s18 + $0x20c] ss:$36 sps:$4 sm:$0xff]  }
  0x78   : > { %2026 = vmatmul.mubr.bf16.gmra.mrb[40].mxu1 %v4650_v45  ;;  %1872 = vmatprep.mubr.bf16.mxu0 %v4655_v46  ;;  %v4745_v45 = vld [vmem:[%s4986_s18 + $0x214] ss:$36 sps:$4 sm:$0xff]   ;;  %v4747_v46 = vld [vmem:[%s4986_s18 + $0x208] ss:$36 sps:$4 sm:$0xff]  }
  0x79   : > { %2033 = vmatprep.mubr.bf16.mxu1 %v4657_v47  ;;  %v4748_v47 = vld [vmem:[%s4986_s18 + $0x210] ss:$36 sps:$4 sm:$0xff]  }
  0x7f   : > { %1873 = vmatmul.mubr.bf16.gmra.mrb[44].mxu0 %v4659_v48  ;;  %v4749_v48 = vld [vmem:[%s4986_s18 + $0x254] ss:$36 sps:$4 sm:$0xff]  }
  0x80   : > { %2034 = vmatmul.mubr.bf16.gmra.mrb[44].mxu1 %v4660_v49  ;;  %1880 = vmatprep.mubr.bf16.mxu0 %v4661_v50  ;;  %v4751_v49 = vld [vmem:[%s4986_s18 + $0x25c] ss:$36 sps:$4 sm:$0xff]   ;;  %v4753_v50 = vld [vmem:[%s4986_s18 + $0x250] ss:$36 sps:$4 sm:$0xff]  }
  0x81   : > { %2041 = vmatprep.mubr.bf16.mxu1 %v4663_v51  ;;  %v4754_v51 = vld [vmem:[%s4986_s18 + $0x258] ss:$36 sps:$4 sm:$0xff]  }
  0x87   : > { %1881 = vmatmul.mubr.bf16.gmra.mrb[48].mxu0 %v4665_v52  ;;  %v4757_v52 = vld [vmem:[%s4986_s18 + $0x29c] ss:$36 sps:$4 sm:$0xff]  }
  0x88   : > { %2042 = vmatmul.mubr.bf16.gmra.mrb[48].mxu1 %v4666_v53  ;;  %1888 = vmatprep.mubr.bf16.mxu0 %v4671_v54  ;;  %v4759_v53 = vld [vmem:[%s4986_s18 + $0x2a4] ss:$36 sps:$4 sm:$0xff]   ;;  %v4761_v54 = vld [vmem:[%s4986_s18 + $0x298] ss:$36 sps:$4 sm:$0xff]  }
  0x89   : > { %2049 = vmatprep.mubr.bf16.mxu1 %v4673_v55  ;;  %v4762_v55 = vld [vmem:[%s4986_s18 + $0x2a0] ss:$36 sps:$4 sm:$0xff]  }
  0x8f   : > { %1889 = vmatmul.mubr.bf16.gmra.mrb[52].mxu0 %v4675_v56  ;;  %v4763_v56 = vld [vmem:[%s4986_s18 + $0x2e4] ss:$36 sps:$4 sm:$0xff]  }
  0x90   : > { %2050 = vmatmul.mubr.bf16.gmra.mrb[52].mxu1 %v4676_v57  ;;  %1896 = vmatprep.mubr.bf16.mxu0 %v4677_v58  ;;  %v4765_v57 = vld [vmem:[%s4986_s18 + $0x2ec] ss:$36 sps:$4 sm:$0xff]   ;;  %v4767_v58 = vld [vmem:[%s4986_s18 + $0x2e0] ss:$36 sps:$4 sm:$0xff]  }
  0x91   : > { %2057 = vmatprep.mubr.bf16.mxu1 %v4679_v59  ;;  %v4768_v59 = vld [vmem:[%s4986_s18 + $0x2e8] ss:$36 sps:$4 sm:$0xff]  }
  0x97   : > { %1897 = vmatmul.mubr.bf16.gmra.mrb[56].mxu0 %v4681_v60  ;;  %v4771_v60 = vld [vmem:[%s4986_s18 + $0x32c] ss:$36 sps:$4 sm:$0xff]  }
  0x98   : > { %2058 = vmatmul.mubr.bf16.gmra.mrb[56].mxu1 %v4682_v61  ;;  %1904 = vmatprep.mubr.bf16.mxu0 %v4687_v62  ;;  %v4773_v61 = vld [vmem:[%s4986_s18 + $0x334] ss:$36 sps:$4 sm:$0xff]  }
  0x99   : > { %2065 = vmatprep.mubr.bf16.mxu1 %v4689_v63 }
  0x9f   : > { %1905 = vmatmul.mubr.bf16.gmra.mrb[60].mxu0 %v4691_v0  ;;  %v5251_v0 = vld [vmem:[%s5612_s2] ss:$0 sm:$0xff] }
  0xa0   : > { %2066 = vmatmul.mubr.bf16.gmra.mrb[60].mxu1 %v4692_v1  ;;  %2106 = vmatprep.mubr.bf16.mxu0 %v4695_v2  ;;  %v4775_v2 = vld [vmem:[%s4986_s18 + $0x328] ss:$36 sps:$4 sm:$0xff]  }
  0xa1   : > { %2267 = vmatprep.mubr.bf16.mxu1 %v4698_v3 }
  0xa7   : > { %2107 = vmatmul.mubr.bf16.vlgmr.msra.gmra.mrb[64].mxu0 %v4693_v4 }
  0xa8   : > { %2268 = vmatmul.mubr.bf16.vlgmr.msra.gmra.mrb[64].mxu1 %v4696_v5  ;;  %4429 = vmatpush3.bf16.msra.mxu0 %v4699_v42  ;;  %v4739_v42 = vld [vmem:[%s4986_s18 + $0x1c0] ss:$36 sps:$4 sm:$0xff]  }
  0xa9   : > { %4477 = vmatpush3.bf16.msra.mxu1 %v4700_v43  ;;  %2114 = vmatprep.mubr.bf16.mxu0 %v4701_v6  ;;  %v4740_v43 = vld [vmem:[%s4986_s18 + $0x1c8] ss:$36 sps:$4 sm:$0xff]   ;;  %v4776_v6 = vld [vmem:[%s4986_s18 + $0x330] ss:$36 sps:$4 sm:$0xff]  }
  0xaa   : > { %2275 = vmatprep.mubr.bf16.mxu1 %v4703_v7  ;;  %4430 = vmatprep.subr.bf16.mxu0 %v4713_v8  ;;  %v4777_v7 = vld [vmem:[%s4986_s18 + $0x374] ss:$36 sps:$4 sm:$0xff]  }
  0xab   : > { %4478 = vmatprep.subr.bf16.mxu1 %v4714_v9 }
  0xac   : > { %4431 = vmatpush3.bf16.msra.mxu0 %v4713_v8 }
  0xad   : > { %4479 = vmatpush3.bf16.msra.mxu1 %v4714_v9  ;;  %4432 = vmatprep.subr.bf16.mxu0 %v4727_v11 }
  0xae   : > { %4480 = vmatprep.subr.bf16.mxu1 %v4728_v12 }
  0xaf   : > { %2115 = vmatmul.mubr.bf16.gmra.mrb[68].mxu0 %v4705_v10 }
  0xb0   : > { %2276 = vmatmul.mubr.bf16.gmra.mrb[68].mxu1 %v4706_v13  ;;  %2122 = vmatprep.mubr.bf16.mxu0 %v4707_v14 }
  0xb1   : > { %2283 = vmatprep.mubr.bf16.mxu1 %v4709_v15  ;;  %4433 = vmatpush3.bf16.msra.mxu0 %v4727_v11  ;;  %v4779_v11 = vld [vmem:[%s4986_s18 + $0x37c] ss:$36 sps:$4 sm:$0xff]  }
  0xb2   : > { %4481 = vmatpush3.bf16.msra.mxu1 %v4728_v12  ;;  %4434 = vmatprep.subr.bf16.mxu0 %v4741_v16 }
  0xb3   : > { %4482 = vmatprep.subr.bf16.mxu1 %v4742_v17 }
  0xb5   : > { %4435 = vmatpush3.bf16.msra.mxu0 %v4741_v16 }
  0xb6   : > { %4483 = vmatpush3.bf16.msra.mxu1 %v4742_v17  ;;  %4436 = vmatprep.subr.bf16.mxu0 %v4755_v18 }
  0xb7   : > { %2123 = vmatmul.mubr.bf16.gmra.mrb[72].mxu0 %v4711_v19  ;;  %4484 = vmatprep.subr.bf16.mxu1 %v4756_v20 }
  0xb8   : > { %2284 = vmatmul.mubr.bf16.gmra.mrb[72].mxu1 %v4712_v21  ;;  %2130 = vmatprep.mubr.bf16.mxu0 %v4715_v22  ;;  %v4781_v22 = vld [vmem:[%s4986_s18 + $0x370] ss:$36 sps:$4 sm:$0xff]  }
  0xb9   : > { %2291 = vmatprep.mubr.bf16.mxu1 %v4717_v23  ;;  %4437 = vmatpush3.bf16.msra.mxu0 %v4755_v18 }
  0xba   : > { %4485 = vmatpush3.bf16.msra.mxu1 %v4756_v20  ;;  %4438 = vmatprep.subr.bf16.mxu0 %v4769_v24 }
  0xbb   : > { %4486 = vmatprep.subr.bf16.mxu1 %v4770_v25 }
  0xbd   : > { %4439 = vmatpush3.bf16.msra.mxu0 %v4769_v24 }
  0xbe   : > { %4487 = vmatpush3.bf16.msra.mxu1 %v4770_v25  ;;  %4440 = vmatprep.subr.bf16.mxu0 %v4783_v26 }
  0xbf   : > { %2131 = vmatmul.mubr.bf16.gmra.mrb[76].mxu0 %v4719_v27  ;;  %4488 = vmatprep.subr.bf16.mxu1 %v4784_v28  ;;  %v4785_v27 = vld [vmem:[%s4986_s18 + $0x3bc] ss:$36 sps:$4 sm:$0xff]  }
  0xc0   : > { %2292 = vmatmul.mubr.bf16.gmra.mrb[76].mxu1 %v4720_v29  ;;  %2138 = vmatprep.mubr.bf16.mxu0 %v4721_v30 }
  0xc1   : > { %2299 = vmatprep.mubr.bf16.mxu1 %v4723_v31  ;;  %4441 = vmatpush3.bf16.msra.mxu0 %v4783_v26  ;;  %v4782_v26 = vld [vmem:[%s4986_s18 + $0x378] ss:$36 sps:$4 sm:$0xff]   ;;  %v4787_v31 = vld [vmem:[%s4986_s18 + $0x3c4] ss:$36 sps:$4 sm:$0xff]  }
  0xc2   : > { %4489 = vmatpush3.bf16.msra.mxu1 %v4784_v28  ;;  %4442 = vmatprep.subr.bf16.mxu0 %v4797_v32 }
  0xc3   : > { %4490 = vmatprep.subr.bf16.mxu1 %v4798_v33 }
  0xc5   : > { %4443 = vmatpush3.bf16.msra.mxu0 %v4797_v32 }
  0xc6   : > { %4491 = vmatpush3.bf16.msra.mxu1 %v4798_v33 }
  0xc7   : > { %2139 = vmatmul.mubr.bf16.gmra.mrb[80].mxu0 %v4725_v34 }
  0xc8   : > { %2300 = vmatmul.mubr.bf16.gmra.mrb[80].mxu1 %v4726_v35  ;;  %2146 = vmatprep.mubr.bf16.mxu0 %v4729_v36 }
  0xc9   : > { %2307 = vmatprep.mubr.bf16.mxu1 %v4731_v37 }
  0xcf   : > { %2147 = vmatmul.mubr.bf16.gmra.mrb[84].mxu0 %v4733_v38 }
  0xd0   : > { %2308 = vmatmul.mubr.bf16.gmra.mrb[84].mxu1 %v4734_v39  ;;  %2154 = vmatprep.mubr.bf16.mxu0 %v4735_v40 }
  0xd1   : > { %2315 = vmatprep.mubr.bf16.mxu1 %v4737_v41 }
  0xd7   : > { %2155 = vmatmul.mubr.bf16.gmra.mrb[88].mxu0 %v4739_v42  ;;  %v4789_v42 = vld [vmem:[%s4986_s18 + $0x3b8] ss:$36 sps:$4 sm:$0xff]  }
  0xd8   : > { %2316 = vmatmul.mubr.bf16.gmra.mrb[88].mxu1 %v4740_v43  ;;  %2162 = vmatprep.mubr.bf16.mxu0 %v4743_v44 }
  0xd9   : > { %2323 = vmatprep.mubr.bf16.mxu1 %v4745_v45 }
  0xdf   : > { %2163 = vmatmul.mubr.bf16.gmra.mrb[92].mxu0 %v4747_v46  ;;  %v4790_v46 = vld [vmem:[%s4986_s18 + $0x3c0] ss:$36 sps:$4 sm:$0xff]  }
  0xe0   : > { %2324 = vmatmul.mubr.bf16.gmra.mrb[92].mxu1 %v4748_v47  ;;  %2170 = vmatprep.mubr.bf16.mxu0 %v4749_v48  ;;  %v4791_v47 = vld [vmem:[%s4986_s18 + $0x404] ss:$36 sps:$4 sm:$0xff]  }
  0xe1   : > { %2331 = vmatprep.mubr.bf16.mxu1 %v4751_v49 }
  0xe7   : > { %2171 = vmatmul.mubr.bf16.gmra.mrb[96].mxu0 %v4753_v50 }
  0xe8   : > { %2332 = vmatmul.mubr.bf16.gmra.mrb[96].mxu1 %v4754_v51  ;;  %2178 = vmatprep.mubr.bf16.mxu0 %v4757_v52  ;;  %v4793_v51 = vld [vmem:[%s4986_s18 + $0x40c] ss:$36 sps:$4 sm:$0xff]  }
  0xe9   : > { %2339 = vmatprep.mubr.bf16.mxu1 %v4759_v53 }
  0xef   : > { %2179 = vmatmul.mubr.bf16.gmra.mrb[100].mxu0 %v4761_v54 }
  0xf0   : > { %2340 = vmatmul.mubr.bf16.gmra.mrb[100].mxu1 %v4762_v55  ;;  %2186 = vmatprep.mubr.bf16.mxu0 %v4763_v56 }
  0xf1   : > { %2347 = vmatprep.mubr.bf16.mxu1 %v4765_v57 }
  0xf7   : > { %2187 = vmatmul.mubr.bf16.gmra.mrb[104].mxu0 %v4767_v58 }
  0xf8   : > { %2348 = vmatmul.mubr.bf16.gmra.mrb[104].mxu1 %v4768_v59  ;;  %2194 = vmatprep.mubr.bf16.mxu0 %v4771_v60 }
  0xf9   : > { %2355 = vmatprep.mubr.bf16.mxu1 %v4773_v61 }
  0xfa   : > { %v3948_v62 = vpop.f32.mrb[0].mxu0 }
  0xfb   : > { %v4060_v63 = vpop.f32.mrb[0].mxu1  ;;  %v3949_v1 = vpop.f32.mrb[1].mxu0 }
  0xfc   : > { %v3950_v3 = vadd.f32 %v3949_v1, %v3948_v62  ;;  %v4061_v4 = vpop.f32.mrb[1].mxu1  ;;  %v3951_v5 = vpop.f32.mrb[2].mxu0  ;;  %v4795_v62 = vld [vmem:[%s4986_s18 + $0x400] ss:$36 sps:$4 sm:$0xff]  }
  0xfd   : > { %v4062_v8 = vadd.f32 %v4061_v4, %v4060_v63  ;;  %v4063_v9 = vpop.f32.mrb[2].mxu1  ;;  %v3952_v10 = vpop.f32.mrb[3].mxu0  ;;  %v4799_v4 = vld [vmem:[%s4986_s18 + $0x44c] ss:$36 sps:$4 sm:$0xff]  }
  0xfe   : > { %v1787_v12 = vadd.f32 %v3950_v3, %v5251_v0  ;;  %v3953_v13 = vadd.f32 %v3952_v10, %v3951_v5  ;;  %v4064_v14 = vpop.f32.mrb[3].mxu1  ;;  %v4796_v3 = vld [vmem:[%s4986_s18 + $0x408] ss:$36 sps:$4 sm:$0xff]  }
  0xff   : > { %v4065_v15 = vadd.f32 %v4064_v14, %v4063_v9  ;;  %2195 = vmatmul.mubr.bf16.gmra.mrb[108].mxu0 %v4775_v2 }
 0x100   : > { %v5258_v16 = vadd.f32 %v4062_v8, %v1787_v12  ;;  %v1790_v17 = vadd.f32 %v3953_v13, %v5251_v0  ;;  %2356 = vmatmul.mubr.bf16.gmra.mrb[108].mxu1 %v4776_v6  ;;  %2202 = vmatprep.mubr.bf16.mxu0 %v4777_v7  ;;  %v4801_v8 = vld [vmem:[%s4986_s18 + $0x454] ss:$36 sps:$4 sm:$0xff]  }
 0x101   : > { %2363 = vmatprep.mubr.bf16.mxu1 %v4779_v11 }
 0x102   : > { %v5261_v18 = vadd.f32 %v4065_v15, %v1790_v17  ;;  %v3954_v19 = vpop.f32.mrb[4].mxu0 }
 0x103   : > { %v4066_v20 = vpop.f32.mrb[4].mxu1  ;;  %v3955_v21 = vpop.f32.mrb[5].mxu0 }
 0x104   : > { %v3956_v23 = vadd.f32 %v3955_v21, %v3954_v19  ;;  %v4067_v24 = vpop.f32.mrb[5].mxu1  ;;  %v3957_v25 = vpop.f32.mrb[6].mxu0  ;;  %v4803_v21 = vld [vmem:[%s4986_s18 + $0x448] ss:$36 sps:$4 sm:$0xff]  }
 0x105   : > { %v4068_v28 = vadd.f32 %v4067_v24, %v4066_v20  ;;  %v4069_v29 = vpop.f32.mrb[6].mxu1  ;;  %v3958_v30 = vpop.f32.mrb[7].mxu0 }
 0x106   : > { %v1795_v32 = vadd.f32 %v3956_v23, %v5251_v0  ;;  %v3959_v33 = vadd.f32 %v3958_v30, %v3957_v25  ;;  %v4070_v34 = vpop.f32.mrb[7].mxu1  ;;  %v4804_v25 = vld [vmem:[%s4986_s18 + $0x450] ss:$36 sps:$4 sm:$0xff]  }
 0x107   : > { %v4071_v35 = vadd.f32 %v4070_v34, %v4069_v29  ;;  %2203 = vmatmul.mubr.bf16.gmra.mrb[112].mxu0 %v4781_v22  ;;  %v4806_v30 = vld [vmem:[%s4986_s18 + $0x10] ss:$36 sps:$4 sm:$0xff]  }
 0x108   : > { %v5268_v36 = vadd.f32 %v4068_v28, %v1795_v32  ;;  %v1798_v37 = vadd.f32 %v3959_v33, %v5251_v0  ;;  %2364 = vmatmul.mubr.bf16.gmra.mrb[112].mxu1 %v4782_v26  ;;  %2210 = vmatprep.mubr.bf16.mxu0 %v4785_v27  ;;  %v4805_v26 = vld [vmem:[%s4986_s18 + $0x20] ss:$36 sps:$4 sm:$0xff]  }
 0x109   : > { %2371 = vmatprep.mubr.bf16.mxu1 %v4787_v31 }
 0x10a   : > { %v5271_v38 = vadd.f32 %v4071_v35, %v1798_v37  ;;  %v3960_v39 = vpop.f32.mrb[8].mxu0 }
 0x10b   : > { %v4072_v40 = vpop.f32.mrb[8].mxu1  ;;  %v3961_v41 = vpop.f32.mrb[9].mxu0 }
 0x10c   : > { %v3962_v43 = vadd.f32 %v3961_v41, %v3960_v39  ;;  %v4073_v44 = vpop.f32.mrb[9].mxu1  ;;  %v3963_v45 = vpop.f32.mrb[10].mxu0 }
 0x10d   : > { %v4074_v48 = vadd.f32 %v4073_v44, %v4072_v40  ;;  %v4075_v49 = vpop.f32.mrb[10].mxu1  ;;  %v3964_v50 = vpop.f32.mrb[11].mxu0 }
 0x10e   : > { %v1803_v52 = vadd.f32 %v3962_v43, %v5251_v0  ;;  %v3965_v53 = vadd.f32 %v3964_v50, %v3963_v45  ;;  %v4076_v54 = vpop.f32.mrb[11].mxu1  ;;  %v4807_v43 = vld [vmem:[%s4986_s18 + $0x68] ss:$36 sps:$4 sm:$0xff]  }
 0x10f   : > { %v4077_v55 = vadd.f32 %v4076_v54, %v4075_v49  ;;  %2211 = vmatmul.mubr.bf16.gmra.mrb[116].mxu0 %v4789_v42 }
 0x110   : > { %v5278_v56 = vadd.f32 %v4074_v48, %v1803_v52  ;;  %v1806_v57 = vadd.f32 %v3965_v53, %v5251_v0  ;;  %2372 = vmatmul.mubr.bf16.gmra.mrb[116].mxu1 %v4790_v46  ;;  %2218 = vmatprep.mubr.bf16.mxu0 %v4791_v47  ;;  %v4808_v47 = vld [vmem:[%s4986_s18 + $0x58] ss:$36 sps:$4 sm:$0xff]   ;;  %v4809_v48 = vld [vmem:[%s4986_s18 + $0xb0] ss:$36 sps:$4 sm:$0xff]   ;;  %v4810_v52 = vld [vmem:[%s4986_s18 + $0xa0] ss:$36 sps:$4 sm:$0xff]  }
 0x111   : > { %2379 = vmatprep.mubr.bf16.mxu1 %v4793_v51 }
 0x112   : > { %v5281_v58 = vadd.f32 %v4077_v55, %v1806_v57  ;;  %v3966_v59 = vpop.f32.mrb[12].mxu0 }
 0x113   : > { %v4078_v60 = vpop.f32.mrb[12].mxu1  ;;  %v3967_v61 = vpop.f32.mrb[13].mxu0 }
 0x114   : > { %v3968_v63 = vadd.f32 %v3967_v61, %v3966_v59  ;;  %v4079_v1 = vpop.f32.mrb[13].mxu1  ;;  %v3969_v2 = vpop.f32.mrb[14].mxu0 }
 0x115   : > { %v4080_v5 = vadd.f32 %v4079_v1, %v4078_v60  ;;  %v4081_v6 = vpop.f32.mrb[14].mxu1  ;;  %v3970_v7 = vpop.f32.mrb[15].mxu0 }
 0x116   : > { %v1811_v9 = vadd.f32 %v3968_v63, %v5251_v0  ;;  %v3971_v10 = vadd.f32 %v3970_v7, %v3969_v2  ;;  %v4082_v11 = vpop.f32.mrb[15].mxu1  ;;  %v4811_v2 = vld [vmem:[%s4986_s18 + $0xf8] ss:$36 sps:$4 sm:$0xff]   ;;  %v4813_v7 = vld [vmem:[%s4986_s18 + $0x140] ss:$36 sps:$4 sm:$0xff]  }
 0x117   : > { %v4083_v12 = vadd.f32 %v4082_v11, %v4081_v6  ;;  %2219 = vmatmul.mubr.bf16.gmra.mrb[120].mxu0 %v4795_v62  ;;  %v4812_v6 = vld [vmem:[%s4986_s18 + $0xe8] ss:$36 sps:$4 sm:$0xff]   ;;  %v4814_v11 = vld [vmem:[%s4986_s18 + $0x130] ss:$36 sps:$4 sm:$0xff]  }
 0x118   : > { %v5288_v13 = vadd.f32 %v4080_v5, %v1811_v9  ;;  %v1814_v14 = vadd.f32 %v3971_v10, %v5251_v0  ;;  %2380 = vmatmul.mubr.bf16.gmra.mrb[120].mxu1 %v4796_v3  ;;  %2226 = vmatprep.mubr.bf16.mxu0 %v4799_v4 }
 0x119   : > { %2387 = vmatprep.mubr.bf16.mxu1 %v4801_v8 }
 0x11a   : > { %v5291_v15 = vadd.f32 %v4083_v12, %v1814_v14  ;;  %v3972_v17 = vpop.f32.mrb[16].mxu0 }
 0x11b   : > { %v4084_v19 = vpop.f32.mrb[16].mxu1  ;;  %v3973_v20 = vpop.f32.mrb[17].mxu0 }
 0x11c   : > { %v3974_v22 = vadd.f32 %v3973_v20, %v3972_v17  ;;  %v4085_v23 = vpop.f32.mrb[17].mxu1  ;;  %v3975_v24 = vpop.f32.mrb[18].mxu0 }
 0x11d   : > { %v4086_v27 = vadd.f32 %v4085_v23, %v4084_v19  ;;  %v4087_v28 = vpop.f32.mrb[18].mxu1  ;;  %v3976_v29 = vpop.f32.mrb[19].mxu0 }
 0x11e   : > { %v1819_v31 = vadd.f32 %v3974_v22, %v5251_v0  ;;  %v3977_v32 = vadd.f32 %v3976_v29, %v3975_v24  ;;  %v4088_v33 = vpop.f32.mrb[19].mxu1 }
 0x11f   : > { %v4089_v34 = vadd.f32 %v4088_v33, %v4087_v28  ;;  %2227 = vmatmul.mubr.bf16.gmra.mrb[124].mxu0 %v4803_v21 }
 0x120   : > { %v5298_v35 = vadd.f32 %v4086_v27, %v1819_v31  ;;  %v1822_v37 = vadd.f32 %v3977_v32, %v5251_v0  ;;  %2388 = vmatmul.mubr.bf16.gmra.mrb[124].mxu1 %v4804_v25  ;;  %4444 = vmatprep.mubr.bf16.mxu0 %v4805_v26  ;;  %v4815_v26 = vld [vmem:[%s4986_s18 + $0x188] ss:$36 sps:$4 sm:$0xff]   ;;  %v4817_v31 = vld [vmem:[%s4986_s18 + $0x1d0] ss:$36 sps:$4 sm:$0xff]  }
 0x121   : > { %4492 = vmatprep.mubr.bf16.mxu1 %v4806_v30  ;;  %v4816_v30 = vld [vmem:[%s4986_s18 + $0x178] ss:$36 sps:$4 sm:$0xff]  }
 0x122   : > { %v5301_v39 = vadd.f32 %v4089_v34, %v1822_v37  ;;  %v3978_v40 = vpop.f32.mrb[20].mxu0  ;;  %v4818_v37 = vld [vmem:[%s4986_s18 + $0x1c0] ss:$36 sps:$4 sm:$0xff]  }
 0x123   : > { %v4090_v41 = vpop.f32.mrb[20].mxu1  ;;  %v3979_v42 = vpop.f32.mrb[21].mxu0 }
 0x124   : > { %v3980_v44 = vadd.f32 %v3979_v42, %v3978_v40  ;;  %v4091_v45 = vpop.f32.mrb[21].mxu1  ;;  %v3981_v46 = vpop.f32.mrb[22].mxu0 }
 0x125   : > { %v4092_v49 = vadd.f32 %v4091_v45, %v4090_v41  ;;  %v4093_v50 = vpop.f32.mrb[22].mxu1  ;;  %v3982_v51 = vpop.f32.mrb[23].mxu0 }
 0x126   : > { %v1827_v53 = vadd.f32 %v3980_v44, %v5251_v0  ;;  %v3983_v54 = vadd.f32 %v3982_v51, %v3981_v46  ;;  %v4094_v55 = vpop.f32.mrb[23].mxu1 }
 0x127   : > { %v4095_v57 = vadd.f32 %v4094_v55, %v4093_v50  ;;  %4445 = vmatmul.mubr.bf16.vlgmr.msra.gmra.mrb[128].mxu0 %v4807_v43  ;;  %v4819_v50 = vld [vmem:[%s4986_s18 + $0x218] ss:$36 sps:$4 sm:$0xff]   ;;  %v4821_v55 = vld [vmem:[%s4986_s18 + $0x260] ss:$36 sps:$4 sm:$0xff]  }
 0x128   : > { %v5308_v59 = vadd.f32 %v4092_v49, %v1827_v53  ;;  %v1830_v60 = vadd.f32 %v3983_v54, %v5251_v0  ;;  %4493 = vmatmul.mubr.bf16.vlgmr.msra.gmra.mrb[128].mxu1 %v4808_v47  ;;  %4448 = vmatprep.mubr.bf16.mxu0 %v4809_v48  ;;  %v4820_v54 = vld [vmem:[%s4986_s18 + $0x208] ss:$36 sps:$4 sm:$0xff]  }
 0x129   : > { %4496 = vmatprep.mubr.bf16.mxu1 %v4810_v52 }
 0x12a   : > { %v5311_v61 = vadd.f32 %v4095_v57, %v1830_v60  ;;  %v3984_v62 = vpop.f32.mrb[24].mxu0 }
 0x12b   : > { %v4096_v63 = vpop.f32.mrb[24].mxu1  ;;  %v3985_v1 = vpop.f32.mrb[25].mxu0 }
 0x12c   : > { %v3986_v3 = vadd.f32 %v3985_v1, %v3984_v62  ;;  %v4097_v4 = vpop.f32.mrb[25].mxu1  ;;  %v3987_v5 = vpop.f32.mrb[26].mxu0 }
 0x12d   : > { %v4098_v8 = vadd.f32 %v4097_v4, %v4096_v63  ;;  %v4099_v9 = vpop.f32.mrb[26].mxu1  ;;  %v3988_v10 = vpop.f32.mrb[27].mxu0  ;;  %v4822_v63 = vld [vmem:[%s4986_s18 + $0x250] ss:$36 sps:$4 sm:$0xff]  }
 0x12e   : > { %v1835_v12 = vadd.f32 %v3986_v3, %v5251_v0  ;;  %v3989_v14 = vadd.f32 %v3988_v10, %v3987_v5  ;;  %v4100_v17 = vpop.f32.mrb[27].mxu1 }
 0x12f   : > { %v4101_v19 = vadd.f32 %v4100_v17, %v4099_v9  ;;  %4449 = vmatmul.mubr.bf16.gmra.mrb[132].mxu0 %v4811_v2 }
 0x130   : > { %v5318_v20 = vadd.f32 %v4098_v8, %v1835_v12  ;;  %v1838_v21 = vadd.f32 %v3989_v14, %v5251_v0  ;;  %4497 = vmatmul.mubr.bf16.gmra.mrb[132].mxu1 %v4812_v6  ;;  %4452 = vmatprep.mubr.bf16.mxu0 %v4813_v7 }
 0x131   : > { %4500 = vmatprep.mubr.bf16.mxu1 %v4814_v11  ;;  %v4823_v11 = vld [vmem:[%s4986_s18 + $0x2a8] ss:$36 sps:$4 sm:$0xff]  }
 0x132   : > { %v5321_v22 = vadd.f32 %v4101_v19, %v1838_v21  ;;  %v3990_v23 = vpop.f32.mrb[28].mxu0  ;;  %v4824_v19 = vld [vmem:[%s4986_s18 + $0x298] ss:$36 sps:$4 sm:$0xff]   ;;  %v4825_v21 = vld [vmem:[%s4986_s18 + $0x2f0] ss:$36 sps:$4 sm:$0xff]  }
 0x133   : > { %v4102_v24 = vpop.f32.mrb[28].mxu1  ;;  %v3991_v25 = vpop.f32.mrb[29].mxu0 }
 0x134   : > { %v3992_v27 = vadd.f32 %v3991_v25, %v3990_v23  ;;  %v4103_v28 = vpop.f32.mrb[29].mxu1  ;;  %v3993_v29 = vpop.f32.mrb[30].mxu0 }
 0x135   : > { %v4104_v32 = vadd.f32 %v4103_v28, %v4102_v24  ;;  %v4105_v33 = vpop.f32.mrb[30].mxu1  ;;  %v3994_v34 = vpop.f32.mrb[31].mxu0 }
 0x136   : > { %v1843_v40 = vadd.f32 %v3992_v27, %v5251_v0  ;;  %v3995_v41 = vadd.f32 %v3994_v34, %v3993_v29  ;;  %v4106_v42 = vpop.f32.mrb[31].mxu1 }
 0x137   : > { %v4107_v43 = vadd.f32 %v4106_v42, %v4105_v33  ;;  %4453 = vmatmul.mubr.bf16.gmra.mrb[136].mxu0 %v4815_v26  ;;  %v4826_v26 = vld [vmem:[%s4986_s18 + $0x2e0] ss:$36 sps:$4 sm:$0xff]  }
 0x138   : > { %v5328_v44 = vadd.f32 %v4104_v32, %v1843_v40  ;;  %v1846_v45 = vadd.f32 %v3995_v41, %v5251_v0  ;;  %4501 = vmatmul.mubr.bf16.gmra.mrb[136].mxu1 %v4816_v30  ;;  %4456 = vmatprep.mubr.bf16.mxu0 %v4817_v31  ;;  %v4827_v41 = vld [vmem:[%s4986_s18 + $0x338] ss:$36 sps:$4 sm:$0xff]  }
 0x139   : > { %4504 = vmatprep.mubr.bf16.mxu1 %v4818_v37 }
 0x13a   : > { %v5331_v46 = vadd.f32 %v4107_v43, %v1846_v45  ;;  %v3996_v47 = vpop.f32.mrb[32].mxu0 }
 0x13b   : > { %v4108_v48 = vpop.f32.mrb[32].mxu1  ;;  %v3997_v49 = vpop.f32.mrb[33].mxu0 }
 0x13c   : > { %v3998_v51 = vadd.f32 %v3997_v49, %v3996_v47  ;;  %v4109_v52 = vpop.f32.mrb[33].mxu1  ;;  %v3999_v53 = vpop.f32.mrb[34].mxu0  ;;  %v4828_v47 = vld [vmem:[%s4986_s18 + $0x328] ss:$36 sps:$4 sm:$0xff]  }
 0x13d   : > { %v4110_v57 = vadd.f32 %v4109_v52, %v4108_v48  ;;  %v4111_v60 = vpop.f32.mrb[34].mxu1  ;;  %v4000_v62 = vpop.f32.mrb[35].mxu0  ;;  %v4829_v48 = vld [vmem:[%s4986_s18 + $0x380] ss:$36 sps:$4 sm:$0xff]   ;;  %v4830_v52 = vld [vmem:[%s4986_s18 + $0x370] ss:$36 sps:$4 sm:$0xff]  }
 0x13e   : > { %v1851_v1 = vadd.f32 %v3998_v51, %v5251_v0  ;;  %v4001_v2 = vadd.f32 %v4000_v62, %v3999_v53  ;;  %v4112_v3 = vpop.f32.mrb[35].mxu1 }
 0x13f   : > { %v4113_v4 = vadd.f32 %v4112_v3, %v4111_v60  ;;  %4457 = vmatmul.mubr.bf16.gmra.mrb[140].mxu0 %v4819_v50 }
 0x140   : > { %v5338_v5 = vadd.f32 %v4110_v57, %v1851_v1  ;;  %v1854_v6 = vadd.f32 %v4001_v2, %v5251_v0  ;;  %4505 = vmatmul.mubr.bf16.gmra.mrb[140].mxu1 %v4820_v54  ;;  %4460 = vmatprep.mubr.bf16.mxu0 %v4821_v55 }
 0x141   : > { %4508 = vmatprep.mubr.bf16.mxu1 %v4822_v63 }
 0x142   : > { %v5341_v7 = vadd.f32 %v4113_v4, %v1854_v6  ;;  %v4002_v8 = vpop.f32.mrb[36].mxu0  ;;  %v4831_v4 = vld [vmem:[%s4986_s18 + $0x3c8] ss:$36 sps:$4 sm:$0xff]  }
 0x143   : > { %v4114_v9 = vpop.f32.mrb[36].mxu1  ;;  %v4003_v10 = vpop.f32.mrb[37].mxu0 }
 0x144   : > { %v4004_v12 = vadd.f32 %v4003_v10, %v4002_v8  ;;  %v4115_v14 = vpop.f32.mrb[37].mxu1  ;;  %v4005_v17 = vpop.f32.mrb[38].mxu0  ;;  %v4832_v10 = vld [vmem:[%s4986_s18 + $0x3b8] ss:$36 sps:$4 sm:$0xff]  }
 0x145   : > { %v4116_v23 = vadd.f32 %v4115_v14, %v4114_v9  ;;  %v4117_v24 = vpop.f32.mrb[38].mxu1  ;;  %v4006_v25 = vpop.f32.mrb[39].mxu0 }
 0x146   : > { %v1859_v27 = vadd.f32 %v4004_v12, %v5251_v0  ;;  %v4007_v28 = vadd.f32 %v4006_v25, %v4005_v17  ;;  %v4118_v29 = vpop.f32.mrb[39].mxu1 }
 0x147   : > { %v4119_v30 = vadd.f32 %v4118_v29, %v4117_v24  ;;  %4461 = vmatmul.mubr.bf16.gmra.mrb[144].mxu0 %v4823_v11  ;;  %v4833_v11 = vld [vmem:[%s4986_s18 + $0x410] ss:$36 sps:$4 sm:$0xff]  }
 0x148   : > { %v5348_v31 = vadd.f32 %v4116_v23, %v1859_v27  ;;  %v1862_v32 = vadd.f32 %v4007_v28, %v5251_v0  ;;  %4509 = vmatmul.mubr.bf16.gmra.mrb[144].mxu1 %v4824_v19  ;;  %4464 = vmatprep.mubr.bf16.mxu0 %v4825_v21  ;;  %v4834_v19 = vld [vmem:[%s4986_s18 + $0x400] ss:$36 sps:$4 sm:$0xff]  }
 0x149   : > { %4512 = vmatprep.mubr.bf16.mxu1 %v4826_v26 }
 0x14a   : > { %v5351_v33 = vadd.f32 %v4119_v30, %v1862_v32  ;;  %v4008_v34 = vpop.f32.mrb[40].mxu0 }
 0x14b   : > { %v4120_v37 = vpop.f32.mrb[40].mxu1  ;;  %v4009_v40 = vpop.f32.mrb[41].mxu0 }
 0x14c   : > { %v4010_v42 = vadd.f32 %v4009_v40, %v4008_v34  ;;  %v4121_v43 = vpop.f32.mrb[41].mxu1  ;;  %v4011_v45 = vpop.f32.mrb[42].mxu0  ;;  %v4835_v34 = vld [vmem:[%s4986_s18 + $0x458] ss:$36 sps:$4 sm:$0xff]  }
 0x14d   : > { %v4122_v49 = vadd.f32 %v4121_v43, %v4120_v37  ;;  %v4123_v50 = vpop.f32.mrb[42].mxu1  ;;  %v4012_v51 = vpop.f32.mrb[43].mxu0 }
 0x14e   : > { %v1867_v53 = vadd.f32 %v4010_v42, %v5251_v0  ;;  %v4013_v54 = vadd.f32 %v4012_v51, %v4011_v45  ;;  %v4124_v55 = vpop.f32.mrb[43].mxu1  ;;  %v4836_v42 = vld [vmem:[%s4986_s18 + $0x448] ss:$36 sps:$4 sm:$0xff]  }
 0x14f   : > { %v4125_v57 = vadd.f32 %v4124_v55, %v4123_v50  ;;  %4465 = vmatmul.mubr.bf16.gmra.mrb[148].mxu0 %v4827_v41 }
 0x150   : > { %v5358_v60 = vadd.f32 %v4122_v49, %v1867_v53  ;;  %v1870_v62 = vadd.f32 %v4013_v54, %v5251_v0  ;;  %4513 = vmatmul.mubr.bf16.gmra.mrb[148].mxu1 %v4828_v47  ;;  %4468 = vmatprep.mubr.bf16.mxu0 %v4829_v48 }
 0x151   : > { %4516 = vmatprep.mubr.bf16.mxu1 %v4830_v52 }
 0x152   : > { %v5361_v63 = vadd.f32 %v4125_v57, %v1870_v62  ;;  %v4014_v1 = vpop.f32.mrb[44].mxu0 }
 0x153   : > { %v4126_v2 = vpop.f32.mrb[44].mxu1  ;;  %v4015_v3 = vpop.f32.mrb[45].mxu0 }
 0x154   : > { %v4016_v6 = vadd.f32 %v4015_v3, %v4014_v1  ;;  %v4127_v8 = vpop.f32.mrb[45].mxu1  ;;  %v4017_v9 = vpop.f32.mrb[46].mxu0 }
 0x155   : > { %v4128_v12 = vadd.f32 %v4127_v8, %v4126_v2  ;;  %v4129_v14 = vpop.f32.mrb[46].mxu1  ;;  %v4018_v17 = vpop.f32.mrb[47].mxu0 }
 0x156   : > { %v1875_v21 = vadd.f32 %v4016_v6, %v5251_v0  ;;  %v4019_v23 = vadd.f32 %v4018_v17, %v4017_v9  ;;  %v4130_v24 = vpop.f32.mrb[47].mxu1 }
 0x157   : > { %v4131_v25 = vadd.f32 %v4130_v24, %v4129_v14  ;;  %4469 = vmatmul.mubr.bf16.gmra.mrb[152].mxu0 %v4831_v4 }
 0x158   : > { %v5368_v26 = vadd.f32 %v4128_v12, %v1875_v21  ;;  %v1878_v27 = vadd.f32 %v4019_v23, %v5251_v0  ;;  %4517 = vmatmul.mubr.bf16.gmra.mrb[152].mxu1 %v4832_v10  ;;  %4472 = vmatprep.mubr.bf16.mxu0 %v4833_v11 }
 0x159   : > { %4520 = vmatprep.mubr.bf16.mxu1 %v4834_v19 }
 0x15a   : > { %v5371_v28 = vadd.f32 %v4131_v25, %v1878_v27  ;;  %v4020_v29 = vpop.f32.mrb[48].mxu0 }
 0x15b   : > { %v4132_v30 = vpop.f32.mrb[48].mxu1  ;;  %v4021_v32 = vpop.f32.mrb[49].mxu0 }
 0x15c   : > { %v4022_v37 = vadd.f32 %v4021_v32, %v4020_v29  ;;  %v4133_v40 = vpop.f32.mrb[49].mxu1  ;;  %v4023_v41 = vpop.f32.mrb[50].mxu0 }
 0x15d   : > { %v4134_v43 = vadd.f32 %v4133_v40, %v4132_v30  ;;  %v4135_v45 = vpop.f32.mrb[50].mxu1  ;;  %v4024_v47 = vpop.f32.mrb[51].mxu0 }
 0x15e   : > { %v1883_v48 = vadd.f32 %v4022_v37, %v5251_v0  ;;  %v4025_v49 = vadd.f32 %v4024_v47, %v4023_v41  ;;  %v4136_v50 = vpop.f32.mrb[51].mxu1 }
 0x15f   : > { %v4137_v51 = vadd.f32 %v4136_v50, %v4135_v45  ;;  %4473 = vmatmul.mubr.bf16.gmra.mrb[156].mxu0 %v4835_v34 }
 0x160   : > { %v5376_v52 = vadd.f32 %v4134_v43, %v1883_v48  ;;  %v1886_v53 = vadd.f32 %v4025_v49, %v5251_v0  ;;  %4521 = vmatmul.mubr.bf16.gmra.mrb[156].mxu1 %v4836_v42 }
 0x162   : > { %v5379_v54 = vadd.f32 %v4137_v51, %v1886_v53  ;;  %v4026_v55 = vpop.f32.mrb[52].mxu0 }
 0x163   : > { %v4138_v57 = vpop.f32.mrb[52].mxu1  ;;  %v4027_v62 = vpop.f32.mrb[53].mxu0 }
 0x164   : > { %v4028_v1 = vadd.f32 %v4027_v62, %v4026_v55  ;;  %v4139_v2 = vpop.f32.mrb[53].mxu1  ;;  %v4029_v3 = vpop.f32.mrb[54].mxu0 }
 0x165   : > { %v4140_v4 = vadd.f32 %v4139_v2, %v4138_v57  ;;  %v4141_v6 = vpop.f32.mrb[54].mxu1  ;;  %v4030_v8 = vpop.f32.mrb[55].mxu0 }
 0x166   : > { %v1891_v9 = vadd.f32 %v4028_v1, %v5251_v0  ;;  %v4031_v10 = vadd.f32 %v4030_v8, %v4029_v3  ;;  %v4142_v11 = vpop.f32.mrb[55].mxu1 }
 0x167   : > { %v4143_v12 = vadd.f32 %v4142_v11, %v4141_v6 }
 0x168   : > { %v5382_v14 = vadd.f32 %v4140_v4, %v1891_v9  ;;  %v1894_v17 = vadd.f32 %v4031_v10, %v5251_v0 }
 0x16a   : > { %v5385_v19 = vadd.f32 %v4143_v12, %v1894_v17  ;;  %v4032_v21 = vpop.f32.mrb[56].mxu0 }
 0x16b   : > { %v4144_v23 = vpop.f32.mrb[56].mxu1  ;;  %v4033_v24 = vpop.f32.mrb[57].mxu0 }
 0x16c   : > { %v4034_v25 = vadd.f32 %v4033_v24, %v4032_v21  ;;  %v4145_v27 = vpop.f32.mrb[57].mxu1  ;;  %v4035_v29 = vpop.f32.mrb[58].mxu0 }
 0x16d   : > { %v4146_v30 = vadd.f32 %v4145_v27, %v4144_v23  ;;  %v4147_v32 = vpop.f32.mrb[58].mxu1  ;;  %v4036_v34 = vpop.f32.mrb[59].mxu0 }
 0x16e   : > { %v1899_v37 = vadd.f32 %v4034_v25, %v5251_v0  ;;  %v4037_v40 = vadd.f32 %v4036_v34, %v4035_v29  ;;  %v4148_v41 = vpop.f32.mrb[59].mxu1 }
 0x16f   : > { %v4149_v42 = vadd.f32 %v4148_v41, %v4147_v32 }
 0x170   : > { %v5388_v43 = vadd.f32 %v4146_v30, %v1899_v37  ;;  %v1902_v45 = vadd.f32 %v4037_v40, %v5251_v0 }
 0x172   : > { %v5391_v47 = vadd.f32 %v4149_v42, %v1902_v45  ;;  %v4038_v48 = vpop.f32.mrb[60].mxu0 }
 0x173   : > { %v4150_v49 = vpop.f32.mrb[60].mxu1  ;;  %v4039_v50 = vpop.f32.mrb[61].mxu0 }
 0x174   : > { %v4040_v51 = vadd.f32 %v4039_v50, %v4038_v48  ;;  %v4151_v53 = vpop.f32.mrb[61].mxu1  ;;  %v4041_v55 = vpop.f32.mrb[62].mxu0 }
 0x175   : > { %v4152_v57 = vadd.f32 %v4151_v53, %v4150_v49  ;;  %v4153_v62 = vpop.f32.mrb[62].mxu1  ;;  %v4042_v1 = vpop.f32.mrb[63].mxu0 }
 0x176   : > { %v1907_v2 = vadd.f32 %v4040_v51, %v5251_v0  ;;  %v4043_v3 = vadd.f32 %v4042_v1, %v4041_v55  ;;  %v4154_v4 = vpop.f32.mrb[63].mxu1 }
 0x177   : > { %v4155_v6 = vadd.f32 %v4154_v4, %v4153_v62 }
 0x178   : > { %v5394_v8 = vadd.f32 %v4152_v57, %v1907_v2  ;;  %v1910_v9 = vadd.f32 %v4043_v3, %v5251_v0 }
 0x17a   : > { %v5397_v10 = vadd.f32 %v4155_v6, %v1910_v9  ;;  %v4172_v11 = vpop.f32.mrb[64].mxu0 }
 0x17b   : > { %v4284_v12 = vpop.f32.mrb[64].mxu1  ;;  %v4173_v17 = vpop.f32.mrb[65].mxu0 }
 0x17c   : > { %v4174_v21 = vadd.f32 %v4173_v17, %v4172_v11  ;;  %v4285_v23 = vpop.f32.mrb[65].mxu1  ;;  %v4175_v24 = vpop.f32.mrb[66].mxu0 }
 0x17d   : > { %v4286_v25 = vadd.f32 %v4285_v23, %v4284_v12  ;;  %v4287_v27 = vpop.f32.mrb[66].mxu1  ;;  %v4176_v29 = vpop.f32.mrb[67].mxu0 }
 0x17e   : > { %v2109_v30 = vadd.f32 %v4174_v21, %v5258_v16  ;;  %v4177_v32 = vadd.f32 %v4176_v29, %v4175_v24  ;;  %v4288_v34 = vpop.f32.mrb[67].mxu1 }
 0x17f   : > { %v4289_v37 = vadd.f32 %v4288_v34, %v4287_v27 }
 0x180   : > { %v2112_v40 = vadd.f32 %v4177_v32, %v5261_v18  ;;  %v5401_v41 = vadd.f32 %v4286_v25, %v2109_v30 }
 0x182   : > { %v4178_v0 = vpop.f32.mrb[68].mxu0  ;;  %v5403_v42 = vadd.f32 %v4289_v37, %v2112_v40 }
 0x183   : > { %v4290_v45 = vpop.f32.mrb[68].mxu1  ;;  %v4179_v48 = vpop.f32.mrb[69].mxu0 }
 0x184   : > { %v4180_v49 = vadd.f32 %v4179_v48, %v4178_v0  ;;  %v4291_v50 = vpop.f32.mrb[69].mxu1  ;;  %v4181_v51 = vpop.f32.mrb[70].mxu0 }
 0x185   : > { %v4292_v53 = vadd.f32 %v4291_v50, %v4290_v45  ;;  %v4293_v55 = vpop.f32.mrb[70].mxu1  ;;  %v4182_v57 = vpop.f32.mrb[71].mxu0 }
 0x186   : > { %v2117_v16 = vadd.f32 %v4180_v49, %v5268_v36  ;;  %v4183_v62 = vadd.f32 %v4182_v57, %v4181_v51  ;;  %v4294_v1 = vpop.f32.mrb[71].mxu1 }
 0x187   : > { %v4295_v2 = vadd.f32 %v4294_v1, %v4293_v55 }
 0x188   : > { %v2120_v18 = vadd.f32 %v4183_v62, %v5271_v38  ;;  %v5407_v3 = vadd.f32 %v4292_v53, %v2117_v16 }
 0x18a   : > { %v4184_v4 = vpop.f32.mrb[72].mxu0  ;;  %v5409_v6 = vadd.f32 %v4295_v2, %v2120_v18 }
 0x18b   : > { %v4296_v9 = vpop.f32.mrb[72].mxu1  ;;  %v4185_v11 = vpop.f32.mrb[73].mxu0 }
 0x18c   : > { %v4186_v12 = vadd.f32 %v4185_v11, %v4184_v4  ;;  %v4297_v17 = vpop.f32.mrb[73].mxu1  ;;  %v4187_v21 = vpop.f32.mrb[74].mxu0 }
 0x18d   : > { %v4298_v23 = vadd.f32 %v4297_v17, %v4296_v9  ;;  %v4299_v24 = vpop.f32.mrb[74].mxu1  ;;  %v4188_v25 = vpop.f32.mrb[75].mxu0 }
 0x18e   : > { %v2125_v36 = vadd.f32 %v4186_v12, %v5278_v56  ;;  %v4189_v27 = vadd.f32 %v4188_v25, %v4187_v21  ;;  %v4300_v29 = vpop.f32.mrb[75].mxu1 }
 0x18f   : > { %v4301_v30 = vadd.f32 %v4300_v29, %v4299_v24 }
 0x190   : > { %v2128_v38 = vadd.f32 %v4189_v27, %v5281_v58  ;;  %v5413_v32 = vadd.f32 %v4298_v23, %v2125_v36 }
 0x192   : > { %v4190_v34 = vpop.f32.mrb[76].mxu0  ;;  %v5415_v37 = vadd.f32 %v4301_v30, %v2128_v38 }
 0x193   : > { %v4302_v40 = vpop.f32.mrb[76].mxu1  ;;  %v4191_v0 = vpop.f32.mrb[77].mxu0 }
 0x194   : > { %v4192_v45 = vadd.f32 %v4191_v0, %v4190_v34  ;;  %v4303_v48 = vpop.f32.mrb[77].mxu1  ;;  %v4193_v49 = vpop.f32.mrb[78].mxu0 }
 0x195   : > { %v4304_v50 = vadd.f32 %v4303_v48, %v4302_v40  ;;  %v4305_v51 = vpop.f32.mrb[78].mxu1  ;;  %v4194_v53 = vpop.f32.mrb[79].mxu0 }
 0x196   : > { %v2133_v56 = vadd.f32 %v4192_v45, %v5288_v13  ;;  %v4195_v55 = vadd.f32 %v4194_v53, %v4193_v49  ;;  %v4306_v57 = vpop.f32.mrb[79].mxu1 }
 0x197   : > { %v4307_v16 = vadd.f32 %v4306_v57, %v4305_v51 }
 0x198   : > { %v2136_v58 = vadd.f32 %v4195_v55, %v5291_v15  ;;  %v5419_v62 = vadd.f32 %v4304_v50, %v2133_v56 }
 0x19a   : > { %v4196_v1 = vpop.f32.mrb[80].mxu0  ;;  %v5421_v2 = vadd.f32 %v4307_v16, %v2136_v58 }
 0x19b   : > { %v4308_v18 = vpop.f32.mrb[80].mxu1  ;;  %v4197_v4 = vpop.f32.mrb[81].mxu0 }
 0x19c   : > { %v4198_v9 = vadd.f32 %v4197_v4, %v4196_v1  ;;  %v4309_v11 = vpop.f32.mrb[81].mxu1  ;;  %v4199_v12 = vpop.f32.mrb[82].mxu0 }
 0x19d   : > { %v4310_v17 = vadd.f32 %v4309_v11, %v4308_v18  ;;  %v4311_v21 = vpop.f32.mrb[82].mxu1  ;;  %v4200_v23 = vpop.f32.mrb[83].mxu0 }
 0x19e   : > { %v2141_v13 = vadd.f32 %v4198_v9, %v5298_v35  ;;  %v4201_v24 = vadd.f32 %v4200_v23, %v4199_v12  ;;  %v4312_v25 = vpop.f32.mrb[83].mxu1 }
 0x19f   : > { %v4313_v36 = vadd.f32 %v4312_v25, %v4311_v21 }
 0x1a0   : > { %v2144_v15 = vadd.f32 %v4201_v24, %v5301_v39  ;;  %v5425_v27 = vadd.f32 %v4310_v17, %v2141_v13 }
 0x1a2   : > { %v4202_v29 = vpop.f32.mrb[84].mxu0  ;;  %v5427_v30 = vadd.f32 %v4313_v36, %v2144_v15 }
 0x1a3   : > { %v4314_v38 = vpop.f32.mrb[84].mxu1  ;;  %v4203_v34 = vpop.f32.mrb[85].mxu0 }
 0x1a4   : > { %v4204_v40 = vadd.f32 %v4203_v34, %v4202_v29  ;;  %v4315_v0 = vpop.f32.mrb[85].mxu1  ;;  %v4205_v45 = vpop.f32.mrb[86].mxu0 }
 0x1a5   : > { %v4316_v48 = vadd.f32 %v4315_v0, %v4314_v38  ;;  %v4317_v49 = vpop.f32.mrb[86].mxu1  ;;  %v4206_v50 = vpop.f32.mrb[87].mxu0 }
 0x1a6   : > { %v2149_v35 = vadd.f32 %v4204_v40, %v5308_v59  ;;  %v4207_v51 = vadd.f32 %v4206_v50, %v4205_v45  ;;  %v4318_v53 = vpop.f32.mrb[87].mxu1 }
 0x1a7   : > { %v4319_v56 = vadd.f32 %v4318_v53, %v4317_v49 }
 0x1a8   : > { %v2152_v39 = vadd.f32 %v4207_v51, %v5311_v61  ;;  %v5431_v55 = vadd.f32 %v4316_v48, %v2149_v35 }
 0x1aa   : > { %v4208_v57 = vpop.f32.mrb[88].mxu0  ;;  %v5433_v16 = vadd.f32 %v4319_v56, %v2152_v39 }
 0x1ab   : > { %v4320_v58 = vpop.f32.mrb[88].mxu1  ;;  %v4209_v1 = vpop.f32.mrb[89].mxu0 }
 0x1ac   : > { %v4210_v18 = vadd.f32 %v4209_v1, %v4208_v57  ;;  %v4321_v4 = vpop.f32.mrb[89].mxu1  ;;  %v4211_v9 = vpop.f32.mrb[90].mxu0 }
 0x1ad   : > { %v4322_v11 = vadd.f32 %v4321_v4, %v4320_v58  ;;  %v4323_v12 = vpop.f32.mrb[90].mxu1  ;;  %v4212_v17 = vpop.f32.mrb[91].mxu0 }
 0x1ae   : > { %v2157_v59 = vadd.f32 %v4210_v18, %v5318_v20  ;;  %v4213_v21 = vadd.f32 %v4212_v17, %v4211_v9  ;;  %v4324_v23 = vpop.f32.mrb[91].mxu1 }
 0x1af   : > { %v4325_v13 = vadd.f32 %v4324_v23, %v4323_v12 }
 0x1b0   : > { %v2160_v61 = vadd.f32 %v4213_v21, %v5321_v22  ;;  %v5437_v24 = vadd.f32 %v4322_v11, %v2157_v59 }
 0x1b2   : > { %v4214_v25 = vpop.f32.mrb[92].mxu0  ;;  %v5439_v36 = vadd.f32 %v4325_v13, %v2160_v61 }
 0x1b3   : > { %v4326_v15 = vpop.f32.mrb[92].mxu1  ;;  %v4215_v29 = vpop.f32.mrb[93].mxu0 }
 0x1b4   : > { %v4216_v38 = vadd.f32 %v4215_v29, %v4214_v25  ;;  %v4327_v34 = vpop.f32.mrb[93].mxu1  ;;  %v4217_v40 = vpop.f32.mrb[94].mxu0 }
 0x1b5   : > { %v4328_v0 = vadd.f32 %v4327_v34, %v4326_v15  ;;  %v4329_v45 = vpop.f32.mrb[94].mxu1  ;;  %v4218_v48 = vpop.f32.mrb[95].mxu0 }
 0x1b6   : > { %v2165_v20 = vadd.f32 %v4216_v38, %v5328_v44  ;;  %v4219_v49 = vadd.f32 %v4218_v48, %v4217_v40  ;;  %v4330_v50 = vpop.f32.mrb[95].mxu1 }
 0x1b7   : > { %v4331_v35 = vadd.f32 %v4330_v50, %v4329_v45 }
 0x1b8   : > { %v2168_v22 = vadd.f32 %v4219_v49, %v5331_v46  ;;  %v5443_v51 = vadd.f32 %v4328_v0, %v2165_v20 }
 0x1ba   : > { %v4220_v53 = vpop.f32.mrb[96].mxu0  ;;  %v5445_v56 = vadd.f32 %v4331_v35, %v2168_v22 }
 0x1bb   : > { %v4332_v39 = vpop.f32.mrb[96].mxu1  ;;  %v4221_v57 = vpop.f32.mrb[97].mxu0 }
 0x1bc   : > { %v4222_v58 = vadd.f32 %v4221_v57, %v4220_v53  ;;  %v4333_v1 = vpop.f32.mrb[97].mxu1  ;;  %v4223_v18 = vpop.f32.mrb[98].mxu0 }
 0x1bd   : > { %v4334_v4 = vadd.f32 %v4333_v1, %v4332_v39  ;;  %v4335_v9 = vpop.f32.mrb[98].mxu1  ;;  %v4224_v11 = vpop.f32.mrb[99].mxu0 }
 0x1be   : > { %v2173_v44 = vadd.f32 %v4222_v58, %v5338_v5  ;;  %v4225_v12 = vadd.f32 %v4224_v11, %v4223_v18  ;;  %v4336_v17 = vpop.f32.mrb[99].mxu1 }
 0x1bf   : > { %v4337_v59 = vadd.f32 %v4336_v17, %v4335_v9 }
 0x1c0   : > { %v2176_v46 = vadd.f32 %v4225_v12, %v5341_v7  ;;  %v5449_v21 = vadd.f32 %v4334_v4, %v2173_v44 }
 0x1c2   : > { %v4226_v23 = vpop.f32.mrb[100].mxu0  ;;  %v5451_v13 = vadd.f32 %v4337_v59, %v2176_v46 }
 0x1c3   : > { %v4338_v61 = vpop.f32.mrb[100].mxu1  ;;  %v4227_v25 = vpop.f32.mrb[101].mxu0 }
 0x1c4   : > { %v4228_v15 = vadd.f32 %v4227_v25, %v4226_v23  ;;  %v4339_v29 = vpop.f32.mrb[101].mxu1  ;;  %v4229_v38 = vpop.f32.mrb[102].mxu0 }
 0x1c5   : > { %v4340_v34 = vadd.f32 %v4339_v29, %v4338_v61  ;;  %v4341_v40 = vpop.f32.mrb[102].mxu1  ;;  %v4230_v0 = vpop.f32.mrb[103].mxu0 }
 0x1c6   : > { %v2181_v5 = vadd.f32 %v4228_v15, %v5348_v31  ;;  %v4231_v45 = vadd.f32 %v4230_v0, %v4229_v38  ;;  %v4342_v48 = vpop.f32.mrb[103].mxu1 }
 0x1c7   : > { %v4343_v20 = vadd.f32 %v4342_v48, %v4341_v40 }
 0x1c8   : > { %v2184_v7 = vadd.f32 %v4231_v45, %v5351_v33  ;;  %v5455_v49 = vadd.f32 %v4340_v34, %v2181_v5 }
 0x1ca   : > { %v4232_v50 = vpop.f32.mrb[104].mxu0  ;;  %v5457_v35 = vadd.f32 %v4343_v20, %v2184_v7 }
 0x1cb   : > { %v4344_v22 = vpop.f32.mrb[104].mxu1  ;;  %v4233_v53 = vpop.f32.mrb[105].mxu0 }
 0x1cc   : > { %v4234_v39 = vadd.f32 %v4233_v53, %v4232_v50  ;;  %v4345_v57 = vpop.f32.mrb[105].mxu1  ;;  %v4235_v58 = vpop.f32.mrb[106].mxu0 }
 0x1cd   : > { %v4346_v1 = vadd.f32 %v4345_v57, %v4344_v22  ;;  %v4347_v18 = vpop.f32.mrb[106].mxu1  ;;  %v4236_v4 = vpop.f32.mrb[107].mxu0 }
 0x1ce   : > { %v2189_v31 = vadd.f32 %v4234_v39, %v5358_v60  ;;  %v4237_v9 = vadd.f32 %v4236_v4, %v4235_v58  ;;  %v4348_v11 = vpop.f32.mrb[107].mxu1 }
 0x1cf   : > { %v4349_v44 = vadd.f32 %v4348_v11, %v4347_v18 }
 0x1d0   : > { %v2192_v33 = vadd.f32 %v4237_v9, %v5361_v63  ;;  %v5461_v12 = vadd.f32 %v4346_v1, %v2189_v31 }
 0x1d2   : > { %v4238_v17 = vpop.f32.mrb[108].mxu0  ;;  %v5463_v59 = vadd.f32 %v4349_v44, %v2192_v33 }
 0x1d3   : > { %v4350_v46 = vpop.f32.mrb[108].mxu1  ;;  %v4239_v23 = vpop.f32.mrb[109].mxu0 }
 0x1d4   : > { %v4240_v61 = vadd.f32 %v4239_v23, %v4238_v17  ;;  %v4351_v25 = vpop.f32.mrb[109].mxu1  ;;  %v4241_v15 = vpop.f32.mrb[110].mxu0 }
 0x1d5   : > { %v4352_v29 = vadd.f32 %v4351_v25, %v4350_v46  ;;  %v4353_v38 = vpop.f32.mrb[110].mxu1  ;;  %v4242_v34 = vpop.f32.mrb[111].mxu0 }
 0x1d6   : > { %v2197_v60 = vadd.f32 %v4240_v61, %v5368_v26  ;;  %v4243_v40 = vadd.f32 %v4242_v34, %v4241_v15  ;;  %v4354_v0 = vpop.f32.mrb[111].mxu1 }
 0x1d7   : > { %v4355_v5 = vadd.f32 %v4354_v0, %v4353_v38 }
 0x1d8   : > { %v2200_v63 = vadd.f32 %v4243_v40, %v5371_v28  ;;  %v5467_v45 = vadd.f32 %v4352_v29, %v2197_v60 }
 0x1da   : > { %v4244_v48 = vpop.f32.mrb[112].mxu0  ;;  %v5469_v20 = vadd.f32 %v4355_v5, %v2200_v63 }
 0x1db   : > { %v4356_v7 = vpop.f32.mrb[112].mxu1  ;;  %v4245_v50 = vpop.f32.mrb[113].mxu0 }
 0x1dc   : > { %v4246_v22 = vadd.f32 %v4245_v50, %v4244_v48  ;;  %v4357_v53 = vpop.f32.mrb[113].mxu1  ;;  %v4247_v39 = vpop.f32.mrb[114].mxu0 }
 0x1dd   : > { %v4358_v57 = vadd.f32 %v4357_v53, %v4356_v7  ;;  %v4359_v58 = vpop.f32.mrb[114].mxu1  ;;  %v4248_v1 = vpop.f32.mrb[115].mxu0 }
 0x1de   : > { %v2205_v26 = vadd.f32 %v4246_v22, %v5376_v52  ;;  %v4249_v18 = vadd.f32 %v4248_v1, %v4247_v39  ;;  %v4360_v4 = vpop.f32.mrb[115].mxu1 }
 0x1df   : > { %v4361_v31 = vadd.f32 %v4360_v4, %v4359_v58 }
 0x1e0   : > { %v2208_v28 = vadd.f32 %v4249_v18, %v5379_v54  ;;  %v5473_v9 = vadd.f32 %v4358_v57, %v2205_v26 }
 0x1e2   : > { %v4250_v11 = vpop.f32.mrb[116].mxu0  ;;  %v5475_v44 = vadd.f32 %v4361_v31, %v2208_v28 }
 0x1e3   : > { %v4362_v33 = vpop.f32.mrb[116].mxu1  ;;  %v4251_v17 = vpop.f32.mrb[117].mxu0 }
 0x1e4   : > { %v4252_v46 = vadd.f32 %v4251_v17, %v4250_v11  ;;  %v4363_v23 = vpop.f32.mrb[117].mxu1  ;;  %v4253_v61 = vpop.f32.mrb[118].mxu0 }
 0x1e5   : > { %v4364_v25 = vadd.f32 %v4363_v23, %v4362_v33  ;;  %v4365_v15 = vpop.f32.mrb[118].mxu1  ;;  %v4254_v29 = vpop.f32.mrb[119].mxu0 }
 0x1e6   : > { %v2213_v52 = vadd.f32 %v4252_v46, %v5382_v14  ;;  %v4255_v38 = vadd.f32 %v4254_v29, %v4253_v61  ;;  %v4366_v34 = vpop.f32.mrb[119].mxu1 }
 0x1e7   : > { %v4367_v60 = vadd.f32 %v4366_v34, %v4365_v15  ;;  %v5496_v34 = vld [vmem:[%s5614_s4] ss:$0 sm:$0xff] }
 0x1e8   : > { %v2216_v54 = vadd.f32 %v4255_v38, %v5385_v19  ;;  %v5479_v40 = vadd.f32 %v4364_v25, %v2213_v52 }
 0x1ea   : > { %v4256_v0 = vpop.f32.mrb[120].mxu0  ;;  %v5481_v5 = vadd.f32 %v4367_v60, %v2216_v54 }
 0x1eb   : > { %v4368_v63 = vpop.f32.mrb[120].mxu1  ;;  %v4257_v48 = vpop.f32.mrb[121].mxu0 }
 0x1ec   : > { %v4258_v7 = vadd.f32 %v4257_v48, %v4256_v0  ;;  %v4369_v50 = vpop.f32.mrb[121].mxu1  ;;  %v4259_v22 = vpop.f32.mrb[122].mxu0 }
 0x1ed   : > { %v4370_v53 = vadd.f32 %v4369_v50, %v4368_v63  ;;  %v4371_v39 = vpop.f32.mrb[122].mxu1  ;;  %v4260_v57 = vpop.f32.mrb[123].mxu0 }
 0x1ee   : > { %v2221_v14 = vadd.f32 %v4258_v7, %v5388_v43  ;;  %v4261_v58 = vadd.f32 %v4260_v57, %v4259_v22  ;;  %v4372_v1 = vpop.f32.mrb[123].mxu1 }
 0x1ef   : > { %v4373_v26 = vadd.f32 %v4372_v1, %v4371_v39 }
 0x1f0   : > { %v2224_v19 = vadd.f32 %v4261_v58, %v5391_v47  ;;  %v5485_v18 = vadd.f32 %v4370_v53, %v2221_v14 }
 0x1f2   : > { %v4262_v4 = vpop.f32.mrb[124].mxu0  ;;  %v5487_v31 = vadd.f32 %v4373_v26, %v2224_v19 }
 0x1f3   : > { %v4374_v28 = vpop.f32.mrb[124].mxu1  ;;  %v4263_v11 = vpop.f32.mrb[125].mxu0 }
 0x1f4   : > { %v4264_v33 = vadd.f32 %v4263_v11, %v4262_v4  ;;  %v4375_v17 = vpop.f32.mrb[125].mxu1  ;;  %v4265_v46 = vpop.f32.mrb[126].mxu0 }
 0x1f5   : > { %v4376_v23 = vadd.f32 %v4375_v17, %v4374_v28  ;;  %v4377_v61 = vpop.f32.mrb[126].mxu1  ;;  %v4266_v25 = vpop.f32.mrb[127].mxu0 }
 0x1f6   : > { %v2229_v43 = vadd.f32 %v4264_v33, %v5394_v8  ;;  %v4267_v15 = vadd.f32 %v4266_v25, %v4265_v46  ;;  %v4378_v29 = vpop.f32.mrb[127].mxu1 }
 0x1f7   : > { %v4379_v52 = vadd.f32 %v4378_v29, %v4377_v61 }
 0x1f8   : > { %v2232_v47 = vadd.f32 %v4267_v15, %v5397_v10  ;;  %v5491_v38 = vadd.f32 %v4376_v23, %v2229_v43 }
 0x1fa   : > { %v4446_v60 = vpop.f32.mrb[128].mxu0  ;;  %v5498_v54 = vadd.f32 %v4379_v52, %v2232_v47 }
 0x1fb   : > { %v2439_v0 = vadd.f32 %v4446_v60, %v5407_v3  ;;  %v4494_v63 = vpop.f32.mrb[128].mxu1  ;;  %v2430_v48 = vpop.f32.mrb[129].mxu0 }
 0x1fc   : > { %v2991_v8 = vadd.f32 %v4494_v63, %v5496_v34  ;;  %v2431_v7 = vadd.f32 %v2430_v48, %v5401_v41  ;;  %v2982_v50 = vpop.f32.mrb[129].mxu1  ;;  %v4447_v10 = vpop.f32.mrb[130].mxu0 }
 0x1fd   : > { %v2983_v22 = vadd.f32 %v5496_v34, %v2982_v50  ;;  %v2442_v53 = vadd.f32 %v4447_v10, %v5409_v6  ;;  %v4495_v39 = vpop.f32.mrb[130].mxu1  ;;  %v2433_v57 = vpop.f32.mrb[131].mxu0  ;;  %v2559_v1 = vmax.f32 %v2439_v0, 0.0 }
 0x1fe   : > { %v2994_v14 = vadd.f32 %v4495_v39, %v5496_v34  ;;  %v2434_v58 = vadd.f32 %v2433_v57, %v5403_v42  ;;  %v2985_v3 = vpop.f32.mrb[131].mxu1  ;;  %v2557_v19 = vmax.f32 %v2431_v7, 0.0 }
 0x1ff   : > { %v2560_v26 = vmax.f32 %v2442_v53, 0.0  ;;  %v2986_v41 = vadd.f32 %v5496_v34, %v2985_v3 }
 0x200   : > { %v3830_v42 = vpack.c.bf16 %v2994_v14, %v2991_v8  ;;  %v2558_v6 = vmax.f32 %v2434_v58, 0.0 }
 0x201   : > { %v3750_v4 = vpack.c.bf16 %v2560_v26, %v2559_v1  ;;  %v3825_v28 = vpack.c.bf16 %v2986_v41, %v2983_v22 }
 0x202   : > { %3917 = vst [vmem:[%s5511_s20 + $0x8] sm:$0xff] %v3830_v42   ;;  %v3745_v11 = vpack.c.bf16 %v2558_v6, %v2557_v19  ;;  %v4450_v33 = vpop.f32.mrb[132].mxu0 }
 0x203   : > { %3902 = vst [vmem:[%s5517_s24 + $0x8] sm:$0xff] %v3750_v4   ;;  %3826 = vst [vmem:[%s5511_s20] sm:$0xff] %v3825_v28   ;;  %v2455_v17 = vadd.f32 %v4450_v33, %v5419_v62  ;;  %v4498_v46 = vpop.f32.mrb[132].mxu1  ;;  %v2446_v23 = vpop.f32.mrb[133].mxu0 }
 0x204   : > { %3746 = vst [vmem:[%s5517_s24] sm:$0xff] %v3745_v11   ;;  %v3007_v61 = vadd.f32 %v4498_v46, %v5496_v34  ;;  %v2447_v25 = vadd.f32 %v2446_v23, %v5413_v32  ;;  %v2998_v43 = vpop.f32.mrb[133].mxu1  ;;  %v4451_v15 = vpop.f32.mrb[134].mxu0 }
 0x205   : > { %v2999_v29 = vadd.f32 %v5496_v34, %v2998_v43  ;;  %v2458_v52 = vadd.f32 %v4451_v15, %v5421_v2  ;;  %v4499_v47 = vpop.f32.mrb[134].mxu1  ;;  %v2449_v60 = vpop.f32.mrb[135].mxu0  ;;  %v2563_v48 = vmax.f32 %v2455_v17, 0.0 }
 0x206   : > { %v3010_v62 = vadd.f32 %v4499_v47, %v5496_v34  ;;  %v2450_v0 = vadd.f32 %v2449_v60, %v5415_v37  ;;  %v3001_v63 = vpop.f32.mrb[135].mxu1  ;;  %v2561_v7 = vmax.f32 %v2447_v25, 0.0 }
 0x207   : > { %v2564_v8 = vmax.f32 %v2458_v52, 0.0  ;;  %v3002_v32 = vadd.f32 %v5496_v34, %v3001_v63 }
 0x208   : > { %v3840_v50 = vpack.c.bf16 %v3010_v62, %v3007_v61  ;;  %v2562_v10 = vmax.f32 %v2450_v0, 0.0 }
 0x209   : > { %v3760_v22 = vpack.c.bf16 %v2564_v8, %v2563_v48  ;;  %v3835_v53 = vpack.c.bf16 %v3002_v32, %v2999_v29 }
 0x20a   : > { %3919 = vst [vmem:[%s5511_s20 + $0x18] sm:$0xff] %v3840_v50   ;;  %v3755_v2 = vpack.c.bf16 %v2562_v10, %v2561_v7  ;;  %v4454_v39 = vpop.f32.mrb[136].mxu0 }
 0x20b   : > { %3904 = vst [vmem:[%s5517_s24 + $0x18] sm:$0xff] %v3760_v22   ;;  %3918 = vst [vmem:[%s5511_s20 + $0x10] sm:$0xff] %v3835_v53   ;;  %v2471_v57 = vadd.f32 %v4454_v39, %v5431_v55  ;;  %v4502_v14 = vpop.f32.mrb[136].mxu1  ;;  %v2462_v37 = vpop.f32.mrb[137].mxu0 }
 0x20c   : > { %3903 = vst [vmem:[%s5517_s24 + $0x10] sm:$0xff] %v3755_v2   ;;  %v3023_v58 = vadd.f32 %v4502_v14, %v5496_v34  ;;  %v2463_v3 = vadd.f32 %v2462_v37, %v5425_v27  ;;  %v3014_v1 = vpop.f32.mrb[137].mxu1  ;;  %v4455_v26 = vpop.f32.mrb[138].mxu0 }
 0x20d   : > { %v3015_v41 = vadd.f32 %v5496_v34, %v3014_v1  ;;  %v2474_v19 = vadd.f32 %v4455_v26, %v5433_v16  ;;  %v4503_v42 = vpop.f32.mrb[138].mxu1  ;;  %v2465_v6 = vpop.f32.mrb[139].mxu0  ;;  %v2567_v11 = vmax.f32 %v2471_v57, 0.0 }
 0x20e   : > { %v3026_v55 = vadd.f32 %v4503_v42, %v5496_v34  ;;  %v2466_v4 = vadd.f32 %v2465_v6, %v5427_v30  ;;  %v3017_v28 = vpop.f32.mrb[139].mxu1  ;;  %v2565_v17 = vmax.f32 %v2463_v3, 0.0 }
 0x20f   : > { %v2568_v33 = vmax.f32 %v2474_v19, 0.0  ;;  %v3018_v27 = vadd.f32 %v5496_v34, %v3017_v28 }
 0x210   : > { %v3850_v46 = vpack.c.bf16 %v3026_v55, %v3023_v58  ;;  %v2566_v23 = vmax.f32 %v2466_v4, 0.0 }
 0x211   : > { %v3770_v61 = vpack.c.bf16 %v2568_v33, %v2567_v11  ;;  %v3845_v25 = vpack.c.bf16 %v3018_v27, %v3015_v41 }
 0x212   : > { %3921 = vst [vmem:[%s5511_s20 + $0x28] sm:$0xff] %v3850_v46   ;;  %v3765_v16 = vpack.c.bf16 %v2566_v23, %v2565_v17  ;;  %v4458_v43 = vpop.f32.mrb[140].mxu0 }
 0x213   : > { %3906 = vst [vmem:[%s5517_s24 + $0x28] sm:$0xff] %v3770_v61   ;;  %3920 = vst [vmem:[%s5511_s20 + $0x20] sm:$0xff] %v3845_v25   ;;  %v2487_v15 = vadd.f32 %v4458_v43, %v5443_v51  ;;  %v4506_v29 = vpop.f32.mrb[140].mxu1  ;;  %v2478_v30 = vpop.f32.mrb[141].mxu0 }
 0x214   : > { %3905 = vst [vmem:[%s5517_s24 + $0x20] sm:$0xff] %v3765_v16   ;;  %v3039_v52 = vadd.f32 %v4506_v29, %v5496_v34  ;;  %v2479_v47 = vadd.f32 %v2478_v30, %v5437_v24  ;;  %v3030_v60 = vpop.f32.mrb[141].mxu1  ;;  %v4459_v62 = vpop.f32.mrb[142].mxu0 }
 0x215   : > { %v3031_v0 = vadd.f32 %v5496_v34, %v3030_v60  ;;  %v2490_v63 = vadd.f32 %v4459_v62, %v5445_v56  ;;  %v4507_v48 = vpop.f32.mrb[142].mxu1  ;;  %v2481_v8 = vpop.f32.mrb[143].mxu0  ;;  %v2571_v50 = vmax.f32 %v2487_v15, 0.0 }
 0x216   : > { %v3042_v51 = vadd.f32 %v4507_v48, %v5496_v34  ;;  %v2482_v32 = vadd.f32 %v2481_v8, %v5439_v36  ;;  %v3033_v7 = vpop.f32.mrb[143].mxu1  ;;  %v2569_v22 = vmax.f32 %v2479_v47, 0.0 }
 0x217   : > { %v2572_v10 = vmax.f32 %v2490_v63, 0.0  ;;  %v3034_v24 = vadd.f32 %v5496_v34, %v3033_v7 }
 0x218   : > { %v3860_v53 = vpack.c.bf16 %v3042_v51, %v3039_v52  ;;  %v2570_v2 = vmax.f32 %v2482_v32, 0.0 }
 0x219   : > { %v3780_v39 = vpack.c.bf16 %v2572_v10, %v2571_v50  ;;  %v3855_v57 = vpack.c.bf16 %v3034_v24, %v3031_v0 }
 0x21a   : > { %3923 = vst [vmem:[%s5511_s20 + $0x38] sm:$0xff] %v3860_v53   ;;  %v3775_v56 = vpack.c.bf16 %v2570_v2, %v2569_v22  ;;  %v4462_v14 = vpop.f32.mrb[144].mxu0 }
 0x21b   : > { %3908 = vst [vmem:[%s5517_s24 + $0x38] sm:$0xff] %v3780_v39   ;;  %3922 = vst [vmem:[%s5511_s20 + $0x30] sm:$0xff] %v3855_v57   ;;  %v2503_v37 = vadd.f32 %v4462_v14, %v5455_v49  ;;  %v4510_v58 = vpop.f32.mrb[144].mxu1  ;;  %v2494_v36 = vpop.f32.mrb[145].mxu0 }
 0x21c   : > { %3907 = vst [vmem:[%s5517_s24 + $0x30] sm:$0xff] %v3775_v56   ;;  %v3055_v3 = vadd.f32 %v4510_v58, %v5496_v34  ;;  %v2495_v1 = vadd.f32 %v2494_v36, %v5449_v21  ;;  %v3046_v26 = vpop.f32.mrb[145].mxu1  ;;  %v4463_v41 = vpop.f32.mrb[146].mxu0 }
 0x21d   : > { %v3047_v19 = vadd.f32 %v5496_v34, %v3046_v26  ;;  %v2506_v42 = vadd.f32 %v4463_v41, %v5457_v35  ;;  %v4511_v6 = vpop.f32.mrb[146].mxu1  ;;  %v2497_v55 = vpop.f32.mrb[147].mxu0  ;;  %v2575_v11 = vmax.f32 %v2503_v37, 0.0 }
 0x21e   : > { %v3058_v49 = vadd.f32 %v4511_v6, %v5496_v34  ;;  %v2498_v4 = vadd.f32 %v2497_v55, %v5451_v13  ;;  %v3049_v28 = vpop.f32.mrb[147].mxu1  ;;  %v2573_v27 = vmax.f32 %v2495_v1, 0.0 }
 0x21f   : > { %v2576_v33 = vmax.f32 %v2506_v42, 0.0  ;;  %v3050_v21 = vadd.f32 %v5496_v34, %v3049_v28 }
 0x220   : > { %v3870_v17 = vpack.c.bf16 %v3058_v49, %v3055_v3  ;;  %v2574_v46 = vmax.f32 %v2498_v4, 0.0 }
 0x221   : > { %v3790_v23 = vpack.c.bf16 %v2576_v33, %v2575_v11  ;;  %v3865_v61 = vpack.c.bf16 %v3050_v21, %v3047_v19 }
 0x222   : > { %3925 = vst [vmem:[%s5511_s20 + $0x48] sm:$0xff] %v3870_v17   ;;  %v3785_v35 = vpack.c.bf16 %v2574_v46, %v2573_v27  ;;  %v4466_v25 = vpop.f32.mrb[148].mxu0 }
 0x223   : > { %3910 = vst [vmem:[%s5517_s24 + $0x48] sm:$0xff] %v3790_v23   ;;  %3924 = vst [vmem:[%s5511_s20 + $0x40] sm:$0xff] %v3865_v61   ;;  %v2519_v16 = vadd.f32 %v4466_v25, %v5467_v45  ;;  %v4514_v43 = vpop.f32.mrb[148].mxu1  ;;  %v2510_v13 = vpop.f32.mrb[149].mxu0 }
 0x224   : > { %3909 = vst [vmem:[%s5517_s24 + $0x40] sm:$0xff] %v3785_v35   ;;  %v3071_v15 = vadd.f32 %v4514_v43, %v5496_v34  ;;  %v2511_v29 = vadd.f32 %v2510_v13, %v5461_v12  ;;  %v3062_v30 = vpop.f32.mrb[149].mxu1  ;;  %v4467_v52 = vpop.f32.mrb[150].mxu0 }
 0x225   : > { %v3063_v47 = vadd.f32 %v5496_v34, %v3062_v30  ;;  %v2522_v60 = vadd.f32 %v4467_v52, %v5469_v20  ;;  %v4515_v62 = vpop.f32.mrb[150].mxu1  ;;  %v2513_v0 = vpop.f32.mrb[151].mxu0  ;;  %v2579_v8 = vmax.f32 %v2519_v16, 0.0 }
 0x226   : > { %v3074_v45 = vadd.f32 %v4515_v62, %v5496_v34  ;;  %v2514_v63 = vadd.f32 %v2513_v0, %v5463_v59  ;;  %v3065_v48 = vpop.f32.mrb[151].mxu1  ;;  %v2577_v32 = vmax.f32 %v2511_v29, 0.0 }
 0x227   : > { %v2580_v51 = vmax.f32 %v2522_v60, 0.0  ;;  %v3066_v12 = vadd.f32 %v5496_v34, %v3065_v48 }
 0x228   : > { %v3880_v7 = vpack.c.bf16 %v3074_v45, %v3071_v15  ;;  %v2578_v50 = vmax.f32 %v2514_v63, 0.0 }
 0x229   : > { %v3800_v10 = vpack.c.bf16 %v2580_v51, %v2579_v8  ;;  %v3875_v24 = vpack.c.bf16 %v3066_v12, %v3063_v47 }
 0x22a   : > { %3927 = vst [vmem:[%s5511_s20 + $0x58] sm:$0xff] %v3880_v7   ;;  %v3795_v20 = vpack.c.bf16 %v2578_v50, %v2577_v32  ;;  %v4470_v22 = vpop.f32.mrb[152].mxu0 }
 0x22b   : > { %3912 = vst [vmem:[%s5517_s24 + $0x58] sm:$0xff] %v3800_v10   ;;  %3926 = vst [vmem:[%s5511_s20 + $0x50] sm:$0xff] %v3875_v24   ;;  %v2535_v53 = vadd.f32 %v4470_v22, %v5479_v40  ;;  %v4518_v2 = vpop.f32.mrb[152].mxu1  ;;  %v2526_v59 = vpop.f32.mrb[153].mxu0 }
 0x22c   : > { %3911 = vst [vmem:[%s5517_s24 + $0x50] sm:$0xff] %v3795_v20   ;;  %v3087_v39 = vadd.f32 %v4518_v2, %v5496_v34  ;;  %v2527_v57 = vadd.f32 %v2526_v59, %v5473_v9  ;;  %v3078_v56 = vpop.f32.mrb[153].mxu1  ;;  %v4471_v14 = vpop.f32.mrb[154].mxu0 }
 0x22d   : > { %v3079_v37 = vadd.f32 %v5496_v34, %v3078_v56  ;;  %v2538_v58 = vadd.f32 %v4471_v14, %v5481_v5  ;;  %v4519_v36 = vpop.f32.mrb[154].mxu1  ;;  %v2529_v3 = vpop.f32.mrb[155].mxu0  ;;  %v2583_v41 = vmax.f32 %v2535_v53, 0.0 }
 0x22e   : > { %v3090_v40 = vadd.f32 %v4519_v36, %v5496_v34  ;;  %v2530_v1 = vadd.f32 %v2529_v3, %v5475_v44  ;;  %v3081_v26 = vpop.f32.mrb[155].mxu1  ;;  %v2581_v42 = vmax.f32 %v2527_v57, 0.0 }
 0x22f   : > { %v2584_v19 = vmax.f32 %v2538_v58, 0.0  ;;  %v3082_v9 = vadd.f32 %v5496_v34, %v3081_v26 }
 0x230   : > { %v3890_v6 = vpack.c.bf16 %v3090_v40, %v3087_v39  ;;  %v2582_v55 = vmax.f32 %v2530_v1, 0.0 }
 0x231   : > { %v3810_v49 = vpack.c.bf16 %v2584_v19, %v2583_v41  ;;  %v3885_v4 = vpack.c.bf16 %v3082_v9, %v3079_v37 }
 0x232   : > { %3929 = vst [vmem:[%s5511_s20 + $0x68] sm:$0xff] %v3890_v6   ;;  %v3805_v5 = vpack.c.bf16 %v2582_v55, %v2581_v42  ;;  %v4474_v28 = vpop.f32.mrb[156].mxu0 }
 0x233   : > { %3914 = vst [vmem:[%s5517_s24 + $0x68] sm:$0xff] %v3810_v49   ;;  %3928 = vst [vmem:[%s5511_s20 + $0x60] sm:$0xff] %v3885_v4   ;;  %v2551_v11 = vadd.f32 %v4474_v28, %v5491_v38  ;;  %v4522_v33 = vpop.f32.mrb[156].mxu1  ;;  %v2542_v44 = vpop.f32.mrb[157].mxu0 }
 0x234   : > { %3913 = vst [vmem:[%s5517_s24 + $0x60] sm:$0xff] %v3805_v5   ;;  %v3103_v21 = vadd.f32 %v4522_v33, %v5496_v34  ;;  %v2543_v27 = vadd.f32 %v2542_v44, %v5485_v18  ;;  %v3094_v17 = vpop.f32.mrb[157].mxu1  ;;  %v4475_v46 = vpop.f32.mrb[158].mxu0 }
 0x235   : > { %v3095_v23 = vadd.f32 %v5496_v34, %v3094_v17  ;;  %v2554_v61 = vadd.f32 %v4475_v46, %v5498_v54  ;;  %v4523_v35 = vpop.f32.mrb[158].mxu1  ;;  %v2545_v25 = vpop.f32.mrb[159].mxu0  ;;  %v2587_v13 = vmax.f32 %v2551_v11, 0.0 }
 0x236   : > { %v3106_v38 = vadd.f32 %v4523_v35, %v5496_v34  ;;  %v2546_v16 = vadd.f32 %v2545_v25, %v5487_v31  ;;  %v3097_v43 = vpop.f32.mrb[159].mxu1  ;;  %v2585_v29 = vmax.f32 %v2543_v27, 0.0 }
 0x237   : > { %v2588_v15 = vmax.f32 %v2554_v61, 0.0  ;;  %v3098_v18 = vadd.f32 %v5496_v34, %v3097_v43 }
 0x238   : > { %v3900_v30 = vpack.c.bf16 %v3106_v38, %v3103_v21  ;;  %v2586_v52 = vmax.f32 %v2546_v16, 0.0 }
 0x239   : > { %v3820_v47 = vpack.c.bf16 %v2588_v15, %v2587_v13  ;;  %v3895_v60 = vpack.c.bf16 %v3098_v18, %v3095_v23 }
 0x23a   : > { %3931 = vst [vmem:[%s5511_s20 + $0x78] sm:$0xff] %v3900_v30   ;;  %v3815_v54 = vpack.c.bf16 %v2586_v52, %v2585_v29 }
 0x23b   : > { %3916 = vst [vmem:[%s5517_s24 + $0x78] sm:$0xff] %v3820_v47   ;;  %3930 = vst [vmem:[%s5511_s20 + $0x70] sm:$0xff] %v3895_v60  }
 0x23c   : > { %3915 = vst [vmem:[%s5517_s24 + $0x70] sm:$0xff] %v3815_v54  }
 0x23d PF: > { %s17_s21 = sadd.s32 1, %s4843_s21  }
 0x23e   : > { %p14_p4 = scmp.ge.s32.totalorder %s17_s21, 4  }
 0x240   :  { %16 = sbr.rel (!%p14_p4) target bundleno = 1 (0x1), region = 82 }

// kernel: _lambda_.12
= control target key start
LH: loop header
LB: loop body
LE: loop exit
PB: predicated region body
PF: predicated region fallthrough
CT: control target
= control target key end

     0   :  { %s2384_s21 = smov 0   ;;  %s2713_s0 = inlined_call_operand.vmem [shape: bf16[128,1152], index: 0, kind: input, shape index: {}]   ;;  %s2714_s1 = inlined_call_operand.vmem [shape: bf16[1152,128], index: 1, kind: input, shape index: {}]   ;;  %s2715_s2 = inlined_call_operand.vmem [shape: f32[1,128], index: 2, kind: input, shape index: {}]   ;;  %s2716_s3 = inlined_call_operand.vmem [shape: bf16[128,128], index: 3, kind: input, shape index: {}]   ;;  %s2717_s4 = inlined_call_operand.vmem [shape: f32[1,128], index: 4, kind: input, shape index: {}]   ;;  %s2718_s5 = inlined_call_operand.vmem [shape: bf16[128,128], index: 5, kind: output, shape index: {0}]   ;;  %s2719_s6 = inlined_call_operand.vmem [shape: bf16[128,128], index: 6, kind: output, shape index: {1}]  }
   0x1 LB: > { %s1751_s22 = sadd.s32 4294967295, %s2347_s21   ;;  %p1755_p0 = scmp.ge.s32.totalorder %s2347_s21, 1  ;;  %s2347_s21 = sphi %s2384_s21, %s17_s21  }
   0x2   : > { %p217_p1 = scmp.lt.s32.totalorder %s2347_s21, 3 }
   0x4   : > { %p218_p2 = pnand %p1755_p0, %p217_p1 }
   0x5   : > { %v2205_v0 = vld [vmem:[%s2714_s1 + $0x40] sm:$0xff] (!%p218_p2)   ;;  %v2209_v4 = vld [vmem:[%s2714_s1 + $0x48] sm:$0xff] (!%p218_p2)   ;;  %v2213_v8 = vld [vmem:[%s2714_s1 + $0x50] sm:$0xff] (!%p218_p2)   ;;  %s1756_s7 = sshll.u32 (!%p218_p2), %s1751_s22, 3 }
   0x6   : > { %221 = sbr.rel (%p218_p2) target bundleno = 334 (0x14e), region = 40  ;;  %v2206_v1 = vld [vmem:[%s2714_s1 + $0xc0] sm:$0xff] (!%p218_p2)   ;;  %1964 = vmatprep.subr.bf16.mxu0 (!%p218_p2), %v2205_v0  ;;  %v2210_v5 = vld [vmem:[%s2714_s1 + $0xc8] sm:$0xff] (!%p218_p2)   ;;  %v2214_v9 = vld [vmem:[%s2714_s1 + $0xd0] sm:$0xff] (!%p218_p2)   ;;  %p254_p3 = scmp.lt.s32.totalorder (!%p218_p2), %s1756_s7, 15 }
   0x7   : > { %v2207_v2 = vld [vmem:[%s2714_s1] sm:$0xff] (!%p218_p2)   ;;  %2004 = vmatprep.subr.bf16.mxu1 (!%p218_p2), %v2206_v1  ;;  %v2211_v6 = vld [vmem:[%s2714_s1 + $0x8] sm:$0xff] (!%p218_p2)   ;;  %v2215_v10 = vld [vmem:[%s2714_s1 + $0x10] sm:$0xff] (!%p218_p2)  }
   0x8   : > { %v2208_v3 = vld [vmem:[%s2714_s1 + $0x80] sm:$0xff] (!%p218_p2)   ;;  %1965 = vmatpush3.bf16.msra.mxu0 (!%p218_p2), %v2207_v2  ;;  %v2212_v7 = vld [vmem:[%s2714_s1 + $0x88] sm:$0xff] (!%p218_p2)   ;;  %v2216_v11 = vld [vmem:[%s2714_s1 + $0x90] sm:$0xff] (!%p218_p2)  }
   0x9   : > { %2005 = vmatpush3.bf16.msra.mxu1 (!%p218_p2), %v2208_v3  ;;  %1966 = vmatprep.subr.bf16.mxu0 (!%p218_p2), %v2209_v4  ;;  %v2217_v12 = vld [vmem:[%s2714_s1 + $0x58] sm:$0xff] (!%p218_p2)   ;;  %v2221_v16 = vld [vmem:[%s2714_s1 + $0x60] sm:$0xff] (!%p218_p2)   ;;  %v2225_v20 = vld [vmem:[%s2714_s1 + $0x68] sm:$0xff] (!%p218_p2)  }
   0xa   : > { %2006 = vmatprep.subr.bf16.mxu1 (!%p218_p2), %v2210_v5  ;;  %v2218_v13 = vld [vmem:[%s2714_s1 + $0xd8] sm:$0xff] (!%p218_p2)   ;;  %v2222_v17 = vld [vmem:[%s2714_s1 + $0xe0] sm:$0xff] (!%p218_p2)   ;;  %v2226_v21 = vld [vmem:[%s2714_s1 + $0xe8] sm:$0xff] (!%p218_p2)  }
   0xb   : > { %v2219_v14 = vld [vmem:[%s2714_s1 + $0x18] sm:$0xff] (!%p218_p2)   ;;  %v2223_v18 = vld [vmem:[%s2714_s1 + $0x20] sm:$0xff] (!%p218_p2)   ;;  %v2227_v22 = vld [vmem:[%s2714_s1 + $0x28] sm:$0xff] (!%p218_p2)  }
   0xc   : > { %1967 = vmatpush3.bf16.msra.mxu0 (!%p218_p2), %v2211_v6  ;;  %v2220_v15 = vld [vmem:[%s2714_s1 + $0x98] sm:$0xff] (!%p218_p2)   ;;  %v2224_v19 = vld [vmem:[%s2714_s1 + $0xa0] sm:$0xff] (!%p218_p2)   ;;  %v2228_v23 = vld [vmem:[%s2714_s1 + $0xa8] sm:$0xff] (!%p218_p2)  }
   0xd   : > { %2007 = vmatpush3.bf16.msra.mxu1 %v2212_v7  ;;  %1968 = vmatprep.subr.bf16.mxu0 %v2213_v8  ;;  %s2721_s7 = smov (!%p254_p3, %s1756_s7), 15  ;;  %v2229_v24 = vld [vmem:[%s2714_s1 + $0x70] sm:$0xff]   ;;  %v2233_v28 = vld [vmem:[%s2714_s1 + $0x78] sm:$0xff]   ;;  %v2243_v36 = vld [vmem:[%s2714_s1 + $0x140] sm:$0xff]  }
   0xe   : > { %2008 = vmatprep.subr.bf16.mxu1 %v2214_v9  ;;  %v2230_v25 = vld [vmem:[%s2714_s1 + $0xf0] sm:$0xff]   ;;  %s2196_s8 = smul.u32 36, %s2721_s7  ;;  %v2234_v29 = vld [vmem:[%s2714_s1 + $0xf8] sm:$0xff]   ;;  %v2244_v37 = vld [vmem:[%s2714_s1 + $0x1c0] sm:$0xff]   ;;  %s1759_s16 = sshll.u32 %s2721_s7, 2 }
   0xf   : > { %v2231_v26 = vld [vmem:[%s2714_s1 + $0x30] sm:$0xff]   ;;  %v2235_v30 = vld [vmem:[%s2714_s1 + $0x38] sm:$0xff]   ;;  %v2245_v38 = vld [vmem:[%s2714_s1 + $0x100] sm:$0xff]   ;;  %s2695_s20 = scalar_lea.vmem %s2719_s6, %s1759_s16  ;;  %s2700_s24 = scalar_lea.vmem %s2718_s5, %s1759_s16 }
  0x10   : > { %1969 = vmatpush3.bf16.msra.mxu0 %v2215_v10  ;;  %v2232_v27 = vld [vmem:[%s2714_s1 + $0xb0] sm:$0xff]   ;;  %s2490_s18 = scalar_lea.vmem %s2713_s0, %s2196_s8  ;;  %v2236_v31 = vld [vmem:[%s2714_s1 + $0xb8] sm:$0xff]   ;;  %v2246_v39 = vld [vmem:[%s2714_s1 + $0x180] sm:$0xff]  }
  0x11   : > { %2009 = vmatpush3.bf16.msra.mxu1 %v2216_v11  ;;  %1970 = vmatprep.subr.bf16.mxu0 %v2217_v12  ;;  %v2237_v32 = vld [vmem:[%s2490_s18] ss:$36 sps:$4 sm:$0xff]   ;;  %v2240_v34 = vld [vmem:[%s2490_s18 + $0x8] ss:$36 sps:$4 sm:$0xff]   ;;  %v2253_v45 = vld [vmem:[%s2490_s18 + $0x54] ss:$36 sps:$4 sm:$0xff]  }
  0x12   : > { %2010 = vmatprep.subr.bf16.mxu1 %v2218_v13  ;;  %v2239_v33 = vld [vmem:[%s2490_s18 + $0x4] ss:$36 sps:$4 sm:$0xff]   ;;  %v2242_v35 = vld [vmem:[%s2490_s18 + $0xc] ss:$36 sps:$4 sm:$0xff]   ;;  %v2261_v52 = vld [vmem:[%s2714_s1 + $0x158] sm:$0xff]  }
  0x13   : > { %1112 = vmatprep.mubr.bf16.mxu0 %v2239_v33  ;;  %1177 = vmatprep.mubr.bf16.mxu1 %v2242_v35  ;;  %v2247_v40 = vld [vmem:[%s2714_s1 + $0x148] sm:$0xff]   ;;  %v2256_v47 = vld [vmem:[%s2490_s18 + $0x50] ss:$36 sps:$4 sm:$0xff]   ;;  %v2262_v53 = vld [vmem:[%s2714_s1 + $0x1d8] sm:$0xff]  }
  0x14   : > { %1971 = vmatpush3.bf16.msra.mxu0 %v2219_v14  ;;  %v2248_v41 = vld [vmem:[%s2714_s1 + $0x1c8] sm:$0xff]   ;;  %v2257_v48 = vld [vmem:[%s2714_s1 + $0x150] sm:$0xff]   ;;  %v2263_v54 = vld [vmem:[%s2714_s1 + $0x118] sm:$0xff]  }
  0x15   : > { %2011 = vmatpush3.bf16.msra.mxu1 %v2220_v15  ;;  %1972 = vmatprep.subr.bf16.mxu0 %v2221_v16  ;;  %v2249_v42 = vld [vmem:[%s2714_s1 + $0x108] sm:$0xff]   ;;  %v2258_v49 = vld [vmem:[%s2714_s1 + $0x1d0] sm:$0xff]   ;;  %v2264_v55 = vld [vmem:[%s2714_s1 + $0x198] sm:$0xff]  }
  0x16   : > { %2012 = vmatprep.subr.bf16.mxu1 %v2222_v17  ;;  %v2250_v43 = vld [vmem:[%s2714_s1 + $0x188] sm:$0xff]   ;;  %v2259_v50 = vld [vmem:[%s2714_s1 + $0x110] sm:$0xff]   ;;  %v2267_v57 = vld [vmem:[%s2490_s18 + $0x9c] ss:$36 sps:$4 sm:$0xff]  }
  0x17   : > { %v2251_v44 = vld [vmem:[%s2490_s18 + $0x4c] ss:$36 sps:$4 sm:$0xff]   ;;  %v2265_v56 = vld [vmem:[%s2490_s18 + $0x94] ss:$36 sps:$4 sm:$0xff]   ;;  %v2271_v60 = vld [vmem:[%s2714_s1 + $0x160] sm:$0xff]  }
  0x18   : > { %1973 = vmatpush3.bf16.msra.mxu0 %v2223_v18  ;;  %v2255_v46 = vld [vmem:[%s2490_s18 + $0x48] ss:$36 sps:$4 sm:$0xff]   ;;  %v2260_v51 = vld [vmem:[%s2714_s1 + $0x190] sm:$0xff]   ;;  %v2270_v59 = vld [vmem:[%s2490_s18 + $0x98] ss:$36 sps:$4 sm:$0xff]  }
  0x19   : > { %2013 = vmatpush3.bf16.msra.mxu1 %v2224_v19  ;;  %1974 = vmatprep.subr.bf16.mxu0 %v2225_v20  ;;  %v2269_v58 = vld [vmem:[%s2490_s18 + $0x90] ss:$36 sps:$4 sm:$0xff]   ;;  %v2272_v61 = vld [vmem:[%s2714_s1 + $0x1e0] sm:$0xff]   ;;  %v2275_v0 = vld [vmem:[%s2714_s1 + $0x168] sm:$0xff]  }
  0x1a   : > { %2014 = vmatprep.subr.bf16.mxu1 %v2226_v21  ;;  %v2273_v62 = vld [vmem:[%s2714_s1 + $0x120] sm:$0xff]   ;;  %v2276_v1 = vld [vmem:[%s2714_s1 + $0x1e8] sm:$0xff]   ;;  %v2283_v6 = vld [vmem:[%s2490_s18 + $0xd8] ss:$36 sps:$4 sm:$0xff]  }
  0x1b   : > { %v2274_v63 = vld [vmem:[%s2714_s1 + $0x1a0] sm:$0xff]   ;;  %v2277_v2 = vld [vmem:[%s2714_s1 + $0x128] sm:$0xff]   ;;  %v2285_v8 = vld [vmem:[%s2714_s1 + $0x170] sm:$0xff]  }
  0x1c   : > { %1975 = vmatpush3.bf16.msra.mxu0 %v2227_v22  ;;  %v2278_v3 = vld [vmem:[%s2714_s1 + $0x1a8] sm:$0xff]   ;;  %v2279_v4 = vld [vmem:[%s2490_s18 + $0xdc] ss:$36 sps:$4 sm:$0xff]   ;;  %v2286_v9 = vld [vmem:[%s2714_s1 + $0x1f0] sm:$0xff]  }
  0x1d   : > { %2015 = vmatpush3.bf16.msra.mxu1 %v2228_v23  ;;  %1976 = vmatprep.subr.bf16.mxu0 %v2229_v24  ;;  %v2281_v5 = vld [vmem:[%s2490_s18 + $0xe4] ss:$36 sps:$4 sm:$0xff]   ;;  %v2287_v10 = vld [vmem:[%s2714_s1 + $0x130] sm:$0xff]   ;;  %v2289_v12 = vld [vmem:[%s2714_s1 + $0x178] sm:$0xff]  }
  0x1e   : > { %2016 = vmatprep.subr.bf16.mxu1 %v2230_v25  ;;  %v2284_v7 = vld [vmem:[%s2490_s18 + $0xe0] ss:$36 sps:$4 sm:$0xff]   ;;  %v2288_v11 = vld [vmem:[%s2714_s1 + $0x1b0] sm:$0xff]   ;;  %v2290_v13 = vld [vmem:[%s2714_s1 + $0x1f8] sm:$0xff]  }
  0x1f   : > { %v2291_v14 = vld [vmem:[%s2714_s1 + $0x138] sm:$0xff]   ;;  %v2293_v16 = vld [vmem:[%s2490_s18 + $0x10] ss:$36 sps:$4 sm:$0xff]   ;;  %v2299_v20 = vld [vmem:[%s2714_s1 + $0x200] sm:$0xff]  }
  0x20   : > { %1977 = vmatpush3.bf16.msra.mxu0 %v2231_v26  ;;  %v2292_v15 = vld [vmem:[%s2714_s1 + $0x1b8] sm:$0xff]   ;;  %v2300_v21 = vld [vmem:[%s2716_s3] sm:$0xff]   ;;  %v2301_v22 = vld [vmem:[%s2714_s1 + $0x208] sm:$0xff]  }
  0x21   : > { %2017 = vmatpush3.bf16.msra.mxu1 %v2232_v27  ;;  %1978 = vmatprep.subr.bf16.mxu0 %v2233_v28  ;;  %v2295_v17 = vld [vmem:[%s2490_s18 + $0x14] ss:$36 sps:$4 sm:$0xff]   ;;  %v2298_v19 = vld [vmem:[%s2490_s18 + $0x1c] ss:$36 sps:$4 sm:$0xff]   ;;  %v2302_v23 = vld [vmem:[%s2716_s3 + $0x8] sm:$0xff]  }
  0x22   : > { %2018 = vmatprep.subr.bf16.mxu1 %v2234_v29  ;;  %v2296_v18 = vld [vmem:[%s2490_s18 + $0x18] ss:$36 sps:$4 sm:$0xff]   ;;  %v2305_v25 = vld [vmem:[%s2490_s18 + $0x64] ss:$36 sps:$4 sm:$0xff]   ;;  %v2309_v28 = vld [vmem:[%s2714_s1 + $0x210] sm:$0xff]  }
  0x23   : > { %v2303_v24 = vld [vmem:[%s2490_s18 + $0x5c] ss:$36 sps:$4 sm:$0xff]   ;;  %v2310_v29 = vld [vmem:[%s2716_s3 + $0x10] sm:$0xff]   ;;  %v2318_v35 = vld [vmem:[%s2490_s18 + $0xa8] ss:$36 sps:$4 sm:$0xff]  }
  0x24   : > { %1979 = vmatpush3.bf16.msra.mxu0 %v2235_v30  ;;  %v2307_v26 = vld [vmem:[%s2490_s18 + $0x58] ss:$36 sps:$4 sm:$0xff]   ;;  %v2308_v27 = vld [vmem:[%s2490_s18 + $0x60] ss:$36 sps:$4 sm:$0xff]   ;;  %v2315_v33 = vld [vmem:[%s2490_s18 + $0xac] ss:$36 sps:$4 sm:$0xff]  }
  0x25   : > { %2019 = vmatpush3.bf16.msra.mxu1 %v2236_v31  ;;  %2044 = vmatprep.subr.bf16.mxu0 %v2243_v36  ;;  %v2311_v30 = vld [vmem:[%s2714_s1 + $0x218] sm:$0xff]   ;;  %v2319_v36 = vld [vmem:[%s2714_s1 + $0x220] sm:$0xff]  }
  0x26   : > { %2084 = vmatprep.subr.bf16.mxu1 %v2244_v37  ;;  %v2312_v31 = vld [vmem:[%s2716_s3 + $0x18] sm:$0xff]   ;;  %v2320_v37 = vld [vmem:[%s2716_s3 + $0x20] sm:$0xff]  }
  0x27   : > { %1113 = vmatmul.mubr.bf16.vlgmr.msra.gmra.mrb[0].mxu0 %v2237_v32  ;;  %v2313_v32 = vld [vmem:[%s2490_s18 + $0xa4] ss:$36 sps:$4 sm:$0xff]  }
  0x28   : > { %1178 = vmatmul.mubr.bf16.vlgmr.msra.gmra.mrb[0].mxu1 %v2240_v34  ;;  %2045 = vmatpush3.bf16.msra.mxu0 %v2245_v38  ;;  %v2317_v34 = vld [vmem:[%s2490_s18 + $0xa0] ss:$36 sps:$4 sm:$0xff]   ;;  %v2321_v38 = vld [vmem:[%s2714_s1 + $0x228] sm:$0xff]  }
  0x29   : > { %2085 = vmatpush3.bf16.msra.mxu1 %v2246_v39  ;;  %2046 = vmatprep.subr.bf16.mxu0 %v2247_v40  ;;  %v2322_v39 = vld [vmem:[%s2716_s3 + $0x28] sm:$0xff]  }
  0x2a   : > { %2086 = vmatprep.subr.bf16.mxu1 %v2248_v41  ;;  %1120 = vmatprep.mubr.bf16.mxu0 %v2251_v44  ;;  %v2323_v40 = vld [vmem:[%s2490_s18 + $0xec] ss:$36 sps:$4 sm:$0xff]   ;;  %v2325_v41 = vld [vmem:[%s2490_s18 + $0xf4] ss:$36 sps:$4 sm:$0xff]  }
  0x2b   : > { %1185 = vmatprep.mubr.bf16.mxu1 %v2253_v45  ;;  %v2329_v44 = vld [vmem:[%s2714_s1 + $0x230] sm:$0xff]  }
  0x2c   : > { %2047 = vmatpush3.bf16.msra.mxu0 %v2249_v42  ;;  %v2327_v42 = vld [vmem:[%s2490_s18 + $0xe8] ss:$36 sps:$4 sm:$0xff]   ;;  %v2330_v45 = vld [vmem:[%s2716_s3 + $0x30] sm:$0xff]  }
  0x2d   : > { %2087 = vmatpush3.bf16.msra.mxu1 %v2250_v43  ;;  %2048 = vmatprep.subr.bf16.mxu0 %v2257_v48  ;;  %v2328_v43 = vld [vmem:[%s2490_s18 + $0xf0] ss:$36 sps:$4 sm:$0xff]   ;;  %v2333_v48 = vld [vmem:[%s2490_s18 + $0x20] ss:$36 sps:$4 sm:$0xff]  }
  0x2e   : > { %2088 = vmatprep.subr.bf16.mxu1 %v2258_v49  ;;  %v2334_v49 = vld [vmem:[%s2490_s18 + $0x10] ss:$36 sps:$4 sm:$0xff]  }
  0x2f   : > { %1121 = vmatmul.mubr.bf16.gmra.mrb[4].mxu0 %v2255_v46  ;;  %v2331_v46 = vld [vmem:[%s2714_s1 + $0x238] sm:$0xff]  }
  0x30   : > { %1186 = vmatmul.mubr.bf16.gmra.mrb[4].mxu1 %v2256_v47  ;;  %2049 = vmatpush3.bf16.msra.mxu0 %v2259_v50  ;;  %v2332_v47 = vld [vmem:[%s2716_s3 + $0x38] sm:$0xff]   ;;  %v2335_v50 = vld [vmem:[%s2490_s18 + $0x68] ss:$36 sps:$4 sm:$0xff]  }
  0x31   : > { %2089 = vmatpush3.bf16.msra.mxu1 %v2260_v51  ;;  %2050 = vmatprep.subr.bf16.mxu0 %v2261_v52  ;;  %v2336_v51 = vld [vmem:[%s2490_s18 + $0x58] ss:$36 sps:$4 sm:$0xff]   ;;  %v2337_v52 = vld [vmem:[%s2490_s18 + $0xb0] ss:$36 sps:$4 sm:$0xff]  }
  0x32   : > { %2090 = vmatprep.subr.bf16.mxu1 %v2262_v53  ;;  %1128 = vmatprep.mubr.bf16.mxu0 %v2265_v56  ;;  %v2338_v53 = vld [vmem:[%s2490_s18 + $0xa0] ss:$36 sps:$4 sm:$0xff]  }
  0x33   : > { %1193 = vmatprep.mubr.bf16.mxu1 %v2267_v57 }
  0x34   : > { %2051 = vmatpush3.bf16.msra.mxu0 %v2263_v54  ;;  %v2339_v54 = vld [vmem:[%s2490_s18 + $0xf8] ss:$36 sps:$4 sm:$0xff]  }
  0x35   : > { %2091 = vmatpush3.bf16.msra.mxu1 %v2264_v55  ;;  %2052 = vmatprep.subr.bf16.mxu0 %v2271_v60  ;;  %v2340_v55 = vld [vmem:[%s2490_s18 + $0xe8] ss:$36 sps:$4 sm:$0xff]  }
  0x36   : > { %2092 = vmatprep.subr.bf16.mxu1 %v2272_v61 }
  0x37   : > { %1129 = vmatmul.mubr.bf16.gmra.mrb[8].mxu0 %v2269_v58  ;;  %v1762_v58 = vld [vmem:[%s2715_s2] ss:$0 sm:$0xff] }
  0x38   : > { %1194 = vmatmul.mubr.bf16.gmra.mrb[8].mxu1 %v2270_v59  ;;  %2053 = vmatpush3.bf16.msra.mxu0 %v2273_v62 }
  0x39   : > { %2093 = vmatpush3.bf16.msra.mxu1 %v2274_v63  ;;  %2054 = vmatprep.subr.bf16.mxu0 %v2275_v0 }
  0x3a   : > { %2094 = vmatprep.subr.bf16.mxu1 %v2276_v1  ;;  %1136 = vmatprep.mubr.bf16.mxu0 %v2279_v4 }
  0x3b   : > { %1201 = vmatprep.mubr.bf16.mxu1 %v2281_v5 }
  0x3c   : > { %2055 = vmatpush3.bf16.msra.mxu0 %v2277_v2 }
  0x3d   : > { %2095 = vmatpush3.bf16.msra.mxu1 %v2278_v3  ;;  %2056 = vmatprep.subr.bf16.mxu0 %v2285_v8 }
  0x3e   : > { %2096 = vmatprep.subr.bf16.mxu1 %v2286_v9 }
  0x3f   : > { %1137 = vmatmul.mubr.bf16.gmra.mrb[12].mxu0 %v2283_v6 }
  0x40   : > { %1202 = vmatmul.mubr.bf16.gmra.mrb[12].mxu1 %v2284_v7  ;;  %2057 = vmatpush3.bf16.msra.mxu0 %v2287_v10 }
  0x41   : > { %2097 = vmatpush3.bf16.msra.mxu1 %v2288_v11  ;;  %2058 = vmatprep.subr.bf16.mxu0 %v2289_v12 }
  0x42   : > { %2098 = vmatprep.subr.bf16.mxu1 %v2290_v13  ;;  %1242 = vmatprep.mubr.bf16.mxu0 %v2295_v17 }
  0x43   : > { %1307 = vmatprep.mubr.bf16.mxu1 %v2298_v19 }
  0x44   : > { %2059 = vmatpush3.bf16.msra.mxu0 %v2291_v14 }
  0x45   : > { %2099 = vmatpush3.bf16.msra.mxu1 %v2292_v15  ;;  %2148 = vmatprep.subr.bf16.mxu0 %v2299_v20 }
  0x46   : > { %2172 = vmatprep.subr.bf16.mxu1 %v2300_v21 }
  0x47   : > { %1243 = vmatmul.mubr.bf16.vlgmr.msra.gmra.mrb[16].mxu0 %v2293_v16 }
  0x48   : > { %1308 = vmatmul.mubr.bf16.vlgmr.msra.gmra.mrb[16].mxu1 %v2296_v18  ;;  %2149 = vmatpush3.bf16.msra.mxu0 %v2299_v20 }
  0x49   : > { %2173 = vmatpush3.bf16.msra.mxu1 %v2300_v21  ;;  %2150 = vmatprep.subr.bf16.mxu0 %v2301_v22 }
  0x4a   : > { %2174 = vmatprep.subr.bf16.mxu1 %v2302_v23  ;;  %1250 = vmatprep.mubr.bf16.mxu0 %v2303_v24 }
  0x4b   : > { %1315 = vmatprep.mubr.bf16.mxu1 %v2305_v25 }
  0x4c   : > { %2151 = vmatpush3.bf16.msra.mxu0 %v2301_v22 }
  0x4d   : > { %2175 = vmatpush3.bf16.msra.mxu1 %v2302_v23  ;;  %2152 = vmatprep.subr.bf16.mxu0 %v2309_v28 }
  0x4e   : > { %2176 = vmatprep.subr.bf16.mxu1 %v2310_v29 }
  0x4f   : > { %1251 = vmatmul.mubr.bf16.gmra.mrb[20].mxu0 %v2307_v26 }
  0x50   : > { %1316 = vmatmul.mubr.bf16.gmra.mrb[20].mxu1 %v2308_v27  ;;  %2153 = vmatpush3.bf16.msra.mxu0 %v2309_v28 }
  0x51   : > { %2177 = vmatpush3.bf16.msra.mxu1 %v2310_v29  ;;  %2154 = vmatprep.subr.bf16.mxu0 %v2311_v30 }
  0x52   : > { %2178 = vmatprep.subr.bf16.mxu1 %v2312_v31  ;;  %1258 = vmatprep.mubr.bf16.mxu0 %v2313_v32 }
  0x53   : > { %1323 = vmatprep.mubr.bf16.mxu1 %v2315_v33 }
  0x54   : > { %2155 = vmatpush3.bf16.msra.mxu0 %v2311_v30 }
  0x55   : > { %2179 = vmatpush3.bf16.msra.mxu1 %v2312_v31  ;;  %2156 = vmatprep.subr.bf16.mxu0 %v2319_v36 }
  0x56   : > { %2180 = vmatprep.subr.bf16.mxu1 %v2320_v37 }
  0x57   : > { %1259 = vmatmul.mubr.bf16.gmra.mrb[24].mxu0 %v2317_v34 }
  0x58   : > { %1324 = vmatmul.mubr.bf16.gmra.mrb[24].mxu1 %v2318_v35  ;;  %2157 = vmatpush3.bf16.msra.mxu0 %v2319_v36 }
  0x59   : > { %1266 = vmatprep.mubr.bf16.mxu0 %v2323_v40  ;;  %2181 = vmatpush3.bf16.msra.mxu1 %v2320_v37 }
  0x5a   : > { %2158 = vmatprep.subr.bf16.mxu0 %v2321_v38  ;;  %2182 = vmatprep.subr.bf16.mxu1 %v2322_v39 }
  0x5b   : > { %1331 = vmatprep.mubr.bf16.mxu1 %v2325_v41 }
  0x5c   : > { %2159 = vmatpush3.bf16.msra.mxu0 %v2321_v38 }
  0x5d   : > { %2183 = vmatpush3.bf16.msra.mxu1 %v2322_v39  ;;  %2160 = vmatprep.subr.bf16.mxu0 %v2329_v44 }
  0x5e   : > { %2184 = vmatprep.subr.bf16.mxu1 %v2330_v45 }
  0x5f   : > { %1267 = vmatmul.mubr.bf16.gmra.mrb[28].mxu0 %v2327_v42 }
  0x60   : > { %1332 = vmatmul.mubr.bf16.gmra.mrb[28].mxu1 %v2328_v43  ;;  %2164 = vmatprep.mubr.bf16.mxu0 %v2333_v48 }
  0x61   : > { %2161 = vmatpush3.bf16.msra.mxu0 %v2329_v44  ;;  %2188 = vmatprep.mubr.bf16.mxu1 %v2334_v49 }
  0x62   : > { %2185 = vmatpush3.bf16.msra.mxu1 %v2330_v45  ;;  %2162 = vmatprep.subr.bf16.mxu0 %v2331_v46 }
  0x63   : > { %2186 = vmatprep.subr.bf16.mxu1 %v2332_v47 }
  0x65   : > { %2163 = vmatpush3.bf16.msra.mxu0 %v2331_v46 }
  0x66   : > { %2187 = vmatpush3.bf16.msra.mxu1 %v2332_v47 }
  0x68   : > { %2165 = vmatmul.mubr.bf16.vlgmr.msra.gmra.mrb[32].mxu0 %v2335_v50 }
  0x69   : > { %2189 = vmatmul.mubr.bf16.vlgmr.msra.gmra.mrb[32].mxu1 %v2336_v51  ;;  %2168 = vmatprep.mubr.bf16.mxu0 %v2337_v52 }
  0x6a   : > { %2192 = vmatprep.mubr.bf16.mxu1 %v2338_v53 }
  0x70   : > { %2169 = vmatmul.mubr.bf16.gmra.mrb[36].mxu0 %v2339_v54 }
  0x71   : > { %2193 = vmatmul.mubr.bf16.gmra.mrb[36].mxu1 %v2340_v55 }
  0xfa   : > { %v1980_v56 = vpop.f32.mrb[0].mxu0 }
  0xfb   : > { %v2020_v57 = vpop.f32.mrb[0].mxu1  ;;  %v1981_v59 = vpop.f32.mrb[1].mxu0 }
  0xfc   : > { %v1982_v60 = vadd.f32 %v1981_v59, %v1980_v56  ;;  %v2021_v61 = vpop.f32.mrb[1].mxu1  ;;  %v1983_v62 = vpop.f32.mrb[2].mxu0 }
  0xfd   : > { %v2022_v63 = vadd.f32 %v2021_v61, %v2020_v57  ;;  %v2023_v0 = vpop.f32.mrb[2].mxu1  ;;  %v1984_v1 = vpop.f32.mrb[3].mxu0 }
  0xfe   : > { %v1115_v2 = vadd.f32 %v1982_v60, %v1762_v58  ;;  %v1985_v3 = vadd.f32 %v1984_v1, %v1983_v62  ;;  %v2024_v4 = vpop.f32.mrb[3].mxu1 }
  0xff   : > { %v2025_v5 = vadd.f32 %v2024_v4, %v2023_v0 }
 0x100   : > { %v1180_v6 = vadd.f32 %v2022_v63, %v1115_v2  ;;  %v1118_v7 = vadd.f32 %v1985_v3, %v1762_v58 }
 0x102   : > { %v1183_v8 = vadd.f32 %v2025_v5, %v1118_v7  ;;  %v1986_v9 = vpop.f32.mrb[4].mxu0 }
 0x103   : > { %v2026_v10 = vpop.f32.mrb[4].mxu1  ;;  %v1987_v11 = vpop.f32.mrb[5].mxu0 }
 0x104   : > { %v1988_v12 = vadd.f32 %v1987_v11, %v1986_v9  ;;  %v2027_v13 = vpop.f32.mrb[5].mxu1  ;;  %v1989_v14 = vpop.f32.mrb[6].mxu0 }
 0x105   : > { %v2028_v15 = vadd.f32 %v2027_v13, %v2026_v10  ;;  %v2029_v16 = vpop.f32.mrb[6].mxu1  ;;  %v1990_v17 = vpop.f32.mrb[7].mxu0 }
 0x106   : > { %v1123_v18 = vadd.f32 %v1988_v12, %v1762_v58  ;;  %v1991_v19 = vadd.f32 %v1990_v17, %v1989_v14  ;;  %v2030_v20 = vpop.f32.mrb[7].mxu1 }
 0x107   : > { %v2031_v21 = vadd.f32 %v2030_v20, %v2029_v16 }
 0x108   : > { %v1188_v22 = vadd.f32 %v2028_v15, %v1123_v18  ;;  %v1126_v23 = vadd.f32 %v1991_v19, %v1762_v58 }
 0x10a   : > { %v1191_v24 = vadd.f32 %v2031_v21, %v1126_v23  ;;  %v1992_v25 = vpop.f32.mrb[8].mxu0 }
 0x10b   : > { %v2032_v26 = vpop.f32.mrb[8].mxu1  ;;  %v1993_v27 = vpop.f32.mrb[9].mxu0 }
 0x10c   : > { %v1994_v28 = vadd.f32 %v1993_v27, %v1992_v25  ;;  %v2033_v29 = vpop.f32.mrb[9].mxu1  ;;  %v1995_v30 = vpop.f32.mrb[10].mxu0 }
 0x10d   : > { %v2034_v31 = vadd.f32 %v2033_v29, %v2032_v26  ;;  %v2035_v32 = vpop.f32.mrb[10].mxu1  ;;  %v1996_v33 = vpop.f32.mrb[11].mxu0 }
 0x10e   : > { %v1131_v34 = vadd.f32 %v1994_v28, %v1762_v58  ;;  %v1997_v35 = vadd.f32 %v1996_v33, %v1995_v30  ;;  %v2036_v36 = vpop.f32.mrb[11].mxu1 }
 0x10f   : > { %v2037_v37 = vadd.f32 %v2036_v36, %v2035_v32 }
 0x110   : > { %v1196_v38 = vadd.f32 %v2034_v31, %v1131_v34  ;;  %v1134_v39 = vadd.f32 %v1997_v35, %v1762_v58 }
 0x112   : > { %v1199_v40 = vadd.f32 %v2037_v37, %v1134_v39  ;;  %v1998_v41 = vpop.f32.mrb[12].mxu0 }
 0x113   : > { %v2038_v42 = vpop.f32.mrb[12].mxu1  ;;  %v1999_v43 = vpop.f32.mrb[13].mxu0 }
 0x114   : > { %v2039_v44 = vpop.f32.mrb[13].mxu1  ;;  %v2000_v45 = vadd.f32 %v1999_v43, %v1998_v41  ;;  %v2001_v47 = vpop.f32.mrb[14].mxu0 }
 0x115   : > { %v2040_v46 = vadd.f32 %v2039_v44, %v2038_v42  ;;  %v2041_v48 = vpop.f32.mrb[14].mxu1  ;;  %v2002_v49 = vpop.f32.mrb[15].mxu0 }
 0x116   : > { %v2042_v50 = vpop.f32.mrb[15].mxu1  ;;  %v1139_v51 = vadd.f32 %v2000_v45, %v1762_v58  ;;  %v2003_v52 = vadd.f32 %v2002_v49, %v2001_v47 }
 0x117   : > { %v2043_v53 = vadd.f32 %v2042_v50, %v2041_v48 }
 0x118   : > { %v1204_v54 = vadd.f32 %v2040_v46, %v1139_v51  ;;  %v1142_v55 = vadd.f32 %v2003_v52, %v1762_v58 }
 0x11a   : > { %v1207_v56 = vadd.f32 %v2043_v53, %v1142_v55  ;;  %v2060_v57 = vpop.f32.mrb[16].mxu0 }
 0x11b   : > { %v2061_v59 = vpop.f32.mrb[17].mxu0  ;;  %v2100_v60 = vpop.f32.mrb[16].mxu1 }
 0x11c   : > { %v2062_v61 = vadd.f32 %v2061_v59, %v2060_v57  ;;  %v2063_v62 = vpop.f32.mrb[18].mxu0  ;;  %v2101_v63 = vpop.f32.mrb[17].mxu1 }
 0x11d   : > { %v2064_v0 = vpop.f32.mrb[19].mxu0  ;;  %v2102_v2 = vadd.f32 %v2101_v63, %v2100_v60  ;;  %v2103_v3 = vpop.f32.mrb[18].mxu1  ;;  %v1879_v60 = vld [vmem:[%s2717_s4] ss:$0 sm:$0xff] }
 0x11e   : > { %v1245_v1 = vadd.f32 %v2062_v61, %v1180_v6  ;;  %v2065_v4 = vadd.f32 %v2064_v0, %v2063_v62  ;;  %v2104_v5 = vpop.f32.mrb[19].mxu1 }
 0x11f   : > { %v2105_v9 = vadd.f32 %v2104_v5, %v2103_v3 }
 0x120   : > { %v1248_v7 = vadd.f32 %v2065_v4, %v1183_v8  ;;  %v1310_v10 = vadd.f32 %v2102_v2, %v1245_v1 }
 0x122   : > { %v2066_v11 = vpop.f32.mrb[20].mxu0  ;;  %v2685_v12 = vadd.f32 %v2105_v9, %v1248_v7 }
 0x123   : > { %v2067_v58 = vpop.f32.mrb[21].mxu0  ;;  %v2106_v13 = vpop.f32.mrb[20].mxu1 }
 0x124   : > { %v2068_v14 = vadd.f32 %v2067_v58, %v2066_v11  ;;  %v2069_v15 = vpop.f32.mrb[22].mxu0  ;;  %v2107_v16 = vpop.f32.mrb[21].mxu1 }
 0x125   : > { %v2070_v17 = vpop.f32.mrb[23].mxu0  ;;  %v2108_v19 = vadd.f32 %v2107_v16, %v2106_v13  ;;  %v2109_v20 = vpop.f32.mrb[22].mxu1 }
 0x126   : > { %v1253_v18 = vadd.f32 %v2068_v14, %v1188_v22  ;;  %v2071_v6 = vadd.f32 %v2070_v17, %v2069_v15  ;;  %v2110_v21 = vpop.f32.mrb[23].mxu1 }
 0x127   : > { %v2111_v25 = vadd.f32 %v2110_v21, %v2109_v20 }
 0x128   : > { %v1256_v23 = vadd.f32 %v2071_v6, %v1191_v24  ;;  %v1318_v26 = vadd.f32 %v2108_v19, %v1253_v18 }
 0x12a   : > { %v2072_v8 = vpop.f32.mrb[24].mxu0  ;;  %v1321_v27 = vadd.f32 %v2111_v25, %v1256_v23 }
 0x12b   : > { %v2073_v28 = vpop.f32.mrb[25].mxu0  ;;  %v2112_v29 = vpop.f32.mrb[24].mxu1 }
 0x12c   : > { %v2074_v30 = vadd.f32 %v2073_v28, %v2072_v8  ;;  %v2075_v31 = vpop.f32.mrb[26].mxu0  ;;  %v2113_v32 = vpop.f32.mrb[25].mxu1 }
 0x12d   : > { %v2076_v33 = vpop.f32.mrb[27].mxu0  ;;  %v2114_v35 = vadd.f32 %v2113_v32, %v2112_v29  ;;  %v2115_v36 = vpop.f32.mrb[26].mxu1 }
 0x12e   : > { %v1261_v34 = vadd.f32 %v2074_v30, %v1196_v38  ;;  %v2077_v37 = vadd.f32 %v2076_v33, %v2075_v31  ;;  %v2116_v22 = vpop.f32.mrb[27].mxu1 }
 0x12f   : > { %v2117_v41 = vadd.f32 %v2116_v22, %v2115_v36 }
 0x130   : > { %v1264_v39 = vadd.f32 %v2077_v37, %v1199_v40  ;;  %v1326_v42 = vadd.f32 %v2114_v35, %v1261_v34 }
 0x132   : > { %v2078_v43 = vpop.f32.mrb[28].mxu0  ;;  %v1329_v24 = vadd.f32 %v2117_v41, %v1264_v39 }
 0x133   : > { %v2079_v44 = vpop.f32.mrb[29].mxu0  ;;  %v2118_v45 = vpop.f32.mrb[28].mxu1 }
 0x134   : > { %v2080_v46 = vadd.f32 %v2079_v44, %v2078_v43  ;;  %v2081_v47 = vpop.f32.mrb[30].mxu0  ;;  %v2119_v48 = vpop.f32.mrb[29].mxu1 }
 0x135   : > { %v2082_v49 = vpop.f32.mrb[31].mxu0  ;;  %v2120_v51 = vadd.f32 %v2119_v48, %v2118_v45  ;;  %v2121_v52 = vpop.f32.mrb[30].mxu1 }
 0x136   : > { %v1269_v50 = vadd.f32 %v2080_v46, %v1204_v54  ;;  %v2083_v38 = vadd.f32 %v2082_v49, %v2081_v47  ;;  %v2122_v53 = vpop.f32.mrb[31].mxu1 }
 0x137   : > { %v2123_v57 = vadd.f32 %v2122_v53, %v2121_v52 }
 0x138   : > { %v1272_v55 = vadd.f32 %v2083_v38, %v1207_v56  ;;  %v1334_v59 = vadd.f32 %v2120_v51, %v1269_v50 }
 0x13a   : > { %v1337_v40 = vadd.f32 %v2123_v57, %v1272_v55 }
 0x13b   : > { %v2166_v61 = vpop.f32.mrb[32].mxu0 }
 0x13c   : > { %v1383_v62 = vadd.f32 %v2166_v61, %v1318_v26  ;;  %v2190_v63 = vpop.f32.mrb[32].mxu1  ;;  %v1374_v0 = vpop.f32.mrb[33].mxu0 }
 0x13d   : > { %v1599_v1 = vadd.f32 %v2190_v63, %v1879_v60  ;;  %v1375_v2 = vadd.f32 %v1374_v0, %v1310_v10  ;;  %v1590_v54 = vpop.f32.mrb[33].mxu1  ;;  %v2167_v3 = vpop.f32.mrb[34].mxu0 }
 0x13e   : > { %v1591_v4 = vadd.f32 %v1879_v60, %v1590_v54  ;;  %v1386_v5 = vadd.f32 %v2167_v3, %v1321_v27  ;;  %v2191_v7 = vpop.f32.mrb[34].mxu1  ;;  %v1377_v56 = vpop.f32.mrb[35].mxu0  ;;  %v1407_v13 = vmax.f32 %v1383_v62, 0.0 }
 0x13f   : > { %v1602_v9 = vadd.f32 %v2191_v7, %v1879_v60  ;;  %v1378_v11 = vadd.f32 %v1377_v56, %v2685_v12  ;;  %v1593_v58 = vpop.f32.mrb[35].mxu1  ;;  %v1405_v15 = vmax.f32 %v1375_v2, 0.0 }
 0x140   : > { %v1408_v14 = vmax.f32 %v1386_v5, 0.0  ;;  %v1594_v10 = vadd.f32 %v1879_v60, %v1593_v58 }
 0x141   : > { %v1946_v12 = vpack.c.bf16 %v1602_v9, %v1599_v1  ;;  %v1406_v16 = vmax.f32 %v1378_v11, 0.0 }
 0x142   : > { %v1926_v17 = vpack.c.bf16 %v1408_v14, %v1407_v13  ;;  %v1941_v18 = vpack.c.bf16 %v1594_v10, %v1591_v4 }
 0x143   : > { %1961 = vst [vmem:[%s2695_s20 + $0x8] sm:$0xff] %v1946_v12   ;;  %v1921_v19 = vpack.c.bf16 %v1406_v16, %v1405_v15  ;;  %v2170_v20 = vpop.f32.mrb[36].mxu0 }
 0x144   : > { %1958 = vst [vmem:[%s2700_s24 + $0x8] sm:$0xff] %v1926_v17   ;;  %1942 = vst [vmem:[%s2695_s20] sm:$0xff] %v1941_v18   ;;  %v1399_v6 = vadd.f32 %v2170_v20, %v1334_v59  ;;  %v2194_v21 = vpop.f32.mrb[36].mxu1  ;;  %v1390_v23 = vpop.f32.mrb[37].mxu0 }
 0x145   : > { %1922 = vst [vmem:[%s2700_s24] sm:$0xff] %v1921_v19   ;;  %v1615_v25 = vadd.f32 %v2194_v21, %v1879_v60  ;;  %v1391_v26 = vadd.f32 %v1390_v23, %v1326_v42  ;;  %v1606_v8 = vpop.f32.mrb[37].mxu1  ;;  %v2171_v27 = vpop.f32.mrb[38].mxu0 }
 0x146   : > { %v1607_v28 = vadd.f32 %v1879_v60, %v1606_v8  ;;  %v1402_v29 = vadd.f32 %v2171_v27, %v1337_v40  ;;  %v2195_v30 = vpop.f32.mrb[38].mxu1  ;;  %v1393_v31 = vpop.f32.mrb[39].mxu0  ;;  %v1411_v35 = vmax.f32 %v1399_v6, 0.0 }
 0x147   : > { %v1618_v32 = vadd.f32 %v2195_v30, %v1879_v60  ;;  %v1394_v33 = vadd.f32 %v1393_v31, %v1329_v24  ;;  %v1609_v34 = vpop.f32.mrb[39].mxu1  ;;  %v1409_v22 = vmax.f32 %v1391_v26, 0.0 }
 0x148   : > { %v1412_v36 = vmax.f32 %v1402_v29, 0.0  ;;  %v1610_v37 = vadd.f32 %v1879_v60, %v1609_v34 }
 0x149   : > { %v1956_v39 = vpack.c.bf16 %v1618_v32, %v1615_v25  ;;  %v1410_v41 = vmax.f32 %v1394_v33, 0.0 }
 0x14a   : > { %v1936_v42 = vpack.c.bf16 %v1412_v36, %v1411_v35  ;;  %v1951_v43 = vpack.c.bf16 %v1610_v37, %v1607_v28 }
 0x14b   : > { %1963 = vst [vmem:[%s2695_s20 + $0x18] sm:$0xff] %v1956_v39   ;;  %v1931_v44 = vpack.c.bf16 %v1410_v41, %v1409_v22 }
 0x14c   : > { %1960 = vst [vmem:[%s2700_s24 + $0x18] sm:$0xff] %v1936_v42   ;;  %1962 = vst [vmem:[%s2695_s20 + $0x10] sm:$0xff] %v1951_v43  }
 0x14d   : > { %1959 = vst [vmem:[%s2700_s24 + $0x10] sm:$0xff] %v1931_v44  }
 0x14e PF: > { %s17_s21 = sadd.s32 1, %s2347_s21  }
 0x14f   : > { %p14_p4 = scmp.ge.s32.totalorder %s17_s21, 4  }
 0x151   :  { %16 = sbr.rel (!%p14_p4) target bundleno = 1 (0x1), region = 82 }

// kernel: _lambda_.13
= control target key start
LH: loop header
LB: loop body
LE: loop exit
PB: predicated region body
PF: predicated region fallthrough
CT: control target
= control target key end

     0   :  { %s2057_s15 = smov 0   ;;  %s2353_s0 = inlined_call_operand.vmem [shape: bf16[128,1152], index: 0, kind: input, shape index: {}]   ;;  %s2354_s1 = inlined_call_operand.vmem [shape: bf16[1152,128], index: 1, kind: input, shape index: {}]   ;;  %s2355_s2 = inlined_call_operand.vmem [shape: f32[1,128], index: 2, kind: input, shape index: {}]   ;;  %s2356_s3 = inlined_call_operand.vmem [shape: bf16[128,128], index: 3, kind: input, shape index: {}]   ;;  %s2357_s4 = inlined_call_operand.vmem [shape: bf16[128,128], index: 4, kind: output, shape index: {}]  }
   0x1 LB: > { %s1499_s16 = sadd.s32 4294967295, %s2030_s15   ;;  %p1503_p0 = scmp.ge.s32.totalorder %s2030_s15, 1  ;;  %s2030_s15 = sphi %s2057_s15, %s14_s15  }
   0x2   : > { %p175_p1 = scmp.lt.s32.totalorder %s2030_s15, 3 }
   0x4   : > { %p176_p2 = pnand %p1503_p0, %p175_p1 }
   0x5   : > { %v1900_v0 = vld [vmem:[%s2354_s1 + $0x40] sm:$0xff] (!%p176_p2)   ;;  %v1904_v4 = vld [vmem:[%s2354_s1 + $0x48] sm:$0xff] (!%p176_p2)   ;;  %v1908_v8 = vld [vmem:[%s2354_s1 + $0x50] sm:$0xff] (!%p176_p2)   ;;  %s1504_s23 = sshll.u32 (!%p176_p2), %s1499_s16, 3 }
   0x6   : > { %179 = sbr.rel (%p176_p2) target bundleno = 329 (0x149), region = 36  ;;  %v1901_v1 = vld [vmem:[%s2354_s1 + $0xc0] sm:$0xff] (!%p176_p2)   ;;  %1679 = vmatprep.subr.bf16.mxu0 (!%p176_p2), %v1900_v0  ;;  %v1905_v5 = vld [vmem:[%s2354_s1 + $0xc8] sm:$0xff] (!%p176_p2)   ;;  %v1909_v9 = vld [vmem:[%s2354_s1 + $0xd0] sm:$0xff] (!%p176_p2)   ;;  %p208_p3 = scmp.lt.s32.totalorder (!%p176_p2), %s1504_s23, 15 }
   0x7   : > { %v1902_v2 = vld [vmem:[%s2354_s1] sm:$0xff] (!%p176_p2)   ;;  %1719 = vmatprep.subr.bf16.mxu1 (!%p176_p2), %v1901_v1  ;;  %v1906_v6 = vld [vmem:[%s2354_s1 + $0x8] sm:$0xff] (!%p176_p2)   ;;  %v1910_v10 = vld [vmem:[%s2354_s1 + $0x10] sm:$0xff] (!%p176_p2)  }
   0x8   : > { %v1903_v3 = vld [vmem:[%s2354_s1 + $0x80] sm:$0xff] (!%p176_p2)   ;;  %1680 = vmatpush3.bf16.msra.mxu0 (!%p176_p2), %v1902_v2  ;;  %v1907_v7 = vld [vmem:[%s2354_s1 + $0x88] sm:$0xff] (!%p176_p2)   ;;  %v1911_v11 = vld [vmem:[%s2354_s1 + $0x90] sm:$0xff] (!%p176_p2)  }
   0x9   : > { %1720 = vmatpush3.bf16.msra.mxu1 (!%p176_p2), %v1903_v3  ;;  %1681 = vmatprep.subr.bf16.mxu0 (!%p176_p2), %v1904_v4  ;;  %v1912_v12 = vld [vmem:[%s2354_s1 + $0x58] sm:$0xff] (!%p176_p2)   ;;  %v1916_v16 = vld [vmem:[%s2354_s1 + $0x60] sm:$0xff] (!%p176_p2)   ;;  %v1920_v20 = vld [vmem:[%s2354_s1 + $0x68] sm:$0xff] (!%p176_p2)  }
   0xa   : > { %1721 = vmatprep.subr.bf16.mxu1 (!%p176_p2), %v1905_v5  ;;  %v1913_v13 = vld [vmem:[%s2354_s1 + $0xd8] sm:$0xff] (!%p176_p2)   ;;  %v1917_v17 = vld [vmem:[%s2354_s1 + $0xe0] sm:$0xff] (!%p176_p2)   ;;  %v1921_v21 = vld [vmem:[%s2354_s1 + $0xe8] sm:$0xff] (!%p176_p2)  }
   0xb   : > { %v1914_v14 = vld [vmem:[%s2354_s1 + $0x18] sm:$0xff] (!%p176_p2)   ;;  %v1918_v18 = vld [vmem:[%s2354_s1 + $0x20] sm:$0xff] (!%p176_p2)   ;;  %v1922_v22 = vld [vmem:[%s2354_s1 + $0x28] sm:$0xff] (!%p176_p2)  }
   0xc   : > { %1682 = vmatpush3.bf16.msra.mxu0 (!%p176_p2), %v1906_v6  ;;  %v1915_v15 = vld [vmem:[%s2354_s1 + $0x98] sm:$0xff] (!%p176_p2)   ;;  %v1919_v19 = vld [vmem:[%s2354_s1 + $0xa0] sm:$0xff] (!%p176_p2)   ;;  %v1923_v23 = vld [vmem:[%s2354_s1 + $0xa8] sm:$0xff] (!%p176_p2)  }
   0xd   : > { %1722 = vmatpush3.bf16.msra.mxu1 %v1907_v7  ;;  %1683 = vmatprep.subr.bf16.mxu0 %v1908_v8  ;;  %s2359_s23 = smov (!%p208_p3, %s1504_s23), 15  ;;  %v1924_v24 = vld [vmem:[%s2354_s1 + $0x70] sm:$0xff]   ;;  %v1928_v28 = vld [vmem:[%s2354_s1 + $0x78] sm:$0xff]   ;;  %v1938_v36 = vld [vmem:[%s2354_s1 + $0x140] sm:$0xff]  }
   0xe   : > { %1723 = vmatprep.subr.bf16.mxu1 %v1909_v9  ;;  %v1925_v25 = vld [vmem:[%s2354_s1 + $0xf0] sm:$0xff]   ;;  %s1891_s21 = smul.u32 36, %s2359_s23  ;;  %v1929_v29 = vld [vmem:[%s2354_s1 + $0xf8] sm:$0xff]   ;;  %v1939_v37 = vld [vmem:[%s2354_s1 + $0x1c0] sm:$0xff]  }
   0xf   : > { %v1926_v26 = vld [vmem:[%s2354_s1 + $0x30] sm:$0xff]   ;;  %v1930_v30 = vld [vmem:[%s2354_s1 + $0x38] sm:$0xff]   ;;  %v1940_v38 = vld [vmem:[%s2354_s1 + $0x100] sm:$0xff]  }
  0x10   : > { %1684 = vmatpush3.bf16.msra.mxu0 %v1910_v10  ;;  %v1927_v27 = vld [vmem:[%s2354_s1 + $0xb0] sm:$0xff]   ;;  %s2163_s6 = scalar_lea.vmem %s2353_s0, %s1891_s21  ;;  %v1931_v31 = vld [vmem:[%s2354_s1 + $0xb8] sm:$0xff]   ;;  %v1941_v39 = vld [vmem:[%s2354_s1 + $0x180] sm:$0xff]  }
  0x11   : > { %1724 = vmatpush3.bf16.msra.mxu1 %v1911_v11  ;;  %1685 = vmatprep.subr.bf16.mxu0 %v1912_v12  ;;  %v1932_v32 = vld [vmem:[%s2163_s6] ss:$36 sps:$4 sm:$0xff]   ;;  %v1935_v34 = vld [vmem:[%s2163_s6 + $0x8] ss:$36 sps:$4 sm:$0xff]   ;;  %v1948_v45 = vld [vmem:[%s2163_s6 + $0x54] ss:$36 sps:$4 sm:$0xff]  }
  0x12   : > { %1725 = vmatprep.subr.bf16.mxu1 %v1913_v13  ;;  %v1934_v33 = vld [vmem:[%s2163_s6 + $0x4] ss:$36 sps:$4 sm:$0xff]   ;;  %v1937_v35 = vld [vmem:[%s2163_s6 + $0xc] ss:$36 sps:$4 sm:$0xff]   ;;  %v1956_v52 = vld [vmem:[%s2354_s1 + $0x158] sm:$0xff]  }
  0x13   : > { %1066 = vmatprep.mubr.bf16.mxu0 %v1934_v33  ;;  %1131 = vmatprep.mubr.bf16.mxu1 %v1937_v35  ;;  %v1942_v40 = vld [vmem:[%s2354_s1 + $0x148] sm:$0xff]   ;;  %v1951_v47 = vld [vmem:[%s2163_s6 + $0x50] ss:$36 sps:$4 sm:$0xff]   ;;  %v1957_v53 = vld [vmem:[%s2354_s1 + $0x1d8] sm:$0xff]  }
  0x14   : > { %1686 = vmatpush3.bf16.msra.mxu0 %v1914_v14  ;;  %v1943_v41 = vld [vmem:[%s2354_s1 + $0x1c8] sm:$0xff]   ;;  %v1952_v48 = vld [vmem:[%s2354_s1 + $0x150] sm:$0xff]   ;;  %v1958_v54 = vld [vmem:[%s2354_s1 + $0x118] sm:$0xff]  }
  0x15   : > { %1726 = vmatpush3.bf16.msra.mxu1 %v1915_v15  ;;  %1687 = vmatprep.subr.bf16.mxu0 %v1916_v16  ;;  %v1944_v42 = vld [vmem:[%s2354_s1 + $0x108] sm:$0xff]   ;;  %v1953_v49 = vld [vmem:[%s2354_s1 + $0x1d0] sm:$0xff]   ;;  %v1959_v55 = vld [vmem:[%s2354_s1 + $0x198] sm:$0xff]  }
  0x16   : > { %1727 = vmatprep.subr.bf16.mxu1 %v1917_v17  ;;  %v1945_v43 = vld [vmem:[%s2354_s1 + $0x188] sm:$0xff]   ;;  %v1954_v50 = vld [vmem:[%s2354_s1 + $0x110] sm:$0xff]   ;;  %v1962_v57 = vld [vmem:[%s2163_s6 + $0x9c] ss:$36 sps:$4 sm:$0xff]  }
  0x17   : > { %v1946_v44 = vld [vmem:[%s2163_s6 + $0x4c] ss:$36 sps:$4 sm:$0xff]   ;;  %v1960_v56 = vld [vmem:[%s2163_s6 + $0x94] ss:$36 sps:$4 sm:$0xff]   ;;  %v1966_v60 = vld [vmem:[%s2354_s1 + $0x160] sm:$0xff]  }
  0x18   : > { %1688 = vmatpush3.bf16.msra.mxu0 %v1918_v18  ;;  %v1950_v46 = vld [vmem:[%s2163_s6 + $0x48] ss:$36 sps:$4 sm:$0xff]   ;;  %v1955_v51 = vld [vmem:[%s2354_s1 + $0x190] sm:$0xff]   ;;  %v1965_v59 = vld [vmem:[%s2163_s6 + $0x98] ss:$36 sps:$4 sm:$0xff]  }
  0x19   : > { %1728 = vmatpush3.bf16.msra.mxu1 %v1919_v19  ;;  %1689 = vmatprep.subr.bf16.mxu0 %v1920_v20  ;;  %v1964_v58 = vld [vmem:[%s2163_s6 + $0x90] ss:$36 sps:$4 sm:$0xff]   ;;  %v1967_v61 = vld [vmem:[%s2354_s1 + $0x1e0] sm:$0xff]   ;;  %v1970_v0 = vld [vmem:[%s2354_s1 + $0x168] sm:$0xff]  }
  0x1a   : > { %1729 = vmatprep.subr.bf16.mxu1 %v1921_v21  ;;  %v1968_v62 = vld [vmem:[%s2354_s1 + $0x120] sm:$0xff]   ;;  %v1971_v1 = vld [vmem:[%s2354_s1 + $0x1e8] sm:$0xff]   ;;  %v1978_v6 = vld [vmem:[%s2163_s6 + $0xd8] ss:$36 sps:$4 sm:$0xff]  }
  0x1b   : > { %v1969_v63 = vld [vmem:[%s2354_s1 + $0x1a0] sm:$0xff]   ;;  %v1972_v2 = vld [vmem:[%s2354_s1 + $0x128] sm:$0xff]   ;;  %v1980_v8 = vld [vmem:[%s2354_s1 + $0x170] sm:$0xff]  }
  0x1c   : > { %1690 = vmatpush3.bf16.msra.mxu0 %v1922_v22  ;;  %v1973_v3 = vld [vmem:[%s2354_s1 + $0x1a8] sm:$0xff]   ;;  %v1974_v4 = vld [vmem:[%s2163_s6 + $0xdc] ss:$36 sps:$4 sm:$0xff]   ;;  %v1981_v9 = vld [vmem:[%s2354_s1 + $0x1f0] sm:$0xff]  }
  0x1d   : > { %1730 = vmatpush3.bf16.msra.mxu1 %v1923_v23  ;;  %1691 = vmatprep.subr.bf16.mxu0 %v1924_v24  ;;  %v1976_v5 = vld [vmem:[%s2163_s6 + $0xe4] ss:$36 sps:$4 sm:$0xff]   ;;  %v1982_v10 = vld [vmem:[%s2354_s1 + $0x130] sm:$0xff]   ;;  %v1984_v12 = vld [vmem:[%s2354_s1 + $0x178] sm:$0xff]  }
  0x1e   : > { %1731 = vmatprep.subr.bf16.mxu1 %v1925_v25  ;;  %v1979_v7 = vld [vmem:[%s2163_s6 + $0xe0] ss:$36 sps:$4 sm:$0xff]   ;;  %v1983_v11 = vld [vmem:[%s2354_s1 + $0x1b0] sm:$0xff]   ;;  %v1985_v13 = vld [vmem:[%s2354_s1 + $0x1f8] sm:$0xff]  }
  0x1f   : > { %v1986_v14 = vld [vmem:[%s2354_s1 + $0x138] sm:$0xff]   ;;  %v1988_v16 = vld [vmem:[%s2163_s6 + $0x10] ss:$36 sps:$4 sm:$0xff]   ;;  %v1994_v20 = vld [vmem:[%s2354_s1 + $0x200] sm:$0xff]  }
  0x20   : > { %1692 = vmatpush3.bf16.msra.mxu0 %v1926_v26  ;;  %v1987_v15 = vld [vmem:[%s2354_s1 + $0x1b8] sm:$0xff]   ;;  %v1995_v21 = vld [vmem:[%s2354_s1 + $0x208] sm:$0xff]   ;;  %v2001_v25 = vld [vmem:[%s2163_s6 + $0x60] ss:$36 sps:$4 sm:$0xff]  }
  0x21   : > { %1732 = vmatpush3.bf16.msra.mxu1 %v1927_v27  ;;  %1693 = vmatprep.subr.bf16.mxu0 %v1928_v28  ;;  %v1990_v17 = vld [vmem:[%s2163_s6 + $0x14] ss:$36 sps:$4 sm:$0xff]   ;;  %v1993_v19 = vld [vmem:[%s2163_s6 + $0x1c] ss:$36 sps:$4 sm:$0xff]   ;;  %v1998_v23 = vld [vmem:[%s2163_s6 + $0x64] ss:$36 sps:$4 sm:$0xff]  }
  0x22   : > { %1733 = vmatprep.subr.bf16.mxu1 %v1929_v29  ;;  %v1991_v18 = vld [vmem:[%s2163_s6 + $0x18] ss:$36 sps:$4 sm:$0xff]   ;;  %v2002_v26 = vld [vmem:[%s2354_s1 + $0x210] sm:$0xff]   ;;  %v2004_v27 = vld [vmem:[%s2163_s6 + $0xa4] ss:$36 sps:$4 sm:$0xff]  }
  0x23   : > { %v1996_v22 = vld [vmem:[%s2163_s6 + $0x5c] ss:$36 sps:$4 sm:$0xff]   ;;  %v2006_v28 = vld [vmem:[%s2163_s6 + $0xac] ss:$36 sps:$4 sm:$0xff]  }
  0x24   : > { %1694 = vmatpush3.bf16.msra.mxu0 %v1930_v30  ;;  %v2000_v24 = vld [vmem:[%s2163_s6 + $0x58] ss:$36 sps:$4 sm:$0xff]   ;;  %v2008_v30 = vld [vmem:[%s2163_s6 + $0xa0] ss:$36 sps:$4 sm:$0xff]   ;;  %v2012_v33 = vld [vmem:[%s2163_s6 + $0xec] ss:$36 sps:$4 sm:$0xff]  }
  0x25   : > { %1734 = vmatpush3.bf16.msra.mxu1 %v1931_v31  ;;  %1759 = vmatprep.subr.bf16.mxu0 %v1938_v36  ;;  %v2003_v29 = vld [vmem:[%s2354_s1 + $0x218] sm:$0xff]   ;;  %v2009_v31 = vld [vmem:[%s2163_s6 + $0xa8] ss:$36 sps:$4 sm:$0xff]  }
  0x26   : > { %1799 = vmatprep.subr.bf16.mxu1 %v1939_v37  ;;  %v2011_v35 = vld [vmem:[%s2354_s1 + $0x228] sm:$0xff]   ;;  %v2018_v37 = vld [vmem:[%s2354_s1 + $0x230] sm:$0xff]  }
  0x27   : > { %1067 = vmatmul.mubr.bf16.vlgmr.msra.gmra.mrb[0].mxu0 %v1932_v32  ;;  %v2010_v32 = vld [vmem:[%s2354_s1 + $0x220] sm:$0xff]   ;;  %v2016_v36 = vld [vmem:[%s2163_s6 + $0xe8] ss:$36 sps:$4 sm:$0xff]  }
  0x28   : > { %1132 = vmatmul.mubr.bf16.vlgmr.msra.gmra.mrb[0].mxu1 %v1935_v34  ;;  %1760 = vmatpush3.bf16.msra.mxu0 %v1940_v38  ;;  %v2014_v34 = vld [vmem:[%s2163_s6 + $0xf4] ss:$36 sps:$4 sm:$0xff]  }
  0x29   : > { %1800 = vmatpush3.bf16.msra.mxu1 %v1941_v39  ;;  %1761 = vmatprep.subr.bf16.mxu0 %v1942_v40  ;;  %v2017_v38 = vld [vmem:[%s2163_s6 + $0xf0] ss:$36 sps:$4 sm:$0xff]   ;;  %v2020_v39 = vld [vmem:[%s2163_s6 + $0x20] ss:$36 sps:$4 sm:$0xff]  }
  0x2a   : > { %1801 = vmatprep.subr.bf16.mxu1 %v1943_v41  ;;  %1074 = vmatprep.mubr.bf16.mxu0 %v1946_v44  ;;  %v2021_v40 = vld [vmem:[%s2163_s6 + $0xb0] ss:$36 sps:$4 sm:$0xff]   ;;  %v2019_v41 = vld [vmem:[%s2354_s1 + $0x238] sm:$0xff]  }
  0x2b   : > { %1139 = vmatprep.mubr.bf16.mxu1 %v1948_v45 }
  0x2c   : > { %1762 = vmatpush3.bf16.msra.mxu0 %v1944_v42  ;;  %v2022_v42 = vld [vmem:[%s2163_s6 + $0x68] ss:$36 sps:$4 sm:$0xff]  }
  0x2d   : > { %1802 = vmatpush3.bf16.msra.mxu1 %v1945_v43  ;;  %1763 = vmatprep.subr.bf16.mxu0 %v1952_v48  ;;  %v2023_v43 = vld [vmem:[%s2163_s6 + $0xf8] ss:$36 sps:$4 sm:$0xff]   ;;  %s1507_s6 = sshll.u32 %s2359_s23, 2 }
  0x2e   : > { %1803 = vmatprep.subr.bf16.mxu1 %v1953_v49  ;;  %s218_s29 = scalar_lea.vmem %s2356_s3, %s1507_s6  ;;  %s224_s16 = scalar_lea.vmem %s2357_s4, %s1507_s6 }
  0x2f   : > { %1075 = vmatmul.mubr.bf16.gmra.mrb[4].mxu0 %v1950_v46  ;;  %v1510_v46 = vld [vmem:[%s2355_s2] ss:$0 sm:$0xff] }
  0x30   : > { %1140 = vmatmul.mubr.bf16.gmra.mrb[4].mxu1 %v1951_v47  ;;  %1764 = vmatpush3.bf16.msra.mxu0 %v1954_v50 }
  0x31   : > { %1804 = vmatpush3.bf16.msra.mxu1 %v1955_v51  ;;  %1765 = vmatprep.subr.bf16.mxu0 %v1956_v52 }
  0x32   : > { %1805 = vmatprep.subr.bf16.mxu1 %v1957_v53  ;;  %1082 = vmatprep.mubr.bf16.mxu0 %v1960_v56 }
  0x33   : > { %1147 = vmatprep.mubr.bf16.mxu1 %v1962_v57 }
  0x34   : > { %1766 = vmatpush3.bf16.msra.mxu0 %v1958_v54 }
  0x35   : > { %1806 = vmatpush3.bf16.msra.mxu1 %v1959_v55  ;;  %1767 = vmatprep.subr.bf16.mxu0 %v1966_v60 }
  0x36   : > { %1807 = vmatprep.subr.bf16.mxu1 %v1967_v61 }
  0x37   : > { %1083 = vmatmul.mubr.bf16.gmra.mrb[8].mxu0 %v1964_v58 }
  0x38   : > { %1148 = vmatmul.mubr.bf16.gmra.mrb[8].mxu1 %v1965_v59  ;;  %1768 = vmatpush3.bf16.msra.mxu0 %v1968_v62 }
  0x39   : > { %1808 = vmatpush3.bf16.msra.mxu1 %v1969_v63  ;;  %1769 = vmatprep.subr.bf16.mxu0 %v1970_v0 }
  0x3a   : > { %1809 = vmatprep.subr.bf16.mxu1 %v1971_v1  ;;  %1090 = vmatprep.mubr.bf16.mxu0 %v1974_v4 }
  0x3b   : > { %1155 = vmatprep.mubr.bf16.mxu1 %v1976_v5 }
  0x3c   : > { %1770 = vmatpush3.bf16.msra.mxu0 %v1972_v2 }
  0x3d   : > { %1810 = vmatpush3.bf16.msra.mxu1 %v1973_v3  ;;  %1771 = vmatprep.subr.bf16.mxu0 %v1980_v8 }
  0x3e   : > { %1811 = vmatprep.subr.bf16.mxu1 %v1981_v9 }
  0x3f   : > { %1091 = vmatmul.mubr.bf16.gmra.mrb[12].mxu0 %v1978_v6 }
  0x40   : > { %1156 = vmatmul.mubr.bf16.gmra.mrb[12].mxu1 %v1979_v7  ;;  %1772 = vmatpush3.bf16.msra.mxu0 %v1982_v10 }
  0x41   : > { %1812 = vmatpush3.bf16.msra.mxu1 %v1983_v11  ;;  %1773 = vmatprep.subr.bf16.mxu0 %v1984_v12 }
  0x42   : > { %1813 = vmatprep.subr.bf16.mxu1 %v1985_v13  ;;  %1196 = vmatprep.mubr.bf16.mxu0 %v1990_v17 }
  0x43   : > { %1261 = vmatprep.mubr.bf16.mxu1 %v1993_v19 }
  0x44   : > { %1774 = vmatpush3.bf16.msra.mxu0 %v1986_v14 }
  0x45   : > { %1814 = vmatpush3.bf16.msra.mxu1 %v1987_v15  ;;  %1851 = vmatprep.subr.bf16.mxu0 %v1994_v20 }
  0x46   : > { %1875 = vmatprep.subr.bf16.mxu1 %v1994_v20 }
  0x47   : > { %1197 = vmatmul.mubr.bf16.vlgmr.msra.gmra.mrb[16].mxu0 %v1988_v16 }
  0x48   : > { %1262 = vmatmul.mubr.bf16.vlgmr.msra.gmra.mrb[16].mxu1 %v1991_v18  ;;  %1852 = vmatpush3.bf16.msra.mxu0 %v1994_v20 }
  0x49   : > { %1883 = vmatpush3.bf16.msra.mxu1 %v1994_v20  ;;  %1853 = vmatprep.subr.bf16.mxu0 %v1995_v21 }
  0x4a   : > { %1876 = vmatprep.subr.bf16.mxu1 %v1995_v21  ;;  %1204 = vmatprep.mubr.bf16.mxu0 %v1996_v22 }
  0x4b   : > { %1269 = vmatprep.mubr.bf16.mxu1 %v1998_v23 }
  0x4c   : > { %1854 = vmatpush3.bf16.msra.mxu0 %v1995_v21 }
  0x4d   : > { %1884 = vmatpush3.bf16.msra.mxu1 %v1995_v21  ;;  %1855 = vmatprep.subr.bf16.mxu0 %v2002_v26 }
  0x4e   : > { %1877 = vmatprep.subr.bf16.mxu1 %v2002_v26 }
  0x4f   : > { %1205 = vmatmul.mubr.bf16.gmra.mrb[20].mxu0 %v2000_v24 }
  0x50   : > { %1270 = vmatmul.mubr.bf16.gmra.mrb[20].mxu1 %v2001_v25  ;;  %1212 = vmatprep.mubr.bf16.mxu0 %v2004_v27 }
  0x51   : > { %1856 = vmatpush3.bf16.msra.mxu0 %v2002_v26  ;;  %1277 = vmatprep.mubr.bf16.mxu1 %v2006_v28 }
  0x52   : > { %1885 = vmatpush3.bf16.msra.mxu1 %v2002_v26  ;;  %1857 = vmatprep.subr.bf16.mxu0 %v2003_v29 }
  0x53   : > { %1878 = vmatprep.subr.bf16.mxu1 %v2003_v29 }
  0x55   : > { %1858 = vmatpush3.bf16.msra.mxu0 %v2003_v29 }
  0x56   : > { %1886 = vmatpush3.bf16.msra.mxu1 %v2003_v29  ;;  %1859 = vmatprep.subr.bf16.mxu0 %v2010_v32 }
  0x57   : > { %1213 = vmatmul.mubr.bf16.gmra.mrb[24].mxu0 %v2008_v30  ;;  %1879 = vmatprep.subr.bf16.mxu1 %v2010_v32 }
  0x58   : > { %1278 = vmatmul.mubr.bf16.gmra.mrb[24].mxu1 %v2009_v31  ;;  %1220 = vmatprep.mubr.bf16.mxu0 %v2012_v33 }
  0x59   : > { %1860 = vmatpush3.bf16.msra.mxu0 %v2010_v32  ;;  %1285 = vmatprep.mubr.bf16.mxu1 %v2014_v34 }
  0x5a   : > { %1887 = vmatpush3.bf16.msra.mxu1 %v2010_v32  ;;  %1861 = vmatprep.subr.bf16.mxu0 %v2011_v35 }
  0x5b   : > { %1880 = vmatprep.subr.bf16.mxu1 %v2011_v35 }
  0x5d   : > { %1862 = vmatpush3.bf16.msra.mxu0 %v2011_v35 }
  0x5e   : > { %1888 = vmatpush3.bf16.msra.mxu1 %v2011_v35  ;;  %1863 = vmatprep.subr.bf16.mxu0 %v2018_v37 }
  0x5f   : > { %1221 = vmatmul.mubr.bf16.gmra.mrb[28].mxu0 %v2016_v36  ;;  %1881 = vmatprep.subr.bf16.mxu1 %v2018_v37 }
  0x60   : > { %1286 = vmatmul.mubr.bf16.gmra.mrb[28].mxu1 %v2017_v38  ;;  %1867 = vmatprep.mubr.bf16.mxu0 %v2020_v39 }
  0x61   : > { %1864 = vmatpush3.bf16.msra.mxu0 %v2018_v37  ;;  %1871 = vmatprep.mubr.bf16.mxu1 %v2021_v40 }
  0x62   : > { %1889 = vmatpush3.bf16.msra.mxu1 %v2018_v37  ;;  %1865 = vmatprep.subr.bf16.mxu0 %v2019_v41 }
  0x63   : > { %1882 = vmatprep.subr.bf16.mxu1 %v2019_v41 }
  0x65   : > { %1866 = vmatpush3.bf16.msra.mxu0 %v2019_v41 }
  0x66   : > { %1890 = vmatpush3.bf16.msra.mxu1 %v2019_v41 }
  0x68   : > { %1868 = vmatmul.mubr.bf16.vlgmr.msra.gmra.mrb[32].mxu0 %v2022_v42 }
  0x69   : > { %1872 = vmatmul.mubr.bf16.vlgmr.msra.gmra.mrb[32].mxu1 %v2023_v43 }
  0xfa   : > { %v1695_v44 = vpop.f32.mrb[0].mxu0 }
  0xfb   : > { %v1735_v45 = vpop.f32.mrb[0].mxu1  ;;  %v1696_v47 = vpop.f32.mrb[1].mxu0 }
  0xfc   : > { %v1697_v48 = vadd.f32 %v1696_v47, %v1695_v44  ;;  %v1736_v49 = vpop.f32.mrb[1].mxu1  ;;  %v1698_v50 = vpop.f32.mrb[2].mxu0 }
  0xfd   : > { %v1737_v51 = vadd.f32 %v1736_v49, %v1735_v45  ;;  %v1738_v52 = vpop.f32.mrb[2].mxu1  ;;  %v1699_v53 = vpop.f32.mrb[3].mxu0 }
  0xfe   : > { %v1069_v54 = vadd.f32 %v1697_v48, %v1510_v46  ;;  %v1700_v55 = vadd.f32 %v1699_v53, %v1698_v50  ;;  %v1739_v56 = vpop.f32.mrb[3].mxu1 }
  0xff   : > { %v1740_v57 = vadd.f32 %v1739_v56, %v1738_v52 }
 0x100   : > { %v1134_v58 = vadd.f32 %v1737_v51, %v1069_v54  ;;  %v1072_v59 = vadd.f32 %v1700_v55, %v1510_v46 }
 0x102   : > { %v1137_v60 = vadd.f32 %v1740_v57, %v1072_v59  ;;  %v1701_v61 = vpop.f32.mrb[4].mxu0 }
 0x103   : > { %v1741_v62 = vpop.f32.mrb[4].mxu1  ;;  %v1702_v63 = vpop.f32.mrb[5].mxu0 }
 0x104   : > { %v1703_v0 = vadd.f32 %v1702_v63, %v1701_v61  ;;  %v1742_v1 = vpop.f32.mrb[5].mxu1  ;;  %v1704_v2 = vpop.f32.mrb[6].mxu0 }
 0x105   : > { %v1743_v3 = vadd.f32 %v1742_v1, %v1741_v62  ;;  %v1744_v4 = vpop.f32.mrb[6].mxu1  ;;  %v1705_v5 = vpop.f32.mrb[7].mxu0 }
 0x106   : > { %v1077_v6 = vadd.f32 %v1703_v0, %v1510_v46  ;;  %v1706_v7 = vadd.f32 %v1705_v5, %v1704_v2  ;;  %v1745_v8 = vpop.f32.mrb[7].mxu1 }
 0x107   : > { %v1746_v9 = vadd.f32 %v1745_v8, %v1744_v4 }
 0x108   : > { %v1142_v10 = vadd.f32 %v1743_v3, %v1077_v6  ;;  %v1080_v11 = vadd.f32 %v1706_v7, %v1510_v46 }
 0x10a   : > { %v1145_v12 = vadd.f32 %v1746_v9, %v1080_v11  ;;  %v1707_v13 = vpop.f32.mrb[8].mxu0 }
 0x10b   : > { %v1747_v14 = vpop.f32.mrb[8].mxu1  ;;  %v1708_v15 = vpop.f32.mrb[9].mxu0 }
 0x10c   : > { %v1709_v16 = vadd.f32 %v1708_v15, %v1707_v13  ;;  %v1748_v17 = vpop.f32.mrb[9].mxu1  ;;  %v1710_v18 = vpop.f32.mrb[10].mxu0 }
 0x10d   : > { %v1749_v19 = vadd.f32 %v1748_v17, %v1747_v14  ;;  %v1750_v20 = vpop.f32.mrb[10].mxu1  ;;  %v1711_v21 = vpop.f32.mrb[11].mxu0 }
 0x10e   : > { %v1085_v22 = vadd.f32 %v1709_v16, %v1510_v46  ;;  %v1712_v23 = vadd.f32 %v1711_v21, %v1710_v18  ;;  %v1751_v24 = vpop.f32.mrb[11].mxu1 }
 0x10f   : > { %v1752_v25 = vadd.f32 %v1751_v24, %v1750_v20 }
 0x110   : > { %v1150_v26 = vadd.f32 %v1749_v19, %v1085_v22  ;;  %v1088_v27 = vadd.f32 %v1712_v23, %v1510_v46 }
 0x112   : > { %v1153_v28 = vadd.f32 %v1752_v25, %v1088_v27  ;;  %v1713_v29 = vpop.f32.mrb[12].mxu0 }
 0x113   : > { %v1753_v30 = vpop.f32.mrb[12].mxu1  ;;  %v1714_v31 = vpop.f32.mrb[13].mxu0 }
 0x114   : > { %v1754_v32 = vpop.f32.mrb[13].mxu1  ;;  %v1715_v33 = vadd.f32 %v1714_v31, %v1713_v29  ;;  %v1716_v35 = vpop.f32.mrb[14].mxu0 }
 0x115   : > { %v1755_v34 = vadd.f32 %v1754_v32, %v1753_v30  ;;  %v1756_v36 = vpop.f32.mrb[14].mxu1  ;;  %v1717_v37 = vpop.f32.mrb[15].mxu0 }
 0x116   : > { %v1757_v38 = vpop.f32.mrb[15].mxu1  ;;  %v1093_v39 = vadd.f32 %v1715_v33, %v1510_v46  ;;  %v1718_v40 = vadd.f32 %v1717_v37, %v1716_v35 }
 0x117   : > { %v1758_v41 = vadd.f32 %v1757_v38, %v1756_v36 }
 0x118   : > { %v1158_v42 = vadd.f32 %v1755_v34, %v1093_v39  ;;  %v1096_v43 = vadd.f32 %v1718_v40, %v1510_v46 }
 0x11a   : > { %v2330_v44 = vadd.f32 %v1758_v41, %v1096_v43  ;;  %v1775_v45 = vpop.f32.mrb[16].mxu0 }
 0x11b   : > { %v1776_v47 = vpop.f32.mrb[17].mxu0  ;;  %v1815_v48 = vpop.f32.mrb[16].mxu1 }
 0x11c   : > { %v1777_v49 = vadd.f32 %v1776_v47, %v1775_v45  ;;  %v1778_v50 = vpop.f32.mrb[18].mxu0  ;;  %v1816_v51 = vpop.f32.mrb[17].mxu1  ;;  %v1673_v45 = vld [vmem:[%s218_s29 + $0x8] sm:$0xff]  }
 0x11d   : > { %v1779_v52 = vpop.f32.mrb[19].mxu0  ;;  %v1817_v54 = vadd.f32 %v1816_v51, %v1815_v48  ;;  %v1818_v55 = vpop.f32.mrb[18].mxu1  ;;  %v1675_v48 = vld [vmem:[%s218_s29 + $0x18] sm:$0xff]  }
 0x11e   : > { %v1199_v53 = vadd.f32 %v1777_v49, %v1134_v58  ;;  %v1780_v56 = vadd.f32 %v1779_v52, %v1778_v50  ;;  %v1819_v57 = vpop.f32.mrb[19].mxu1  ;;  %v1638_v49 = vld [vmem:[%s218_s29] sm:$0xff]   ;;  %v1674_v50 = vld [vmem:[%s218_s29 + $0x10] sm:$0xff]   ;;  %v1643_v52 = vunpack.c.l.bf16 %v1673_v45 }
 0x11f   : > { %v1820_v61 = vadd.f32 %v1819_v57, %v1818_v55  ;;  %v1639_v55 = vunpack.c.l.bf16 %v1638_v49 }
 0x120   : > { %v1202_v59 = vadd.f32 %v1780_v56, %v1137_v60  ;;  %v2332_v62 = vadd.f32 %v1817_v54, %v1199_v53  ;;  %v1651_v54 = vunpack.c.l.bf16 %v1675_v48 }
 0x122   : > { %v1781_v63 = vpop.f32.mrb[20].mxu0  ;;  %v2334_v46 = vadd.f32 %v1820_v61, %v1202_v59  ;;  %v1647_v59 = vunpack.c.l.bf16 %v1674_v50  ;;  %v1644_v61 = vunpack.c.h.bf16 %v1673_v45 }
 0x123   : > { %v1782_v0 = vpop.f32.mrb[21].mxu0  ;;  %v1821_v1 = vpop.f32.mrb[20].mxu1 }
 0x124   : > { %v1783_v2 = vadd.f32 %v1782_v0, %v1781_v63  ;;  %v1784_v3 = vpop.f32.mrb[22].mxu0  ;;  %v1822_v4 = vpop.f32.mrb[21].mxu1 }
 0x125   : > { %v1785_v5 = vpop.f32.mrb[23].mxu0  ;;  %v1823_v7 = vadd.f32 %v1822_v4, %v1821_v1  ;;  %v1824_v58 = vpop.f32.mrb[22].mxu1 }
 0x126   : > { %v1207_v6 = vadd.f32 %v1783_v2, %v1142_v10  ;;  %v1786_v8 = vadd.f32 %v1785_v5, %v1784_v3  ;;  %v1825_v9 = vpop.f32.mrb[23].mxu1  ;;  %v1652_v2 = vunpack.c.h.bf16 %v1675_v48  ;;  %v1640_v3 = vunpack.c.h.bf16 %v1638_v49 }
 0x127   : > { %v1826_v13 = vadd.f32 %v1825_v9, %v1824_v58 }
 0x128   : > { %v1210_v11 = vadd.f32 %v1786_v8, %v1145_v12  ;;  %v1272_v60 = vadd.f32 %v1823_v7, %v1207_v6  ;;  %v1648_v8 = vunpack.c.h.bf16 %v1674_v50 }
 0x12a   : > { %v1787_v14 = vpop.f32.mrb[24].mxu0  ;;  %v1275_v15 = vadd.f32 %v1826_v13, %v1210_v11 }
 0x12b   : > { %v1788_v16 = vpop.f32.mrb[25].mxu0  ;;  %v1827_v17 = vpop.f32.mrb[24].mxu1 }
 0x12c   : > { %v1789_v18 = vadd.f32 %v1788_v16, %v1787_v14  ;;  %v1790_v19 = vpop.f32.mrb[26].mxu0  ;;  %v1828_v20 = vpop.f32.mrb[25].mxu1 }
 0x12d   : > { %v1791_v21 = vpop.f32.mrb[27].mxu0  ;;  %v1829_v23 = vadd.f32 %v1828_v20, %v1827_v17  ;;  %v1830_v10 = vpop.f32.mrb[26].mxu1 }
 0x12e   : > { %v1215_v22 = vadd.f32 %v1789_v18, %v1150_v26  ;;  %v1792_v24 = vadd.f32 %v1791_v21, %v1790_v19  ;;  %v1831_v25 = vpop.f32.mrb[27].mxu1 }
 0x12f   : > { %v1832_v29 = vadd.f32 %v1831_v25, %v1830_v10 }
 0x130   : > { %v1218_v27 = vadd.f32 %v1792_v24, %v1153_v28  ;;  %v1280_v12 = vadd.f32 %v1829_v23, %v1215_v22 }
 0x132   : > { %v1793_v30 = vpop.f32.mrb[28].mxu0  ;;  %v1283_v31 = vadd.f32 %v1832_v29, %v1218_v27 }
 0x133   : > { %v1794_v32 = vpop.f32.mrb[29].mxu0  ;;  %v1833_v33 = vpop.f32.mrb[28].mxu1 }
 0x134   : > { %v1795_v34 = vadd.f32 %v1794_v32, %v1793_v30  ;;  %v1796_v35 = vpop.f32.mrb[30].mxu0  ;;  %v1834_v36 = vpop.f32.mrb[29].mxu1 }
 0x135   : > { %v1797_v37 = vpop.f32.mrb[31].mxu0  ;;  %v1835_v38 = vadd.f32 %v1834_v36, %v1833_v33  ;;  %v1836_v39 = vpop.f32.mrb[30].mxu1 }
 0x136   : > { %v1223_v26 = vadd.f32 %v1795_v34, %v1158_v42  ;;  %v1798_v28 = vadd.f32 %v1797_v37, %v1796_v35  ;;  %v1837_v40 = vpop.f32.mrb[31].mxu1 }
 0x137   : > { %v1838_v43 = vadd.f32 %v1837_v40, %v1836_v39 }
 0x138   : > { %v1226_v41 = vadd.f32 %v1798_v28, %v2330_v44  ;;  %v1288_v47 = vadd.f32 %v1835_v38, %v1223_v26 }
 0x13a   : > { %v1291_v51 = vadd.f32 %v1838_v43, %v1226_v41 }
 0x13b   : > { %v1869_v53 = vpop.f32.mrb[32].mxu0 }
 0x13c   : > { %v1337_v56 = vadd.f32 %v1869_v53, %v1272_v60  ;;  %v1873_v57 = vpop.f32.mrb[32].mxu1  ;;  %v1328_v42 = vpop.f32.mrb[33].mxu0 }
 0x13d   : > { %v1353_v63 = vadd.f32 %v1873_v57, %v1288_v47  ;;  %v1329_v0 = vadd.f32 %v1328_v42, %v2332_v62  ;;  %v1344_v44 = vpop.f32.mrb[33].mxu1  ;;  %v1870_v1 = vpop.f32.mrb[34].mxu0 }
 0x13e   : > { %v1377_v4 = vadd.f32 %v1643_v52, %v1337_v56  ;;  %v1345_v5 = vadd.f32 %v1344_v44, %v1280_v12  ;;  %v1340_v6 = vadd.f32 %v1870_v1, %v1275_v15  ;;  %v1874_v7 = vpop.f32.mrb[34].mxu1  ;;  %v1331_v58 = vpop.f32.mrb[35].mxu0 }
 0x13f   : > { %v1381_v9 = vadd.f32 %v1651_v54, %v1353_v63  ;;  %v1375_v11 = vadd.f32 %v1639_v55, %v1329_v0  ;;  %v1356_v13 = vadd.f32 %v1874_v7, %v1291_v51  ;;  %v1332_v60 = vadd.f32 %v1331_v58, %v2334_v46  ;;  %v1347_v14 = vpop.f32.mrb[35].mxu1 }
 0x140   : > { %v1379_v16 = vadd.f32 %v1647_v59, %v1345_v5  ;;  %v1378_v17 = vadd.f32 %v1644_v61, %v1340_v6  ;;  %v1348_v62 = vadd.f32 %v1347_v14, %v1283_v31  ;;  %v1385_v20 = vmax.f32 %v1377_v4, 0.0 }
 0x141   : > { %v1382_v18 = vadd.f32 %v1652_v2, %v1356_v13  ;;  %v1376_v19 = vadd.f32 %v1640_v3, %v1332_v60  ;;  %v1389_v23 = vmax.f32 %v1381_v9, 0.0  ;;  %v1383_v15 = vmax.f32 %v1375_v11, 0.0 }
 0x142   : > { %v1386_v21 = vmax.f32 %v1378_v17, 0.0  ;;  %v1380_v22 = vadd.f32 %v1648_v8, %v1348_v62  ;;  %v1387_v25 = vmax.f32 %v1379_v16, 0.0 }
 0x143   : > { %v1390_v10 = vmax.f32 %v1382_v18, 0.0  ;;  %v1384_v24 = vmax.f32 %v1376_v19, 0.0 }
 0x144   : > { %v1661_v46 = vpack.c.bf16 %v1386_v21, %v1385_v20  ;;  %v1388_v27 = vmax.f32 %v1380_v22, 0.0 }
 0x145   : > { %v1671_v29 = vpack.c.bf16 %v1390_v10, %v1389_v23  ;;  %v1656_v12 = vpack.c.bf16 %v1384_v24, %v1383_v15 }
 0x146   : > { %1676 = vst [vmem:[%s224_s16 + $0x8] sm:$0xff] %v1661_v46   ;;  %v1666_v30 = vpack.c.bf16 %v1388_v27, %v1387_v25 }
 0x147   : > { %1678 = vst [vmem:[%s224_s16 + $0x18] sm:$0xff] %v1671_v29   ;;  %1657 = vst [vmem:[%s224_s16] sm:$0xff] %v1656_v12  }
 0x148   : > { %1677 = vst [vmem:[%s224_s16 + $0x10] sm:$0xff] %v1666_v30  }
 0x149 PF: > { %s14_s15 = sadd.s32 1, %s2030_s15  }
 0x14a   : > { %p11_p4 = scmp.ge.s32.totalorder %s14_s15, 4  }
 0x14c   :  { %13 = sbr.rel (!%p11_p4) target bundleno = 1 (0x1), region = 69 }

// kernel: _lambda_.14
= control target key start
LH: loop header
LB: loop body
LE: loop exit
PB: predicated region body
PF: predicated region fallthrough
CT: control target
= control target key end

     0   :  { %s1768_s21 = smov 0   ;;  %s2052_s0 = inlined_call_operand.vmem [shape: bf16[32,1152], index: 0, kind: input, shape index: {}]   ;;  %s2053_s1 = inlined_call_operand.vmem [shape: bf16[1152,128], index: 1, kind: input, shape index: {}]   ;;  %s2054_s2 = inlined_call_operand.vmem [shape: f32[1,128], index: 2, kind: input, shape index: {}]   ;;  %s2055_s3 = inlined_call_operand.vmem [shape: bf16[128,128], index: 3, kind: input, shape index: {}]   ;;  %s2056_s4 = inlined_call_operand.vmem [shape: f32[1,128], index: 4, kind: input, shape index: {}]   ;;  %s2057_s5 = inlined_call_operand.vmem [shape: bf16[32,128], index: 5, kind: output, shape index: {0}]   ;;  %s2058_s6 = inlined_call_operand.vmem [shape: bf16[32,128], index: 6, kind: output, shape index: {1}]  }
   0x1 LB: > { %s1349_s22 = sadd.s32 4294967295, %s1729_s21   ;;  %p1353_p0 = scmp.ge.s32.totalorder %s1729_s21, 1  ;;  %s1729_s21 = sphi %s1768_s21, %s17_s21  }
   0x2   : > { %p217_p1 = scmp.lt.s32.totalorder %s1729_s21, 3 }
   0x4   : > { %p218_p2 = pnand %p1353_p0, %p217_p1 }
   0x5   : > { %v1629_v0 = vld [vmem:[%s2053_s1 + $0x40] sm:$0xff] (!%p218_p2)   ;;  %v1633_v4 = vld [vmem:[%s2053_s1 + $0x48] sm:$0xff] (!%p218_p2)   ;;  %v1637_v8 = vld [vmem:[%s2053_s1 + $0x50] sm:$0xff] (!%p218_p2)   ;;  %s1354_s7 = sshll.u32 (!%p218_p2), %s1349_s22, 1  ;;  %vm1732_vm0 = vmmov (!%p218_p2), 0  }
   0x6   : > { %221 = sbr.rel (%p218_p2) target bundleno = 325 (0x145), region = 40  ;;  %v1630_v1 = vld [vmem:[%s2053_s1 + $0xc0] sm:$0xff] (!%p218_p2)   ;;  %1472 = vmatprep.subr.bf16.mxu0 (!%p218_p2), %v1629_v0  ;;  %v1634_v5 = vld [vmem:[%s2053_s1 + $0xc8] sm:$0xff] (!%p218_p2)   ;;  %v1638_v9 = vld [vmem:[%s2053_s1 + $0xd0] sm:$0xff] (!%p218_p2)   ;;  %p254_p3 = scmp.lt.s32.totalorder (!%p218_p2), %s1354_s7, 3 }
   0x7   : > { %v1631_v2 = vld [vmem:[%s2053_s1] sm:$0xff] (!%p218_p2)   ;;  %1494 = vmatprep.subr.bf16.mxu1 (!%p218_p2), %v1630_v1  ;;  %v1635_v6 = vld [vmem:[%s2053_s1 + $0x8] sm:$0xff] (!%p218_p2)   ;;  %v1639_v10 = vld [vmem:[%s2053_s1 + $0x10] sm:$0xff] (!%p218_p2)  }
   0x8   : > { %v1632_v3 = vld [vmem:[%s2053_s1 + $0x80] sm:$0xff] (!%p218_p2)   ;;  %1473 = vmatpush3.bf16.msra.mxu0 (!%p218_p2), %v1631_v2  ;;  %v1636_v7 = vld [vmem:[%s2053_s1 + $0x88] sm:$0xff] (!%p218_p2)   ;;  %v1640_v11 = vld [vmem:[%s2053_s1 + $0x90] sm:$0xff] (!%p218_p2)  }
   0x9   : > { %1495 = vmatpush3.bf16.msra.mxu1 (!%p218_p2), %v1632_v3  ;;  %1474 = vmatprep.subr.bf16.mxu0 (!%p218_p2), %v1633_v4  ;;  %v1641_v12 = vld [vmem:[%s2053_s1 + $0x58] sm:$0xff] (!%p218_p2)   ;;  %v1645_v16 = vld [vmem:[%s2053_s1 + $0x60] sm:$0xff] (!%p218_p2)   ;;  %v1649_v20 = vld [vmem:[%s2053_s1 + $0x68] sm:$0xff] (!%p218_p2)  }
   0xa   : > { %1496 = vmatprep.subr.bf16.mxu1 (!%p218_p2), %v1634_v5  ;;  %v1642_v13 = vld [vmem:[%s2053_s1 + $0xd8] sm:$0xff] (!%p218_p2)   ;;  %v1646_v17 = vld [vmem:[%s2053_s1 + $0xe0] sm:$0xff] (!%p218_p2)   ;;  %v1650_v21 = vld [vmem:[%s2053_s1 + $0xe8] sm:$0xff] (!%p218_p2)  }
   0xb   : > { %v1643_v14 = vld [vmem:[%s2053_s1 + $0x18] sm:$0xff] (!%p218_p2)   ;;  %v1647_v18 = vld [vmem:[%s2053_s1 + $0x20] sm:$0xff] (!%p218_p2)   ;;  %v1651_v22 = vld [vmem:[%s2053_s1 + $0x28] sm:$0xff] (!%p218_p2)  }
   0xc   : > { %1475 = vmatpush3.bf16.msra.mxu0 (!%p218_p2), %v1635_v6  ;;  %v1644_v15 = vld [vmem:[%s2053_s1 + $0x98] sm:$0xff] (!%p218_p2)   ;;  %v1648_v19 = vld [vmem:[%s2053_s1 + $0xa0] sm:$0xff] (!%p218_p2)   ;;  %v1652_v23 = vld [vmem:[%s2053_s1 + $0xa8] sm:$0xff] (!%p218_p2)  }
   0xd   : > { %1497 = vmatpush3.bf16.msra.mxu1 %v1636_v7  ;;  %1476 = vmatprep.subr.bf16.mxu0 %v1637_v8  ;;  %s2060_s7 = smov (!%p254_p3, %s1354_s7), 3  ;;  %v1653_v24 = vld [vmem:[%s2053_s1 + $0x70] sm:$0xff]   ;;  %v1657_v28 = vld [vmem:[%s2053_s1 + $0x78] sm:$0xff]   ;;  %v1667_v36 = vld [vmem:[%s2053_s1 + $0x140] sm:$0xff]   ;;  %v1731_v7 = vmov 0.0  }
   0xe   : > { %1498 = vmatprep.subr.bf16.mxu1 %v1638_v9  ;;  %v1654_v25 = vld [vmem:[%s2053_s1 + $0xf0] sm:$0xff]   ;;  %s1618_s8 = smul.u32 36, %s2060_s7  ;;  %v1658_v29 = vld [vmem:[%s2053_s1 + $0xf8] sm:$0xff]   ;;  %v1668_v37 = vld [vmem:[%s2053_s1 + $0x1c0] sm:$0xff]   ;;  %s1357_s16 = sshll.u32 %s2060_s7, 2 }
   0xf   : > { %v1655_v26 = vld [vmem:[%s2053_s1 + $0x30] sm:$0xff]   ;;  %v1659_v30 = vld [vmem:[%s2053_s1 + $0x38] sm:$0xff]   ;;  %v1669_v38 = vld [vmem:[%s2053_s1 + $0x100] sm:$0xff]   ;;  %s270_s20 = scalar_lea.vmem %s2058_s6, %s1357_s16  ;;  %s264_s25 = scalar_lea.vmem %s2057_s5, %s1357_s16 }
  0x10   : > { %1477 = vmatpush3.bf16.msra.mxu0 %v1639_v10  ;;  %v1656_v27 = vld [vmem:[%s2053_s1 + $0xb0] sm:$0xff]   ;;  %s1874_s18 = scalar_lea.vmem %s2052_s0, %s1618_s8  ;;  %v1660_v31 = vld [vmem:[%s2053_s1 + $0xb8] sm:$0xff]   ;;  %v1670_v39 = vld [vmem:[%s2053_s1 + $0x180] sm:$0xff]  }
  0x11   : > { %1499 = vmatpush3.bf16.msra.mxu1 %v1640_v11  ;;  %1478 = vmatprep.subr.bf16.mxu0 %v1641_v12  ;;  %v1661_v32 = vld [vmem:[%s1874_s18] ss:$36 sps:$4 sm:$0xff]   ;;  %v1664_v34 = vld [vmem:[%s1874_s18 + $0x8] ss:$36 sps:$4 sm:$0xff]   ;;  %v1675_v44 = vld [vmem:[%s2053_s1 + $0x150] sm:$0xff]  }
  0x12   : > { %1500 = vmatprep.subr.bf16.mxu1 %v1642_v13  ;;  %v1663_v33 = vld [vmem:[%s1874_s18 + $0x4] ss:$36 sps:$4 sm:$0xff]   ;;  %v1666_v35 = vld [vmem:[%s1874_s18 + $0xc] ss:$36 sps:$4 sm:$0xff]   ;;  %v1679_v48 = vld [vmem:[%s2053_s1 + $0x158] sm:$0xff]  }
  0x13   : > { %944 = vmatprep.mubr.bf16.mxu0 %v1663_v33  ;;  %985 = vmatprep.mubr.bf16.mxu1 %v1666_v35  ;;  %v1671_v40 = vld [vmem:[%s2053_s1 + $0x148] sm:$0xff]   ;;  %v1676_v45 = vld [vmem:[%s2053_s1 + $0x1d0] sm:$0xff]   ;;  %v1680_v49 = vld [vmem:[%s2053_s1 + $0x1d8] sm:$0xff]  }
  0x14   : > { %1479 = vmatpush3.bf16.msra.mxu0 %v1643_v14  ;;  %v1672_v41 = vld [vmem:[%s2053_s1 + $0x1c8] sm:$0xff]   ;;  %v1677_v46 = vld [vmem:[%s2053_s1 + $0x110] sm:$0xff]   ;;  %v1681_v50 = vld [vmem:[%s2053_s1 + $0x118] sm:$0xff]  }
  0x15   : > { %1501 = vmatpush3.bf16.msra.mxu1 %v1644_v15  ;;  %1480 = vmatprep.subr.bf16.mxu0 %v1645_v16  ;;  %v1673_v42 = vld [vmem:[%s2053_s1 + $0x108] sm:$0xff]   ;;  %v1678_v47 = vld [vmem:[%s2053_s1 + $0x190] sm:$0xff]   ;;  %v1682_v51 = vld [vmem:[%s2053_s1 + $0x198] sm:$0xff]  }
  0x16   : > { %1502 = vmatprep.subr.bf16.mxu1 %v1646_v17  ;;  %v1674_v43 = vld [vmem:[%s2053_s1 + $0x188] sm:$0xff]   ;;  %v1683_v52 = vld [vmem:[%s2053_s1 + $0x160] sm:$0xff]   ;;  %v1691_v60 = vld [vmem:[%s2053_s1 + $0x170] sm:$0xff]  }
  0x17   : > { %v1684_v53 = vld [vmem:[%s2053_s1 + $0x1e0] sm:$0xff]   ;;  %v1687_v56 = vld [vmem:[%s2053_s1 + $0x168] sm:$0xff]   ;;  %v1692_v61 = vld [vmem:[%s2053_s1 + $0x1f0] sm:$0xff]  }
  0x18   : > { %1481 = vmatpush3.bf16.msra.mxu0 %v1647_v18  ;;  %v1685_v54 = vld [vmem:[%s2053_s1 + $0x120] sm:$0xff]   ;;  %v1688_v57 = vld [vmem:[%s2053_s1 + $0x1e8] sm:$0xff]   ;;  %v1693_v62 = vld [vmem:[%s2053_s1 + $0x130] sm:$0xff]  }
  0x19   : > { %1503 = vmatpush3.bf16.msra.mxu1 %v1648_v19  ;;  %1482 = vmatprep.subr.bf16.mxu0 %v1649_v20  ;;  %v1686_v55 = vld [vmem:[%s2053_s1 + $0x1a0] sm:$0xff]   ;;  %v1689_v58 = vld [vmem:[%s2053_s1 + $0x128] sm:$0xff]   ;;  %v1694_v63 = vld [vmem:[%s2053_s1 + $0x1b0] sm:$0xff]  }
  0x1a   : > { %1504 = vmatprep.subr.bf16.mxu1 %v1650_v21  ;;  %v1690_v59 = vld [vmem:[%s2053_s1 + $0x1a8] sm:$0xff]   ;;  %v1695_v0 = vld [vmem:[%s2053_s1 + $0x178] sm:$0xff]   ;;  %v1699_v4 = vld [vmem:[%s1874_s18 + $0x10] ss:$36 sps:$4 sm:$0xff]  }
  0x1b   : > { %v1696_v1 = vld [vmem:[%s2053_s1 + $0x1f8] sm:$0xff]   ;;  %v1705_v9 = vld [vmem:[%s2053_s1 + $0x200] sm:$0xff]   ;;  %v1707_v11 = vld [vmem:[%s2053_s1 + $0x208] sm:$0xff]  }
  0x1c   : > { %1483 = vmatpush3.bf16.msra.mxu0 %v1651_v22  ;;  %v1697_v2 = vld [vmem:[%s2053_s1 + $0x138] sm:$0xff]   ;;  %v1706_v10 = vld [vmem:[%s2055_s3] sm:$0xff]   ;;  %v1708_v12 = vld [vmem:[%s2055_s3 + $0x8] sm:$0xff]  }
  0x1d   : > { %1505 = vmatpush3.bf16.msra.mxu1 %v1652_v23  ;;  %1484 = vmatprep.subr.bf16.mxu0 %v1653_v24  ;;  %v1698_v3 = vld [vmem:[%s2053_s1 + $0x1b8] sm:$0xff]   ;;  %v1709_v13 = vld [vmem:[%s2053_s1 + $0x210] sm:$0xff]   ;;  %v1713_v17 = vld [vmem:[%s2053_s1 + $0x220] sm:$0xff]  }
  0x1e   : > { %1506 = vmatprep.subr.bf16.mxu1 %v1654_v25  ;;  %v1701_v5 = vld [vmem:[%s1874_s18 + $0x14] ss:$36 sps:$4 sm:$0xff]   ;;  %v1704_v8 = vld [vmem:[%s1874_s18 + $0x1c] ss:$36 sps:$4 sm:$0xff]   ;;  %v1715_v19 = vld [vmem:[%s2053_s1 + $0x228] sm:$0xff]  }
  0x1f   : > { %v1702_v6 = vld [vmem:[%s1874_s18 + $0x18] ss:$36 sps:$4 sm:$0xff]   ;;  %v1710_v14 = vld [vmem:[%s2055_s3 + $0x10] sm:$0xff]   ;;  %v1714_v18 = vld [vmem:[%s2055_s3 + $0x20] sm:$0xff]  }
  0x20   : > { %1485 = vmatpush3.bf16.msra.mxu0 %v1655_v26  ;;  %v1711_v15 = vld [vmem:[%s2053_s1 + $0x218] sm:$0xff]   ;;  %v1716_v20 = vld [vmem:[%s2055_s3 + $0x28] sm:$0xff]   ;;  %v1717_v21 = vld [vmem:[%s2053_s1 + $0x230] sm:$0xff]  }
  0x21   : > { %1507 = vmatpush3.bf16.msra.mxu1 %v1656_v27  ;;  %1486 = vmatprep.subr.bf16.mxu0 %v1657_v28  ;;  %v1712_v16 = vld [vmem:[%s2055_s3 + $0x18] sm:$0xff]   ;;  %v1718_v22 = vld [vmem:[%s2055_s3 + $0x30] sm:$0xff]   ;;  %v1721_v25 = vld [vmem:[%s1874_s18 + $0x20] ss:$36 sps:$4 sm:$0xff]  }
  0x22   : > { %1508 = vmatprep.subr.bf16.mxu1 %v1658_v29  ;;  %v1719_v23 = vld [vmem:[%s2053_s1 + $0x238] sm:$0xff]   ;;  %v1722_v26 = vld [vmem:[%s1874_s18 + $0x10] ss:$36 sps:$4 sm:$0xff]   ;;  %v1360_v29 = vld [vmem:[%s2054_s2] ss:$0 sm:$0xff] }
  0x23   : > { %v1720_v24 = vld [vmem:[%s2055_s3 + $0x38] sm:$0xff]  }
  0x24   : > { %1487 = vmatpush3.bf16.msra.mxu0 %v1659_v30 }
  0x25   : > { %1509 = vmatpush3.bf16.msra.mxu1 %v1660_v31  ;;  %1516 = vmatprep.subr.bf16.mxu0 %v1667_v36 }
  0x26   : > { %1538 = vmatprep.subr.bf16.mxu1 %v1668_v37 }
  0x27   : > { %945 = vmatmul.mubr.bf16.vlgmr.msra.gmra.mrb[0].mxu0 %v1661_v32 }
  0x28   : > { %986 = vmatmul.mubr.bf16.vlgmr.msra.gmra.mrb[0].mxu1 %v1664_v34  ;;  %1517 = vmatpush3.bf16.msra.mxu0 %v1669_v38 }
  0x29   : > { %1539 = vmatpush3.bf16.msra.mxu1 %v1670_v39  ;;  %1518 = vmatprep.subr.bf16.mxu0 %v1671_v40 }
  0x2a   : > { %1540 = vmatprep.subr.bf16.mxu1 %v1672_v41  ;;  %1026 = vmatprep.mubr.bf16.mxu0 %v1701_v5 }
  0x2b   : > { %1067 = vmatprep.mubr.bf16.mxu1 %v1704_v8 }
  0x2c   : > { %1519 = vmatpush3.bf16.msra.mxu0 %v1673_v42 }
  0x2d   : > { %1541 = vmatpush3.bf16.msra.mxu1 %v1674_v43  ;;  %1520 = vmatprep.subr.bf16.mxu0 %v1675_v44 }
  0x2e   : > { %1542 = vmatprep.subr.bf16.mxu1 %v1676_v45 }
  0x30   : > { %1521 = vmatpush3.bf16.msra.mxu0 %v1677_v46 }
  0x31   : > { %1543 = vmatpush3.bf16.msra.mxu1 %v1678_v47  ;;  %1522 = vmatprep.subr.bf16.mxu0 %v1679_v48 }
  0x32   : > { %1544 = vmatprep.subr.bf16.mxu1 %v1680_v49 }
  0x34   : > { %1523 = vmatpush3.bf16.msra.mxu0 %v1681_v50 }
  0x35   : > { %1545 = vmatpush3.bf16.msra.mxu1 %v1682_v51  ;;  %1524 = vmatprep.subr.bf16.mxu0 %v1683_v52 }
  0x36   : > { %1546 = vmatprep.subr.bf16.mxu1 %v1684_v53 }
  0x38   : > { %1525 = vmatpush3.bf16.msra.mxu0 %v1685_v54 }
  0x39   : > { %1547 = vmatpush3.bf16.msra.mxu1 %v1686_v55  ;;  %1526 = vmatprep.subr.bf16.mxu0 %v1687_v56 }
  0x3a   : > { %1548 = vmatprep.subr.bf16.mxu1 %v1688_v57 }
  0x3c   : > { %1527 = vmatpush3.bf16.msra.mxu0 %v1689_v58 }
  0x3d   : > { %1549 = vmatpush3.bf16.msra.mxu1 %v1690_v59  ;;  %1528 = vmatprep.subr.bf16.mxu0 %v1691_v60  ;;  %v1444_v60 = vld [vmem:[%s2056_s4] ss:$0 sm:$0xff] }
  0x3e   : > { %1550 = vmatprep.subr.bf16.mxu1 %v1692_v61 }
  0x40   : > { %1529 = vmatpush3.bf16.msra.mxu0 %v1693_v62 }
  0x41   : > { %1551 = vmatpush3.bf16.msra.mxu1 %v1694_v63  ;;  %1530 = vmatprep.subr.bf16.mxu0 %v1695_v0 }
  0x42   : > { %1552 = vmatprep.subr.bf16.mxu1 %v1696_v1 }
  0x44   : > { %1531 = vmatpush3.bf16.msra.mxu0 %v1697_v2 }
  0x45   : > { %1553 = vmatpush3.bf16.msra.mxu1 %v1698_v3  ;;  %1578 = vmatprep.subr.bf16.mxu0 %v1731_v7 }
  0x46   : > { %1598 = vmatprep.subr.bf16.mxu1 %v1731_v7 }
  0x47   : > { %1027 = vmatmul.mubr.bf16.vlgmr.msra.gmra.mrb[4].mxu0 %v1699_v4 }
  0x48   : > { %1594 = vmatprep.mubr.msk.bf16.mxu0 %vm1732_vm0, %v1731_v7  ;;  %1068 = vmatmul.mubr.bf16.vlgmr.msra.gmra.mrb[4].mxu1 %v1702_v6 }
  0x49   : > { %1579 = vmatpush3.bf16.msra.mxu0 %v1705_v9  ;;  %1599 = vmatpush3.bf16.msra.mxu1 %v1706_v10 }
  0x4a   : > { %1580 = vmatprep.subr.bf16.mxu0 %v1731_v7  ;;  %1600 = vmatprep.subr.bf16.mxu1 %v1731_v7 }
  0x4b   : > { %1614 = vmatprep.mubr.msk.bf16.mxu1 %vm1732_vm0, %v1731_v7 }
  0x4d   : > { %1581 = vmatpush3.bf16.msra.mxu0 %v1707_v11  ;;  %1601 = vmatpush3.bf16.msra.mxu1 %v1708_v12 }
  0x4e   : > { %1582 = vmatprep.subr.bf16.mxu0 %v1731_v7  ;;  %1602 = vmatprep.subr.bf16.mxu1 %v1731_v7 }
  0x51   : > { %1583 = vmatpush3.bf16.msra.mxu0 %v1709_v13  ;;  %1603 = vmatpush3.bf16.msra.mxu1 %v1710_v14 }
  0x52   : > { %1584 = vmatprep.subr.bf16.mxu0 %v1731_v7  ;;  %1604 = vmatprep.subr.bf16.mxu1 %v1731_v7 }
  0x55   : > { %1585 = vmatpush3.bf16.msra.mxu0 %v1711_v15  ;;  %1605 = vmatpush3.bf16.msra.mxu1 %v1712_v16 }
  0x56   : > { %1586 = vmatprep.subr.bf16.mxu0 %v1731_v7  ;;  %1606 = vmatprep.subr.bf16.mxu1 %v1731_v7 }
  0x59   : > { %1587 = vmatpush3.bf16.msra.mxu0 %v1713_v17  ;;  %1607 = vmatpush3.bf16.msra.mxu1 %v1714_v18 }
  0x5a   : > { %1588 = vmatprep.subr.bf16.mxu0 %v1731_v7  ;;  %1608 = vmatprep.subr.bf16.mxu1 %v1731_v7 }
  0x5d   : > { %1589 = vmatpush3.bf16.msra.mxu0 %v1715_v19  ;;  %1609 = vmatpush3.bf16.msra.mxu1 %v1716_v20 }
  0x5e   : > { %1590 = vmatprep.subr.bf16.mxu0 %v1731_v7  ;;  %1610 = vmatprep.subr.bf16.mxu1 %v1731_v7 }
  0x61   : > { %1591 = vmatpush3.bf16.msra.mxu0 %v1717_v21  ;;  %1611 = vmatpush3.bf16.msra.mxu1 %v1718_v22 }
  0x62   : > { %1592 = vmatprep.subr.bf16.mxu0 %v1731_v7  ;;  %1612 = vmatprep.subr.bf16.mxu1 %v1731_v7 }
  0x65   : > { %1593 = vmatpush3.bf16.msra.mxu0 %v1719_v23  ;;  %1613 = vmatpush3.bf16.msra.mxu1 %v1720_v24 }
  0x68   : > { %1595 = vmatmul.mubr.bf16.vlgmr.msra.gmra.mrb[8].mxu0 %v1721_v25  ;;  %1615 = vmatmul.mubr.bf16.vlgmr.msra.gmra.mrb[8].mxu1 %v1722_v26 }
  0xfa   : > { %v1488_v27 = vpop.f32.mrb[0].mxu0 }
  0xfb   : > { %v1510_v28 = vpop.f32.mrb[0].mxu1  ;;  %v1489_v30 = vpop.f32.mrb[1].mxu0 }
  0xfc   : > { %v1490_v31 = vadd.f32 %v1489_v30, %v1488_v27  ;;  %v1511_v32 = vpop.f32.mrb[1].mxu1  ;;  %v1491_v33 = vpop.f32.mrb[2].mxu0 }
  0xfd   : > { %v1512_v34 = vadd.f32 %v1511_v32, %v1510_v28  ;;  %v1513_v35 = vpop.f32.mrb[2].mxu1  ;;  %v1492_v36 = vpop.f32.mrb[3].mxu0 }
  0xfe   : > { %v947_v37 = vadd.f32 %v1490_v31, %v1360_v29  ;;  %v1493_v38 = vadd.f32 %v1492_v36, %v1491_v33  ;;  %v1514_v39 = vpop.f32.mrb[3].mxu1 }
  0xff   : > { %v1515_v40 = vadd.f32 %v1514_v39, %v1513_v35 }
 0x100   : > { %v988_v41 = vadd.f32 %v1512_v34, %v947_v37  ;;  %v950_v42 = vadd.f32 %v1493_v38, %v1360_v29 }
 0x102   : > { %v991_v43 = vadd.f32 %v1515_v40, %v950_v42 }
 0x11a   : > { %v1532_v44 = vpop.f32.mrb[4].mxu0 }
 0x11b   : > { %v1533_v45 = vpop.f32.mrb[5].mxu0  ;;  %v1554_v46 = vpop.f32.mrb[4].mxu1 }
 0x11c   : > { %v1534_v47 = vadd.f32 %v1533_v45, %v1532_v44  ;;  %v1535_v48 = vpop.f32.mrb[6].mxu0  ;;  %v1555_v49 = vpop.f32.mrb[5].mxu1 }
 0x11d   : > { %v1536_v50 = vpop.f32.mrb[7].mxu0  ;;  %v1556_v52 = vadd.f32 %v1555_v49, %v1554_v46  ;;  %v1557_v53 = vpop.f32.mrb[6].mxu1 }
 0x11e   : > { %v1029_v51 = vadd.f32 %v1534_v47, %v988_v41  ;;  %v1537_v54 = vadd.f32 %v1536_v50, %v1535_v48  ;;  %v1558_v55 = vpop.f32.mrb[7].mxu1 }
 0x11f   : > { %v1559_v57 = vadd.f32 %v1558_v55, %v1557_v53 }
 0x120   : > { %v1032_v56 = vadd.f32 %v1537_v54, %v991_v43  ;;  %v1070_v58 = vadd.f32 %v1556_v52, %v1029_v51 }
 0x122   : > { %v1073_v59 = vadd.f32 %v1559_v57, %v1032_v56 }
 0x13b   : > { %v1110_v61 = vpop.f32.mrb[8].mxu0  ;;  %v1242_v63 = vpop.f32.mrb[8].mxu1 }
 0x13c   : > { %v1111_v62 = vadd.f32 %v1110_v61, %v1070_v58  ;;  %v1596_v0 = vpop.f32.mrb[9].mxu0  ;;  %v1243_v1 = vadd.f32 %v1444_v60, %v1242_v63  ;;  %v1616_v2 = vpop.f32.mrb[9].mxu1 }
 0x13d   : > { %v1113_v3 = vpop.f32.mrb[10].mxu0  ;;  %v1245_v5 = vpop.f32.mrb[10].mxu1 }
 0x13e   : > { %v1114_v4 = vadd.f32 %v1113_v3, %v1073_v59  ;;  %v1597_v6 = vpop.f32.mrb[11].mxu0  ;;  %v1246_v7 = vadd.f32 %v1444_v60, %v1245_v5  ;;  %v1617_v8 = vpop.f32.mrb[11].mxu1  ;;  %v1117_v9 = vmax.f32 %v1111_v62, 0.0 }
 0x140   : > { %v1118_v10 = vmax.f32 %v1114_v4, 0.0  ;;  %v1470_v11 = vpack.c.bf16 %v1246_v7, %v1243_v1 }
 0x142   : > { %v1465_v12 = vpack.c.bf16 %v1118_v10, %v1117_v9  ;;  %1471 = vst [vmem:[%s270_s20] sm:$0xff] %v1470_v11  }
 0x144   : > { %1466 = vst [vmem:[%s264_s25] sm:$0xff] %v1465_v12  }
 0x145 PF: > { %s17_s21 = sadd.s32 1, %s1729_s21  }
 0x146   : > { %p14_p4 = scmp.ge.s32.totalorder %s17_s21, 4  }
 0x148   :  { %16 = sbr.rel (!%p14_p4) target bundleno = 1 (0x1), region = 82 }

// kernel: _lambda_.15
= control target key start
LH: loop header
LB: loop body
LE: loop exit
PB: predicated region body
PF: predicated region fallthrough
CT: control target
= control target key end

     0   :  { %s1513_s15 = smov 0   ;;  %s1769_s0 = inlined_call_operand.vmem [shape: bf16[32,1152], index: 0, kind: input, shape index: {}]   ;;  %s1770_s1 = inlined_call_operand.vmem [shape: bf16[1152,128], index: 1, kind: input, shape index: {}]   ;;  %s1771_s2 = inlined_call_operand.vmem [shape: f32[1,128], index: 2, kind: input, shape index: {}]   ;;  %s1772_s3 = inlined_call_operand.vmem [shape: bf16[32,128], index: 3, kind: input, shape index: {}]   ;;  %s1773_s4 = inlined_call_operand.vmem [shape: bf16[32,128], index: 4, kind: output, shape index: {}]  }
   0x1 LB: > { %s1157_s16 = sadd.s32 4294967295, %s1484_s15   ;;  %p1161_p0 = scmp.ge.s32.totalorder %s1484_s15, 1  ;;  %s1484_s15 = sphi %s1513_s15, %s14_s15  }
   0x2   : > { %p175_p1 = scmp.lt.s32.totalorder %s1484_s15, 3 }
   0x4   : > { %p176_p2 = pnand %p1161_p0, %p175_p1 }
   0x5   : > { %v1393_v0 = vld [vmem:[%s1770_s1 + $0x40] sm:$0xff] (!%p176_p2)   ;;  %v1397_v4 = vld [vmem:[%s1770_s1 + $0x48] sm:$0xff] (!%p176_p2)   ;;  %v1401_v8 = vld [vmem:[%s1770_s1 + $0x50] sm:$0xff] (!%p176_p2)   ;;  %s1162_s21 = sshll.u32 (!%p176_p2), %s1157_s16, 1  ;;  %vm1487_vm0 = vmmov (!%p176_p2), 0  }
   0x6   : > { %179 = sbr.rel (%p176_p2) target bundleno = 325 (0x145), region = 36  ;;  %v1394_v1 = vld [vmem:[%s1770_s1] sm:$0xff] (!%p176_p2)   ;;  %1265 = vmatprep.subr.bf16.mxu0 (!%p176_p2), %v1393_v0  ;;  %v1398_v5 = vld [vmem:[%s1770_s1 + $0x8] sm:$0xff] (!%p176_p2)   ;;  %v1402_v9 = vld [vmem:[%s1770_s1 + $0x10] sm:$0xff] (!%p176_p2)   ;;  %p208_p3 = scmp.lt.s32.totalorder (!%p176_p2), %s1162_s21, 3 }
   0x7   : > { %v1395_v2 = vld [vmem:[%s1770_s1 + $0xc0] sm:$0xff] (!%p176_p2)   ;;  %1266 = vmatpush3.bf16.msra.mxu0 (!%p176_p2), %v1394_v1  ;;  %v1399_v6 = vld [vmem:[%s1770_s1 + $0xc8] sm:$0xff] (!%p176_p2)   ;;  %v1403_v10 = vld [vmem:[%s1770_s1 + $0xd0] sm:$0xff] (!%p176_p2)  }
   0x8   : > { %v1396_v3 = vld [vmem:[%s1770_s1 + $0x80] sm:$0xff] (!%p176_p2)   ;;  %1287 = vmatprep.subr.bf16.mxu1 (!%p176_p2), %v1395_v2  ;;  %1267 = vmatprep.subr.bf16.mxu0 (!%p176_p2), %v1397_v4  ;;  %v1400_v7 = vld [vmem:[%s1770_s1 + $0x88] sm:$0xff] (!%p176_p2)   ;;  %v1404_v11 = vld [vmem:[%s1770_s1 + $0x90] sm:$0xff] (!%p176_p2)  }
   0x9   : > { %1288 = vmatpush3.bf16.msra.mxu1 (!%p176_p2), %v1396_v3  ;;  %v1405_v12 = vld [vmem:[%s1770_s1 + $0x58] sm:$0xff] (!%p176_p2)   ;;  %v1409_v16 = vld [vmem:[%s1770_s1 + $0x60] sm:$0xff] (!%p176_p2)   ;;  %v1413_v20 = vld [vmem:[%s1770_s1 + $0x68] sm:$0xff] (!%p176_p2)  }
   0xa   : > { %1289 = vmatprep.subr.bf16.mxu1 (!%p176_p2), %v1399_v6  ;;  %v1406_v13 = vld [vmem:[%s1770_s1 + $0x18] sm:$0xff] (!%p176_p2)   ;;  %v1410_v17 = vld [vmem:[%s1770_s1 + $0x20] sm:$0xff] (!%p176_p2)   ;;  %v1414_v21 = vld [vmem:[%s1770_s1 + $0x28] sm:$0xff] (!%p176_p2)   ;;  %v1486_v6 = vmov (!%p176_p2), 0.0  }
   0xb   : > { %1268 = vmatpush3.bf16.msra.mxu0 (!%p176_p2), %v1398_v5  ;;  %v1407_v14 = vld [vmem:[%s1770_s1 + $0xd8] sm:$0xff] (!%p176_p2)   ;;  %v1411_v18 = vld [vmem:[%s1770_s1 + $0xe0] sm:$0xff] (!%p176_p2)   ;;  %v1415_v22 = vld [vmem:[%s1770_s1 + $0xe8] sm:$0xff] (!%p176_p2)  }
   0xc   : > { %1269 = vmatprep.subr.bf16.mxu0 (!%p176_p2), %v1401_v8  ;;  %v1408_v15 = vld [vmem:[%s1770_s1 + $0x98] sm:$0xff] (!%p176_p2)   ;;  %v1412_v19 = vld [vmem:[%s1770_s1 + $0xa0] sm:$0xff] (!%p176_p2)   ;;  %v1416_v23 = vld [vmem:[%s1770_s1 + $0xa8] sm:$0xff] (!%p176_p2)  }
   0xd   : > { %1290 = vmatpush3.bf16.msra.mxu1 %v1400_v7  ;;  %s1775_s21 = smov (!%p208_p3, %s1162_s21), 3  ;;  %v1417_v24 = vld [vmem:[%s1770_s1 + $0x70] sm:$0xff]   ;;  %v1421_v28 = vld [vmem:[%s1770_s1 + $0x78] sm:$0xff]   ;;  %v1428_v34 = vld [vmem:[%s1770_s1 + $0x140] sm:$0xff]  }
   0xe   : > { %1291 = vmatprep.subr.bf16.mxu1 %v1403_v10  ;;  %s1382_s19 = smul.u32 36, %s1775_s21  ;;  %v1418_v25 = vld [vmem:[%s1770_s1 + $0x30] sm:$0xff]   ;;  %v1422_v29 = vld [vmem:[%s1770_s1 + $0x38] sm:$0xff]   ;;  %v1432_v37 = vld [vmem:[%s1770_s1 + $0x100] sm:$0xff]  }
   0xf   : > { %1270 = vmatpush3.bf16.msra.mxu0 %v1402_v9  ;;  %v1419_v26 = vld [vmem:[%s1770_s1 + $0xf0] sm:$0xff]   ;;  %v1423_v30 = vld [vmem:[%s1770_s1 + $0xf8] sm:$0xff]   ;;  %v1433_v38 = vld [vmem:[%s1770_s1 + $0x1c0] sm:$0xff]  }
  0x10   : > { %1271 = vmatprep.subr.bf16.mxu0 %v1405_v12  ;;  %v1420_v27 = vld [vmem:[%s1770_s1 + $0xb0] sm:$0xff]   ;;  %s1616_s30 = scalar_lea.vmem %s1769_s0, %s1382_s19  ;;  %v1427_v33 = vld [vmem:[%s1770_s1 + $0xb8] sm:$0xff]   ;;  %v1434_v39 = vld [vmem:[%s1770_s1 + $0x180] sm:$0xff]  }
  0x11   : > { %1292 = vmatpush3.bf16.msra.mxu1 %v1404_v11  ;;  %v1424_v31 = vld [vmem:[%s1616_s30] ss:$36 sps:$4 sm:$0xff]   ;;  %v1429_v35 = vld [vmem:[%s1616_s30 + $0x8] ss:$36 sps:$4 sm:$0xff]   ;;  %v1439_v44 = vld [vmem:[%s1770_s1 + $0x150] sm:$0xff]  }
  0x12   : > { %1293 = vmatprep.subr.bf16.mxu1 %v1407_v14  ;;  %v1426_v32 = vld [vmem:[%s1616_s30 + $0x4] ss:$36 sps:$4 sm:$0xff]   ;;  %v1431_v36 = vld [vmem:[%s1616_s30 + $0xc] ss:$36 sps:$4 sm:$0xff]   ;;  %v1443_v48 = vld [vmem:[%s1770_s1 + $0x158] sm:$0xff]  }
  0x13   : > { %1272 = vmatpush3.bf16.msra.mxu0 %v1406_v13  ;;  %898 = vmatprep.mubr.bf16.mxu0 %v1426_v32  ;;  %v1435_v40 = vld [vmem:[%s1770_s1 + $0x148] sm:$0xff]   ;;  %v1440_v45 = vld [vmem:[%s1770_s1 + $0x110] sm:$0xff]   ;;  %v1444_v49 = vld [vmem:[%s1770_s1 + $0x118] sm:$0xff]  }
  0x14   : > { %1273 = vmatprep.subr.bf16.mxu0 %v1409_v16  ;;  %939 = vmatprep.mubr.bf16.mxu1 %v1431_v36  ;;  %v1436_v41 = vld [vmem:[%s1770_s1 + $0x108] sm:$0xff]   ;;  %v1441_v46 = vld [vmem:[%s1770_s1 + $0x1d0] sm:$0xff]   ;;  %v1445_v50 = vld [vmem:[%s1770_s1 + $0x1d8] sm:$0xff]  }
  0x15   : > { %1294 = vmatpush3.bf16.msra.mxu1 %v1408_v15  ;;  %v1437_v42 = vld [vmem:[%s1770_s1 + $0x1c8] sm:$0xff]   ;;  %v1442_v47 = vld [vmem:[%s1770_s1 + $0x190] sm:$0xff]   ;;  %v1446_v51 = vld [vmem:[%s1770_s1 + $0x198] sm:$0xff]  }
  0x16   : > { %1295 = vmatprep.subr.bf16.mxu1 %v1411_v18  ;;  %v1438_v43 = vld [vmem:[%s1770_s1 + $0x188] sm:$0xff]   ;;  %v1447_v52 = vld [vmem:[%s1770_s1 + $0x160] sm:$0xff]   ;;  %v1455_v60 = vld [vmem:[%s1770_s1 + $0x170] sm:$0xff]  }
  0x17   : > { %1274 = vmatpush3.bf16.msra.mxu0 %v1410_v17  ;;  %v1448_v53 = vld [vmem:[%s1770_s1 + $0x120] sm:$0xff]   ;;  %v1451_v56 = vld [vmem:[%s1770_s1 + $0x168] sm:$0xff]   ;;  %v1456_v61 = vld [vmem:[%s1770_s1 + $0x130] sm:$0xff]  }
  0x18   : > { %1275 = vmatprep.subr.bf16.mxu0 %v1413_v20  ;;  %v1449_v54 = vld [vmem:[%s1770_s1 + $0x1e0] sm:$0xff]   ;;  %v1452_v57 = vld [vmem:[%s1770_s1 + $0x128] sm:$0xff]   ;;  %v1457_v62 = vld [vmem:[%s1770_s1 + $0x1f0] sm:$0xff]  }
  0x19   : > { %1296 = vmatpush3.bf16.msra.mxu1 %v1412_v19  ;;  %v1450_v55 = vld [vmem:[%s1770_s1 + $0x1a0] sm:$0xff]   ;;  %v1453_v58 = vld [vmem:[%s1770_s1 + $0x1e8] sm:$0xff]   ;;  %v1458_v63 = vld [vmem:[%s1770_s1 + $0x1b0] sm:$0xff]  }
  0x1a   : > { %1297 = vmatprep.subr.bf16.mxu1 %v1415_v22  ;;  %v1454_v59 = vld [vmem:[%s1770_s1 + $0x1a8] sm:$0xff]   ;;  %v1459_v0 = vld [vmem:[%s1770_s1 + $0x178] sm:$0xff]   ;;  %v1462_v3 = vld [vmem:[%s1616_s30 + $0x10] ss:$36 sps:$4 sm:$0xff]  }
  0x1b   : > { %1276 = vmatpush3.bf16.msra.mxu0 %v1414_v21  ;;  %v1460_v1 = vld [vmem:[%s1770_s1 + $0x138] sm:$0xff]   ;;  %v1469_v9 = vld [vmem:[%s1770_s1 + $0x200] sm:$0xff]   ;;  %v1470_v10 = vld [vmem:[%s1770_s1 + $0x208] sm:$0xff]  }
  0x1c   : > { %1277 = vmatprep.subr.bf16.mxu0 %v1417_v24  ;;  %v1461_v2 = vld [vmem:[%s1770_s1 + $0x1f8] sm:$0xff]   ;;  %v1471_v11 = vld [vmem:[%s1770_s1 + $0x210] sm:$0xff]   ;;  %v1473_v13 = vld [vmem:[%s1770_s1 + $0x220] sm:$0xff]  }
  0x1d   : > { %1298 = vmatpush3.bf16.msra.mxu1 %v1416_v23  ;;  %v1464_v4 = vld [vmem:[%s1616_s30 + $0x14] ss:$36 sps:$4 sm:$0xff]   ;;  %v1468_v8 = vld [vmem:[%s1616_s30 + $0x1c] ss:$36 sps:$4 sm:$0xff]   ;;  %v1474_v14 = vld [vmem:[%s1770_s1 + $0x228] sm:$0xff]  }
  0x1e   : > { %1299 = vmatprep.subr.bf16.mxu1 %v1419_v26  ;;  %v1465_v5 = vld [vmem:[%s1770_s1 + $0x1b8] sm:$0xff]   ;;  %v1475_v15 = vld [vmem:[%s1770_s1 + $0x230] sm:$0xff]   ;;  %v1477_v17 = vld [vmem:[%s1616_s30 + $0x20] ss:$36 sps:$4 sm:$0xff]  }
  0x1f   : > { %1278 = vmatpush3.bf16.msra.mxu0 %v1418_v25  ;;  %v1466_v7 = vld [vmem:[%s1616_s30 + $0x18] ss:$36 sps:$4 sm:$0xff]   ;;  %v1168_v19 = vld [vmem:[%s1771_s2] ss:$0 sm:$0xff]  ;;  %s1165_s30 = sshll.u32 %s1775_s21, 2 }
  0x20   : > { %1279 = vmatprep.subr.bf16.mxu0 %v1421_v28  ;;  %v1472_v12 = vld [vmem:[%s1770_s1 + $0x218] sm:$0xff]   ;;  %s218_s29 = scalar_lea.vmem %s1772_s3, %s1165_s30  ;;  %s224_s21 = scalar_lea.vmem %s1773_s4, %s1165_s30 }
  0x21   : > { %1300 = vmatpush3.bf16.msra.mxu1 %v1420_v27  ;;  %v1476_v16 = vld [vmem:[%s1770_s1 + $0x238] sm:$0xff]  }
  0x22   : > { %1301 = vmatprep.subr.bf16.mxu1 %v1423_v30 }
  0x23   : > { %1280 = vmatpush3.bf16.msra.mxu0 %v1422_v29 }
  0x24   : > { %1309 = vmatprep.subr.bf16.mxu0 %v1428_v34 }
  0x25   : > { %1302 = vmatpush3.bf16.msra.mxu1 %v1427_v33 }
  0x26   : > { %899 = vmatmul.mubr.bf16.vlgmr.msra.gmra.mrb[0].mxu0 %v1424_v31  ;;  %1331 = vmatprep.subr.bf16.mxu1 %v1433_v38 }
  0x27   : > { %1310 = vmatpush3.bf16.msra.mxu0 %v1432_v37  ;;  %980 = vmatprep.mubr.bf16.mxu0 %v1464_v4 }
  0x28   : > { %940 = vmatmul.mubr.bf16.vlgmr.msra.gmra.mrb[0].mxu1 %v1429_v35  ;;  %1311 = vmatprep.subr.bf16.mxu0 %v1435_v40 }
  0x29   : > { %1332 = vmatpush3.bf16.msra.mxu1 %v1434_v39  ;;  %1021 = vmatprep.mubr.bf16.mxu1 %v1468_v8 }
  0x2a   : > { %1333 = vmatprep.subr.bf16.mxu1 %v1437_v42 }
  0x2b   : > { %1312 = vmatpush3.bf16.msra.mxu0 %v1436_v41 }
  0x2c   : > { %1313 = vmatprep.subr.bf16.mxu0 %v1439_v44 }
  0x2d   : > { %1334 = vmatpush3.bf16.msra.mxu1 %v1438_v43 }
  0x2e   : > { %1335 = vmatprep.subr.bf16.mxu1 %v1441_v46 }
  0x2f   : > { %1314 = vmatpush3.bf16.msra.mxu0 %v1440_v45 }
  0x30   : > { %1315 = vmatprep.subr.bf16.mxu0 %v1443_v48 }
  0x31   : > { %1336 = vmatpush3.bf16.msra.mxu1 %v1442_v47 }
  0x32   : > { %1337 = vmatprep.subr.bf16.mxu1 %v1445_v50 }
  0x33   : > { %1316 = vmatpush3.bf16.msra.mxu0 %v1444_v49 }
  0x34   : > { %1317 = vmatprep.subr.bf16.mxu0 %v1447_v52 }
  0x35   : > { %1338 = vmatpush3.bf16.msra.mxu1 %v1446_v51  ;;  %v1257_v51 = vld [vmem:[%s218_s29] sm:$0xff]  }
  0x36   : > { %1339 = vmatprep.subr.bf16.mxu1 %v1449_v54  ;;  %v1258_v52 = vunpack.c.l.bf16 %v1257_v51 }
  0x37   : > { %1318 = vmatpush3.bf16.msra.mxu0 %v1448_v53 }
  0x38   : > { %1319 = vmatprep.subr.bf16.mxu0 %v1451_v56  ;;  %v1259_v56 = vunpack.c.h.bf16 %v1257_v51 }
  0x39   : > { %1340 = vmatpush3.bf16.msra.mxu1 %v1450_v55 }
  0x3a   : > { %1341 = vmatprep.subr.bf16.mxu1 %v1453_v58 }
  0x3b   : > { %1320 = vmatpush3.bf16.msra.mxu0 %v1452_v57 }
  0x3c   : > { %1321 = vmatprep.subr.bf16.mxu0 %v1455_v60 }
  0x3d   : > { %1342 = vmatpush3.bf16.msra.mxu1 %v1454_v59 }
  0x3e   : > { %1343 = vmatprep.subr.bf16.mxu1 %v1457_v62 }
  0x3f   : > { %1322 = vmatpush3.bf16.msra.mxu0 %v1456_v61 }
  0x40   : > { %1323 = vmatprep.subr.bf16.mxu0 %v1459_v0 }
  0x41   : > { %1344 = vmatpush3.bf16.msra.mxu1 %v1458_v63 }
  0x42   : > { %1345 = vmatprep.subr.bf16.mxu1 %v1461_v2 }
  0x43   : > { %1324 = vmatpush3.bf16.msra.mxu0 %v1460_v1 }
  0x44   : > { %1362 = vmatprep.subr.bf16.mxu0 %v1486_v6 }
  0x45   : > { %1346 = vmatpush3.bf16.msra.mxu1 %v1465_v5 }
  0x46   : > { %981 = vmatmul.mubr.bf16.vlgmr.msra.gmra.mrb[4].mxu0 %v1462_v3 }
  0x47   : > { %1378 = vmatprep.mubr.msk.bf16.mxu0 %vm1487_vm0, %v1486_v6  ;;  %1363 = vmatpush3.bf16.msra.mxu0 %v1469_v9 }
  0x48   : > { %1022 = vmatmul.mubr.bf16.vlgmr.msra.gmra.mrb[4].mxu1 %v1466_v7  ;;  %1364 = vmatprep.subr.bf16.mxu0 %v1486_v6 }
  0x4b   : > { %1365 = vmatpush3.bf16.msra.mxu0 %v1470_v10 }
  0x4c   : > { %1366 = vmatprep.subr.bf16.mxu0 %v1486_v6 }
  0x4f   : > { %1367 = vmatpush3.bf16.msra.mxu0 %v1471_v11 }
  0x50   : > { %1368 = vmatprep.subr.bf16.mxu0 %v1486_v6 }
  0x53   : > { %1369 = vmatpush3.bf16.msra.mxu0 %v1472_v12 }
  0x54   : > { %1370 = vmatprep.subr.bf16.mxu0 %v1486_v6 }
  0x57   : > { %1371 = vmatpush3.bf16.msra.mxu0 %v1473_v13 }
  0x58   : > { %1372 = vmatprep.subr.bf16.mxu0 %v1486_v6 }
  0x5b   : > { %1373 = vmatpush3.bf16.msra.mxu0 %v1474_v14 }
  0x5c   : > { %1374 = vmatprep.subr.bf16.mxu0 %v1486_v6 }
  0x5f   : > { %1375 = vmatpush3.bf16.msra.mxu0 %v1475_v15 }
  0x60   : > { %1376 = vmatprep.subr.bf16.mxu0 %v1486_v6 }
  0x63   : > { %1377 = vmatpush3.bf16.msra.mxu0 %v1476_v16 }
  0x66   : > { %1379 = vmatmul.mubr.bf16.vlgmr.msra.gmra.mrb[8].mxu0 %v1477_v17 }
  0xf9   : > { %v1281_v18 = vpop.f32.mrb[0].mxu0 }
  0xfa   : > { %v1282_v20 = vpop.f32.mrb[1].mxu0 }
  0xfb   : > { %v1283_v21 = vadd.f32 %v1282_v20, %v1281_v18  ;;  %v1284_v22 = vpop.f32.mrb[2].mxu0  ;;  %v1303_v23 = vpop.f32.mrb[0].mxu1 }
  0xfc   : > { %v1285_v24 = vpop.f32.mrb[3].mxu0  ;;  %v1304_v27 = vpop.f32.mrb[1].mxu1 }
  0xfd   : > { %v901_v25 = vadd.f32 %v1283_v21, %v1168_v19  ;;  %v1286_v26 = vadd.f32 %v1285_v24, %v1284_v22  ;;  %v1305_v28 = vadd.f32 %v1304_v27, %v1303_v23  ;;  %v1306_v29 = vpop.f32.mrb[2].mxu1 }
  0xfe   : > { %v1307_v31 = vpop.f32.mrb[3].mxu1 }
  0xff   : > { %v904_v30 = vadd.f32 %v1286_v26, %v1168_v19  ;;  %v942_v32 = vadd.f32 %v1305_v28, %v901_v25  ;;  %v1308_v33 = vadd.f32 %v1307_v31, %v1306_v29 }
 0x101   : > { %v945_v34 = vadd.f32 %v1308_v33, %v904_v30 }
 0x119   : > { %v1325_v35 = vpop.f32.mrb[4].mxu0 }
 0x11a   : > { %v1326_v36 = vpop.f32.mrb[5].mxu0 }
 0x11b   : > { %v1327_v37 = vadd.f32 %v1326_v36, %v1325_v35  ;;  %v1328_v38 = vpop.f32.mrb[6].mxu0  ;;  %v1347_v39 = vpop.f32.mrb[4].mxu1 }
 0x11c   : > { %v1329_v40 = vpop.f32.mrb[7].mxu0  ;;  %v1348_v43 = vpop.f32.mrb[5].mxu1 }
 0x11d   : > { %v983_v41 = vadd.f32 %v1327_v37, %v942_v32  ;;  %v1330_v42 = vadd.f32 %v1329_v40, %v1328_v38  ;;  %v1349_v44 = vadd.f32 %v1348_v43, %v1347_v39  ;;  %v1350_v45 = vpop.f32.mrb[6].mxu1 }
 0x11e   : > { %v1351_v47 = vpop.f32.mrb[7].mxu1 }
 0x11f   : > { %v986_v46 = vadd.f32 %v1330_v42, %v945_v34  ;;  %v1352_v48 = vadd.f32 %v1351_v47, %v1350_v45  ;;  %v1024_v49 = vadd.f32 %v1349_v44, %v983_v41 }
 0x121   : > { %v1027_v50 = vadd.f32 %v1352_v48, %v986_v46 }
 0x139   : > { %v1064_v53 = vpop.f32.mrb[8].mxu0 }
 0x13a   : > { %v1065_v54 = vadd.f32 %v1064_v53, %v1024_v49  ;;  %v1380_v55 = vpop.f32.mrb[9].mxu0 }
 0x13b   : > { %v1067_v57 = vpop.f32.mrb[10].mxu0 }
 0x13c   : > { %v1075_v58 = vadd.f32 %v1258_v52, %v1065_v54  ;;  %v1068_v59 = vadd.f32 %v1067_v57, %v1027_v50  ;;  %v1381_v60 = vpop.f32.mrb[11].mxu0 }
 0x13e   : > { %v1076_v61 = vadd.f32 %v1259_v56, %v1068_v59  ;;  %v1077_v62 = vmax.f32 %v1075_v58, 0.0 }
 0x140   : > { %v1078_v63 = vmax.f32 %v1076_v61, 0.0 }
 0x142   : > { %v1263_v0 = vpack.c.bf16 %v1078_v63, %v1077_v62 }
 0x144   : > { %1264 = vst [vmem:[%s224_s21] sm:$0xff] %v1263_v0  }
 0x145 PF: > { %s14_s15 = sadd.s32 1, %s1484_s15  }
 0x146   : > { %p11_p4 = scmp.ge.s32.totalorder %s14_s15, 4  }
 0x148   :  { %13 = sbr.rel (!%p11_p4) target bundleno = 1 (0x1), region = 69 }

// kernel: _lambda_.16
= control target key start
LH: loop header
LB: loop body
LE: loop exit
PB: predicated region body
PF: predicated region fallthrough
CT: control target
= control target key end

     0   :  { %s2316_s1 = inlined_call_operand.vmem [shape: bf16[1152,256], index: 1, kind: input, shape index: {}]   ;;  %s2317_s0 = inlined_call_operand.vmem [shape: bf16[8,1152], index: 0, kind: input, shape index: {}]   ;;  %s2318_s3 = inlined_call_operand.vmem [shape: bf16[128,256], index: 3, kind: input, shape index: {}]   ;;  %s2319_s2 = inlined_call_operand.vmem [shape: f32[1,256], index: 2, kind: input, shape index: {}]   ;;  %s2320_s4 = inlined_call_operand.vmem [shape: f32[1,256], index: 4, kind: input, shape index: {}]   ;;  %s2321_s6 = inlined_call_operand.vmem [shape: bf16[8,256], index: 6, kind: output, shape index: {1}]   ;;  %s2322_s5 = inlined_call_operand.vmem [shape: bf16[8,256], index: 5, kind: output, shape index: {0}]  }
   0x1   :  { %v1509_v0 = vld [vmem:[%s2316_s1 + $0x4] ss:$8 sps:$4 sm:$0xff]   ;;  %v1513_v2 = vld [vmem:[%s2316_s1] ss:$8 sps:$4 sm:$0xff]   ;;  %v1515_v4 = vld [vmem:[%s2316_s1 + $0x14] ss:$8 sps:$4 sm:$0xff]  }
   0x2   :  { %v1511_v1 = vld [vmem:[%s2316_s1 + $0x204] ss:$8 sps:$4 sm:$0xff]   ;;  %936 = vmatprep.subr.bf16.mxu1 %v1509_v0  ;;  %v1514_v3 = vld [vmem:[%s2316_s1 + $0x200] ss:$8 sps:$4 sm:$0xff]   ;;  %v1517_v5 = vld [vmem:[%s2316_s1 + $0x214] ss:$8 sps:$4 sm:$0xff]  }
   0x3   :  { %1018 = vmatprep.subr.bf16.mxu0 %v1511_v1  ;;  %937 = vmatpush1.bf16.msra.mxu1 %v1513_v2  ;;  %v1519_v6 = vld [vmem:[%s2316_s1 + $0x10] ss:$8 sps:$4 sm:$0xff]   ;;  %v1521_v8 = vld [vmem:[%s2316_s1 + $0x24] ss:$8 sps:$4 sm:$0xff]   ;;  %v1525_v10 = vld [vmem:[%s2316_s1 + $0x20] ss:$8 sps:$4 sm:$0xff]  }
   0x4   :  { %1019 = vmatpush1.bf16.msra.mxu0 %v1514_v3  ;;  %938 = vmatprep.subr.bf16.mxu1 %v1515_v4  ;;  %v1520_v7 = vld [vmem:[%s2316_s1 + $0x210] ss:$8 sps:$4 sm:$0xff]   ;;  %v1523_v9 = vld [vmem:[%s2316_s1 + $0x224] ss:$8 sps:$4 sm:$0xff]   ;;  %v1526_v11 = vld [vmem:[%s2316_s1 + $0x220] ss:$8 sps:$4 sm:$0xff]  }
   0x5   :  { %1020 = vmatprep.subr.bf16.mxu0 %v1517_v5  ;;  %v1527_v12 = vld [vmem:[%s2316_s1 + $0x34] ss:$8 sps:$4 sm:$0xff]   ;;  %v1531_v14 = vld [vmem:[%s2316_s1 + $0x30] ss:$8 sps:$4 sm:$0xff]   ;;  %v1533_v16 = vld [vmem:[%s2316_s1 + $0x44] ss:$8 sps:$4 sm:$0xff]  }
   0x6   :  { %v1529_v13 = vld [vmem:[%s2316_s1 + $0x234] ss:$8 sps:$4 sm:$0xff]   ;;  %v1532_v15 = vld [vmem:[%s2316_s1 + $0x230] ss:$8 sps:$4 sm:$0xff]   ;;  %v1535_v17 = vld [vmem:[%s2316_s1 + $0x244] ss:$8 sps:$4 sm:$0xff]  }
   0x7   :  { %939 = vmatpush1.bf16.msra.mxu1 %v1519_v6  ;;  %v1537_v18 = vld [vmem:[%s2316_s1 + $0x40] ss:$8 sps:$4 sm:$0xff]   ;;  %v1539_v20 = vld [vmem:[%s2316_s1 + $0x54] ss:$8 sps:$4 sm:$0xff]   ;;  %v1543_v22 = vld [vmem:[%s2316_s1 + $0x50] ss:$8 sps:$4 sm:$0xff]  }
   0x8   :  { %1021 = vmatpush1.bf16.msra.mxu0 %v1520_v7  ;;  %940 = vmatprep.subr.bf16.mxu1 %v1521_v8  ;;  %v1538_v19 = vld [vmem:[%s2316_s1 + $0x240] ss:$8 sps:$4 sm:$0xff]   ;;  %v1541_v21 = vld [vmem:[%s2316_s1 + $0x254] ss:$8 sps:$4 sm:$0xff]   ;;  %v1544_v23 = vld [vmem:[%s2316_s1 + $0x250] ss:$8 sps:$4 sm:$0xff]  }
   0x9   :  { %1022 = vmatprep.subr.bf16.mxu0 %v1523_v9  ;;  %v1545_v24 = vld [vmem:[%s2316_s1 + $0x64] ss:$8 sps:$4 sm:$0xff]   ;;  %v1549_v26 = vld [vmem:[%s2316_s1 + $0x60] ss:$8 sps:$4 sm:$0xff]   ;;  %v1551_v28 = vld [vmem:[%s2316_s1 + $0x74] ss:$8 sps:$4 sm:$0xff]  }
   0xa   :  { %v1547_v25 = vld [vmem:[%s2316_s1 + $0x264] ss:$8 sps:$4 sm:$0xff]   ;;  %v1550_v27 = vld [vmem:[%s2316_s1 + $0x260] ss:$8 sps:$4 sm:$0xff]   ;;  %v1553_v29 = vld [vmem:[%s2316_s1 + $0x274] ss:$8 sps:$4 sm:$0xff]  }
   0xb   :  { %941 = vmatpush1.bf16.msra.mxu1 %v1525_v10  ;;  %v1555_v30 = vld [vmem:[%s2316_s1 + $0x70] ss:$8 sps:$4 sm:$0xff]   ;;  %v1557_v32 = vld [vmem:[%s2316_s1 + $0x84] ss:$8 sps:$4 sm:$0xff]   ;;  %v1561_v34 = vld [vmem:[%s2316_s1 + $0x80] ss:$8 sps:$4 sm:$0xff]  }
   0xc   :  { %1023 = vmatpush1.bf16.msra.mxu0 %v1526_v11  ;;  %942 = vmatprep.subr.bf16.mxu1 %v1527_v12  ;;  %v1556_v31 = vld [vmem:[%s2316_s1 + $0x270] ss:$8 sps:$4 sm:$0xff]   ;;  %v1559_v33 = vld [vmem:[%s2316_s1 + $0x284] ss:$8 sps:$4 sm:$0xff]   ;;  %v1562_v35 = vld [vmem:[%s2316_s1 + $0x280] ss:$8 sps:$4 sm:$0xff]  }
   0xd   :  { %1024 = vmatprep.subr.bf16.mxu0 %v1529_v13  ;;  %v1563_v36 = vld [vmem:[%s2316_s1 + $0x94] ss:$8 sps:$4 sm:$0xff]   ;;  %v1567_v38 = vld [vmem:[%s2316_s1 + $0x90] ss:$8 sps:$4 sm:$0xff]   ;;  %v1569_v40 = vld [vmem:[%s2316_s1 + $0xa4] ss:$8 sps:$4 sm:$0xff]  }
   0xe   :  { %v1565_v37 = vld [vmem:[%s2316_s1 + $0x294] ss:$8 sps:$4 sm:$0xff]   ;;  %v1568_v39 = vld [vmem:[%s2316_s1 + $0x290] ss:$8 sps:$4 sm:$0xff]   ;;  %v1571_v41 = vld [vmem:[%s2316_s1 + $0x2a4] ss:$8 sps:$4 sm:$0xff]  }
   0xf   :  { %943 = vmatpush1.bf16.msra.mxu1 %v1531_v14  ;;  %v1573_v42 = vld [vmem:[%s2316_s1 + $0xa0] ss:$8 sps:$4 sm:$0xff]   ;;  %v1575_v44 = vld [vmem:[%s2316_s1 + $0xb4] ss:$8 sps:$4 sm:$0xff]   ;;  %v1579_v47 = vld [vmem:[%s2316_s1 + $0xb0] ss:$8 sps:$4 sm:$0xff]  }
  0x10   :  { %1025 = vmatpush1.bf16.msra.mxu0 %v1532_v15  ;;  %944 = vmatprep.subr.bf16.mxu1 %v1533_v16  ;;  %v1574_v43 = vld [vmem:[%s2316_s1 + $0x2a0] ss:$8 sps:$4 sm:$0xff]   ;;  %v1577_v45 = vld [vmem:[%s2316_s1 + $0x2b4] ss:$8 sps:$4 sm:$0xff]   ;;  %v1580_v49 = vld [vmem:[%s2316_s1 + $0x2b0] ss:$8 sps:$4 sm:$0xff]  }
  0x11   :  { %1026 = vmatprep.subr.bf16.mxu0 %v1535_v17  ;;  %v23_v46 = vld [vmem:[%s2317_s0] sm:$0xff]  ;;  %v25_v50 = vld [vmem:[%s2317_s0 + $0x10] sm:$0xff] }
  0x12   :  { %v1320_v48 = vcombine.high %v23_v46, %v23_v46  ;;  %v1581_v51 = vld [vmem:[%s2316_s1 + $0xc4] ss:$8 sps:$4 sm:$0xff]   ;;  %v1324_v53 = vcombine.high %v25_v50, %v25_v50  ;;  %v1585_v54 = vld [vmem:[%s2316_s1 + $0xc0] ss:$8 sps:$4 sm:$0xff]   ;;  %v1587_v56 = vld [vmem:[%s2316_s1 + $0xd4] ss:$8 sps:$4 sm:$0xff]   ;;  %v1319_v6 = vcombine.low %v23_v46, %v23_v46  ;;  %v1323_v7 = vcombine.low %v25_v50, %v25_v50 }
  0x13   :  { %945 = vmatpush1.bf16.msra.mxu1 %v1537_v18  ;;  %v1583_v52 = vld [vmem:[%s2316_s1 + $0x2c4] ss:$8 sps:$4 sm:$0xff]   ;;  %v1586_v55 = vld [vmem:[%s2316_s1 + $0x2c0] ss:$8 sps:$4 sm:$0xff]   ;;  %v1589_v57 = vld [vmem:[%s2316_s1 + $0x2d4] ss:$8 sps:$4 sm:$0xff]  }
  0x14   :  { %1027 = vmatpush1.bf16.msra.mxu0 %v1538_v19  ;;  %946 = vmatprep.subr.bf16.mxu1 %v1539_v20  ;;  %v1591_v58 = vld [vmem:[%s2316_s1 + $0xd0] ss:$8 sps:$4 sm:$0xff]   ;;  %v1593_v60 = vld [vmem:[%s2316_s1 + $0xe4] ss:$8 sps:$4 sm:$0xff]   ;;  %v1597_v62 = vld [vmem:[%s2316_s1 + $0xe0] ss:$8 sps:$4 sm:$0xff]  }
  0x15   :  { %1028 = vmatprep.subr.bf16.mxu0 %v1541_v21  ;;  %968 = vmatprep.mubr.bf16.mxu1 %v1320_v48  ;;  %v1592_v59 = vld [vmem:[%s2316_s1 + $0x2d0] ss:$8 sps:$4 sm:$0xff]   ;;  %v1595_v61 = vld [vmem:[%s2316_s1 + $0x2e4] ss:$8 sps:$4 sm:$0xff]   ;;  %v1598_v63 = vld [vmem:[%s2316_s1 + $0x2e0] ss:$8 sps:$4 sm:$0xff]  }
  0x16   :  { %1050 = vmatprep.mubr.bf16.mxu0 %v1324_v53  ;;  %v1599_v0 = vld [vmem:[%s2316_s1 + $0xf4] ss:$8 sps:$4 sm:$0xff]   ;;  %v1603_v2 = vld [vmem:[%s2316_s1 + $0xf0] ss:$8 sps:$4 sm:$0xff]   ;;  %v1609_v4 = vld [vmem:[%s2316_s1 + $0x104] ss:$8 sps:$4 sm:$0xff]  }
  0x17   :  { %947 = vmatpush1.bf16.msra.mxu1 %v1543_v22  ;;  %v1601_v1 = vld [vmem:[%s2316_s1 + $0x2f4] ss:$8 sps:$4 sm:$0xff]   ;;  %v1604_v3 = vld [vmem:[%s2316_s1 + $0x2f0] ss:$8 sps:$4 sm:$0xff]   ;;  %v1614_v5 = vld [vmem:[%s2316_s1 + $0x304] ss:$8 sps:$4 sm:$0xff]  }
  0x18   :  { %1029 = vmatpush1.bf16.msra.mxu0 %v1544_v23  ;;  %948 = vmatprep.subr.bf16.mxu1 %v1545_v24  ;;  %v1607_v8 = vld [vmem:[%s2316_s1 + $0x100] ss:$8 sps:$4 sm:$0xff]   ;;  %v1617_v10 = vld [vmem:[%s2316_s1 + $0x114] ss:$8 sps:$4 sm:$0xff]   ;;  %v1615_v12 = vld [vmem:[%s2316_s1 + $0x110] ss:$8 sps:$4 sm:$0xff]  }
  0x19   :  { %1030 = vmatprep.subr.bf16.mxu0 %v1547_v25  ;;  %v1612_v9 = vld [vmem:[%s2316_s1 + $0x300] ss:$8 sps:$4 sm:$0xff]   ;;  %v1620_v11 = vld [vmem:[%s2316_s1 + $0x314] ss:$8 sps:$4 sm:$0xff]   ;;  %v1618_v13 = vld [vmem:[%s2316_s1 + $0x310] ss:$8 sps:$4 sm:$0xff]  }
  0x1a   :  { %v1623_v14 = vld [vmem:[%s2316_s1 + $0x124] ss:$8 sps:$4 sm:$0xff]   ;;  %v1621_v16 = vld [vmem:[%s2316_s1 + $0x120] ss:$8 sps:$4 sm:$0xff]   ;;  %v1629_v18 = vld [vmem:[%s2316_s1 + $0x134] ss:$8 sps:$4 sm:$0xff]  }
  0x1b   :  { %949 = vmatpush1.bf16.msra.mxu1 %v1549_v26  ;;  %v1626_v15 = vld [vmem:[%s2316_s1 + $0x324] ss:$8 sps:$4 sm:$0xff]   ;;  %v1624_v17 = vld [vmem:[%s2316_s1 + $0x320] ss:$8 sps:$4 sm:$0xff]   ;;  %v1632_v19 = vld [vmem:[%s2316_s1 + $0x334] ss:$8 sps:$4 sm:$0xff]  }
  0x1c   :  { %1031 = vmatpush1.bf16.msra.mxu0 %v1550_v27  ;;  %950 = vmatprep.subr.bf16.mxu1 %v1551_v28  ;;  %v1627_v20 = vld [vmem:[%s2316_s1 + $0x130] ss:$8 sps:$4 sm:$0xff]   ;;  %v1635_v22 = vld [vmem:[%s2316_s1 + $0x144] ss:$8 sps:$4 sm:$0xff]   ;;  %v1633_v24 = vld [vmem:[%s2316_s1 + $0x140] ss:$8 sps:$4 sm:$0xff]  }
  0x1d   :  { %1032 = vmatprep.subr.bf16.mxu0 %v1553_v29  ;;  %v1630_v21 = vld [vmem:[%s2316_s1 + $0x330] ss:$8 sps:$4 sm:$0xff]   ;;  %v1638_v23 = vld [vmem:[%s2316_s1 + $0x344] ss:$8 sps:$4 sm:$0xff]   ;;  %v1636_v25 = vld [vmem:[%s2316_s1 + $0x340] ss:$8 sps:$4 sm:$0xff]  }
  0x1e   :  { %v1641_v26 = vld [vmem:[%s2316_s1 + $0x154] ss:$8 sps:$4 sm:$0xff]   ;;  %v1639_v28 = vld [vmem:[%s2316_s1 + $0x150] ss:$8 sps:$4 sm:$0xff]   ;;  %v1671_v50 = vld [vmem:[%s2316_s1 + $0x1a4] ss:$8 sps:$4 sm:$0xff]  }
  0x1f   :  { %951 = vmatpush1.bf16.msra.mxu1 %v1555_v30  ;;  %v1644_v27 = vld [vmem:[%s2316_s1 + $0x354] ss:$8 sps:$4 sm:$0xff]   ;;  %v1642_v29 = vld [vmem:[%s2316_s1 + $0x350] ss:$8 sps:$4 sm:$0xff]   ;;  %v1647_v30 = vld [vmem:[%s2316_s1 + $0x164] ss:$8 sps:$4 sm:$0xff]  }
  0x20   :  { %1033 = vmatpush1.bf16.msra.mxu0 %v1556_v31  ;;  %952 = vmatprep.subr.bf16.mxu1 %v1557_v32  ;;  %v1650_v31 = vld [vmem:[%s2316_s1 + $0x364] ss:$8 sps:$4 sm:$0xff]   ;;  %v1665_v46 = vld [vmem:[%s2316_s1 + $0x194] ss:$8 sps:$4 sm:$0xff]   ;;  %v1663_v48 = vld [vmem:[%s2316_s1 + $0x190] ss:$8 sps:$4 sm:$0xff]  }
  0x21   :  { %1034 = vmatprep.subr.bf16.mxu0 %v1559_v33  ;;  %v2073_v32 = vld [vmem:[%s2317_s0 + $0x8] sm:$0xff]  ;;  %v2078_v33 = vld [vmem:[%s2317_s0 + $0x18] sm:$0xff] }
  0x22   :  { %v1672_v53 = vld [vmem:[%s2316_s1 + $0x3a0] ss:$8 sps:$4 sm:$0xff]  }
  0x23   :  { %953 = vmatpush1.bf16.msra.mxu1 %v1561_v34  ;;  %v1645_v34 = vld [vmem:[%s2316_s1 + $0x160] ss:$8 sps:$4 sm:$0xff]  }
  0x24   :  { %1035 = vmatpush1.bf16.msra.mxu0 %v1562_v35  ;;  %954 = vmatprep.subr.bf16.mxu1 %v1563_v36  ;;  %v1648_v35 = vld [vmem:[%s2316_s1 + $0x360] ss:$8 sps:$4 sm:$0xff]   ;;  %v1322_v36 = vcombine.high %v2073_v32, %v2073_v32 }
  0x25   :  { %1036 = vmatprep.subr.bf16.mxu0 %v1565_v37  ;;  %v1326_v37 = vcombine.high %v2078_v33, %v2078_v33 }
  0x27   :  { %955 = vmatpush1.bf16.msra.mxu1 %v1567_v38  ;;  %v1653_v38 = vld [vmem:[%s2316_s1 + $0x174] ss:$8 sps:$4 sm:$0xff]  }
  0x28   :  { %1037 = vmatpush1.bf16.msra.mxu0 %v1568_v39  ;;  %956 = vmatprep.subr.bf16.mxu1 %v1569_v40  ;;  %v1656_v39 = vld [vmem:[%s2316_s1 + $0x374] ss:$8 sps:$4 sm:$0xff]   ;;  %v1651_v40 = vld [vmem:[%s2316_s1 + $0x170] ss:$8 sps:$4 sm:$0xff]  }
  0x29   :  { %1038 = vmatprep.subr.bf16.mxu0 %v1571_v41  ;;  %v1654_v41 = vld [vmem:[%s2316_s1 + $0x370] ss:$8 sps:$4 sm:$0xff]  }
  0x2b   :  { %957 = vmatpush1.bf16.msra.mxu1 %v1573_v42  ;;  %v1659_v42 = vld [vmem:[%s2316_s1 + $0x184] ss:$8 sps:$4 sm:$0xff]  }
  0x2c   :  { %1039 = vmatpush1.bf16.msra.mxu0 %v1574_v43  ;;  %958 = vmatprep.subr.bf16.mxu1 %v1575_v44  ;;  %v1662_v43 = vld [vmem:[%s2316_s1 + $0x384] ss:$8 sps:$4 sm:$0xff]   ;;  %v1657_v44 = vld [vmem:[%s2316_s1 + $0x180] ss:$8 sps:$4 sm:$0xff]  }
  0x2d   :  { %1040 = vmatprep.subr.bf16.mxu0 %v1577_v45  ;;  %v1660_v45 = vld [vmem:[%s2316_s1 + $0x380] ss:$8 sps:$4 sm:$0xff]  }
  0x2f   :  { %959 = vmatpush1.bf16.msra.mxu1 %v1579_v47  ;;  %v1668_v47 = vld [vmem:[%s2316_s1 + $0x394] ss:$8 sps:$4 sm:$0xff]  }
  0x30   :  { %1041 = vmatpush1.bf16.msra.mxu0 %v1580_v49  ;;  %960 = vmatprep.subr.bf16.mxu1 %v1581_v51  ;;  %v1666_v49 = vld [vmem:[%s2316_s1 + $0x390] ss:$8 sps:$4 sm:$0xff]   ;;  %v1674_v51 = vld [vmem:[%s2316_s1 + $0x3a4] ss:$8 sps:$4 sm:$0xff]  }
  0x31   :  { %1042 = vmatprep.subr.bf16.mxu0 %v1583_v52  ;;  %v1669_v52 = vld [vmem:[%s2316_s1 + $0x1a0] ss:$8 sps:$4 sm:$0xff]  }
  0x33   :  { %961 = vmatpush1.bf16.msra.mxu1 %v1585_v54  ;;  %v1677_v54 = vld [vmem:[%s2316_s1 + $0x1b4] ss:$8 sps:$4 sm:$0xff]  }
  0x34   :  { %1043 = vmatpush1.bf16.msra.mxu0 %v1586_v55  ;;  %962 = vmatprep.subr.bf16.mxu1 %v1587_v56  ;;  %v1680_v55 = vld [vmem:[%s2316_s1 + $0x3b4] ss:$8 sps:$4 sm:$0xff]   ;;  %v1675_v56 = vld [vmem:[%s2316_s1 + $0x1b0] ss:$8 sps:$4 sm:$0xff]  }
  0x35   :  { %1044 = vmatprep.subr.bf16.mxu0 %v1589_v57  ;;  %v1678_v57 = vld [vmem:[%s2316_s1 + $0x3b0] ss:$8 sps:$4 sm:$0xff]  }
  0x37   :  { %963 = vmatpush1.bf16.msra.mxu1 %v1591_v58  ;;  %v1683_v58 = vld [vmem:[%s2316_s1 + $0x1c4] ss:$8 sps:$4 sm:$0xff]  }
  0x38   :  { %1045 = vmatpush1.bf16.msra.mxu0 %v1592_v59  ;;  %964 = vmatprep.subr.bf16.mxu1 %v1593_v60  ;;  %v1686_v59 = vld [vmem:[%s2316_s1 + $0x3c4] ss:$8 sps:$4 sm:$0xff]   ;;  %v1681_v60 = vld [vmem:[%s2316_s1 + $0x1c0] ss:$8 sps:$4 sm:$0xff]  }
  0x39   :  { %1046 = vmatprep.subr.bf16.mxu0 %v1595_v61  ;;  %v1684_v61 = vld [vmem:[%s2316_s1 + $0x3c0] ss:$8 sps:$4 sm:$0xff]  }
  0x3b   :  { %965 = vmatpush1.bf16.msra.mxu1 %v1597_v62  ;;  %v1689_v62 = vld [vmem:[%s2316_s1 + $0x1d4] ss:$8 sps:$4 sm:$0xff]  }
  0x3c   :  { %1047 = vmatpush1.bf16.msra.mxu0 %v1598_v63  ;;  %966 = vmatprep.subr.bf16.mxu1 %v1599_v0  ;;  %v1692_v63 = vld [vmem:[%s2316_s1 + $0x3d4] ss:$8 sps:$4 sm:$0xff]   ;;  %v1687_v0 = vld [vmem:[%s2316_s1 + $0x1d0] ss:$8 sps:$4 sm:$0xff]  }
  0x3d   :  { %1048 = vmatprep.subr.bf16.mxu0 %v1601_v1  ;;  %v1690_v1 = vld [vmem:[%s2316_s1 + $0x3d0] ss:$8 sps:$4 sm:$0xff]  }
  0x3f   :  { %967 = vmatpush1.bf16.msra.mxu1 %v1603_v2  ;;  %v1695_v2 = vld [vmem:[%s2316_s1 + $0x1e4] ss:$8 sps:$4 sm:$0xff]  }
  0x40   :  { %1049 = vmatpush1.bf16.msra.mxu0 %v1604_v3  ;;  %977 = vmatprep.subr.bf16.mxu1 %v1609_v4  ;;  %v1698_v3 = vld [vmem:[%s2316_s1 + $0x3e4] ss:$8 sps:$4 sm:$0xff]   ;;  %v1693_v4 = vld [vmem:[%s2316_s1 + $0x1e0] ss:$8 sps:$4 sm:$0xff]  }
  0x41   :  { %1059 = vmatprep.subr.bf16.mxu0 %v1614_v5  ;;  %v1696_v5 = vld [vmem:[%s2316_s1 + $0x3e0] ss:$8 sps:$4 sm:$0xff]  }
  0x42   :  { %969 = vmatmul.mubr.bf16.vlgmr.msra.gmra.mrb[0].mxu1 %v1319_v6  ;;  %v1701_v6 = vld [vmem:[%s2316_s1 + $0x1f4] ss:$8 sps:$4 sm:$0xff]  }
  0x43   :  { %1051 = vmatmul.mubr.bf16.vlgmr.msra.gmra.mrb[0].mxu0 %v1323_v7  ;;  %978 = vmatpush1.bf16.msra.mxu1 %v1607_v8  ;;  %v1704_v7 = vld [vmem:[%s2316_s1 + $0x3f4] ss:$8 sps:$4 sm:$0xff]   ;;  %v1699_v8 = vld [vmem:[%s2316_s1 + $0x1f0] ss:$8 sps:$4 sm:$0xff]  }
  0x44   :  { %1060 = vmatpush1.bf16.msra.mxu0 %v1612_v9  ;;  %979 = vmatprep.subr.bf16.mxu1 %v1617_v10  ;;  %v1702_v9 = vld [vmem:[%s2316_s1 + $0x3f0] ss:$8 sps:$4 sm:$0xff]   ;;  %v1711_v10 = vld [vmem:[%s2316_s1 + $0x404] ss:$8 sps:$4 sm:$0xff]  }
  0x45   :  { %1061 = vmatprep.subr.bf16.mxu0 %v1620_v11  ;;  %1009 = vmatprep.mubr.bf16.mxu1 %v1322_v36  ;;  %v1714_v11 = vld [vmem:[%s2318_s3 + $0x4] ss:$8 sps:$4 sm:$0xff]   ;;  %v1742_v36 = vld [vmem:[%s2318_s3 + $0x50] ss:$8 sps:$4 sm:$0xff]  }
  0x46   :  { %1091 = vmatprep.mubr.bf16.mxu0 %v1326_v37  ;;  %v1747_v37 = vld [vmem:[%s2316_s1 + $0x464] ss:$8 sps:$4 sm:$0xff]  }
  0x47   :  { %980 = vmatpush1.bf16.msra.mxu1 %v1615_v12  ;;  %v1321_v12 = vcombine.low %v2073_v32, %v2073_v32  ;;  %v1736_v32 = vld [vmem:[%s2318_s3 + $0x40] ss:$8 sps:$4 sm:$0xff]  }
  0x48   :  { %1062 = vmatpush1.bf16.msra.mxu0 %v1618_v13  ;;  %981 = vmatprep.subr.bf16.mxu1 %v1623_v14  ;;  %v1325_v13 = vcombine.low %v2078_v33, %v2078_v33  ;;  %v1709_v14 = vld [vmem:[%s2316_s1 + $0x400] ss:$8 sps:$4 sm:$0xff]   ;;  %v1741_v33 = vld [vmem:[%s2316_s1 + $0x454] ss:$8 sps:$4 sm:$0xff]  }
  0x49   :  { %1063 = vmatprep.subr.bf16.mxu0 %v1626_v15  ;;  %v1712_v15 = vld [vmem:[%s2318_s3] ss:$8 sps:$4 sm:$0xff]  }
  0x4b   :  { %982 = vmatpush1.bf16.msra.mxu1 %v1621_v16  ;;  %v1717_v16 = vld [vmem:[%s2316_s1 + $0x414] ss:$8 sps:$4 sm:$0xff]  }
  0x4c   :  { %1064 = vmatpush1.bf16.msra.mxu0 %v1624_v17  ;;  %983 = vmatprep.subr.bf16.mxu1 %v1629_v18  ;;  %v1720_v17 = vld [vmem:[%s2318_s3 + $0x14] ss:$8 sps:$4 sm:$0xff]   ;;  %v1715_v18 = vld [vmem:[%s2316_s1 + $0x410] ss:$8 sps:$4 sm:$0xff]  }
  0x4d   :  { %1065 = vmatprep.subr.bf16.mxu0 %v1632_v19  ;;  %v1718_v19 = vld [vmem:[%s2318_s3 + $0x10] ss:$8 sps:$4 sm:$0xff]  }
  0x4f   :  { %984 = vmatpush1.bf16.msra.mxu1 %v1627_v20  ;;  %v1723_v20 = vld [vmem:[%s2316_s1 + $0x424] ss:$8 sps:$4 sm:$0xff]  }
  0x50   :  { %1066 = vmatpush1.bf16.msra.mxu0 %v1630_v21  ;;  %985 = vmatprep.subr.bf16.mxu1 %v1635_v22  ;;  %v1726_v21 = vld [vmem:[%s2318_s3 + $0x24] ss:$8 sps:$4 sm:$0xff]   ;;  %v1758_v22 = vmov 0  }
  0x51   :  { %1067 = vmatprep.subr.bf16.mxu0 %v1638_v23  ;;  %v1721_v23 = vld [vmem:[%s2316_s1 + $0x420] ss:$8 sps:$4 sm:$0xff]  }
  0x53   :  { %986 = vmatpush1.bf16.msra.mxu1 %v1633_v24  ;;  %v1724_v24 = vld [vmem:[%s2318_s3 + $0x20] ss:$8 sps:$4 sm:$0xff]  }
  0x54   :  { %1068 = vmatpush1.bf16.msra.mxu0 %v1636_v25  ;;  %987 = vmatprep.subr.bf16.mxu1 %v1641_v26  ;;  %v1729_v25 = vld [vmem:[%s2316_s1 + $0x434] ss:$8 sps:$4 sm:$0xff]  }
  0x55   :  { %1069 = vmatprep.subr.bf16.mxu0 %v1644_v27  ;;  %v1732_v26 = vld [vmem:[%s2318_s3 + $0x34] ss:$8 sps:$4 sm:$0xff]   ;;  %v1727_v27 = vld [vmem:[%s2316_s1 + $0x430] ss:$8 sps:$4 sm:$0xff]  }
  0x57   :  { %988 = vmatpush1.bf16.msra.mxu1 %v1639_v28  ;;  %v1730_v28 = vld [vmem:[%s2318_s3 + $0x30] ss:$8 sps:$4 sm:$0xff]  }
  0x58   :  { %1070 = vmatpush1.bf16.msra.mxu0 %v1642_v29  ;;  %989 = vmatprep.subr.bf16.mxu1 %v1647_v30  ;;  %v1735_v29 = vld [vmem:[%s2316_s1 + $0x444] ss:$8 sps:$4 sm:$0xff]  }
  0x59   :  { %1071 = vmatprep.subr.bf16.mxu0 %v1650_v31  ;;  %v1738_v30 = vld [vmem:[%s2318_s3 + $0x44] ss:$8 sps:$4 sm:$0xff]   ;;  %v1733_v31 = vld [vmem:[%s2316_s1 + $0x440] ss:$8 sps:$4 sm:$0xff]  }
  0x5b   :  { %990 = vmatpush1.bf16.msra.mxu1 %v1645_v34  ;;  %v1744_v34 = vld [vmem:[%s2318_s3 + $0x54] ss:$8 sps:$4 sm:$0xff]  }
  0x5c   :  { %1072 = vmatpush1.bf16.msra.mxu0 %v1648_v35  ;;  %991 = vmatprep.subr.bf16.mxu1 %v1653_v38  ;;  %v1739_v35 = vld [vmem:[%s2316_s1 + $0x450] ss:$8 sps:$4 sm:$0xff]   ;;  %v1750_v38 = vld [vmem:[%s2318_s3 + $0x64] ss:$8 sps:$4 sm:$0xff]  }
  0x5d   :  { %1073 = vmatprep.subr.bf16.mxu0 %v1656_v39  ;;  %v1745_v39 = vld [vmem:[%s2316_s1 + $0x460] ss:$8 sps:$4 sm:$0xff]  }
  0x5f   :  { %992 = vmatpush1.bf16.msra.mxu1 %v1651_v40  ;;  %v1748_v40 = vld [vmem:[%s2318_s3 + $0x60] ss:$8 sps:$4 sm:$0xff]  }
  0x60   :  { %1074 = vmatpush1.bf16.msra.mxu0 %v1654_v41  ;;  %993 = vmatprep.subr.bf16.mxu1 %v1659_v42  ;;  %v1753_v41 = vld [vmem:[%s2316_s1 + $0x474] ss:$8 sps:$4 sm:$0xff]  }
  0x61   :  { %1075 = vmatprep.subr.bf16.mxu0 %v1662_v43  ;;  %v1756_v42 = vld [vmem:[%s2318_s3 + $0x74] ss:$8 sps:$4 sm:$0xff]   ;;  %v1751_v43 = vld [vmem:[%s2316_s1 + $0x470] ss:$8 sps:$4 sm:$0xff]  }
  0x63   :  { %994 = vmatpush1.bf16.msra.mxu1 %v1657_v44  ;;  %v1754_v44 = vld [vmem:[%s2318_s3 + $0x70] ss:$8 sps:$4 sm:$0xff]  }
  0x64   :  { %1076 = vmatpush1.bf16.msra.mxu0 %v1660_v45  ;;  %995 = vmatprep.subr.bf16.mxu1 %v1665_v46  ;;  %v1757_v45 = vld [vmem:[%s2317_s0 + $0x20] ss:$0 sps:$4 sm:$0xff]   ;;  %v1152_v46 = vld [vmem:[%s2317_s0 + $0x10] sm:$0xf] }
  0x65   :  { %1077 = vmatprep.subr.bf16.mxu0 %v1668_v47 }
  0x67   :  { %996 = vmatpush1.bf16.msra.mxu1 %v1663_v48 }
  0x68   :  { %1078 = vmatpush1.bf16.msra.mxu0 %v1666_v49  ;;  %997 = vmatprep.subr.bf16.mxu1 %v1671_v50 }
  0x69   :  { %1079 = vmatprep.subr.bf16.mxu0 %v1674_v51  ;;  %v174_v51 = vlaneseq }
  0x6b   :  { %998 = vmatpush1.bf16.msra.mxu1 %v1669_v52  ;;  %v175_v52 = vshrl.u32 %v174_v51, 7 }
  0x6c   :  { %1080 = vmatpush1.bf16.msra.mxu0 %v1672_v53  ;;  %999 = vmatprep.subr.bf16.mxu1 %v1677_v54  ;;  %v172_v54 = vld [vmem:[%s2319_s2] sm:$0x3] }
  0x6d   :  { %1081 = vmatprep.subr.bf16.mxu0 %v1680_v55  ;;  %v176_v53 = vsub.s32 0, %v175_v52  ;;  %v180_v55 = vsub.s32 1, %v175_v52 }
  0x6f   :  { %1000 = vmatpush1.bf16.msra.mxu1 %v1675_v56  ;;  %v1169_v56 = vld [vmem:[%s2320_s4] sm:$0x3] }
  0x70   :  { %1082 = vmatpush1.bf16.msra.mxu0 %v1678_v57  ;;  %1001 = vmatprep.subr.bf16.mxu1 %v1683_v58  ;;  %v177_v57 = vrot.slane %v172_v54, %v176_v53  ;;  %v181_v58 = vrot.slane %v172_v54, %v180_v55 }
  0x71   :  { %1083 = vmatprep.subr.bf16.mxu0 %v1686_v59  ;;  %v1174_v59 = vrot.slane %v1169_v56, %v176_v53 }
  0x73   :  { %1002 = vmatpush1.bf16.msra.mxu1 %v1681_v60  ;;  %v1178_v60 = vrot.slane %v1169_v56, %v180_v55 }
  0x74   :  { %1084 = vmatpush1.bf16.msra.mxu0 %v1684_v61  ;;  %1003 = vmatprep.subr.bf16.mxu1 %v1689_v62 }
  0x75   :  { %1085 = vmatprep.subr.bf16.mxu0 %v1692_v63 }
  0x77   :  { %1004 = vmatpush1.bf16.msra.mxu1 %v1687_v0 }
  0x78   :  { %1086 = vmatpush1.bf16.msra.mxu0 %v1690_v1  ;;  %1005 = vmatprep.subr.bf16.mxu1 %v1695_v2 }
  0x79   :  { %1087 = vmatprep.subr.bf16.mxu0 %v1698_v3 }
  0x7b   :  { %1006 = vmatpush1.bf16.msra.mxu1 %v1693_v4 }
  0x7c   :  { %1088 = vmatpush1.bf16.msra.mxu0 %v1696_v5  ;;  %1007 = vmatprep.subr.bf16.mxu1 %v1701_v6 }
  0x7d   :  { %1089 = vmatprep.subr.bf16.mxu0 %v1704_v7 }
  0x7f   :  { %1008 = vmatpush1.bf16.msra.mxu1 %v1699_v8 }
  0x80   :  { %1090 = vmatpush1.bf16.msra.mxu0 %v1702_v9  ;;  %1261 = vmatprep.subr.bf16.mxu1 %v1714_v11 }
  0x81   :  { %1100 = vmatprep.subr.bf16.mxu0 %v1711_v10 }
  0x82   :  { %1010 = vmatmul.mubr.bf16.vlgmr.msra.gmra.mrb[0].mxu1 %v1321_v12 }
  0x83   :  { %1092 = vmatmul.mubr.bf16.vlgmr.msra.gmra.mrb[0].mxu0 %v1325_v13  ;;  %1262 = vmatpush1.bf16.msra.mxu1 %v1712_v15 }
  0x84   :  { %1101 = vmatpush1.bf16.msra.mxu0 %v1709_v14  ;;  %1263 = vmatprep.subr.bf16.mxu1 %v1720_v17 }
  0x85   :  { %1102 = vmatprep.subr.bf16.mxu0 %v1717_v16  ;;  %1132 = vmatprep.mubr.bf16.mxu0 %v1758_v22 }
  0x86   :  { %1293 = vmatprep.mubr.bf16.mxu1 %v1758_v22 }
  0x87   :  { %1264 = vmatpush1.bf16.msra.mxu1 %v1718_v19 }
  0x88   :  { %1103 = vmatpush1.bf16.msra.mxu0 %v1715_v18  ;;  %1265 = vmatprep.subr.bf16.mxu1 %v1726_v21 }
  0x89   :  { %1104 = vmatprep.subr.bf16.mxu0 %v1723_v20 }
  0x8b   :  { %1266 = vmatpush1.bf16.msra.mxu1 %v1724_v24 }
  0x8c   :  { %1105 = vmatpush1.bf16.msra.mxu0 %v1721_v23  ;;  %1267 = vmatprep.subr.bf16.mxu1 %v1732_v26 }
  0x8d   :  { %1106 = vmatprep.subr.bf16.mxu0 %v1729_v25 }
  0x8f   :  { %1268 = vmatpush1.bf16.msra.mxu1 %v1730_v28 }
  0x90   :  { %1107 = vmatpush1.bf16.msra.mxu0 %v1727_v27  ;;  %1269 = vmatprep.subr.bf16.mxu1 %v1738_v30 }
  0x91   :  { %1108 = vmatprep.subr.bf16.mxu0 %v1735_v29 }
  0x93   :  { %1270 = vmatpush1.bf16.msra.mxu1 %v1736_v32 }
  0x94   :  { %1109 = vmatpush1.bf16.msra.mxu0 %v1733_v31  ;;  %1271 = vmatprep.subr.bf16.mxu1 %v1744_v34 }
  0x95   :  { %1110 = vmatprep.subr.bf16.mxu0 %v1741_v33 }
  0x97   :  { %1272 = vmatpush1.bf16.msra.mxu1 %v1742_v36 }
  0x98   :  { %1111 = vmatpush1.bf16.msra.mxu0 %v1739_v35  ;;  %1273 = vmatprep.subr.bf16.mxu1 %v1750_v38 }
  0x99   :  { %1112 = vmatprep.subr.bf16.mxu0 %v1747_v37 }
  0x9b   :  { %1274 = vmatpush1.bf16.msra.mxu1 %v1748_v40 }
  0x9c   :  { %1113 = vmatpush1.bf16.msra.mxu0 %v1745_v39  ;;  %1275 = vmatprep.subr.bf16.mxu1 %v1756_v42 }
  0x9d   :  { %1114 = vmatprep.subr.bf16.mxu0 %v1753_v41 }
  0x9f   :  { %1276 = vmatpush1.bf16.msra.mxu1 %v1754_v44 }
  0xa0   :  { %1115 = vmatpush1.bf16.msra.mxu0 %v1751_v43 }
  0xa2   :  { %1294 = vmatmul.mubr.bf16.vlgmr.msra.gmra.mrb[4].mxu1 %v1152_v46 }
  0xa3   :  { %1133 = vmatmul.mubr.bf16.vlgmr.msra.gmra.mrb[0].mxu0 %v1757_v45 }
 0x155   :  { %v1011_v47 = vpop.f32.mrb[0].mxu1 }
 0x156   :  { %v1013_v48 = vpop.f32.mrb[1].mxu1  ;;  %v1492_v61 = vadd.f32 %v1011_v47, %v177_v57 }
 0x157   :  { %v1015_v49 = vpop.f32.mrb[2].mxu1  ;;  %v1494_v62 = vadd.f32 %v1013_v48, %v181_v58 }
 0x158   :  { %v1016_v50 = vpop.f32.mrb[3].mxu1 }
 0x175   :  { %v1295_v0 = vpop.f32.mrb[4].mxu1 }
 0x176   :  { %v1134_v63 = vpop.f32.mrb[0].mxu0  ;;  %v1296_v2 = vadd.f32 %v1295_v0, %v1174_v59  ;;  %v1297_v4 = vpop.f32.mrb[5].mxu1 }
 0x177   :  { %v1493_v1 = vadd.f32 %v1492_v61, %v1134_v63  ;;  %v1136_v3 = vpop.f32.mrb[1].mxu0  ;;  %v1298_v6 = vadd.f32 %v1297_v4, %v1178_v60  ;;  %v1299_v8 = vpop.f32.mrb[6].mxu1 }
 0x178   :  { %v1495_v5 = vadd.f32 %v1494_v62, %v1136_v3  ;;  %v1138_v7 = vpop.f32.mrb[2].mxu0  ;;  %v1300_v11 = vpop.f32.mrb[7].mxu1 }
 0x179   :  { %v1141_v9 = vmax.f32 %v1493_v1, 0.0  ;;  %v1139_v10 = vpop.f32.mrb[3].mxu0  ;;  %v1491_v13 = vpack.c.bf16 %v1298_v6, %v1296_v2 }
 0x17a   :  { %v1142_v12 = vmax.f32 %v1495_v5, 0.0 }
 0x17b   :  { %1310 = vst [vmem:[%s2321_s6] sm:$0xff] %v1491_v13 }
 0x17c   :  { %v1490_v14 = vpack.c.bf16 %v1142_v12, %v1141_v9 }
 0x17e   :  { %1151 = vst [vmem:[%s2322_s5] sm:$0xff] %v1490_v14 }

// kernel: _lambda_.17
= control target key start
LH: loop header
LB: loop body
LE: loop exit
PB: predicated region body
PF: predicated region fallthrough
CT: control target
= control target key end

     0   :  { %s3943_s1 = inlined_call_operand.vmem [shape: bf16[2304,256], index: 1, kind: input, shape index: {}]   ;;  %s3944_s0 = inlined_call_operand.vmem [shape: bf16[8,2304], index: 0, kind: input, shape index: {}]   ;;  %s3945_s2 = inlined_call_operand.vmem [shape: f32[1,256], index: 2, kind: input, shape index: {}]   ;;  %s3946_s3 = inlined_call_operand.vmem [shape: bf16[8,256], index: 3, kind: input, shape index: {}]   ;;  %s3947_s4 = inlined_call_operand.vmem [shape: bf16[8,256], index: 4, kind: output, shape index: {}]  }
   0x1   :  { %v2526_v0 = vld [vmem:[%s3943_s1 + $0x4] ss:$8 sps:$4 sm:$0xff]   ;;  %v2528_v1 = vld [vmem:[%s3943_s1] ss:$8 sps:$4 sm:$0xff]   ;;  %v2532_v4 = vld [vmem:[%s3943_s1 + $0x14] ss:$8 sps:$4 sm:$0xff]  }
   0x2   :  { %1829 = vmatprep.subr.bf16.mxu0 %v2526_v0  ;;  %v2529_v2 = vld [vmem:[%s3943_s1 + $0x104] ss:$8 sps:$4 sm:$0xff]   ;;  %v2531_v3 = vld [vmem:[%s3943_s1 + $0x100] ss:$8 sps:$4 sm:$0xff]   ;;  %v2534_v5 = vld [vmem:[%s3943_s1 + $0x10] ss:$8 sps:$4 sm:$0xff]  }
   0x3   :  { %1830 = vmatpush1.bf16.msra.mxu0 %v2528_v1  ;;  %1870 = vmatprep.subr.bf16.mxu1 %v2529_v2  ;;  %v2535_v6 = vld [vmem:[%s3943_s1 + $0x114] ss:$8 sps:$4 sm:$0xff]   ;;  %v2537_v7 = vld [vmem:[%s3943_s1 + $0x110] ss:$8 sps:$4 sm:$0xff]   ;;  %v2538_v8 = vld [vmem:[%s3943_s1 + $0x24] ss:$8 sps:$4 sm:$0xff]  }
   0x4   :  { %1871 = vmatpush1.bf16.msra.mxu1 %v2531_v3  ;;  %1831 = vmatprep.subr.bf16.mxu0 %v2532_v4  ;;  %v2540_v9 = vld [vmem:[%s3943_s1 + $0x20] ss:$8 sps:$4 sm:$0xff]   ;;  %v2541_v10 = vld [vmem:[%s3943_s1 + $0x124] ss:$8 sps:$4 sm:$0xff]   ;;  %v2544_v11 = vld [vmem:[%s3943_s1 + $0x34] ss:$8 sps:$4 sm:$0xff]  }
   0x5   :  { %1872 = vmatprep.subr.bf16.mxu1 %v2535_v6  ;;  %v2543_v12 = vld [vmem:[%s3943_s1 + $0x120] ss:$8 sps:$4 sm:$0xff]   ;;  %v2547_v13 = vld [vmem:[%s3943_s1 + $0x134] ss:$8 sps:$4 sm:$0xff]   ;;  %v2546_v14 = vld [vmem:[%s3943_s1 + $0x30] ss:$8 sps:$4 sm:$0xff]  }
   0x6   :  { %v2550_v15 = vld [vmem:[%s3943_s1 + $0x44] ss:$8 sps:$4 sm:$0xff]   ;;  %v2549_v16 = vld [vmem:[%s3943_s1 + $0x130] ss:$8 sps:$4 sm:$0xff]   ;;  %v2552_v18 = vld [vmem:[%s3943_s1 + $0x40] ss:$8 sps:$4 sm:$0xff]  }
   0x7   :  { %1832 = vmatpush1.bf16.msra.mxu0 %v2534_v5  ;;  %v2553_v17 = vld [vmem:[%s3943_s1 + $0x144] ss:$8 sps:$4 sm:$0xff]   ;;  %v2556_v19 = vld [vmem:[%s3943_s1 + $0x54] ss:$8 sps:$4 sm:$0xff]   ;;  %v2555_v20 = vld [vmem:[%s3943_s1 + $0x140] ss:$8 sps:$4 sm:$0xff]  }
   0x8   :  { %1833 = vmatprep.subr.bf16.mxu0 %v2538_v8  ;;  %1873 = vmatpush1.bf16.msra.mxu1 %v2537_v7  ;;  %v2559_v21 = vld [vmem:[%s3943_s1 + $0x154] ss:$8 sps:$4 sm:$0xff]   ;;  %v2558_v22 = vld [vmem:[%s3943_s1 + $0x50] ss:$8 sps:$4 sm:$0xff]   ;;  %v2562_v23 = vld [vmem:[%s3943_s1 + $0x64] ss:$8 sps:$4 sm:$0xff]  }
   0x9   :  { %1874 = vmatprep.subr.bf16.mxu1 %v2541_v10  ;;  %v2561_v24 = vld [vmem:[%s3943_s1 + $0x150] ss:$8 sps:$4 sm:$0xff]   ;;  %v2565_v25 = vld [vmem:[%s3943_s1 + $0x164] ss:$8 sps:$4 sm:$0xff]   ;;  %v2564_v26 = vld [vmem:[%s3943_s1 + $0x60] ss:$8 sps:$4 sm:$0xff]  }
   0xa   :  { %v2568_v27 = vld [vmem:[%s3943_s1 + $0x74] ss:$8 sps:$4 sm:$0xff]   ;;  %v2567_v28 = vld [vmem:[%s3943_s1 + $0x160] ss:$8 sps:$4 sm:$0xff]   ;;  %v2570_v30 = vld [vmem:[%s3943_s1 + $0x70] ss:$8 sps:$4 sm:$0xff]  }
   0xb   :  { %1834 = vmatpush1.bf16.msra.mxu0 %v2540_v9  ;;  %v2571_v29 = vld [vmem:[%s3943_s1 + $0x174] ss:$8 sps:$4 sm:$0xff]   ;;  %v2574_v31 = vld [vmem:[%s3943_s1 + $0x84] ss:$8 sps:$4 sm:$0xff]   ;;  %v2573_v32 = vld [vmem:[%s3943_s1 + $0x170] ss:$8 sps:$4 sm:$0xff]  }
   0xc   :  { %1835 = vmatprep.subr.bf16.mxu0 %v2544_v11  ;;  %1875 = vmatpush1.bf16.msra.mxu1 %v2543_v12  ;;  %v2577_v33 = vld [vmem:[%s3943_s1 + $0x184] ss:$8 sps:$4 sm:$0xff]   ;;  %v2576_v34 = vld [vmem:[%s3943_s1 + $0x80] ss:$8 sps:$4 sm:$0xff]   ;;  %v2580_v35 = vld [vmem:[%s3943_s1 + $0x94] ss:$8 sps:$4 sm:$0xff]  }
   0xd   :  { %1876 = vmatprep.subr.bf16.mxu1 %v2547_v13  ;;  %v2579_v36 = vld [vmem:[%s3943_s1 + $0x180] ss:$8 sps:$4 sm:$0xff]   ;;  %v2583_v37 = vld [vmem:[%s3943_s1 + $0x194] ss:$8 sps:$4 sm:$0xff]   ;;  %v2582_v38 = vld [vmem:[%s3943_s1 + $0x90] ss:$8 sps:$4 sm:$0xff]  }
   0xe   :  { %v2586_v39 = vld [vmem:[%s3943_s1 + $0xa4] ss:$8 sps:$4 sm:$0xff]   ;;  %v2585_v40 = vld [vmem:[%s3943_s1 + $0x190] ss:$8 sps:$4 sm:$0xff]   ;;  %v2588_v42 = vld [vmem:[%s3943_s1 + $0xa0] ss:$8 sps:$4 sm:$0xff]  }
   0xf   :  { %1836 = vmatpush1.bf16.msra.mxu0 %v2546_v14  ;;  %v2589_v41 = vld [vmem:[%s3943_s1 + $0x1a4] ss:$8 sps:$4 sm:$0xff]   ;;  %v2592_v43 = vld [vmem:[%s3943_s1 + $0xb4] ss:$8 sps:$4 sm:$0xff]   ;;  %v2591_v44 = vld [vmem:[%s3943_s1 + $0x1a0] ss:$8 sps:$4 sm:$0xff]  }
  0x10   :  { %1837 = vmatprep.subr.bf16.mxu0 %v2550_v15  ;;  %1877 = vmatpush1.bf16.msra.mxu1 %v2549_v16  ;;  %v2595_v45 = vld [vmem:[%s3943_s1 + $0x1b4] ss:$8 sps:$4 sm:$0xff]   ;;  %v17_v46 = vld [vmem:[%s3944_s0] sm:$0xff]  ;;  %v2594_v47 = vld [vmem:[%s3943_s1 + $0xb0] ss:$8 sps:$4 sm:$0xff]  }
  0x11   :  { %1878 = vmatprep.subr.bf16.mxu1 %v2553_v17  ;;  %v2219_v48 = vcombine.high %v17_v46, %v17_v46  ;;  %v2598_v49 = vld [vmem:[%s3943_s1 + $0xc4] ss:$8 sps:$4 sm:$0xff]   ;;  %v2597_v51 = vld [vmem:[%s3943_s1 + $0x1b0] ss:$8 sps:$4 sm:$0xff]   ;;  %v2600_v54 = vld [vmem:[%s3943_s1 + $0xc0] ss:$8 sps:$4 sm:$0xff]   ;;  %v2218_v5 = vcombine.low %v17_v46, %v17_v46 }
  0x12   :  { %v18_v50 = vld [vmem:[%s3944_s0 + $0x8] sm:$0xff]  ;;  %v2604_v55 = vld [vmem:[%s3943_s1 + $0xd4] ss:$8 sps:$4 sm:$0xff]   ;;  %v2606_v58 = vld [vmem:[%s3943_s1 + $0xd0] ss:$8 sps:$4 sm:$0xff]  }
  0x13   :  { %1838 = vmatpush1.bf16.msra.mxu0 %v2552_v18  ;;  %1861 = vmatprep.mubr.bf16.mxu0 %v2219_v48  ;;  %v2221_v52 = vcombine.high %v18_v50, %v18_v50  ;;  %v2601_v53 = vld [vmem:[%s3943_s1 + $0x1c4] ss:$8 sps:$4 sm:$0xff]   ;;  %v2603_v56 = vld [vmem:[%s3943_s1 + $0x1c0] ss:$8 sps:$4 sm:$0xff]   ;;  %v2607_v57 = vld [vmem:[%s3943_s1 + $0x1d4] ss:$8 sps:$4 sm:$0xff]   ;;  %v2220_v8 = vcombine.low %v18_v50, %v18_v50 }
  0x14   :  { %1839 = vmatprep.subr.bf16.mxu0 %v2556_v19  ;;  %1879 = vmatpush1.bf16.msra.mxu1 %v2555_v20  ;;  %v2610_v59 = vld [vmem:[%s3943_s1 + $0xe4] ss:$8 sps:$4 sm:$0xff]   ;;  %v2609_v60 = vld [vmem:[%s3943_s1 + $0x1d0] ss:$8 sps:$4 sm:$0xff]   ;;  %v2612_v62 = vld [vmem:[%s3943_s1 + $0xe0] ss:$8 sps:$4 sm:$0xff]  }
  0x15   :  { %1880 = vmatprep.subr.bf16.mxu1 %v2559_v21  ;;  %1902 = vmatprep.mubr.bf16.mxu1 %v2221_v52  ;;  %v2613_v61 = vld [vmem:[%s3943_s1 + $0x1e4] ss:$8 sps:$4 sm:$0xff]   ;;  %v2616_v63 = vld [vmem:[%s3943_s1 + $0xf4] ss:$8 sps:$4 sm:$0xff]   ;;  %v2615_v0 = vld [vmem:[%s3943_s1 + $0x1e0] ss:$8 sps:$4 sm:$0xff]  }
  0x16   :  { %v2619_v1 = vld [vmem:[%s3943_s1 + $0x1f4] ss:$8 sps:$4 sm:$0xff]   ;;  %v2618_v2 = vld [vmem:[%s3943_s1 + $0xf0] ss:$8 sps:$4 sm:$0xff]   ;;  %v2626_v3 = vld [vmem:[%s3943_s1 + $0x204] ss:$8 sps:$4 sm:$0xff]  }
  0x17   :  { %1840 = vmatpush1.bf16.msra.mxu0 %v2558_v22  ;;  %v2623_v4 = vld [vmem:[%s3943_s1 + $0x1f0] ss:$8 sps:$4 sm:$0xff]   ;;  %v2631_v6 = vld [vmem:[%s3943_s1 + $0x304] ss:$8 sps:$4 sm:$0xff]   ;;  %v2624_v7 = vld [vmem:[%s3943_s1 + $0x200] ss:$8 sps:$4 sm:$0xff]  }
  0x18   :  { %1841 = vmatprep.subr.bf16.mxu0 %v2562_v23  ;;  %1881 = vmatpush1.bf16.msra.mxu1 %v2561_v24  ;;  %v2634_v9 = vld [vmem:[%s3943_s1 + $0x214] ss:$8 sps:$4 sm:$0xff]   ;;  %v2629_v10 = vld [vmem:[%s3943_s1 + $0x300] ss:$8 sps:$4 sm:$0xff]   ;;  %v2632_v12 = vld [vmem:[%s3943_s1 + $0x210] ss:$8 sps:$4 sm:$0xff]  }
  0x19   :  { %1882 = vmatprep.subr.bf16.mxu1 %v2565_v25  ;;  %v2637_v11 = vld [vmem:[%s3943_s1 + $0x314] ss:$8 sps:$4 sm:$0xff]   ;;  %v2640_v13 = vld [vmem:[%s3943_s1 + $0x224] ss:$8 sps:$4 sm:$0xff]   ;;  %v2635_v14 = vld [vmem:[%s3943_s1 + $0x310] ss:$8 sps:$4 sm:$0xff]  }
  0x1a   :  { %v2643_v15 = vld [vmem:[%s3943_s1 + $0x324] ss:$8 sps:$4 sm:$0xff]   ;;  %v2638_v16 = vld [vmem:[%s3943_s1 + $0x220] ss:$8 sps:$4 sm:$0xff]   ;;  %v2646_v17 = vld [vmem:[%s3943_s1 + $0x234] ss:$8 sps:$4 sm:$0xff]  }
  0x1b   :  { %1842 = vmatpush1.bf16.msra.mxu0 %v2564_v26  ;;  %v2641_v18 = vld [vmem:[%s3943_s1 + $0x320] ss:$8 sps:$4 sm:$0xff]   ;;  %v2649_v19 = vld [vmem:[%s3943_s1 + $0x334] ss:$8 sps:$4 sm:$0xff]   ;;  %v2644_v20 = vld [vmem:[%s3943_s1 + $0x230] ss:$8 sps:$4 sm:$0xff]  }
  0x1c   :  { %1843 = vmatprep.subr.bf16.mxu0 %v2568_v27  ;;  %1883 = vmatpush1.bf16.msra.mxu1 %v2567_v28  ;;  %v2652_v21 = vld [vmem:[%s3943_s1 + $0x244] ss:$8 sps:$4 sm:$0xff]   ;;  %v2647_v22 = vld [vmem:[%s3943_s1 + $0x330] ss:$8 sps:$4 sm:$0xff]   ;;  %v2650_v24 = vld [vmem:[%s3943_s1 + $0x240] ss:$8 sps:$4 sm:$0xff]  }
  0x1d   :  { %1884 = vmatprep.subr.bf16.mxu1 %v2571_v29  ;;  %v2655_v23 = vld [vmem:[%s3943_s1 + $0x344] ss:$8 sps:$4 sm:$0xff]   ;;  %v2658_v25 = vld [vmem:[%s3943_s1 + $0x254] ss:$8 sps:$4 sm:$0xff]   ;;  %v2653_v26 = vld [vmem:[%s3943_s1 + $0x340] ss:$8 sps:$4 sm:$0xff]  }
  0x1e   :  { %v2661_v27 = vld [vmem:[%s3943_s1 + $0x354] ss:$8 sps:$4 sm:$0xff]   ;;  %v2656_v28 = vld [vmem:[%s3943_s1 + $0x250] ss:$8 sps:$4 sm:$0xff]   ;;  %v2664_v29 = vld [vmem:[%s3943_s1 + $0x264] ss:$8 sps:$4 sm:$0xff]  }
  0x1f   :  { %1844 = vmatpush1.bf16.msra.mxu0 %v2570_v30  ;;  %v2659_v30 = vld [vmem:[%s3943_s1 + $0x350] ss:$8 sps:$4 sm:$0xff]   ;;  %v2677_v46 = vld [vmem:[%s3943_s1 + $0x380] ss:$8 sps:$4 sm:$0xff]  }
  0x20   :  { %1845 = vmatprep.subr.bf16.mxu0 %v2574_v31  ;;  %1885 = vmatpush1.bf16.msra.mxu1 %v2573_v32  ;;  %v2667_v31 = vld [vmem:[%s3943_s1 + $0x364] ss:$8 sps:$4 sm:$0xff]   ;;  %v3280_v32 = vld [vmem:[%s3944_s0 + $0x10] sm:$0xff]  ;;  %v2686_v52 = vld [vmem:[%s3943_s1 + $0x2a0] ss:$8 sps:$4 sm:$0xff]  }
  0x21   :  { %1886 = vmatprep.subr.bf16.mxu1 %v2577_v33  ;;  %v2662_v33 = vld [vmem:[%s3943_s1 + $0x260] ss:$8 sps:$4 sm:$0xff]   ;;  %v2680_v48 = vld [vmem:[%s3943_s1 + $0x290] ss:$8 sps:$4 sm:$0xff]  }
  0x22   :  { %v2683_v50 = vld [vmem:[%s3943_s1 + $0x390] ss:$8 sps:$4 sm:$0xff]  }
  0x23   :  { %1846 = vmatpush1.bf16.msra.mxu0 %v2576_v34  ;;  %v2223_v34 = vcombine.high %v3280_v32, %v3280_v32 }
  0x24   :  { %1847 = vmatprep.subr.bf16.mxu0 %v2580_v35  ;;  %1887 = vmatpush1.bf16.msra.mxu1 %v2579_v36  ;;  %v3290_v35 = vld [vmem:[%s3944_s0 + $0x18] sm:$0xff] }
  0x25   :  { %1888 = vmatprep.subr.bf16.mxu1 %v2583_v37  ;;  %v2670_v36 = vld [vmem:[%s3943_s1 + $0x274] ss:$8 sps:$4 sm:$0xff]   ;;  %v2225_v37 = vcombine.high %v3290_v35, %v3290_v35 }
  0x27   :  { %1848 = vmatpush1.bf16.msra.mxu0 %v2582_v38  ;;  %v2665_v38 = vld [vmem:[%s3943_s1 + $0x360] ss:$8 sps:$4 sm:$0xff]  }
  0x28   :  { %1849 = vmatprep.subr.bf16.mxu0 %v2586_v39  ;;  %1889 = vmatpush1.bf16.msra.mxu1 %v2585_v40  ;;  %v2673_v39 = vld [vmem:[%s3943_s1 + $0x374] ss:$8 sps:$4 sm:$0xff]   ;;  %v2668_v40 = vld [vmem:[%s3943_s1 + $0x270] ss:$8 sps:$4 sm:$0xff]  }
  0x29   :  { %1890 = vmatprep.subr.bf16.mxu1 %v2589_v41  ;;  %v2676_v41 = vld [vmem:[%s3943_s1 + $0x284] ss:$8 sps:$4 sm:$0xff]  }
  0x2b   :  { %1850 = vmatpush1.bf16.msra.mxu0 %v2588_v42  ;;  %v2671_v42 = vld [vmem:[%s3943_s1 + $0x370] ss:$8 sps:$4 sm:$0xff]  }
  0x2c   :  { %1851 = vmatprep.subr.bf16.mxu0 %v2592_v43  ;;  %1891 = vmatpush1.bf16.msra.mxu1 %v2591_v44  ;;  %v2679_v43 = vld [vmem:[%s3943_s1 + $0x384] ss:$8 sps:$4 sm:$0xff]   ;;  %v2674_v44 = vld [vmem:[%s3943_s1 + $0x280] ss:$8 sps:$4 sm:$0xff]  }
  0x2d   :  { %1892 = vmatprep.subr.bf16.mxu1 %v2595_v45  ;;  %v2682_v45 = vld [vmem:[%s3943_s1 + $0x294] ss:$8 sps:$4 sm:$0xff]  }
  0x2f   :  { %1852 = vmatpush1.bf16.msra.mxu0 %v2594_v47  ;;  %v2685_v47 = vld [vmem:[%s3943_s1 + $0x394] ss:$8 sps:$4 sm:$0xff]  }
  0x30   :  { %1853 = vmatprep.subr.bf16.mxu0 %v2598_v49  ;;  %1893 = vmatpush1.bf16.msra.mxu1 %v2597_v51  ;;  %v2688_v49 = vld [vmem:[%s3943_s1 + $0x2a4] ss:$8 sps:$4 sm:$0xff]  }
  0x31   :  { %1894 = vmatprep.subr.bf16.mxu1 %v2601_v53  ;;  %v2691_v51 = vld [vmem:[%s3943_s1 + $0x3a4] ss:$8 sps:$4 sm:$0xff]   ;;  %v2694_v53 = vld [vmem:[%s3943_s1 + $0x2b4] ss:$8 sps:$4 sm:$0xff]  }
  0x33   :  { %1854 = vmatpush1.bf16.msra.mxu0 %v2600_v54  ;;  %v2689_v54 = vld [vmem:[%s3943_s1 + $0x3a0] ss:$8 sps:$4 sm:$0xff]  }
  0x34   :  { %1855 = vmatprep.subr.bf16.mxu0 %v2604_v55  ;;  %1895 = vmatpush1.bf16.msra.mxu1 %v2603_v56  ;;  %v2697_v55 = vld [vmem:[%s3943_s1 + $0x3b4] ss:$8 sps:$4 sm:$0xff]   ;;  %v2692_v56 = vld [vmem:[%s3943_s1 + $0x2b0] ss:$8 sps:$4 sm:$0xff]  }
  0x35   :  { %1896 = vmatprep.subr.bf16.mxu1 %v2607_v57  ;;  %v2700_v57 = vld [vmem:[%s3943_s1 + $0x2c4] ss:$8 sps:$4 sm:$0xff]  }
  0x37   :  { %1856 = vmatpush1.bf16.msra.mxu0 %v2606_v58  ;;  %v2695_v58 = vld [vmem:[%s3943_s1 + $0x3b0] ss:$8 sps:$4 sm:$0xff]  }
  0x38   :  { %1857 = vmatprep.subr.bf16.mxu0 %v2610_v59  ;;  %1897 = vmatpush1.bf16.msra.mxu1 %v2609_v60  ;;  %v2703_v59 = vld [vmem:[%s3943_s1 + $0x3c4] ss:$8 sps:$4 sm:$0xff]   ;;  %v2698_v60 = vld [vmem:[%s3943_s1 + $0x2c0] ss:$8 sps:$4 sm:$0xff]  }
  0x39   :  { %1898 = vmatprep.subr.bf16.mxu1 %v2613_v61  ;;  %v2706_v61 = vld [vmem:[%s3943_s1 + $0x2d4] ss:$8 sps:$4 sm:$0xff]  }
  0x3b   :  { %1858 = vmatpush1.bf16.msra.mxu0 %v2612_v62  ;;  %v2701_v62 = vld [vmem:[%s3943_s1 + $0x3c0] ss:$8 sps:$4 sm:$0xff]  }
  0x3c   :  { %1859 = vmatprep.subr.bf16.mxu0 %v2616_v63  ;;  %1899 = vmatpush1.bf16.msra.mxu1 %v2615_v0  ;;  %v2709_v63 = vld [vmem:[%s3943_s1 + $0x3d4] ss:$8 sps:$4 sm:$0xff]   ;;  %v2704_v0 = vld [vmem:[%s3943_s1 + $0x2d0] ss:$8 sps:$4 sm:$0xff]  }
  0x3d   :  { %1900 = vmatprep.subr.bf16.mxu1 %v2619_v1  ;;  %v2712_v1 = vld [vmem:[%s3943_s1 + $0x2e4] ss:$8 sps:$4 sm:$0xff]  }
  0x3f   :  { %1860 = vmatpush1.bf16.msra.mxu0 %v2618_v2  ;;  %v2707_v2 = vld [vmem:[%s3943_s1 + $0x3d0] ss:$8 sps:$4 sm:$0xff]  }
  0x40   :  { %1911 = vmatprep.subr.bf16.mxu0 %v2626_v3  ;;  %1901 = vmatpush1.bf16.msra.mxu1 %v2623_v4  ;;  %v2715_v3 = vld [vmem:[%s3943_s1 + $0x3e4] ss:$8 sps:$4 sm:$0xff]   ;;  %v2710_v4 = vld [vmem:[%s3943_s1 + $0x2e0] ss:$8 sps:$4 sm:$0xff]  }
  0x41   :  { %1952 = vmatprep.subr.bf16.mxu1 %v2631_v6  ;;  %v2713_v6 = vld [vmem:[%s3943_s1 + $0x3e0] ss:$8 sps:$4 sm:$0xff]  }
  0x42   :  { %1862 = vmatmul.mubr.bf16.vlgmr.msra.gmra.mrb[0].mxu0 %v2218_v5  ;;  %v2718_v5 = vld [vmem:[%s3943_s1 + $0x2f4] ss:$8 sps:$4 sm:$0xff]  }
  0x43   :  { %1912 = vmatpush1.bf16.msra.mxu0 %v2624_v7  ;;  %1903 = vmatmul.mubr.bf16.vlgmr.msra.gmra.mrb[0].mxu1 %v2220_v8  ;;  %v2721_v7 = vld [vmem:[%s3943_s1 + $0x3f4] ss:$8 sps:$4 sm:$0xff]   ;;  %v2716_v8 = vld [vmem:[%s3943_s1 + $0x2f0] ss:$8 sps:$4 sm:$0xff]  }
  0x44   :  { %1913 = vmatprep.subr.bf16.mxu0 %v2634_v9  ;;  %1953 = vmatpush1.bf16.msra.mxu1 %v2629_v10  ;;  %v2726_v9 = vld [vmem:[%s3943_s1 + $0x404] ss:$8 sps:$4 sm:$0xff]   ;;  %v2719_v10 = vld [vmem:[%s3943_s1 + $0x3f0] ss:$8 sps:$4 sm:$0xff]  }
  0x45   :  { %1954 = vmatprep.subr.bf16.mxu1 %v2637_v11  ;;  %1943 = vmatprep.mubr.bf16.mxu0 %v2223_v34  ;;  %v2222_v11 = vcombine.low %v3280_v32, %v3280_v32  ;;  %v2747_v32 = vld [vmem:[%s3943_s1 + $0x530] ss:$8 sps:$4 sm:$0xff]   ;;  %v2750_v34 = vld [vmem:[%s3943_s1 + $0x440] ss:$8 sps:$4 sm:$0xff]  }
  0x46   :  { %1984 = vmatprep.mubr.bf16.mxu1 %v2225_v37  ;;  %v2761_v37 = vld [vmem:[%s3943_s1 + $0x554] ss:$8 sps:$4 sm:$0xff]  }
  0x47   :  { %1914 = vmatpush1.bf16.msra.mxu0 %v2632_v12  ;;  %v2731_v12 = vld [vmem:[%s3943_s1 + $0x504] ss:$8 sps:$4 sm:$0xff]  }
  0x48   :  { %1915 = vmatprep.subr.bf16.mxu0 %v2640_v13  ;;  %1955 = vmatpush1.bf16.msra.mxu1 %v2635_v14  ;;  %v2724_v13 = vld [vmem:[%s3943_s1 + $0x400] ss:$8 sps:$4 sm:$0xff]   ;;  %v2224_v14 = vcombine.low %v3290_v35, %v3290_v35  ;;  %v2758_v35 = vld [vmem:[%s3943_s1 + $0x454] ss:$8 sps:$4 sm:$0xff]  }
  0x49   :  { %1956 = vmatprep.subr.bf16.mxu1 %v2643_v15  ;;  %v2734_v15 = vld [vmem:[%s3943_s1 + $0x414] ss:$8 sps:$4 sm:$0xff]  }
  0x4b   :  { %1916 = vmatpush1.bf16.msra.mxu0 %v2638_v16  ;;  %v2729_v16 = vld [vmem:[%s3943_s1 + $0x500] ss:$8 sps:$4 sm:$0xff]  }
  0x4c   :  { %1917 = vmatprep.subr.bf16.mxu0 %v2646_v17  ;;  %1957 = vmatpush1.bf16.msra.mxu1 %v2641_v18  ;;  %v3427_v17 = vld [vmem:[%s3944_s0 + $0x20] sm:$0xff]  ;;  %v2732_v18 = vld [vmem:[%s3943_s1 + $0x410] ss:$8 sps:$4 sm:$0xff]  }
  0x4d   :  { %1958 = vmatprep.subr.bf16.mxu1 %v2649_v19  ;;  %v2737_v19 = vld [vmem:[%s3943_s1 + $0x514] ss:$8 sps:$4 sm:$0xff]  }
  0x4f   :  { %1918 = vmatpush1.bf16.msra.mxu0 %v2644_v20  ;;  %v2227_v20 = vcombine.high %v3427_v17, %v3427_v17 }
  0x50   :  { %1919 = vmatprep.subr.bf16.mxu0 %v2652_v21  ;;  %1959 = vmatpush1.bf16.msra.mxu1 %v2647_v22  ;;  %v3440_v21 = vld [vmem:[%s3944_s0 + $0x28] sm:$0xff] }
  0x51   :  { %1960 = vmatprep.subr.bf16.mxu1 %v2655_v23  ;;  %v2740_v22 = vld [vmem:[%s3943_s1 + $0x424] ss:$8 sps:$4 sm:$0xff]   ;;  %v2229_v23 = vcombine.high %v3440_v21, %v3440_v21 }
  0x53   :  { %1920 = vmatpush1.bf16.msra.mxu0 %v2650_v24  ;;  %v2735_v24 = vld [vmem:[%s3943_s1 + $0x510] ss:$8 sps:$4 sm:$0xff]  }
  0x54   :  { %1921 = vmatprep.subr.bf16.mxu0 %v2658_v25  ;;  %1961 = vmatpush1.bf16.msra.mxu1 %v2653_v26  ;;  %v2743_v25 = vld [vmem:[%s3943_s1 + $0x524] ss:$8 sps:$4 sm:$0xff]   ;;  %v2738_v26 = vld [vmem:[%s3943_s1 + $0x420] ss:$8 sps:$4 sm:$0xff]  }
  0x55   :  { %1962 = vmatprep.subr.bf16.mxu1 %v2661_v27  ;;  %v2746_v27 = vld [vmem:[%s3943_s1 + $0x434] ss:$8 sps:$4 sm:$0xff]  }
  0x57   :  { %1922 = vmatpush1.bf16.msra.mxu0 %v2656_v28  ;;  %v2741_v28 = vld [vmem:[%s3943_s1 + $0x520] ss:$8 sps:$4 sm:$0xff]  }
  0x58   :  { %1923 = vmatprep.subr.bf16.mxu0 %v2664_v29  ;;  %1963 = vmatpush1.bf16.msra.mxu1 %v2659_v30  ;;  %v2749_v29 = vld [vmem:[%s3943_s1 + $0x534] ss:$8 sps:$4 sm:$0xff]   ;;  %v2744_v30 = vld [vmem:[%s3943_s1 + $0x430] ss:$8 sps:$4 sm:$0xff]  }
  0x59   :  { %1964 = vmatprep.subr.bf16.mxu1 %v2667_v31  ;;  %v2752_v31 = vld [vmem:[%s3943_s1 + $0x444] ss:$8 sps:$4 sm:$0xff]  }
  0x5b   :  { %1924 = vmatpush1.bf16.msra.mxu0 %v2662_v33  ;;  %v2755_v33 = vld [vmem:[%s3943_s1 + $0x544] ss:$8 sps:$4 sm:$0xff]  }
  0x5c   :  { %1925 = vmatprep.subr.bf16.mxu0 %v2670_v36  ;;  %1965 = vmatpush1.bf16.msra.mxu1 %v2665_v38  ;;  %v2753_v36 = vld [vmem:[%s3943_s1 + $0x540] ss:$8 sps:$4 sm:$0xff]   ;;  %v2756_v38 = vld [vmem:[%s3943_s1 + $0x450] ss:$8 sps:$4 sm:$0xff]  }
  0x5d   :  { %1966 = vmatprep.subr.bf16.mxu1 %v2673_v39  ;;  %v2764_v39 = vld [vmem:[%s3943_s1 + $0x464] ss:$8 sps:$4 sm:$0xff]  }
  0x5f   :  { %1926 = vmatpush1.bf16.msra.mxu0 %v2668_v40  ;;  %v2759_v40 = vld [vmem:[%s3943_s1 + $0x550] ss:$8 sps:$4 sm:$0xff]  }
  0x60   :  { %1927 = vmatprep.subr.bf16.mxu0 %v2676_v41  ;;  %1967 = vmatpush1.bf16.msra.mxu1 %v2671_v42  ;;  %v2767_v41 = vld [vmem:[%s3943_s1 + $0x564] ss:$8 sps:$4 sm:$0xff]   ;;  %v2762_v42 = vld [vmem:[%s3943_s1 + $0x460] ss:$8 sps:$4 sm:$0xff]  }
  0x61   :  { %1968 = vmatprep.subr.bf16.mxu1 %v2679_v43  ;;  %v2770_v43 = vld [vmem:[%s3943_s1 + $0x474] ss:$8 sps:$4 sm:$0xff]  }
  0x63   :  { %1928 = vmatpush1.bf16.msra.mxu0 %v2674_v44  ;;  %v2765_v44 = vld [vmem:[%s3943_s1 + $0x560] ss:$8 sps:$4 sm:$0xff]  }
  0x64   :  { %1929 = vmatprep.subr.bf16.mxu0 %v2682_v45  ;;  %1969 = vmatpush1.bf16.msra.mxu1 %v2677_v46  ;;  %v2773_v45 = vld [vmem:[%s3943_s1 + $0x574] ss:$8 sps:$4 sm:$0xff]   ;;  %v2768_v46 = vld [vmem:[%s3943_s1 + $0x470] ss:$8 sps:$4 sm:$0xff]  }
  0x65   :  { %1970 = vmatprep.subr.bf16.mxu1 %v2685_v47  ;;  %v2776_v47 = vld [vmem:[%s3943_s1 + $0x484] ss:$8 sps:$4 sm:$0xff]  }
  0x67   :  { %1930 = vmatpush1.bf16.msra.mxu0 %v2680_v48  ;;  %v2771_v48 = vld [vmem:[%s3943_s1 + $0x570] ss:$8 sps:$4 sm:$0xff]  }
  0x68   :  { %1931 = vmatprep.subr.bf16.mxu0 %v2688_v49  ;;  %1971 = vmatpush1.bf16.msra.mxu1 %v2683_v50  ;;  %v2779_v49 = vld [vmem:[%s3943_s1 + $0x584] ss:$8 sps:$4 sm:$0xff]   ;;  %v2774_v50 = vld [vmem:[%s3943_s1 + $0x480] ss:$8 sps:$4 sm:$0xff]  }
  0x69   :  { %1972 = vmatprep.subr.bf16.mxu1 %v2691_v51  ;;  %v2782_v51 = vld [vmem:[%s3943_s1 + $0x494] ss:$8 sps:$4 sm:$0xff]  }
  0x6b   :  { %1932 = vmatpush1.bf16.msra.mxu0 %v2686_v52  ;;  %v2777_v52 = vld [vmem:[%s3943_s1 + $0x580] ss:$8 sps:$4 sm:$0xff]  }
  0x6c   :  { %1933 = vmatprep.subr.bf16.mxu0 %v2694_v53  ;;  %1973 = vmatpush1.bf16.msra.mxu1 %v2689_v54  ;;  %v2785_v53 = vld [vmem:[%s3943_s1 + $0x594] ss:$8 sps:$4 sm:$0xff]   ;;  %v2780_v54 = vld [vmem:[%s3943_s1 + $0x490] ss:$8 sps:$4 sm:$0xff]  }
  0x6d   :  { %1974 = vmatprep.subr.bf16.mxu1 %v2697_v55  ;;  %v2788_v55 = vld [vmem:[%s3943_s1 + $0x4a4] ss:$8 sps:$4 sm:$0xff]  }
  0x6f   :  { %1934 = vmatpush1.bf16.msra.mxu0 %v2692_v56  ;;  %v2783_v56 = vld [vmem:[%s3943_s1 + $0x590] ss:$8 sps:$4 sm:$0xff]  }
  0x70   :  { %1935 = vmatprep.subr.bf16.mxu0 %v2700_v57  ;;  %1975 = vmatpush1.bf16.msra.mxu1 %v2695_v58  ;;  %v2791_v57 = vld [vmem:[%s3943_s1 + $0x5a4] ss:$8 sps:$4 sm:$0xff]   ;;  %v2786_v58 = vld [vmem:[%s3943_s1 + $0x4a0] ss:$8 sps:$4 sm:$0xff]  }
  0x71   :  { %1976 = vmatprep.subr.bf16.mxu1 %v2703_v59  ;;  %v2794_v59 = vld [vmem:[%s3943_s1 + $0x4b4] ss:$8 sps:$4 sm:$0xff]  }
  0x73   :  { %1936 = vmatpush1.bf16.msra.mxu0 %v2698_v60  ;;  %v2789_v60 = vld [vmem:[%s3943_s1 + $0x5a0] ss:$8 sps:$4 sm:$0xff]  }
  0x74   :  { %1937 = vmatprep.subr.bf16.mxu0 %v2706_v61  ;;  %1977 = vmatpush1.bf16.msra.mxu1 %v2701_v62  ;;  %v2797_v61 = vld [vmem:[%s3943_s1 + $0x5b4] ss:$8 sps:$4 sm:$0xff]   ;;  %v2792_v62 = vld [vmem:[%s3943_s1 + $0x4b0] ss:$8 sps:$4 sm:$0xff]  }
  0x75   :  { %1978 = vmatprep.subr.bf16.mxu1 %v2709_v63  ;;  %v2800_v63 = vld [vmem:[%s3943_s1 + $0x4c4] ss:$8 sps:$4 sm:$0xff]  }
  0x77   :  { %1938 = vmatpush1.bf16.msra.mxu0 %v2704_v0  ;;  %v2795_v0 = vld [vmem:[%s3943_s1 + $0x5b0] ss:$8 sps:$4 sm:$0xff]  }
  0x78   :  { %1939 = vmatprep.subr.bf16.mxu0 %v2712_v1  ;;  %1979 = vmatpush1.bf16.msra.mxu1 %v2707_v2  ;;  %v2803_v1 = vld [vmem:[%s3943_s1 + $0x5c4] ss:$8 sps:$4 sm:$0xff]   ;;  %v2798_v2 = vld [vmem:[%s3943_s1 + $0x4c0] ss:$8 sps:$4 sm:$0xff]  }
  0x79   :  { %1980 = vmatprep.subr.bf16.mxu1 %v2715_v3  ;;  %v2806_v3 = vld [vmem:[%s3943_s1 + $0x4d4] ss:$8 sps:$4 sm:$0xff]  }
  0x7b   :  { %1940 = vmatpush1.bf16.msra.mxu0 %v2710_v4  ;;  %v2801_v4 = vld [vmem:[%s3943_s1 + $0x5c0] ss:$8 sps:$4 sm:$0xff]  }
  0x7c   :  { %1941 = vmatprep.subr.bf16.mxu0 %v2718_v5  ;;  %1981 = vmatpush1.bf16.msra.mxu1 %v2713_v6  ;;  %v2809_v5 = vld [vmem:[%s3943_s1 + $0x5d4] ss:$8 sps:$4 sm:$0xff]   ;;  %v2804_v6 = vld [vmem:[%s3943_s1 + $0x4d0] ss:$8 sps:$4 sm:$0xff]  }
  0x7d   :  { %1982 = vmatprep.subr.bf16.mxu1 %v2721_v7  ;;  %v2812_v7 = vld [vmem:[%s3943_s1 + $0x4e4] ss:$8 sps:$4 sm:$0xff]  }
  0x7f   :  { %1942 = vmatpush1.bf16.msra.mxu0 %v2716_v8  ;;  %v2807_v8 = vld [vmem:[%s3943_s1 + $0x5d0] ss:$8 sps:$4 sm:$0xff]  }
  0x80   :  { %1993 = vmatprep.subr.bf16.mxu0 %v2726_v9  ;;  %1983 = vmatpush1.bf16.msra.mxu1 %v2719_v10  ;;  %v2815_v9 = vld [vmem:[%s3943_s1 + $0x5e4] ss:$8 sps:$4 sm:$0xff]   ;;  %v2810_v10 = vld [vmem:[%s3943_s1 + $0x4e0] ss:$8 sps:$4 sm:$0xff]  }
  0x81   :  { %2034 = vmatprep.subr.bf16.mxu1 %v2731_v12  ;;  %v2813_v12 = vld [vmem:[%s3943_s1 + $0x5e0] ss:$8 sps:$4 sm:$0xff]  }
  0x82   :  { %1944 = vmatmul.mubr.bf16.vlgmr.msra.gmra.mrb[4].mxu0 %v2222_v11  ;;  %v2818_v11 = vld [vmem:[%s3943_s1 + $0x4f4] ss:$8 sps:$4 sm:$0xff]  }
  0x83   :  { %1994 = vmatpush1.bf16.msra.mxu0 %v2724_v13  ;;  %1985 = vmatmul.mubr.bf16.vlgmr.msra.gmra.mrb[4].mxu1 %v2224_v14  ;;  %v2816_v13 = vld [vmem:[%s3943_s1 + $0x4f0] ss:$8 sps:$4 sm:$0xff]   ;;  %v2821_v14 = vld [vmem:[%s3943_s1 + $0x5f4] ss:$8 sps:$4 sm:$0xff]  }
  0x84   :  { %1995 = vmatprep.subr.bf16.mxu0 %v2734_v15  ;;  %2035 = vmatpush1.bf16.msra.mxu1 %v2729_v16  ;;  %v2826_v15 = vld [vmem:[%s3943_s1 + $0x604] ss:$8 sps:$4 sm:$0xff]   ;;  %v3618_v16 = vld [vmem:[%s3944_s0 + $0x30] sm:$0xff] }
  0x85   :  { %2025 = vmatprep.mubr.bf16.mxu0 %v2227_v20  ;;  %2036 = vmatprep.subr.bf16.mxu1 %v2737_v19  ;;  %v2226_v19 = vcombine.low %v3427_v17, %v3427_v17  ;;  %v2831_v20 = vld [vmem:[%s3943_s1 + $0x704] ss:$8 sps:$4 sm:$0xff]   ;;  %v2228_v17 = vcombine.low %v3440_v21, %v3440_v21  ;;  %v2832_v21 = vld [vmem:[%s3943_s1 + $0x610] ss:$8 sps:$4 sm:$0xff]  }
  0x86   :  { %2066 = vmatprep.mubr.bf16.mxu1 %v2229_v23  ;;  %v2824_v23 = vld [vmem:[%s3943_s1 + $0x600] ss:$8 sps:$4 sm:$0xff]  }
  0x87   :  { %1996 = vmatpush1.bf16.msra.mxu0 %v2732_v18  ;;  %v2819_v18 = vld [vmem:[%s3943_s1 + $0x5f0] ss:$8 sps:$4 sm:$0xff]  }
  0x88   :  { %1997 = vmatprep.subr.bf16.mxu0 %v2740_v22  ;;  %2037 = vmatpush1.bf16.msra.mxu1 %v2735_v24  ;;  %v3631_v22 = vld [vmem:[%s3944_s0 + $0x38] sm:$0xff]  ;;  %v2231_v24 = vcombine.high %v3618_v16, %v3618_v16 }
  0x89   :  { %2038 = vmatprep.subr.bf16.mxu1 %v2743_v25  ;;  %v2834_v25 = vld [vmem:[%s3943_s1 + $0x614] ss:$8 sps:$4 sm:$0xff]  }
  0x8b   :  { %1998 = vmatpush1.bf16.msra.mxu0 %v2738_v26  ;;  %v2829_v26 = vld [vmem:[%s3943_s1 + $0x700] ss:$8 sps:$4 sm:$0xff]  }
  0x8c   :  { %1999 = vmatprep.subr.bf16.mxu0 %v2746_v27  ;;  %2039 = vmatpush1.bf16.msra.mxu1 %v2741_v28  ;;  %v2233_v27 = vcombine.high %v3631_v22, %v3631_v22  ;;  %v2837_v28 = vld [vmem:[%s3943_s1 + $0x714] ss:$8 sps:$4 sm:$0xff]  }
  0x8d   :  { %2040 = vmatprep.subr.bf16.mxu1 %v2749_v29  ;;  %v2840_v29 = vld [vmem:[%s3943_s1 + $0x624] ss:$8 sps:$4 sm:$0xff]  }
  0x8f   :  { %2000 = vmatpush1.bf16.msra.mxu0 %v2744_v30  ;;  %v2835_v30 = vld [vmem:[%s3943_s1 + $0x710] ss:$8 sps:$4 sm:$0xff]  }
  0x90   :  { %2001 = vmatprep.subr.bf16.mxu0 %v2752_v31  ;;  %2041 = vmatpush1.bf16.msra.mxu1 %v2747_v32  ;;  %v2843_v31 = vld [vmem:[%s3943_s1 + $0x724] ss:$8 sps:$4 sm:$0xff]   ;;  %v2838_v32 = vld [vmem:[%s3943_s1 + $0x620] ss:$8 sps:$4 sm:$0xff]  }
  0x91   :  { %2042 = vmatprep.subr.bf16.mxu1 %v2755_v33  ;;  %v2846_v33 = vld [vmem:[%s3943_s1 + $0x634] ss:$8 sps:$4 sm:$0xff]  }
  0x93   :  { %2002 = vmatpush1.bf16.msra.mxu0 %v2750_v34  ;;  %v2841_v34 = vld [vmem:[%s3943_s1 + $0x720] ss:$8 sps:$4 sm:$0xff]  }
  0x94   :  { %2003 = vmatprep.subr.bf16.mxu0 %v2758_v35  ;;  %2043 = vmatpush1.bf16.msra.mxu1 %v2753_v36  ;;  %v2849_v35 = vld [vmem:[%s3943_s1 + $0x734] ss:$8 sps:$4 sm:$0xff]   ;;  %v2844_v36 = vld [vmem:[%s3943_s1 + $0x630] ss:$8 sps:$4 sm:$0xff]  }
  0x95   :  { %2044 = vmatprep.subr.bf16.mxu1 %v2761_v37  ;;  %v2852_v37 = vld [vmem:[%s3943_s1 + $0x644] ss:$8 sps:$4 sm:$0xff]  }
  0x97   :  { %2004 = vmatpush1.bf16.msra.mxu0 %v2756_v38  ;;  %v2847_v38 = vld [vmem:[%s3943_s1 + $0x730] ss:$8 sps:$4 sm:$0xff]  }
  0x98   :  { %2005 = vmatprep.subr.bf16.mxu0 %v2764_v39  ;;  %2045 = vmatpush1.bf16.msra.mxu1 %v2759_v40  ;;  %v2855_v39 = vld [vmem:[%s3943_s1 + $0x744] ss:$8 sps:$4 sm:$0xff]   ;;  %v2850_v40 = vld [vmem:[%s3943_s1 + $0x640] ss:$8 sps:$4 sm:$0xff]  }
  0x99   :  { %2046 = vmatprep.subr.bf16.mxu1 %v2767_v41  ;;  %v2858_v41 = vld [vmem:[%s3943_s1 + $0x654] ss:$8 sps:$4 sm:$0xff]  }
  0x9b   :  { %2006 = vmatpush1.bf16.msra.mxu0 %v2762_v42  ;;  %v2853_v42 = vld [vmem:[%s3943_s1 + $0x740] ss:$8 sps:$4 sm:$0xff]  }
  0x9c   :  { %2007 = vmatprep.subr.bf16.mxu0 %v2770_v43  ;;  %2047 = vmatpush1.bf16.msra.mxu1 %v2765_v44  ;;  %v2861_v43 = vld [vmem:[%s3943_s1 + $0x754] ss:$8 sps:$4 sm:$0xff]   ;;  %v2856_v44 = vld [vmem:[%s3943_s1 + $0x650] ss:$8 sps:$4 sm:$0xff]  }
  0x9d   :  { %2048 = vmatprep.subr.bf16.mxu1 %v2773_v45  ;;  %v2864_v45 = vld [vmem:[%s3943_s1 + $0x664] ss:$8 sps:$4 sm:$0xff]  }
  0x9f   :  { %2008 = vmatpush1.bf16.msra.mxu0 %v2768_v46  ;;  %v2859_v46 = vld [vmem:[%s3943_s1 + $0x750] ss:$8 sps:$4 sm:$0xff]  }
  0xa0   :  { %2009 = vmatprep.subr.bf16.mxu0 %v2776_v47  ;;  %2049 = vmatpush1.bf16.msra.mxu1 %v2771_v48  ;;  %v2867_v47 = vld [vmem:[%s3943_s1 + $0x764] ss:$8 sps:$4 sm:$0xff]   ;;  %v2862_v48 = vld [vmem:[%s3943_s1 + $0x660] ss:$8 sps:$4 sm:$0xff]  }
  0xa1   :  { %2050 = vmatprep.subr.bf16.mxu1 %v2779_v49  ;;  %v2870_v49 = vld [vmem:[%s3943_s1 + $0x674] ss:$8 sps:$4 sm:$0xff]  }
  0xa3   :  { %2010 = vmatpush1.bf16.msra.mxu0 %v2774_v50  ;;  %v2865_v50 = vld [vmem:[%s3943_s1 + $0x760] ss:$8 sps:$4 sm:$0xff]  }
  0xa4   :  { %2011 = vmatprep.subr.bf16.mxu0 %v2782_v51  ;;  %2051 = vmatpush1.bf16.msra.mxu1 %v2777_v52  ;;  %v2873_v51 = vld [vmem:[%s3943_s1 + $0x774] ss:$8 sps:$4 sm:$0xff]   ;;  %v2868_v52 = vld [vmem:[%s3943_s1 + $0x670] ss:$8 sps:$4 sm:$0xff]  }
  0xa5   :  { %2052 = vmatprep.subr.bf16.mxu1 %v2785_v53  ;;  %v2876_v53 = vld [vmem:[%s3943_s1 + $0x684] ss:$8 sps:$4 sm:$0xff]  }
  0xa7   :  { %2012 = vmatpush1.bf16.msra.mxu0 %v2780_v54  ;;  %v2871_v54 = vld [vmem:[%s3943_s1 + $0x770] ss:$8 sps:$4 sm:$0xff]  }
  0xa8   :  { %2013 = vmatprep.subr.bf16.mxu0 %v2788_v55  ;;  %2053 = vmatpush1.bf16.msra.mxu1 %v2783_v56  ;;  %v2879_v55 = vld [vmem:[%s3943_s1 + $0x784] ss:$8 sps:$4 sm:$0xff]   ;;  %v2874_v56 = vld [vmem:[%s3943_s1 + $0x680] ss:$8 sps:$4 sm:$0xff]  }
  0xa9   :  { %2054 = vmatprep.subr.bf16.mxu1 %v2791_v57  ;;  %v2882_v57 = vld [vmem:[%s3943_s1 + $0x694] ss:$8 sps:$4 sm:$0xff]  }
  0xab   :  { %2014 = vmatpush1.bf16.msra.mxu0 %v2786_v58  ;;  %v2877_v58 = vld [vmem:[%s3943_s1 + $0x780] ss:$8 sps:$4 sm:$0xff]  }
  0xac   :  { %2015 = vmatprep.subr.bf16.mxu0 %v2794_v59  ;;  %2055 = vmatpush1.bf16.msra.mxu1 %v2789_v60  ;;  %v2885_v59 = vld [vmem:[%s3943_s1 + $0x794] ss:$8 sps:$4 sm:$0xff]   ;;  %v2880_v60 = vld [vmem:[%s3943_s1 + $0x690] ss:$8 sps:$4 sm:$0xff]  }
  0xad   :  { %2056 = vmatprep.subr.bf16.mxu1 %v2797_v61  ;;  %v2888_v61 = vld [vmem:[%s3943_s1 + $0x6a4] ss:$8 sps:$4 sm:$0xff]  }
  0xaf   :  { %2016 = vmatpush1.bf16.msra.mxu0 %v2792_v62  ;;  %v2883_v62 = vld [vmem:[%s3943_s1 + $0x790] ss:$8 sps:$4 sm:$0xff]  }
  0xb0   :  { %2017 = vmatprep.subr.bf16.mxu0 %v2800_v63  ;;  %2057 = vmatpush1.bf16.msra.mxu1 %v2795_v0  ;;  %v2891_v63 = vld [vmem:[%s3943_s1 + $0x7a4] ss:$8 sps:$4 sm:$0xff]   ;;  %v2886_v0 = vld [vmem:[%s3943_s1 + $0x6a0] ss:$8 sps:$4 sm:$0xff]  }
  0xb1   :  { %2058 = vmatprep.subr.bf16.mxu1 %v2803_v1  ;;  %v2894_v1 = vld [vmem:[%s3943_s1 + $0x6b4] ss:$8 sps:$4 sm:$0xff]  }
  0xb3   :  { %2018 = vmatpush1.bf16.msra.mxu0 %v2798_v2  ;;  %v2889_v2 = vld [vmem:[%s3943_s1 + $0x7a0] ss:$8 sps:$4 sm:$0xff]  }
  0xb4   :  { %2019 = vmatprep.subr.bf16.mxu0 %v2806_v3  ;;  %2059 = vmatpush1.bf16.msra.mxu1 %v2801_v4  ;;  %v2897_v3 = vld [vmem:[%s3943_s1 + $0x7b4] ss:$8 sps:$4 sm:$0xff]   ;;  %v2892_v4 = vld [vmem:[%s3943_s1 + $0x6b0] ss:$8 sps:$4 sm:$0xff]  }
  0xb5   :  { %2060 = vmatprep.subr.bf16.mxu1 %v2809_v5  ;;  %v2900_v5 = vld [vmem:[%s3943_s1 + $0x6c4] ss:$8 sps:$4 sm:$0xff]  }
  0xb7   :  { %2020 = vmatpush1.bf16.msra.mxu0 %v2804_v6  ;;  %v2895_v6 = vld [vmem:[%s3943_s1 + $0x7b0] ss:$8 sps:$4 sm:$0xff]  }
  0xb8   :  { %2021 = vmatprep.subr.bf16.mxu0 %v2812_v7  ;;  %2061 = vmatpush1.bf16.msra.mxu1 %v2807_v8  ;;  %v2903_v7 = vld [vmem:[%s3943_s1 + $0x7c4] ss:$8 sps:$4 sm:$0xff]   ;;  %v2898_v8 = vld [vmem:[%s3943_s1 + $0x6c0] ss:$8 sps:$4 sm:$0xff]  }
  0xb9   :  { %2062 = vmatprep.subr.bf16.mxu1 %v2815_v9  ;;  %v2906_v9 = vld [vmem:[%s3943_s1 + $0x6d4] ss:$8 sps:$4 sm:$0xff]  }
  0xbb   :  { %2022 = vmatpush1.bf16.msra.mxu0 %v2810_v10  ;;  %v2901_v10 = vld [vmem:[%s3943_s1 + $0x7c0] ss:$8 sps:$4 sm:$0xff]  }
  0xbc   :  { %2023 = vmatprep.subr.bf16.mxu0 %v2818_v11  ;;  %2063 = vmatpush1.bf16.msra.mxu1 %v2813_v12  ;;  %v2909_v11 = vld [vmem:[%s3943_s1 + $0x7d4] ss:$8 sps:$4 sm:$0xff]   ;;  %v2904_v12 = vld [vmem:[%s3943_s1 + $0x6d0] ss:$8 sps:$4 sm:$0xff]  }
  0xbd   :  { %2064 = vmatprep.subr.bf16.mxu1 %v2821_v14  ;;  %v2907_v14 = vld [vmem:[%s3943_s1 + $0x7d0] ss:$8 sps:$4 sm:$0xff]  }
  0xbf   :  { %2024 = vmatpush1.bf16.msra.mxu0 %v2816_v13  ;;  %v2912_v13 = vld [vmem:[%s3943_s1 + $0x6e4] ss:$8 sps:$4 sm:$0xff]  }
  0xc0   :  { %2075 = vmatprep.subr.bf16.mxu0 %v2826_v15  ;;  %2065 = vmatpush1.bf16.msra.mxu1 %v2819_v18  ;;  %v2915_v15 = vld [vmem:[%s3943_s1 + $0x7e4] ss:$8 sps:$4 sm:$0xff]   ;;  %v2910_v18 = vld [vmem:[%s3943_s1 + $0x6e0] ss:$8 sps:$4 sm:$0xff]  }
  0xc1   :  { %2116 = vmatprep.subr.bf16.mxu1 %v2831_v20  ;;  %v2913_v20 = vld [vmem:[%s3943_s1 + $0x7e0] ss:$8 sps:$4 sm:$0xff]  }
  0xc2   :  { %2026 = vmatmul.mubr.bf16.vlgmr.msra.gmra.mrb[8].mxu0 %v2226_v19  ;;  %v2918_v19 = vld [vmem:[%s3943_s1 + $0x6f4] ss:$8 sps:$4 sm:$0xff]  }
  0xc3   :  { %2076 = vmatpush1.bf16.msra.mxu0 %v2824_v23  ;;  %2107 = vmatprep.mubr.bf16.mxu0 %v2231_v24  ;;  %v2921_v23 = vld [vmem:[%s3943_s1 + $0x7f4] ss:$8 sps:$4 sm:$0xff]   ;;  %v2916_v24 = vld [vmem:[%s3943_s1 + $0x6f0] ss:$8 sps:$4 sm:$0xff]  }
  0xc4   :  { %2067 = vmatmul.mubr.bf16.vlgmr.msra.gmra.mrb[8].mxu1 %v2228_v17  ;;  %2077 = vmatprep.subr.bf16.mxu0 %v2834_v25  ;;  %v2926_v17 = vld [vmem:[%s3943_s1 + $0x804] ss:$8 sps:$4 sm:$0xff]  }
  0xc5   :  { %2117 = vmatpush1.bf16.msra.mxu1 %v2829_v26  ;;  %2148 = vmatprep.mubr.bf16.mxu1 %v2233_v27  ;;  %v3828_v25 = vld [vmem:[%s3944_s0 + $0x40] sm:$0xff]  ;;  %v2919_v26 = vld [vmem:[%s3943_s1 + $0x7f0] ss:$8 sps:$4 sm:$0xff]   ;;  %v2230_v27 = vcombine.low %v3618_v16, %v3618_v16 }
  0xc6   :  { %2118 = vmatprep.subr.bf16.mxu1 %v2837_v28  ;;  %v2924_v28 = vld [vmem:[%s3943_s1 + $0x800] ss:$8 sps:$4 sm:$0xff]   ;;  %v2929_v16 = vld [vmem:[%s3943_s1 + $0x810] ss:$8 sps:$4 sm:$0xff]  }
  0xc7   :  { %2078 = vmatpush1.bf16.msra.mxu0 %v2832_v21  ;;  %v2235_v21 = vcombine.high %v3828_v25, %v3828_v25 }
  0xc8   :  { %2079 = vmatprep.subr.bf16.mxu0 %v2840_v29  ;;  %v2232_v29 = vcombine.low %v3631_v22, %v3631_v22  ;;  %v2932_v22 = vld [vmem:[%s3943_s1 + $0x820] ss:$8 sps:$4 sm:$0xff]  }
  0xc9   :  { %2119 = vmatpush1.bf16.msra.mxu1 %v2835_v30  ;;  %v2931_v30 = vld [vmem:[%s3943_s1 + $0x814] ss:$8 sps:$4 sm:$0xff]  }
  0xca   :  { %2120 = vmatprep.subr.bf16.mxu1 %v2843_v31  ;;  %v2934_v31 = vld [vmem:[%s3943_s1 + $0x824] ss:$8 sps:$4 sm:$0xff]  }
  0xcb   :  { %2080 = vmatpush1.bf16.msra.mxu0 %v2838_v32  ;;  %v316_v32 = vlaneseq }
  0xcc   :  { %2081 = vmatprep.subr.bf16.mxu0 %v2846_v33  ;;  %v2937_v33 = vld [vmem:[%s3943_s1 + $0x834] ss:$8 sps:$4 sm:$0xff]  }
  0xcd   :  { %2121 = vmatpush1.bf16.msra.mxu1 %v2841_v34  ;;  %v317_v34 = vshrl.u32 %v316_v32, 7 }
  0xce   :  { %2122 = vmatprep.subr.bf16.mxu1 %v2849_v35  ;;  %v2935_v35 = vld [vmem:[%s3943_s1 + $0x830] ss:$8 sps:$4 sm:$0xff]  }
  0xcf   :  { %2082 = vmatpush1.bf16.msra.mxu0 %v2844_v36  ;;  %v2940_v36 = vld [vmem:[%s3943_s1 + $0x844] ss:$8 sps:$4 sm:$0xff]  }
  0xd0   :  { %2083 = vmatprep.subr.bf16.mxu0 %v2852_v37  ;;  %v318_v37 = vsub.s32 0, %v317_v34 }
  0xd1   :  { %2123 = vmatpush1.bf16.msra.mxu1 %v2847_v38  ;;  %v2938_v38 = vld [vmem:[%s3943_s1 + $0x840] ss:$8 sps:$4 sm:$0xff]  }
  0xd2   :  { %2124 = vmatprep.subr.bf16.mxu1 %v2855_v39  ;;  %v314_v39 = vld [vmem:[%s3945_s2] sm:$0x3] }
  0xd3   :  { %2084 = vmatpush1.bf16.msra.mxu0 %v2850_v40  ;;  %v322_v40 = vsub.s32 1, %v317_v34 }
  0xd4   :  { %2085 = vmatprep.subr.bf16.mxu0 %v2858_v41  ;;  %v2943_v41 = vld [vmem:[%s3943_s1 + $0x854] ss:$8 sps:$4 sm:$0xff]  }
  0xd5   :  { %2125 = vmatpush1.bf16.msra.mxu1 %v2853_v42  ;;  %v319_v42 = vrot.slane %v314_v39, %v318_v37 }
  0xd6   :  { %2126 = vmatprep.subr.bf16.mxu1 %v2861_v43  ;;  %v323_v43 = vrot.slane %v314_v39, %v322_v40 }
  0xd7   :  { %2086 = vmatpush1.bf16.msra.mxu0 %v2856_v44  ;;  %v2941_v44 = vld [vmem:[%s3943_s1 + $0x850] ss:$8 sps:$4 sm:$0xff]  }
  0xd8   :  { %2087 = vmatprep.subr.bf16.mxu0 %v2864_v45  ;;  %v2946_v45 = vld [vmem:[%s3943_s1 + $0x864] ss:$8 sps:$4 sm:$0xff]  }
  0xd9   :  { %2127 = vmatpush1.bf16.msra.mxu1 %v2859_v46 }
  0xda   :  { %2128 = vmatprep.subr.bf16.mxu1 %v2867_v47 }
  0xdb   :  { %2088 = vmatpush1.bf16.msra.mxu0 %v2862_v48 }
  0xdc   :  { %2089 = vmatprep.subr.bf16.mxu0 %v2870_v49 }
  0xdd   :  { %2129 = vmatpush1.bf16.msra.mxu1 %v2865_v50 }
  0xde   :  { %2130 = vmatprep.subr.bf16.mxu1 %v2873_v51 }
  0xdf   :  { %2090 = vmatpush1.bf16.msra.mxu0 %v2868_v52  ;;  %v2944_v52 = vld [vmem:[%s3943_s1 + $0x860] ss:$8 sps:$4 sm:$0xff]  }
  0xe0   :  { %2091 = vmatprep.subr.bf16.mxu0 %v2876_v53 }
  0xe1   :  { %2131 = vmatpush1.bf16.msra.mxu1 %v2871_v54 }
  0xe2   :  { %2132 = vmatprep.subr.bf16.mxu1 %v2879_v55 }
  0xe3   :  { %2092 = vmatpush1.bf16.msra.mxu0 %v2874_v56  ;;  %v2949_v56 = vld [vmem:[%s3943_s1 + $0x874] ss:$8 sps:$4 sm:$0xff]  }
  0xe4   :  { %2093 = vmatprep.subr.bf16.mxu0 %v2882_v57 }
  0xe5   :  { %2133 = vmatpush1.bf16.msra.mxu1 %v2877_v58 }
  0xe6   :  { %2134 = vmatprep.subr.bf16.mxu1 %v2885_v59 }
  0xe7   :  { %2094 = vmatpush1.bf16.msra.mxu0 %v2880_v60  ;;  %v2947_v60 = vld [vmem:[%s3943_s1 + $0x870] ss:$8 sps:$4 sm:$0xff]  }
  0xe8   :  { %2095 = vmatprep.subr.bf16.mxu0 %v2888_v61  ;;  %v2952_v61 = vld [vmem:[%s3943_s1 + $0x884] ss:$8 sps:$4 sm:$0xff]  }
  0xe9   :  { %2135 = vmatpush1.bf16.msra.mxu1 %v2883_v62  ;;  %v2950_v62 = vld [vmem:[%s3943_s1 + $0x880] ss:$8 sps:$4 sm:$0xff]  }
  0xea   :  { %2136 = vmatprep.subr.bf16.mxu1 %v2891_v63  ;;  %v2955_v63 = vld [vmem:[%s3943_s1 + $0x894] ss:$8 sps:$4 sm:$0xff]  }
  0xeb   :  { %2096 = vmatpush1.bf16.msra.mxu0 %v2886_v0  ;;  %v2953_v0 = vld [vmem:[%s3943_s1 + $0x890] ss:$8 sps:$4 sm:$0xff]  }
  0xec   :  { %2097 = vmatprep.subr.bf16.mxu0 %v2894_v1  ;;  %v2958_v1 = vld [vmem:[%s3943_s1 + $0x8a4] ss:$8 sps:$4 sm:$0xff]  }
  0xed   :  { %2137 = vmatpush1.bf16.msra.mxu1 %v2889_v2  ;;  %v2956_v2 = vld [vmem:[%s3943_s1 + $0x8a0] ss:$8 sps:$4 sm:$0xff]  }
  0xee   :  { %2138 = vmatprep.subr.bf16.mxu1 %v2897_v3  ;;  %v2961_v3 = vld [vmem:[%s3943_s1 + $0x8b4] ss:$8 sps:$4 sm:$0xff]  }
  0xef   :  { %2098 = vmatpush1.bf16.msra.mxu0 %v2892_v4  ;;  %v2959_v4 = vld [vmem:[%s3943_s1 + $0x8b0] ss:$8 sps:$4 sm:$0xff]  }
  0xf0   :  { %2099 = vmatprep.subr.bf16.mxu0 %v2900_v5  ;;  %v2964_v5 = vld [vmem:[%s3943_s1 + $0x8c4] ss:$8 sps:$4 sm:$0xff]  }
  0xf1   :  { %2139 = vmatpush1.bf16.msra.mxu1 %v2895_v6  ;;  %v2962_v6 = vld [vmem:[%s3943_s1 + $0x8c0] ss:$8 sps:$4 sm:$0xff]  }
  0xf2   :  { %2140 = vmatprep.subr.bf16.mxu1 %v2903_v7  ;;  %v2967_v7 = vld [vmem:[%s3943_s1 + $0x8d4] ss:$8 sps:$4 sm:$0xff]  }
  0xf3   :  { %2100 = vmatpush1.bf16.msra.mxu0 %v2898_v8  ;;  %v2965_v8 = vld [vmem:[%s3943_s1 + $0x8d0] ss:$8 sps:$4 sm:$0xff]  }
  0xf4   :  { %2101 = vmatprep.subr.bf16.mxu0 %v2906_v9  ;;  %v2970_v9 = vld [vmem:[%s3943_s1 + $0x8e4] ss:$8 sps:$4 sm:$0xff]  }
  0xf5   :  { %2141 = vmatpush1.bf16.msra.mxu1 %v2901_v10  ;;  %v2968_v10 = vld [vmem:[%s3943_s1 + $0x8e0] ss:$8 sps:$4 sm:$0xff]  }
  0xf6   :  { %2142 = vmatprep.subr.bf16.mxu1 %v2909_v11  ;;  %v2973_v11 = vld [vmem:[%s3943_s1 + $0x8f4] ss:$8 sps:$4 sm:$0xff]  }
  0xf7   :  { %2102 = vmatpush1.bf16.msra.mxu0 %v2904_v12  ;;  %v2971_v12 = vld [vmem:[%s3943_s1 + $0x8f0] ss:$8 sps:$4 sm:$0xff]  }
  0xf8   :  { %2103 = vmatprep.subr.bf16.mxu0 %v2912_v13  ;;  %v2234_v13 = vcombine.low %v3828_v25, %v3828_v25 }
  0xf9   :  { %2143 = vmatpush1.bf16.msra.mxu1 %v2907_v14 }
  0xfa   :  { %2144 = vmatprep.subr.bf16.mxu1 %v2915_v15 }
  0xfb   :  { %2104 = vmatpush1.bf16.msra.mxu0 %v2910_v18 }
  0xfc   :  { %2105 = vmatprep.subr.bf16.mxu0 %v2918_v19 }
  0xfd   :  { %2145 = vmatpush1.bf16.msra.mxu1 %v2913_v20 }
  0xfe   :  { %2146 = vmatprep.subr.bf16.mxu1 %v2921_v23 }
  0xff   :  { %2106 = vmatpush1.bf16.msra.mxu0 %v2916_v24 }
 0x100   :  { %2157 = vmatprep.subr.bf16.mxu0 %v2926_v17 }
 0x101   :  { %2147 = vmatpush1.bf16.msra.mxu1 %v2919_v26 }
 0x102   :  { %2108 = vmatmul.mubr.bf16.vlgmr.msra.gmra.mrb[12].mxu0 %v2230_v27 }
 0x103   :  { %2158 = vmatpush1.bf16.msra.mxu0 %v2924_v28  ;;  %2189 = vmatprep.mubr.bf16.mxu0 %v2235_v21 }
 0x104   :  { %2149 = vmatmul.mubr.bf16.vlgmr.msra.gmra.mrb[12].mxu1 %v2232_v29  ;;  %2159 = vmatprep.subr.bf16.mxu0 %v2931_v30 }
 0x107   :  { %2160 = vmatpush1.bf16.msra.mxu0 %v2929_v16 }
 0x108   :  { %2161 = vmatprep.subr.bf16.mxu0 %v2934_v31 }
 0x10b   :  { %2162 = vmatpush1.bf16.msra.mxu0 %v2932_v22 }
 0x10c   :  { %2163 = vmatprep.subr.bf16.mxu0 %v2937_v33 }
 0x10f   :  { %2164 = vmatpush1.bf16.msra.mxu0 %v2935_v35 }
 0x110   :  { %2165 = vmatprep.subr.bf16.mxu0 %v2940_v36 }
 0x113   :  { %2166 = vmatpush1.bf16.msra.mxu0 %v2938_v38 }
 0x114   :  { %2167 = vmatprep.subr.bf16.mxu0 %v2943_v41 }
 0x115   :  { %v1863_v46 = vpop.f32.mrb[0].mxu0 }
 0x116   :  { %v1864_v47 = vadd.f32 %v1863_v46, %v319_v42  ;;  %v1865_v48 = vpop.f32.mrb[1].mxu0  ;;  %v1904_v51 = vpop.f32.mrb[0].mxu1 }
 0x117   :  { %v1866_v49 = vadd.f32 %v1865_v48, %v323_v43  ;;  %v1867_v50 = vpop.f32.mrb[2].mxu0  ;;  %2168 = vmatpush1.bf16.msra.mxu0 %v2941_v44  ;;  %v1906_v55 = vpop.f32.mrb[1].mxu1 }
 0x118   :  { %v1905_v53 = vadd.f32 %v1904_v51, %v1864_v47  ;;  %v1868_v54 = vpop.f32.mrb[3].mxu0  ;;  %2169 = vmatprep.subr.bf16.mxu0 %v2946_v45  ;;  %v1908_v58 = vpop.f32.mrb[2].mxu1  ;;  %v2198_v50 = vld [vmem:[%s3946_s3] sm:$0xff] }
 0x119   :  { %v1907_v57 = vadd.f32 %v1906_v55, %v1866_v49  ;;  %v1909_v59 = vpop.f32.mrb[3].mxu1  ;;  %v2199_v51 = vunpack.c.l.bf16 %v2198_v50 }
 0x11b   :  { %2170 = vmatpush1.bf16.msra.mxu0 %v2944_v52 }
 0x11c   :  { %2171 = vmatprep.subr.bf16.mxu0 %v2949_v56 }
 0x11f   :  { %2172 = vmatpush1.bf16.msra.mxu0 %v2947_v60 }
 0x120   :  { %2173 = vmatprep.subr.bf16.mxu0 %v2952_v61 }
 0x123   :  { %2174 = vmatpush1.bf16.msra.mxu0 %v2950_v62 }
 0x124   :  { %2175 = vmatprep.subr.bf16.mxu0 %v2955_v63 }
 0x127   :  { %2176 = vmatpush1.bf16.msra.mxu0 %v2953_v0 }
 0x128   :  { %2177 = vmatprep.subr.bf16.mxu0 %v2958_v1 }
 0x12b   :  { %2178 = vmatpush1.bf16.msra.mxu0 %v2956_v2 }
 0x12c   :  { %2179 = vmatprep.subr.bf16.mxu0 %v2961_v3 }
 0x12f   :  { %2180 = vmatpush1.bf16.msra.mxu0 %v2959_v4 }
 0x130   :  { %2181 = vmatprep.subr.bf16.mxu0 %v2964_v5 }
 0x133   :  { %2182 = vmatpush1.bf16.msra.mxu0 %v2962_v6 }
 0x134   :  { %2183 = vmatprep.subr.bf16.mxu0 %v2967_v7 }
 0x137   :  { %2184 = vmatpush1.bf16.msra.mxu0 %v2965_v8 }
 0x138   :  { %2185 = vmatprep.subr.bf16.mxu0 %v2970_v9 }
 0x13b   :  { %2186 = vmatpush1.bf16.msra.mxu0 %v2968_v10 }
 0x13c   :  { %2187 = vmatprep.subr.bf16.mxu0 %v2973_v11 }
 0x13f   :  { %2188 = vmatpush1.bf16.msra.mxu0 %v2971_v12 }
 0x142   :  { %2190 = vmatmul.mubr.bf16.vlgmr.msra.gmra.mrb[16].mxu0 %v2234_v13 }
 0x155   :  { %v1945_v14 = vpop.f32.mrb[4].mxu0 }
 0x156   :  { %v1946_v15 = vadd.f32 %v1945_v14, %v1905_v53  ;;  %v1947_v18 = vpop.f32.mrb[5].mxu0  ;;  %v1986_v23 = vpop.f32.mrb[4].mxu1  ;;  %v2200_v53 = vunpack.c.h.bf16 %v2198_v50 }
 0x157   :  { %v1948_v19 = vadd.f32 %v1947_v18, %v1907_v57  ;;  %v1949_v20 = vpop.f32.mrb[6].mxu0  ;;  %v1988_v26 = vpop.f32.mrb[5].mxu1 }
 0x158   :  { %v1987_v24 = vadd.f32 %v1986_v23, %v1946_v15  ;;  %v1950_v17 = vpop.f32.mrb[7].mxu0  ;;  %v1990_v28 = vpop.f32.mrb[6].mxu1 }
 0x159   :  { %v1989_v27 = vadd.f32 %v1988_v26, %v1948_v19  ;;  %v1991_v21 = vpop.f32.mrb[7].mxu1 }
 0x195   :  { %v2027_v29 = vpop.f32.mrb[8].mxu0 }
 0x196   :  { %v2028_v30 = vadd.f32 %v2027_v29, %v1987_v24  ;;  %v2029_v16 = vpop.f32.mrb[9].mxu0 }
 0x197   :  { %v2030_v31 = vadd.f32 %v2029_v16, %v1989_v27  ;;  %v2031_v32 = vpop.f32.mrb[10].mxu0  ;;  %v2068_v25 = vpop.f32.mrb[8].mxu1 }
 0x198   :  { %v2069_v22 = vadd.f32 %v2068_v25, %v2028_v30  ;;  %v2032_v33 = vpop.f32.mrb[11].mxu0  ;;  %v2070_v34 = vpop.f32.mrb[9].mxu1 }
 0x199   :  { %v2071_v35 = vadd.f32 %v2070_v34, %v2030_v31  ;;  %v2072_v36 = vpop.f32.mrb[10].mxu1 }
 0x19a   :  { %v2073_v37 = vpop.f32.mrb[11].mxu1 }
 0x1d5   :  { %v2109_v38 = vpop.f32.mrb[12].mxu0 }
 0x1d6   :  { %v2110_v39 = vadd.f32 %v2109_v38, %v2069_v22  ;;  %v2111_v40 = vpop.f32.mrb[13].mxu0 }
 0x1d7   :  { %v2112_v41 = vadd.f32 %v2111_v40, %v2071_v35  ;;  %v2113_v42 = vpop.f32.mrb[14].mxu0  ;;  %v2150_v43 = vpop.f32.mrb[12].mxu1 }
 0x1d8   :  { %v2151_v44 = vadd.f32 %v2150_v43, %v2110_v39  ;;  %v2114_v45 = vpop.f32.mrb[15].mxu0  ;;  %v2152_v46 = vpop.f32.mrb[13].mxu1 }
 0x1d9   :  { %v2153_v47 = vadd.f32 %v2152_v46, %v2112_v41  ;;  %v2154_v48 = vpop.f32.mrb[14].mxu1 }
 0x1da   :  { %v2155_v49 = vpop.f32.mrb[15].mxu1 }
 0x215   :  { %v2191_v52 = vpop.f32.mrb[16].mxu0 }
 0x216   :  { %v2192_v54 = vadd.f32 %v2191_v52, %v2151_v44  ;;  %v2193_v55 = vpop.f32.mrb[17].mxu0 }
 0x217   :  { %v2194_v56 = vadd.f32 %v2193_v55, %v2153_v47  ;;  %v2195_v57 = vpop.f32.mrb[18].mxu0 }
 0x218   :  { %v2201_v58 = vadd.f32 %v2199_v51, %v2192_v54  ;;  %v2196_v59 = vpop.f32.mrb[19].mxu0 }
 0x219   :  { %v2202_v60 = vadd.f32 %v2200_v53, %v2194_v56 }
 0x21a   :  { %v2203_v61 = vmax.f32 %v2201_v58, 0.0 }
 0x21b   :  { %v2204_v62 = vmax.f32 %v2202_v60, 0.0 }
 0x21d   :  { %v2525_v63 = vpack.c.bf16 %v2204_v62, %v2203_v61 }
 0x21f   :  { %2213 = vst [vmem:[%s3947_s4] sm:$0xff] %v2525_v63 }

</bundles_post_ra>
